<compile_context>
chip_gen: v7x
topology: tpu7x:2x2x1
jax: 0.10.0
libtpu: 0.0.40
codegen_flags: <defaults>
</compile_context>

<pallas_src>
import functools

import jax
import jax.numpy as jnp
from jax.experimental import pallas as pl
from jax.experimental.pallas import tpu as pltpu


# ----------------------------- common helpers ------------------------------

_VMEM_LIMIT = 32 * 1024 * 1024
_PAR1 = pltpu.CompilerParams(dimension_semantics=("parallel",),
                             vmem_limit_bytes=_VMEM_LIMIT)


def _round_up(x, m):
    return ((x + m - 1) // m) * m


def _tile_rows(m, cap=1024):
    # Row-tile: multiple of 8 sublanes, capped so double-buffered blocks stay
    # well inside v7x's 64 MiB VMEM.  Partial last blocks are fine (row-wise
    # kernels; OOB rows are masked on store).
    return _round_up(min(cap, m), 8)


def _row_spec(tile, c):
    return pl.BlockSpec((tile, c), lambda i: (i, 0))


def _rep_spec(shape):
    # replicated block (weights / biases): same block on every grid step
    return pl.BlockSpec(shape, lambda i: (0,) * len(shape))


# ----------------------------- Pallas kernels ------------------------------

def _mm_bias_kernel(x_ref, w_ref, b_ref, o_ref):
    y = jnp.dot(x_ref[...], w_ref[...], preferred_element_type=jnp.float32)
    o_ref[...] = (y + b_ref[...]).astype(o_ref.dtype)


def mm_bias(x2d, w, b):
    """(M,K) @ (K,C) + b, M-tiled.  Used for the start 1x1 conv."""
    m, k = x2d.shape
    c = w.shape[1]
    tile = _tile_rows(m)
    return pl.pallas_call(
        _mm_bias_kernel,
        out_shape=jax.ShapeDtypeStruct((m, c), jnp.float32),
        grid=(pl.cdiv(m, tile),),
        in_specs=[_row_spec(tile, k), _rep_spec((k, c)), _rep_spec((1, c))],
        out_specs=_row_spec(tile, c),
        compiler_params=_PAR1,
    )(x2d, w, b.reshape(1, c))


def _tcn_kernel(xa_ref, xb_ref, w0_ref, w1_ref, b_ref,
                sw_ref, sb_ref, sp_ref, gated_ref, skip_ref, *, cd):
    # dilated Conv2d(kernel=(1,2)) taps for filter|gate fused on the N axis,
    # gated activation, skip 1x1 conv and skip accumulation -- one kernel.
    y = (jnp.dot(xa_ref[...], w0_ref[...], preferred_element_type=jnp.float32)
         + jnp.dot(xb_ref[...], w1_ref[...], preferred_element_type=jnp.float32)
         + b_ref[...])
    gated = jnp.tanh(y[:, :cd]) * jax.nn.sigmoid(y[:, cd:])
    gated_ref[...] = gated.astype(gated_ref.dtype)
    s = (jnp.dot(gated, sw_ref[...], preferred_element_type=jnp.float32)
         + sb_ref[...] + sp_ref[...])
    skip_ref[...] = s.astype(skip_ref.dtype)


def gated_tcn_skip(xa2d, xb2d, skip_prev2d, lp):
    m, cin = xa2d.shape
    cd, sc = lp["skip_w"].shape
    tile = _tile_rows(m)
    return pl.pallas_call(
        functools.partial(_tcn_kernel, cd=cd),
        out_shape=(jax.ShapeDtypeStruct((m, cd), jnp.float32),
                   jax.ShapeDtypeStruct((m, sc), jnp.float32)),
        grid=(pl.cdiv(m, tile),),
        in_specs=[_row_spec(tile, cin), _row_spec(tile, cin),
                  _rep_spec((cin, 2 * cd)), _rep_spec((cin, 2 * cd)),
                  _rep_spec((1, 2 * cd)),
                  _rep_spec((cd, sc)), _rep_spec((1, sc)),
                  _row_spec(tile, sc)],
        out_specs=(_row_spec(tile, cd), _row_spec(tile, sc)),
        compiler_params=_PAR1,
    )(xa2d, xb2d, lp["tcn_w0"], lp["tcn_w1"], lp["tcn_b"].reshape(1, 2 * cd),
      lp["skip_w"], lp["skip_b"].reshape(1, sc), skip_prev2d)


def _gcn_bn_kernel(x_ref, adpT_ref, res_ref, w0_ref, w1_ref, w2_ref,
                   b_ref, scale_ref, shift_ref, o_ref):
    # One (batch, time) block: x0 is [N, Cd] with nodes on sublanes.
    x0 = x_ref[0]
    adp_t = adpT_ref[...]
    x1 = jnp.dot(adp_t, x0, preferred_element_type=jnp.float32)   # hop 1
    x2 = jnp.dot(adp_t, x1, preferred_element_type=jnp.float32)   # hop 2
    h = (jnp.dot(x0, w0_ref[...], preferred_element_type=jnp.float32)
         + jnp.dot(x1, w1_ref[...], preferred_element_type=jnp.float32)
         + jnp.dot(x2, w2_ref[...], preferred_element_type=jnp.float32)
         + b_ref[...])
    # TODO(synk): F.dropout after the gconv mlp is identity (eval mode).
    y = (h + res_ref[0]) * scale_ref[...] + shift_ref[...]        # +res, BN
    o_ref[0] = y.astype(o_ref.dtype)


def gcn_residual_bn(x_btnc, adp_t, res_btnc, lp):
    """x_btnc, res_btnc: [B*T, N, C].  Fused nconv x2 + gconv mlp + res + BN."""
    bt, n, cd = x_btnc.shape
    cres = lp["gcn_w0"].shape[1]
    blk3 = lambda c: pl.BlockSpec((1, n, c), lambda i: (i, 0, 0))
    return pl.pallas_call(
        _gcn_bn_kernel,
        out_shape=jax.ShapeDtypeStruct((bt, n, cres), jnp.float32),
        grid=(bt,),
        in_specs=[blk3(cd), _rep_spec((n, n)), blk3(cres),
                  _rep_spec((cd, cres)), _rep_spec((cd, cres)),
                  _rep_spec((cd, cres)),
                  _rep_spec((1, cres)), _rep_spec((1, cres)),
                  _rep_spec((1, cres))],
        out_specs=blk3(cres),
        compiler_params=_PAR1,
    )(x_btnc, adp_t, res_btnc, lp["gcn_w0"], lp["gcn_w1"], lp["gcn_w2"],
      lp["gcn_b"].reshape(1, cres), lp["bn_scale"].reshape(1, cres),
      lp["bn_shift"].reshape(1, cres))


def _adp_kernel(n1_ref, n2_ref, o_ref):
    logits = jnp.maximum(
        jnp.dot(n1_ref[...], n2_ref[...], preferred_element_type=jnp.float32),
        0.0)
    m = jnp.max(logits, axis=1, keepdims=True)
    e = jnp.exp(logits - m)
    o_ref[...] = (e / jnp.sum(e, axis=1, keepdims=True)).astype(o_ref.dtype)


def compute_adaptive_adj(nodevec1, nodevec2):
    """adp = softmax(relu(nodevec1 @ nodevec2), dim=1)."""
    n, r = nodevec1.shape
    return pl.pallas_call(
        _adp_kernel,
        out_shape=jax.ShapeDtypeStruct((n, n), jnp.float32),
        grid=(1,),
        in_specs=[_rep_spec((n, r)), _rep_spec((r, n))],
        out_specs=_rep_spec((n, n)),
        compiler_params=_PAR1,
    )(nodevec1, nodevec2)


def _end_kernel(s_ref, w1_ref, b1_ref, w2_ref, b2_ref, o_ref):
    s = jnp.maximum(s_ref[...], 0.0)
    h = jnp.dot(s, w1_ref[...], preferred_element_type=jnp.float32) + b1_ref[...]
    h = jnp.maximum(h, 0.0)
    y = jnp.dot(h, w2_ref[...], preferred_element_type=jnp.float32) + b2_ref[...]
    o_ref[...] = y.astype(o_ref.dtype)


def end_mlp(skip2d, p):
    """relu(skip) -> end_conv_1 -> relu -> end_conv_2, fused."""
    m, sc = skip2d.shape
    ec = p["end1_w"].shape[1]
    od = p["end2_w"].shape[1]
    tile = _tile_rows(m)
    return pl.pallas_call(
        _end_kernel,
        out_shape=jax.ShapeDtypeStruct((m, od), jnp.float32),
        grid=(pl.cdiv(m, tile),),
        in_specs=[_row_spec(tile, sc), _rep_spec((sc, ec)), _rep_spec((1, ec)),
                  _rep_spec((ec, od)), _rep_spec((1, od))],
        out_specs=_row_spec(tile, od),
        compiler_params=_PAR1,
    )(skip2d, p["end1_w"], p["end1_b"].reshape(1, ec),
      p["end2_w"], p["end2_b"].reshape(1, od))


# ---------------------------- parameter init -------------------------------

def init_params(key, *, num_nodes, in_dim=2, out_dim=12, residual_channels=32,
                dilation_channels=32, skip_channels=64, end_channels=128,
                kernel_size=2, blocks=4, layers=2, dilation=2):
    keys = iter(jax.random.split(key, 256))

    def nrm(shape, scale=0.1):
        return scale * jax.random.normal(next(keys), shape, jnp.float32)

    params = {
        "start_w": nrm((in_dim, residual_channels)),
        "start_b": nrm((residual_channels,)),
        "nodevec1": jax.random.normal(next(keys), (num_nodes, 10), jnp.float32),
        "nodevec2": jax.random.normal(next(keys), (10, num_nodes), jnp.float32),
    }

    eps = 1e-5
    # supports=None, gcn_bool=True, addaptadj=True -> adaptive adjacency only
    # order=2, support_len=1  =>  gconv input = 3 * dilation_channels,
    # stored pre-split into three (Cd, Cres) slabs so the [M, 96] concat is
    # never materialized.
    layers_p, dilations = [], []
    receptive_field = 1
    for _b in range(blocks):
        additional_scope = kernel_size - 1
        new_dilation = 1
        for _l in range(layers):
            lp = {
                # fused dilated-conv weights: [filter | gate] on the out axis,
                # tap 0 (offset 0) and tap 1 (offset +dilation)
                "tcn_w0": nrm((residual_channels, 2 * dilation_channels)),
                "tcn_w1": nrm((residual_channels, 2 * dilation_channels)),
                "tcn_b": nrm((2 * dilation_channels,)),
                "skip_w": nrm((dilation_channels, skip_channels)),
                "skip_b": nrm((skip_channels,)),
                "gcn_w0": nrm((dilation_channels, residual_channels)),
                "gcn_w1": nrm((dilation_channels, residual_channels)),
                "gcn_w2": nrm((dilation_channels, residual_channels)),
                "gcn_b": nrm((residual_channels,)),
            }
            # BatchNorm2d (eval): gamma=1, beta=0, running_mean=0, running_var=1
            gamma = jnp.ones((residual_channels,), jnp.float32)
            beta = jnp.zeros((residual_channels,), jnp.float32)
            rmean = jnp.zeros((residual_channels,), jnp.float32)
            rvar = jnp.ones((residual_channels,), jnp.float32)
            scale = gamma / jnp.sqrt(rvar + eps)
            lp["bn_scale"] = scale
            lp["bn_shift"] = beta - rmean * scale
            layers_p.append(lp)
            dilations.append(new_dilation)
            receptive_field += additional_scope
            additional_scope *= dilation
            new_dilation *= dilation

    params.update(
        layers_p=layers_p,
        end1_w=nrm((skip_channels, end_channels)),
        end1_b=nrm((end_channels,)),
        end2_w=nrm((end_channels, out_dim)),
        end2_b=nrm((out_dim,)),
    )
    config = dict(dilations=dilations, receptive_field=receptive_field,
                  skip_channels=skip_channels)
    return params, config


# ------------------------------- forward ----------------------------------

def graph_wavenet_forward(history_data, params, config):
    """history_data: [B, L, N, C_in].  Returns dict(prediction, representation)."""
    B, L, N, Cin = history_data.shape
    # channel-last activation layout [B, T, N, C]; input is already in it.
    x = history_data
    rf = config["receptive_field"]
    if L < rf:
        x = jnp.pad(x, ((0, 0), (rf - L, 0), (0, 0), (0, 0)))
    T = max(L, rf)

    # start 1x1 conv
    Cres = params["start_w"].shape[1]
    x = mm_bias(x.reshape(B * T * N, Cin),
                params["start_w"], params["start_b"]).reshape(B, T, N, Cres)

    # adaptive adjacency; its transpose drives both propagation hops
    adp = compute_adaptive_adj(params["nodevec1"], params["nodevec2"])
    adp_t = adp.T                                            # tiny [N, N]

    SC = config["skip_channels"]
    skip = None
    for i, d in enumerate(config["dilations"]):
        lp = params["layers_p"][i]
        residual = x                                         # [B, T, N, Cres]
        T = residual.shape[1]
        T_out = T - d
        M = B * T_out * N

        xa = residual[:, :T_out]        # tap 0 of the dilated (1,2) conv
        xb = residual[:, d:]            # tap 1; also == residual[:, -T_out:]

        if skip is None:
            skip_prev2d = jnp.zeros((M, SC), jnp.float32)
        else:
            skip_prev2d = skip[:, -T_out:].reshape(M, SC)

        # fused gated TCN + skip conv + skip accumulation
        gated2d, skip2d = gated_tcn_skip(
            xa.reshape(M, Cres), xb.reshape(M, Cres), skip_prev2d, lp)
        skip = skip2d.reshape(B, T_out, N, SC)

        # fused graph conv (2 hops) + gconv mlp + residual add + eval-BN
        Cd = lp["skip_w"].shape[0]
        x = gcn_residual_bn(
            gated2d.reshape(B * T_out, N, Cd), adp_t,
            xb.reshape(B * T_out, N, Cres), lp).reshape(B, T_out, N, Cres)

    repr_ = skip[:, 0, :, :]                                 # [B, N, skip_ch]

    Tf = skip.shape[1]
    pred2d = end_mlp(skip.reshape(B * Tf * N, SC), params)
    out_dim = params["end2_w"].shape[1]
    pred = jnp.transpose(pred2d.reshape(B, Tf, N, out_dim), (0, 3, 2, 1))
    return {"prediction": pred, "representation": repr_}


# --------------------------------- main ------------------------------------

if __name__ == "__main__":
    B, L, N, C_in = 2, 8, 8, 2
    out_dim = 12

    params, config = init_params(
        jax.random.PRNGKey(0), num_nodes=N, in_dim=C_in, out_dim=out_dim,
        residual_channels=32, dilation_channels=32, skip_channels=64,
        end_channels=128, kernel_size=2, blocks=4, layers=2, dilation=2)

    history = jax.random.normal(jax.random.PRNGKey(0), (B, L, N, C_in),
                                jnp.float32)

    fwd = jax.jit(lambda h: graph_wavenet_forward(h, params, config))
    out = jax.block_until_ready(fwd(history))

    assert out["prediction"].shape == (B, out_dim, N, 1), out["prediction"].shape
    assert out["representation"].shape == (B, N, config["skip_channels"])
    assert jnp.all(jnp.isfinite(out["prediction"]))
    assert jnp.all(jnp.isfinite(out["representation"]))
    print("KERNEL_OK")
</pallas_src>

<mosaic_0001>
module attributes {stable_mosaic.version = 11 : i64} {
  func.func @_mm_bias_kernel(%arg0: i32, %arg1: memref<208x2xf32, #tpu.memory_space<vmem>>, %arg2: memref<2x32xf32, #tpu.memory_space<vmem>>, %arg3: memref<1x32xf32, #tpu.memory_space<vmem>>, %arg4: memref<208x32xf32, #tpu.memory_space<vmem>>) attributes {dimension_semantics = [#tpu.dimension_semantics<parallel>], iteration_bounds = array<i64: 1>, scalar_prefetch = 0 : i64, scratch_operands = 0 : i64, tpu.core_type = #tpu.core_type<tc>, window_params = [{transform_indices = @transform_0, window_bounds = array<i64: 208, 2>}, {pipeline_mode = #tpu.pipeline_mode<synchronous>, transform_indices = @transform_1, window_bounds = array<i64: 2, 32>}, {pipeline_mode = #tpu.pipeline_mode<synchronous>, transform_indices = @transform_2, window_bounds = array<i64: 1, 32>}, {transform_indices = @transform_3, window_bounds = array<i64: 208, 32>}]} {
    %c0 = arith.constant 0 : index
    %c0_0 = arith.constant 0 : index
    %0 = vector.load %arg1[%c0, %c0_0] : memref<208x2xf32, #tpu.memory_space<vmem>>, vector<208x2xf32>
    %c0_1 = arith.constant 0 : index
    %c0_2 = arith.constant 0 : index
    %1 = vector.load %arg2[%c0_1, %c0_2] : memref<2x32xf32, #tpu.memory_space<vmem>>, vector<2x32xf32>
    %cst = arith.constant dense<0.000000e+00> : vector<208x32xf32>
    %2 = tpu.matmul %0, %1, %cst {dimension_numbers = #tpu.dot_dimension_numbers<[1], [0], [0], [1], [0, 0, 1, 1], [], []>} : vector<208x2xf32>, vector<2x32xf32>, vector<208x32xf32> -> vector<208x32xf32>
    %c0_3 = arith.constant 0 : index
    %c0_4 = arith.constant 0 : index
    %3 = vector.load %arg3[%c0_3, %c0_4] : memref<1x32xf32, #tpu.memory_space<vmem>>, vector<1x32xf32>
    %4 = vector.broadcast %3 : vector<1x32xf32> to vector<208x32xf32>
    %5 = arith.addf %2, %4 : vector<208x32xf32>
    %c0_5 = arith.constant 0 : index
    %c0_6 = arith.constant 0 : index
    %6 = vector.load %arg4[%c0_5, %c0_6] : memref<208x32xf32, #tpu.memory_space<vmem>>, vector<208x32xf32>
    tpu.vector_store %arg4[%c0_5, %c0_6], %5 {strides = array<i32>} : memref<208x32xf32, #tpu.memory_space<vmem>>, vector<208x32xf32>,
    return
  }
  func.func @transform_0(%arg0: i32) -> (i32, i32) {
    %c0_i32 = arith.constant 0 : i32
    %c0_i32_0 = arith.constant 0 : i32
    return %arg0, %c0_i32 : i32, i32
  }
  func.func @transform_1(%arg0: i32) -> (i32, i32) {
    %c0_i32 = arith.constant 0 : i32
    %c0_i32_0 = arith.constant 0 : i32
    %c0_i32_1 = arith.constant 0 : i32
    return %c0_i32, %c0_i32_0 : i32, i32
  }
  func.func @transform_2(%arg0: i32) -> (i32, i32) {
    %c0_i32 = arith.constant 0 : i32
    %c0_i32_0 = arith.constant 0 : i32
    %c0_i32_1 = arith.constant 0 : i32
    return %c0_i32, %c0_i32_0 : i32, i32
  }
  func.func @transform_3(%arg0: i32) -> (i32, i32) {
    %c0_i32 = arith.constant 0 : i32
    %c0_i32_0 = arith.constant 0 : i32
    return %arg0, %c0_i32 : i32, i32
  }
}

module attributes {stable_mosaic.version = 11 : i64} {
  func.func @_adp_kernel(%arg0: i32, %arg1: memref<8x10xf32, #tpu.memory_space<vmem>>, %arg2: memref<10x8xf32, #tpu.memory_space<vmem>>, %arg3: memref<8x8xf32, #tpu.memory_space<vmem>>) attributes {dimension_semantics = [#tpu.dimension_semantics<parallel>], iteration_bounds = array<i64: 1>, scalar_prefetch = 0 : i64, scratch_operands = 0 : i64, tpu.core_type = #tpu.core_type<tc>, window_params = [{pipeline_mode = #tpu.pipeline_mode<synchronous>, transform_indices = @transform_0, window_bounds = array<i64: 8, 10>}, {pipeline_mode = #tpu.pipeline_mode<synchronous>, transform_indices = @transform_1, window_bounds = array<i64: 10, 8>}, {pipeline_mode = #tpu.pipeline_mode<synchronous>, transform_indices = @transform_2, window_bounds = array<i64: 8, 8>}]} {
    %c0 = arith.constant 0 : index
    %c0_0 = arith.constant 0 : index
    %0 = vector.load %arg1[%c0, %c0_0] : memref<8x10xf32, #tpu.memory_space<vmem>>, vector<8x10xf32>
    %c0_1 = arith.constant 0 : index
    %c0_2 = arith.constant 0 : index
    %1 = vector.load %arg2[%c0_1, %c0_2] : memref<10x8xf32, #tpu.memory_space<vmem>>, vector<10x8xf32>
    %cst = arith.constant dense<0.000000e+00> : vector<8x8xf32>
    %2 = tpu.matmul %0, %1, %cst {dimension_numbers = #tpu.dot_dimension_numbers<[1], [0], [0], [1], [0, 0, 1, 1], [], []>} : vector<8x10xf32>, vector<10x8xf32>, vector<8x8xf32> -> vector<8x8xf32>
    %cst_3 = arith.constant 0.000000e+00 : f32
    %3 = vector.broadcast %cst_3 : f32 to vector<8x8xf32>
    %4 = arith.maximumf %2, %3 : vector<8x8xf32>
    %cst_4 = arith.constant dense<0xFF800000> : vector<8xf32>
    %5 = vector.multi_reduction <maximumf>, %4, %cst_4 [1] : vector<8x8xf32> to vector<8xf32>
    %6 = vector.shape_cast %5 : vector<8xf32> to vector<8x1xf32>
    %7 = vector.broadcast %6 : vector<8x1xf32> to vector<8x8xf32>
    %8 = arith.subf %4, %7 : vector<8x8xf32>
    %9 = math.exp %8 : vector<8x8xf32>
    %cst_5 = arith.constant dense<0.000000e+00> : vector<8xf32>
    %10 = vector.multi_reduction <add>, %9, %cst_5 [1] : vector<8x8xf32> to vector<8xf32>
    %11 = vector.shape_cast %10 : vector<8xf32> to vector<8x1xf32>
    %12 = vector.broadcast %11 : vector<8x1xf32> to vector<8x8xf32>
    %13 = arith.divf %9, %12 : vector<8x8xf32>
    %c0_6 = arith.constant 0 : index
    %c0_7 = arith.constant 0 : index
    %14 = vector.load %arg3[%c0_6, %c0_7] : memref<8x8xf32, #tpu.memory_space<vmem>>, vector<8x8xf32>
    tpu.vector_store %arg3[%c0_6, %c0_7], %13 {strides = array<i32>} : memref<8x8xf32, #tpu.memory_space<vmem>>, vector<8x8xf32>,
    return
  }
  func.func @transform_0(%arg0: i32) -> (i32, i32) {
    %c0_i32 = arith.constant 0 : i32
    %c0_i32_0 = arith.constant 0 : i32
    %c0_i32_1 = arith.constant 0 : i32
    return %c0_i32, %c0_i32_0 : i32, i32
  }
  func.func @transform_1(%arg0: i32) -> (i32, i32) {
    %c0_i32 = arith.constant 0 : i32
    %c0_i32_0 = arith.constant 0 : i32
    %c0_i32_1 = arith.constant 0 : i32
    return %c0_i32, %c0_i32_0 : i32, i32
  }
  func.func @transform_2(%arg0: i32) -> (i32, i32) {
    %c0_i32 = arith.constant 0 : i32
    %c0_i32_0 = arith.constant 0 : i32
    %c0_i32_1 = arith.constant 0 : i32
    return %c0_i32, %c0_i32_0 : i32, i32
  }
}

module attributes {stable_mosaic.version = 11 : i64} {
  func.func @_tcn_kernel(%arg0: i32, %arg1: memref<192x32xf32, #tpu.memory_space<vmem>>, %arg2: memref<192x32xf32, #tpu.memory_space<vmem>>, %arg3: memref<32x64xf32, #tpu.memory_space<vmem>>, %arg4: memref<32x64xf32, #tpu.memory_space<vmem>>, %arg5: memref<1x64xf32, #tpu.memory_space<vmem>>, %arg6: memref<32x64xf32, #tpu.memory_space<vmem>>, %arg7: memref<1x64xf32, #tpu.memory_space<vmem>>, %arg8: memref<192x64xf32, #tpu.memory_space<vmem>>, %arg9: memref<192x32xf32, #tpu.memory_space<vmem>>, %arg10: memref<192x64xf32, #tpu.memory_space<vmem>>) attributes {dimension_semantics = [#tpu.dimension_semantics<parallel>], iteration_bounds = array<i64: 1>, scalar_prefetch = 0 : i64, scratch_operands = 0 : i64, tpu.core_type = #tpu.core_type<tc>, window_params = [{transform_indices = @transform_0, window_bounds = array<i64: 192, 32>}, {transform_indices = @transform_1, window_bounds = array<i64: 192, 32>}, {pipeline_mode = #tpu.pipeline_mode<synchronous>, transform_indices = @transform_2, window_bounds = array<i64: 32, 64>}, {pipeline_mode = #tpu.pipeline_mode<synchronous>, transform_indices = @transform_3, window_bounds = array<i64: 32, 64>}, {pipeline_mode = #tpu.pipeline_mode<synchronous>, transform_indices = @transform_4, window_bounds = array<i64: 1, 64>}, {pipeline_mode = #tpu.pipeline_mode<synchronous>, transform_indices = @transform_5, window_bounds = array<i64: 32, 64>}, {pipeline_mode = #tpu.pipeline_mode<synchronous>, transform_indices = @transform_6, window_bounds = array<i64: 1, 64>}, {transform_indices = @transform_7, window_bounds = array<i64: 192, 64>}, {transform_indices = @transform_8, window_bounds = array<i64: 192, 32>}, {transform_indices = @transform_9, window_bounds = array<i64: 192, 64>}]} {
    %c0 = arith.constant 0 : index
    %c0_0 = arith.constant 0 : index
    %0 = vector.load %arg1[%c0, %c0_0] : memref<192x32xf32, #tpu.memory_space<vmem>>, vector<192x32xf32>
    %c0_1 = arith.constant 0 : index
    %c0_2 = arith.constant 0 : index
    %1 = vector.load %arg3[%c0_1, %c0_2] : memref<32x64xf32, #tpu.memory_space<vmem>>, vector<32x64xf32>
    %cst = arith.constant dense<0.000000e+00> : vector<192x64xf32>
    %2 = tpu.matmul %0, %1, %cst {dimension_numbers = #tpu.dot_dimension_numbers<[1], [0], [0], [1], [0, 0, 1, 1], [], []>} : vector<192x32xf32>, vector<32x64xf32>, vector<192x64xf32> -> vector<192x64xf32>
    %c0_3 = arith.constant 0 : index
    %c0_4 = arith.constant 0 : index
    %3 = vector.load %arg2[%c0_3, %c0_4] : memref<192x32xf32, #tpu.memory_space<vmem>>, vector<192x32xf32>
    %c0_5 = arith.constant 0 : index
    %c0_6 = arith.constant 0 : index
    %4 = vector.load %arg4[%c0_5, %c0_6] : memref<32x64xf32, #tpu.memory_space<vmem>>, vector<32x64xf32>
    %cst_7 = arith.constant dense<0.000000e+00> : vector<192x64xf32>
    %5 = tpu.matmul %3, %4, %cst_7 {dimension_numbers = #tpu.dot_dimension_numbers<[1], [0], [0], [1], [0, 0, 1, 1], [], []>} : vector<192x32xf32>, vector<32x64xf32>, vector<192x64xf32> -> vector<192x64xf32>
    %6 = arith.addf %2, %5 : vector<192x64xf32>
    %c0_8 = arith.constant 0 : index
    %c0_9 = arith.constant 0 : index
    %7 = vector.load %arg5[%c0_8, %c0_9] : memref<1x64xf32, #tpu.memory_space<vmem>>, vector<1x64xf32>
    %8 = vector.broadcast %7 : vector<1x64xf32> to vector<192x64xf32>
    %9 = arith.addf %6, %8 : vector<192x64xf32>
    %10 = vector.extract_strided_slice %9 {offsets = [0, 0], sizes = [192, 32], strides = [1, 1]} : vector<192x64xf32> to vector<192x32xf32>
    %11 = math.tanh %10 : vector<192x32xf32>
    %12 = vector.extract_strided_slice %9 {offsets = [0, 32], sizes = [192, 32], strides = [1, 1]} : vector<192x64xf32> to vector<192x32xf32>
    %13 = arith.negf %12 : vector<192x32xf32>
    %14 = math.exp %13 : vector<192x32xf32>
    %cst_10 = arith.constant 1.000000e+00 : f32
    %15 = vector.broadcast %cst_10 : f32 to vector<192x32xf32>
    %16 = arith.addf %15, %14 : vector<192x32xf32>
    %17 = arith.divf %15, %16 : vector<192x32xf32>
    %18 = arith.mulf %11, %17 : vector<192x32xf32>
    %c0_11 = arith.constant 0 : index
    %c0_12 = arith.constant 0 : index
    %19 = vector.load %arg9[%c0_11, %c0_12] : memref<192x32xf32, #tpu.memory_space<vmem>>, vector<192x32xf32>
    tpu.vector_store %arg9[%c0_11, %c0_12], %18 {strides = array<i32>} : memref<192x32xf32, #tpu.memory_space<vmem>>, vector<192x32xf32>,
    %c0_13 = arith.constant 0 : index
    %c0_14 = arith.constant 0 : index
    %20 = vector.load %arg6[%c0_13, %c0_14] : memref<32x64xf32, #tpu.memory_space<vmem>>, vector<32x64xf32>
    %cst_15 = arith.constant dense<0.000000e+00> : vector<192x64xf32>
    %21 = tpu.matmul %18, %20, %cst_15 {dimension_numbers = #tpu.dot_dimension_numbers<[1], [0], [0], [1], [0, 0, 1, 1], [], []>} : vector<192x32xf32>, vector<32x64xf32>, vector<192x64xf32> -> vector<192x64xf32>
    %c0_16 = arith.constant 0 : index
    %c0_17 = arith.constant 0 : index
    %22 = vector.load %arg7[%c0_16, %c0_17] : memref<1x64xf32, #tpu.memory_space<vmem>>, vector<1x64xf32>
    %23 = vector.broadcast %22 : vector<1x64xf32> to vector<192x64xf32>
    %24 = arith.addf %21, %23 : vector<192x64xf32>
    %c0_18 = arith.constant 0 : index
    %c0_19 = arith.constant 0 : index
    %25 = vector.load %arg8[%c0_18, %c0_19] : memref<192x64xf32, #tpu.memory_space<vmem>>, vector<192x64xf32>
    %26 = arith.addf %24, %25 : vector<192x64xf32>
    %c0_20 = arith.constant 0 : index
    %c0_21 = arith.constant 0 : index
    %27 = vector.load %arg10[%c0_20, %c0_21] : memref<192x64xf32, #tpu.memory_space<vmem>>, vector<192x64xf32>
    tpu.vector_store %arg10[%c0_20, %c0_21], %26 {strides = array<i32>} : memref<192x64xf32, #tpu.memory_space<vmem>>, vector<192x64xf32>,
    return
  }
  func.func @transform_0(%arg0: i32) -> (i32, i32) {
    %c0_i32 = arith.constant 0 : i32
    %c0_i32_0 = arith.constant 0 : i32
    return %arg0, %c0_i32 : i32, i32
  }
  func.func @transform_1(%arg0: i32) -> (i32, i32) {
    %c0_i32 = arith.constant 0 : i32
    %c0_i32_0 = arith.constant 0 : i32
    return %arg0, %c0_i32 : i32, i32
  }
  func.func @transform_2(%arg0: i32) -> (i32, i32) {
    %c0_i32 = arith.constant 0 : i32
    %c0_i32_0 = arith.constant 0 : i32
    %c0_i32_1 = arith.constant 0 : i32
    return %c0_i32, %c0_i32_0 : i32, i32
  }
  func.func @transform_3(%arg0: i32) -> (i32, i32) {
    %c0_i32 = arith.constant 0 : i32
    %c0_i32_0 = arith.constant 0 : i32
    %c0_i32_1 = arith.constant 0 : i32
    return %c0_i32, %c0_i32_0 : i32, i32
  }
  func.func @transform_4(%arg0: i32) -> (i32, i32) {
    %c0_i32 = arith.constant 0 : i32
    %c0_i32_0 = arith.constant 0 : i32
    %c0_i32_1 = arith.constant 0 : i32
    return %c0_i32, %c0_i32_0 : i32, i32
  }
  func.func @transform_5(%arg0: i32) -> (i32, i32) {
    %c0_i32 = arith.constant 0 : i32
    %c0_i32_0 = arith.constant 0 : i32
    %c0_i32_1 = arith.constant 0 : i32
    return %c0_i32, %c0_i32_0 : i32, i32
  }
  func.func @transform_6(%arg0: i32) -> (i32, i32) {
    %c0_i32 = arith.constant 0 : i32
    %c0_i32_0 = arith.constant 0 : i32
    %c0_i32_1 = arith.constant 0 : i32
    return %c0_i32, %c0_i32_0 : i32, i32
  }
  func.func @transform_7(%arg0: i32) -> (i32, i32) {
    %c0_i32 = arith.constant 0 : i32
    %c0_i32_0 = arith.constant 0 : i32
    return %arg0, %c0_i32 : i32, i32
  }
  func.func @transform_8(%arg0: i32) -> (i32, i32) {
    %c0_i32 = arith.constant 0 : i32
    %c0_i32_0 = arith.constant 0 : i32
    return %arg0, %c0_i32 : i32, i32
  }
  func.func @transform_9(%arg0: i32) -> (i32, i32) {
    %c0_i32 = arith.constant 0 : i32
    %c0_i32_0 = arith.constant 0 : i32
    return %arg0, %c0_i32 : i32, i32
  }
}

module attributes {stable_mosaic.version = 11 : i64} {
  func.func @_gcn_bn_kernel(%arg0: i32, %arg1: memref<1x8x32xf32, #tpu.memory_space<vmem>>, %arg2: memref<8x8xf32, #tpu.memory_space<vmem>>, %arg3: memref<1x8x32xf32, #tpu.memory_space<vmem>>, %arg4: memref<32x32xf32, #tpu.memory_space<vmem>>, %arg5: memref<32x32xf32, #tpu.memory_space<vmem>>, %arg6: memref<32x32xf32, #tpu.memory_space<vmem>>, %arg7: memref<1x32xf32, #tpu.memory_space<vmem>>, %arg8: memref<1x32xf32, #tpu.memory_space<vmem>>, %arg9: memref<1x32xf32, #tpu.memory_space<vmem>>, %arg10: memref<1x8x32xf32, #tpu.memory_space<vmem>>) attributes {dimension_semantics = [#tpu.dimension_semantics<parallel>], iteration_bounds = array<i64: 24>, scalar_prefetch = 0 : i64, scratch_operands = 0 : i64, tpu.core_type = #tpu.core_type<tc>, window_params = [{transform_indices = @transform_0, window_bounds = array<i64: 1, 8, 32>}, {pipeline_mode = #tpu.pipeline_mode<synchronous>, transform_indices = @transform_1, window_bounds = array<i64: 8, 8>}, {transform_indices = @transform_2, window_bounds = array<i64: 1, 8, 32>}, {pipeline_mode = #tpu.pipeline_mode<synchronous>, transform_indices = @transform_3, window_bounds = array<i64: 32, 32>}, {pipeline_mode = #tpu.pipeline_mode<synchronous>, transform_indices = @transform_4, window_bounds = array<i64: 32, 32>}, {pipeline_mode = #tpu.pipeline_mode<synchronous>, transform_indices = @transform_5, window_bounds = array<i64: 32, 32>}, {pipeline_mode = #tpu.pipeline_mode<synchronous>, transform_indices = @transform_6, window_bounds = array<i64: 1, 32>}, {pipeline_mode = #tpu.pipeline_mode<synchronous>, transform_indices = @transform_7, window_bounds = array<i64: 1, 32>}, {pipeline_mode = #tpu.pipeline_mode<synchronous>, transform_indices = @transform_8, window_bounds = array<i64: 1, 32>}, {transform_indices = @transform_9, window_bounds = array<i64: 1, 8, 32>}]} {
    %c0 = arith.constant 0 : index
    %c0_0 = arith.constant 0 : index
    %c0_1 = arith.constant 0 : index
    %0 = vector.load %arg1[%c0, %c0_0, %c0_1] : memref<1x8x32xf32, #tpu.memory_space<vmem>>, vector<1x8x32xf32>
    %1 = vector.shape_cast %0 : vector<1x8x32xf32> to vector<8x32xf32>
    %c0_2 = arith.constant 0 : index
    %c0_3 = arith.constant 0 : index
    %2 = vector.load %arg2[%c0_2, %c0_3] : memref<8x8xf32, #tpu.memory_space<vmem>>, vector<8x8xf32>
    %cst = arith.constant dense<0.000000e+00> : vector<8x32xf32>
    %3 = tpu.matmul %2, %1, %cst {dimension_numbers = #tpu.dot_dimension_numbers<[1], [0], [0], [1], [0, 0, 1, 1], [], []>} : vector<8x8xf32>, vector<8x32xf32>, vector<8x32xf32> -> vector<8x32xf32>
    %cst_4 = arith.constant dense<0.000000e+00> : vector<8x32xf32>
    %4 = tpu.matmul %2, %3, %cst_4 {dimension_numbers = #tpu.dot_dimension_numbers<[1], [0], [0], [1], [0, 0, 1, 1], [], []>} : vector<8x8xf32>, vector<8x32xf32>, vector<8x32xf32> -> vector<8x32xf32>
    %c0_5 = arith.constant 0 : index
    %c0_6 = arith.constant 0 : index
    %5 = vector.load %arg4[%c0_5, %c0_6] : memref<32x32xf32, #tpu.memory_space<vmem>>, vector<32x32xf32>
    %cst_7 = arith.constant dense<0.000000e+00> : vector<8x32xf32>
    %6 = tpu.matmul %1, %5, %cst_7 {dimension_numbers = #tpu.dot_dimension_numbers<[1], [0], [0], [1], [0, 0, 1, 1], [], []>} : vector<8x32xf32>, vector<32x32xf32>, vector<8x32xf32> -> vector<8x32xf32>
    %c0_8 = arith.constant 0 : index
    %c0_9 = arith.constant 0 : index
    %7 = vector.load %arg5[%c0_8, %c0_9] : memref<32x32xf32, #tpu.memory_space<vmem>>, vector<32x32xf32>
    %cst_10 = arith.constant dense<0.000000e+00> : vector<8x32xf32>
    %8 = tpu.matmul %3, %7, %cst_10 {dimension_numbers = #tpu.dot_dimension_numbers<[1], [0], [0], [1], [0, 0, 1, 1], [], []>} : vector<8x32xf32>, vector<32x32xf32>, vector<8x32xf32> -> vector<8x32xf32>
    %9 = arith.addf %6, %8 : vector<8x32xf32>
    %c0_11 = arith.constant 0 : index
    %c0_12 = arith.constant 0 : index
    %10 = vector.load %arg6[%c0_11, %c0_12] : memref<32x32xf32, #tpu.memory_space<vmem>>, vector<32x32xf32>
    %cst_13 = arith.constant dense<0.000000e+00> : vector<8x32xf32>
    %11 = tpu.matmul %4, %10, %cst_13 {dimension_numbers = #tpu.dot_dimension_numbers<[1], [0], [0], [1], [0, 0, 1, 1], [], []>} : vector<8x32xf32>, vector<32x32xf32>, vector<8x32xf32> -> vector<8x32xf32>
    %12 = arith.addf %9, %11 : vector<8x32xf32>
    %c0_14 = arith.constant 0 : index
    %c0_15 = arith.constant 0 : index
    %13 = vector.load %arg7[%c0_14, %c0_15] : memref<1x32xf32, #tpu.memory_space<vmem>>, vector<1x32xf32>
    %14 = vector.broadcast %13 : vector<1x32xf32> to vector<8x32xf32>
    %15 = arith.addf %12, %14 : vector<8x32xf32>
    %c0_16 = arith.constant 0 : index
    %c0_17 = arith.constant 0 : index
    %c0_18 = arith.constant 0 : index
    %16 = vector.load %arg3[%c0_16, %c0_17, %c0_18] : memref<1x8x32xf32, #tpu.memory_space<vmem>>, vector<1x8x32xf32>
    %17 = vector.shape_cast %16 : vector<1x8x32xf32> to vector<8x32xf32>
    %18 = arith.addf %15, %17 : vector<8x32xf32>
    %c0_19 = arith.constant 0 : index
    %c0_20 = arith.constant 0 : index
    %19 = vector.load %arg8[%c0_19, %c0_20] : memref<1x32xf32, #tpu.memory_space<vmem>>, vector<1x32xf32>
    %20 = vector.broadcast %19 : vector<1x32xf32> to vector<8x32xf32>
    %21 = arith.mulf %18, %20 : vector<8x32xf32>
    %c0_21 = arith.constant 0 : index
    %c0_22 = arith.constant 0 : index
    %22 = vector.load %arg9[%c0_21, %c0_22] : memref<1x32xf32, #tpu.memory_space<vmem>>, vector<1x32xf32>
    %23 = vector.broadcast %22 : vector<1x32xf32> to vector<8x32xf32>
    %24 = arith.addf %21, %23 : vector<8x32xf32>
    %c0_23 = arith.constant 0 : index
    %c0_24 = arith.constant 0 : index
    %c0_25 = arith.constant 0 : index
    %25 = vector.load %arg10[%c0_23, %c0_24, %c0_25] : memref<1x8x32xf32, #tpu.memory_space<vmem>>, vector<1x8x32xf32>
    %26 = vector.shape_cast %25 : vector<1x8x32xf32> to vector<8x32xf32>
    %27 = vector.shape_cast %24 : vector<8x32xf32> to vector<1x8x32xf32>
    tpu.vector_store %arg10[%c0_23, %c0_24, %c0_25], %27 {strides = array<i32>} : memref<1x8x32xf32, #tpu.memory_space<vmem>>, vector<1x8x32xf32>,
    return
  }
  func.func @transform_0(%arg0: i32) -> (i32, i32, i32) {
    %c0_i32 = arith.constant 0 : i32
    %c0_i32_0 = arith.constant 0 : i32
    %c0_i32_1 = arith.constant 0 : i32
    return %arg0, %c0_i32, %c0_i32_0 : i32, i32, i32
  }
  func.func @transform_1(%arg0: i32) -> (i32, i32) {
    %c0_i32 = arith.constant 0 : i32
    %c0_i32_0 = arith.constant 0 : i32
    %c0_i32_1 = arith.constant 0 : i32
    return %c0_i32, %c0_i32_0 : i32, i32
  }
  func.func @transform_2(%arg0: i32) -> (i32, i32, i32) {
    %c0_i32 = arith.constant 0 : i32
    %c0_i32_0 = arith.constant 0 : i32
    %c0_i32_1 = arith.constant 0 : i32
    return %arg0, %c0_i32, %c0_i32_0 : i32, i32, i32
  }
  func.func @transform_3(%arg0: i32) -> (i32, i32) {
    %c0_i32 = arith.constant 0 : i32
    %c0_i32_0 = arith.constant 0 : i32
    %c0_i32_1 = arith.constant 0 : i32
    return %c0_i32, %c0_i32_0 : i32, i32
  }
  func.func @transform_4(%arg0: i32) -> (i32, i32) {
    %c0_i32 = arith.constant 0 : i32
    %c0_i32_0 = arith.constant 0 : i32
    %c0_i32_1 = arith.constant 0 : i32
    return %c0_i32, %c0_i32_0 : i32, i32
  }
  func.func @transform_5(%arg0: i32) -> (i32, i32) {
    %c0_i32 = arith.constant 0 : i32
    %c0_i32_0 = arith.constant 0 : i32
    %c0_i32_1 = arith.constant 0 : i32
    return %c0_i32, %c0_i32_0 : i32, i32
  }
  func.func @transform_6(%arg0: i32) -> (i32, i32) {
    %c0_i32 = arith.constant 0 : i32
    %c0_i32_0 = arith.constant 0 : i32
    %c0_i32_1 = arith.constant 0 : i32
    return %c0_i32, %c0_i32_0 : i32, i32
  }
  func.func @transform_7(%arg0: i32) -> (i32, i32) {
    %c0_i32 = arith.constant 0 : i32
    %c0_i32_0 = arith.constant 0 : i32
    %c0_i32_1 = arith.constant 0 : i32
    return %c0_i32, %c0_i32_0 : i32, i32
  }
  func.func @transform_8(%arg0: i32) -> (i32, i32) {
    %c0_i32 = arith.constant 0 : i32
    %c0_i32_0 = arith.constant 0 : i32
    %c0_i32_1 = arith.constant 0 : i32
    return %c0_i32, %c0_i32_0 : i32, i32
  }
  func.func @transform_9(%arg0: i32) -> (i32, i32, i32) {
    %c0_i32 = arith.constant 0 : i32
    %c0_i32_0 = arith.constant 0 : i32
    %c0_i32_1 = arith.constant 0 : i32
    return %arg0, %c0_i32, %c0_i32_0 : i32, i32, i32
  }
}

module attributes {stable_mosaic.version = 11 : i64} {
  func.func @_tcn_kernel(%arg0: i32, %arg1: memref<160x32xf32, #tpu.memory_space<vmem>>, %arg2: memref<160x32xf32, #tpu.memory_space<vmem>>, %arg3: memref<32x64xf32, #tpu.memory_space<vmem>>, %arg4: memref<32x64xf32, #tpu.memory_space<vmem>>, %arg5: memref<1x64xf32, #tpu.memory_space<vmem>>, %arg6: memref<32x64xf32, #tpu.memory_space<vmem>>, %arg7: memref<1x64xf32, #tpu.memory_space<vmem>>, %arg8: memref<160x64xf32, #tpu.memory_space<vmem>>, %arg9: memref<160x32xf32, #tpu.memory_space<vmem>>, %arg10: memref<160x64xf32, #tpu.memory_space<vmem>>) attributes {dimension_semantics = [#tpu.dimension_semantics<parallel>], iteration_bounds = array<i64: 1>, scalar_prefetch = 0 : i64, scratch_operands = 0 : i64, tpu.core_type = #tpu.core_type<tc>, window_params = [{transform_indices = @transform_0, window_bounds = array<i64: 160, 32>}, {transform_indices = @transform_1, window_bounds = array<i64: 160, 32>}, {pipeline_mode = #tpu.pipeline_mode<synchronous>, transform_indices = @transform_2, window_bounds = array<i64: 32, 64>}, {pipeline_mode = #tpu.pipeline_mode<synchronous>, transform_indices = @transform_3, window_bounds = array<i64: 32, 64>}, {pipeline_mode = #tpu.pipeline_mode<synchronous>, transform_indices = @transform_4, window_bounds = array<i64: 1, 64>}, {pipeline_mode = #tpu.pipeline_mode<synchronous>, transform_indices = @transform_5, window_bounds = array<i64: 32, 64>}, {pipeline_mode = #tpu.pipeline_mode<synchronous>, transform_indices = @transform_6, window_bounds = array<i64: 1, 64>}, {transform_indices = @transform_7, window_bounds = array<i64: 160, 64>}, {transform_indices = @transform_8, window_bounds = array<i64: 160, 32>}, {transform_indices = @transform_9, window_bounds = array<i64: 160, 64>}]} {
    %c0 = arith.constant 0 : index
    %c0_0 = arith.constant 0 : index
    %0 = vector.load %arg1[%c0, %c0_0] : memref<160x32xf32, #tpu.memory_space<vmem>>, vector<160x32xf32>
    %c0_1 = arith.constant 0 : index
    %c0_2 = arith.constant 0 : index
    %1 = vector.load %arg3[%c0_1, %c0_2] : memref<32x64xf32, #tpu.memory_space<vmem>>, vector<32x64xf32>
    %cst = arith.constant dense<0.000000e+00> : vector<160x64xf32>
    %2 = tpu.matmul %0, %1, %cst {dimension_numbers = #tpu.dot_dimension_numbers<[1], [0], [0], [1], [0, 0, 1, 1], [], []>} : vector<160x32xf32>, vector<32x64xf32>, vector<160x64xf32> -> vector<160x64xf32>
    %c0_3 = arith.constant 0 : index
    %c0_4 = arith.constant 0 : index
    %3 = vector.load %arg2[%c0_3, %c0_4] : memref<160x32xf32, #tpu.memory_space<vmem>>, vector<160x32xf32>
    %c0_5 = arith.constant 0 : index
    %c0_6 = arith.constant 0 : index
    %4 = vector.load %arg4[%c0_5, %c0_6] : memref<32x64xf32, #tpu.memory_space<vmem>>, vector<32x64xf32>
    %cst_7 = arith.constant dense<0.000000e+00> : vector<160x64xf32>
    %5 = tpu.matmul %3, %4, %cst_7 {dimension_numbers = #tpu.dot_dimension_numbers<[1], [0], [0], [1], [0, 0, 1, 1], [], []>} : vector<160x32xf32>, vector<32x64xf32>, vector<160x64xf32> -> vector<160x64xf32>
    %6 = arith.addf %2, %5 : vector<160x64xf32>
    %c0_8 = arith.constant 0 : index
    %c0_9 = arith.constant 0 : index
    %7 = vector.load %arg5[%c0_8, %c0_9] : memref<1x64xf32, #tpu.memory_space<vmem>>, vector<1x64xf32>
    %8 = vector.broadcast %7 : vector<1x64xf32> to vector<160x64xf32>
    %9 = arith.addf %6, %8 : vector<160x64xf32>
    %10 = vector.extract_strided_slice %9 {offsets = [0, 0], sizes = [160, 32], strides = [1, 1]} : vector<160x64xf32> to vector<160x32xf32>
    %11 = math.tanh %10 : vector<160x32xf32>
    %12 = vector.extract_strided_slice %9 {offsets = [0, 32], sizes = [160, 32], strides = [1, 1]} : vector<160x64xf32> to vector<160x32xf32>
    %13 = arith.negf %12 : vector<160x32xf32>
    %14 = math.exp %13 : vector<160x32xf32>
    %cst_10 = arith.constant 1.000000e+00 : f32
    %15 = vector.broadcast %cst_10 : f32 to vector<160x32xf32>
    %16 = arith.addf %15, %14 : vector<160x32xf32>
    %17 = arith.divf %15, %16 : vector<160x32xf32>
    %18 = arith.mulf %11, %17 : vector<160x32xf32>
    %c0_11 = arith.constant 0 : index
    %c0_12 = arith.constant 0 : index
    %19 = vector.load %arg9[%c0_11, %c0_12] : memref<160x32xf32, #tpu.memory_space<vmem>>, vector<160x32xf32>
    tpu.vector_store %arg9[%c0_11, %c0_12], %18 {strides = array<i32>} : memref<160x32xf32, #tpu.memory_space<vmem>>, vector<160x32xf32>,
    %c0_13 = arith.constant 0 : index
    %c0_14 = arith.constant 0 : index
    %20 = vector.load %arg6[%c0_13, %c0_14] : memref<32x64xf32, #tpu.memory_space<vmem>>, vector<32x64xf32>
    %cst_15 = arith.constant dense<0.000000e+00> : vector<160x64xf32>
    %21 = tpu.matmul %18, %20, %cst_15 {dimension_numbers = #tpu.dot_dimension_numbers<[1], [0], [0], [1], [0, 0, 1, 1], [], []>} : vector<160x32xf32>, vector<32x64xf32>, vector<160x64xf32> -> vector<160x64xf32>
    %c0_16 = arith.constant 0 : index
    %c0_17 = arith.constant 0 : index
    %22 = vector.load %arg7[%c0_16, %c0_17] : memref<1x64xf32, #tpu.memory_space<vmem>>, vector<1x64xf32>
    %23 = vector.broadcast %22 : vector<1x64xf32> to vector<160x64xf32>
    %24 = arith.addf %21, %23 : vector<160x64xf32>
    %c0_18 = arith.constant 0 : index
    %c0_19 = arith.constant 0 : index
    %25 = vector.load %arg8[%c0_18, %c0_19] : memref<160x64xf32, #tpu.memory_space<vmem>>, vector<160x64xf32>
    %26 = arith.addf %24, %25 : vector<160x64xf32>
    %c0_20 = arith.constant 0 : index
    %c0_21 = arith.constant 0 : index
    %27 = vector.load %arg10[%c0_20, %c0_21] : memref<160x64xf32, #tpu.memory_space<vmem>>, vector<160x64xf32>
    tpu.vector_store %arg10[%c0_20, %c0_21], %26 {strides = array<i32>} : memref<160x64xf32, #tpu.memory_space<vmem>>, vector<160x64xf32>,
    return
  }
  func.func @transform_0(%arg0: i32) -> (i32, i32) {
    %c0_i32 = arith.constant 0 : i32
    %c0_i32_0 = arith.constant 0 : i32
    return %arg0, %c0_i32 : i32, i32
  }
  func.func @transform_1(%arg0: i32) -> (i32, i32) {
    %c0_i32 = arith.constant 0 : i32
    %c0_i32_0 = arith.constant 0 : i32
    return %arg0, %c0_i32 : i32, i32
  }
  func.func @transform_2(%arg0: i32) -> (i32, i32) {
    %c0_i32 = arith.constant 0 : i32
    %c0_i32_0 = arith.constant 0 : i32
    %c0_i32_1 = arith.constant 0 : i32
    return %c0_i32, %c0_i32_0 : i32, i32
  }
  func.func @transform_3(%arg0: i32) -> (i32, i32) {
    %c0_i32 = arith.constant 0 : i32
    %c0_i32_0 = arith.constant 0 : i32
    %c0_i32_1 = arith.constant 0 : i32
    return %c0_i32, %c0_i32_0 : i32, i32
  }
  func.func @transform_4(%arg0: i32) -> (i32, i32) {
    %c0_i32 = arith.constant 0 : i32
    %c0_i32_0 = arith.constant 0 : i32
    %c0_i32_1 = arith.constant 0 : i32
    return %c0_i32, %c0_i32_0 : i32, i32
  }
  func.func @transform_5(%arg0: i32) -> (i32, i32) {
    %c0_i32 = arith.constant 0 : i32
    %c0_i32_0 = arith.constant 0 : i32
    %c0_i32_1 = arith.constant 0 : i32
    return %c0_i32, %c0_i32_0 : i32, i32
  }
  func.func @transform_6(%arg0: i32) -> (i32, i32) {
    %c0_i32 = arith.constant 0 : i32
    %c0_i32_0 = arith.constant 0 : i32
    %c0_i32_1 = arith.constant 0 : i32
    return %c0_i32, %c0_i32_0 : i32, i32
  }
  func.func @transform_7(%arg0: i32) -> (i32, i32) {
    %c0_i32 = arith.constant 0 : i32
    %c0_i32_0 = arith.constant 0 : i32
    return %arg0, %c0_i32 : i32, i32
  }
  func.func @transform_8(%arg0: i32) -> (i32, i32) {
    %c0_i32 = arith.constant 0 : i32
    %c0_i32_0 = arith.constant 0 : i32
    return %arg0, %c0_i32 : i32, i32
  }
  func.func @transform_9(%arg0: i32) -> (i32, i32) {
    %c0_i32 = arith.constant 0 : i32
    %c0_i32_0 = arith.constant 0 : i32
    return %arg0, %c0_i32 : i32, i32
  }
}

module attributes {stable_mosaic.version = 11 : i64} {
  func.func @_gcn_bn_kernel(%arg0: i32, %arg1: memref<1x8x32xf32, #tpu.memory_space<vmem>>, %arg2: memref<8x8xf32, #tpu.memory_space<vmem>>, %arg3: memref<1x8x32xf32, #tpu.memory_space<vmem>>, %arg4: memref<32x32xf32, #tpu.memory_space<vmem>>, %arg5: memref<32x32xf32, #tpu.memory_space<vmem>>, %arg6: memref<32x32xf32, #tpu.memory_space<vmem>>, %arg7: memref<1x32xf32, #tpu.memory_space<vmem>>, %arg8: memref<1x32xf32, #tpu.memory_space<vmem>>, %arg9: memref<1x32xf32, #tpu.memory_space<vmem>>, %arg10: memref<1x8x32xf32, #tpu.memory_space<vmem>>) attributes {dimension_semantics = [#tpu.dimension_semantics<parallel>], iteration_bounds = array<i64: 20>, scalar_prefetch = 0 : i64, scratch_operands = 0 : i64, tpu.core_type = #tpu.core_type<tc>, window_params = [{transform_indices = @transform_0, window_bounds = array<i64: 1, 8, 32>}, {pipeline_mode = #tpu.pipeline_mode<synchronous>, transform_indices = @transform_1, window_bounds = array<i64: 8, 8>}, {transform_indices = @transform_2, window_bounds = array<i64: 1, 8, 32>}, {pipeline_mode = #tpu.pipeline_mode<synchronous>, transform_indices = @transform_3, window_bounds = array<i64: 32, 32>}, {pipeline_mode = #tpu.pipeline_mode<synchronous>, transform_indices = @transform_4, window_bounds = array<i64: 32, 32>}, {pipeline_mode = #tpu.pipeline_mode<synchronous>, transform_indices = @transform_5, window_bounds = array<i64: 32, 32>}, {pipeline_mode = #tpu.pipeline_mode<synchronous>, transform_indices = @transform_6, window_bounds = array<i64: 1, 32>}, {pipeline_mode = #tpu.pipeline_mode<synchronous>, transform_indices = @transform_7, window_bounds = array<i64: 1, 32>}, {pipeline_mode = #tpu.pipeline_mode<synchronous>, transform_indices = @transform_8, window_bounds = array<i64: 1, 32>}, {transform_indices = @transform_9, window_bounds = array<i64: 1, 8, 32>}]} {
    %c0 = arith.constant 0 : index
    %c0_0 = arith.constant 0 : index
    %c0_1 = arith.constant 0 : index
    %0 = vector.load %arg1[%c0, %c0_0, %c0_1] : memref<1x8x32xf32, #tpu.memory_space<vmem>>, vector<1x8x32xf32>
    %1 = vector.shape_cast %0 : vector<1x8x32xf32> to vector<8x32xf32>
    %c0_2 = arith.constant 0 : index
    %c0_3 = arith.constant 0 : index
    %2 = vector.load %arg2[%c0_2, %c0_3] : memref<8x8xf32, #tpu.memory_space<vmem>>, vector<8x8xf32>
    %cst = arith.constant dense<0.000000e+00> : vector<8x32xf32>
    %3 = tpu.matmul %2, %1, %cst {dimension_numbers = #tpu.dot_dimension_numbers<[1], [0], [0], [1], [0, 0, 1, 1], [], []>} : vector<8x8xf32>, vector<8x32xf32>, vector<8x32xf32> -> vector<8x32xf32>
    %cst_4 = arith.constant dense<0.000000e+00> : vector<8x32xf32>
    %4 = tpu.matmul %2, %3, %cst_4 {dimension_numbers = #tpu.dot_dimension_numbers<[1], [0], [0], [1], [0, 0, 1, 1], [], []>} : vector<8x8xf32>, vector<8x32xf32>, vector<8x32xf32> -> vector<8x32xf32>
    %c0_5 = arith.constant 0 : index
    %c0_6 = arith.constant 0 : index
    %5 = vector.load %arg4[%c0_5, %c0_6] : memref<32x32xf32, #tpu.memory_space<vmem>>, vector<32x32xf32>
    %cst_7 = arith.constant dense<0.000000e+00> : vector<8x32xf32>
    %6 = tpu.matmul %1, %5, %cst_7 {dimension_numbers = #tpu.dot_dimension_numbers<[1], [0], [0], [1], [0, 0, 1, 1], [], []>} : vector<8x32xf32>, vector<32x32xf32>, vector<8x32xf32> -> vector<8x32xf32>
    %c0_8 = arith.constant 0 : index
    %c0_9 = arith.constant 0 : index
    %7 = vector.load %arg5[%c0_8, %c0_9] : memref<32x32xf32, #tpu.memory_space<vmem>>, vector<32x32xf32>
    %cst_10 = arith.constant dense<0.000000e+00> : vector<8x32xf32>
    %8 = tpu.matmul %3, %7, %cst_10 {dimension_numbers = #tpu.dot_dimension_numbers<[1], [0], [0], [1], [0, 0, 1, 1], [], []>} : vector<8x32xf32>, vector<32x32xf32>, vector<8x32xf32> -> vector<8x32xf32>
    %9 = arith.addf %6, %8 : vector<8x32xf32>
    %c0_11 = arith.constant 0 : index
    %c0_12 = arith.constant 0 : index
    %10 = vector.load %arg6[%c0_11, %c0_12] : memref<32x32xf32, #tpu.memory_space<vmem>>, vector<32x32xf32>
    %cst_13 = arith.constant dense<0.000000e+00> : vector<8x32xf32>
    %11 = tpu.matmul %4, %10, %cst_13 {dimension_numbers = #tpu.dot_dimension_numbers<[1], [0], [0], [1], [0, 0, 1, 1], [], []>} : vector<8x32xf32>, vector<32x32xf32>, vector<8x32xf32> -> vector<8x32xf32>
    %12 = arith.addf %9, %11 : vector<8x32xf32>
    %c0_14 = arith.constant 0 : index
    %c0_15 = arith.constant 0 : index
    %13 = vector.load %arg7[%c0_14, %c0_15] : memref<1x32xf32, #tpu.memory_space<vmem>>, vector<1x32xf32>
    %14 = vector.broadcast %13 : vector<1x32xf32> to vector<8x32xf32>
    %15 = arith.addf %12, %14 : vector<8x32xf32>
    %c0_16 = arith.constant 0 : index
    %c0_17 = arith.constant 0 : index
    %c0_18 = arith.constant 0 : index
    %16 = vector.load %arg3[%c0_16, %c0_17, %c0_18] : memref<1x8x32xf32, #tpu.memory_space<vmem>>, vector<1x8x32xf32>
    %17 = vector.shape_cast %16 : vector<1x8x32xf32> to vector<8x32xf32>
    %18 = arith.addf %15, %17 : vector<8x32xf32>
    %c0_19 = arith.constant 0 : index
    %c0_20 = arith.constant 0 : index
    %19 = vector.load %arg8[%c0_19, %c0_20] : memref<1x32xf32, #tpu.memory_space<vmem>>, vector<1x32xf32>
    %20 = vector.broadcast %19 : vector<1x32xf32> to vector<8x32xf32>
    %21 = arith.mulf %18, %20 : vector<8x32xf32>
    %c0_21 = arith.constant 0 : index
    %c0_22 = arith.constant 0 : index
    %22 = vector.load %arg9[%c0_21, %c0_22] : memref<1x32xf32, #tpu.memory_space<vmem>>, vector<1x32xf32>
    %23 = vector.broadcast %22 : vector<1x32xf32> to vector<8x32xf32>
    %24 = arith.addf %21, %23 : vector<8x32xf32>
    %c0_23 = arith.constant 0 : index
    %c0_24 = arith.constant 0 : index
    %c0_25 = arith.constant 0 : index
    %25 = vector.load %arg10[%c0_23, %c0_24, %c0_25] : memref<1x8x32xf32, #tpu.memory_space<vmem>>, vector<1x8x32xf32>
    %26 = vector.shape_cast %25 : vector<1x8x32xf32> to vector<8x32xf32>
    %27 = vector.shape_cast %24 : vector<8x32xf32> to vector<1x8x32xf32>
    tpu.vector_store %arg10[%c0_23, %c0_24, %c0_25], %27 {strides = array<i32>} : memref<1x8x32xf32, #tpu.memory_space<vmem>>, vector<1x8x32xf32>,
    return
  }
  func.func @transform_0(%arg0: i32) -> (i32, i32, i32) {
    %c0_i32 = arith.constant 0 : i32
    %c0_i32_0 = arith.constant 0 : i32
    %c0_i32_1 = arith.constant 0 : i32
    return %arg0, %c0_i32, %c0_i32_0 : i32, i32, i32
  }
  func.func @transform_1(%arg0: i32) -> (i32, i32) {
    %c0_i32 = arith.constant 0 : i32
    %c0_i32_0 = arith.constant 0 : i32
    %c0_i32_1 = arith.constant 0 : i32
    return %c0_i32, %c0_i32_0 : i32, i32
  }
  func.func @transform_2(%arg0: i32) -> (i32, i32, i32) {
    %c0_i32 = arith.constant 0 : i32
    %c0_i32_0 = arith.constant 0 : i32
    %c0_i32_1 = arith.constant 0 : i32
    return %arg0, %c0_i32, %c0_i32_0 : i32, i32, i32
  }
  func.func @transform_3(%arg0: i32) -> (i32, i32) {
    %c0_i32 = arith.constant 0 : i32
    %c0_i32_0 = arith.constant 0 : i32
    %c0_i32_1 = arith.constant 0 : i32
    return %c0_i32, %c0_i32_0 : i32, i32
  }
  func.func @transform_4(%arg0: i32) -> (i32, i32) {
    %c0_i32 = arith.constant 0 : i32
    %c0_i32_0 = arith.constant 0 : i32
    %c0_i32_1 = arith.constant 0 : i32
    return %c0_i32, %c0_i32_0 : i32, i32
  }
  func.func @transform_5(%arg0: i32) -> (i32, i32) {
    %c0_i32 = arith.constant 0 : i32
    %c0_i32_0 = arith.constant 0 : i32
    %c0_i32_1 = arith.constant 0 : i32
    return %c0_i32, %c0_i32_0 : i32, i32
  }
  func.func @transform_6(%arg0: i32) -> (i32, i32) {
    %c0_i32 = arith.constant 0 : i32
    %c0_i32_0 = arith.constant 0 : i32
    %c0_i32_1 = arith.constant 0 : i32
    return %c0_i32, %c0_i32_0 : i32, i32
  }
  func.func @transform_7(%arg0: i32) -> (i32, i32) {
    %c0_i32 = arith.constant 0 : i32
    %c0_i32_0 = arith.constant 0 : i32
    %c0_i32_1 = arith.constant 0 : i32
    return %c0_i32, %c0_i32_0 : i32, i32
  }
  func.func @transform_8(%arg0: i32) -> (i32, i32) {
    %c0_i32 = arith.constant 0 : i32
    %c0_i32_0 = arith.constant 0 : i32
    %c0_i32_1 = arith.constant 0 : i32
    return %c0_i32, %c0_i32_0 : i32, i32
  }
  func.func @transform_9(%arg0: i32) -> (i32, i32, i32) {
    %c0_i32 = arith.constant 0 : i32
    %c0_i32_0 = arith.constant 0 : i32
    %c0_i32_1 = arith.constant 0 : i32
    return %arg0, %c0_i32, %c0_i32_0 : i32, i32, i32
  }
}

module attributes {stable_mosaic.version = 11 : i64} {
  func.func @_tcn_kernel(%arg0: i32, %arg1: memref<144x32xf32, #tpu.memory_space<vmem>>, %arg2: memref<144x32xf32, #tpu.memory_space<vmem>>, %arg3: memref<32x64xf32, #tpu.memory_space<vmem>>, %arg4: memref<32x64xf32, #tpu.memory_space<vmem>>, %arg5: memref<1x64xf32, #tpu.memory_space<vmem>>, %arg6: memref<32x64xf32, #tpu.memory_space<vmem>>, %arg7: memref<1x64xf32, #tpu.memory_space<vmem>>, %arg8: memref<144x64xf32, #tpu.memory_space<vmem>>, %arg9: memref<144x32xf32, #tpu.memory_space<vmem>>, %arg10: memref<144x64xf32, #tpu.memory_space<vmem>>) attributes {dimension_semantics = [#tpu.dimension_semantics<parallel>], iteration_bounds = array<i64: 1>, scalar_prefetch = 0 : i64, scratch_operands = 0 : i64, tpu.core_type = #tpu.core_type<tc>, window_params = [{transform_indices = @transform_0, window_bounds = array<i64: 144, 32>}, {transform_indices = @transform_1, window_bounds = array<i64: 144, 32>}, {pipeline_mode = #tpu.pipeline_mode<synchronous>, transform_indices = @transform_2, window_bounds = array<i64: 32, 64>}, {pipeline_mode = #tpu.pipeline_mode<synchronous>, transform_indices = @transform_3, window_bounds = array<i64: 32, 64>}, {pipeline_mode = #tpu.pipeline_mode<synchronous>, transform_indices = @transform_4, window_bounds = array<i64: 1, 64>}, {pipeline_mode = #tpu.pipeline_mode<synchronous>, transform_indices = @transform_5, window_bounds = array<i64: 32, 64>}, {pipeline_mode = #tpu.pipeline_mode<synchronous>, transform_indices = @transform_6, window_bounds = array<i64: 1, 64>}, {transform_indices = @transform_7, window_bounds = array<i64: 144, 64>}, {transform_indices = @transform_8, window_bounds = array<i64: 144, 32>}, {transform_indices = @transform_9, window_bounds = array<i64: 144, 64>}]} {
    %c0 = arith.constant 0 : index
    %c0_0 = arith.constant 0 : index
    %0 = vector.load %arg1[%c0, %c0_0] : memref<144x32xf32, #tpu.memory_space<vmem>>, vector<144x32xf32>
    %c0_1 = arith.constant 0 : index
    %c0_2 = arith.constant 0 : index
    %1 = vector.load %arg3[%c0_1, %c0_2] : memref<32x64xf32, #tpu.memory_space<vmem>>, vector<32x64xf32>
    %cst = arith.constant dense<0.000000e+00> : vector<144x64xf32>
    %2 = tpu.matmul %0, %1, %cst {dimension_numbers = #tpu.dot_dimension_numbers<[1], [0], [0], [1], [0, 0, 1, 1], [], []>} : vector<144x32xf32>, vector<32x64xf32>, vector<144x64xf32> -> vector<144x64xf32>
    %c0_3 = arith.constant 0 : index
    %c0_4 = arith.constant 0 : index
    %3 = vector.load %arg2[%c0_3, %c0_4] : memref<144x32xf32, #tpu.memory_space<vmem>>, vector<144x32xf32>
    %c0_5 = arith.constant 0 : index
    %c0_6 = arith.constant 0 : index
    %4 = vector.load %arg4[%c0_5, %c0_6] : memref<32x64xf32, #tpu.memory_space<vmem>>, vector<32x64xf32>
    %cst_7 = arith.constant dense<0.000000e+00> : vector<144x64xf32>
    %5 = tpu.matmul %3, %4, %cst_7 {dimension_numbers = #tpu.dot_dimension_numbers<[1], [0], [0], [1], [0, 0, 1, 1], [], []>} : vector<144x32xf32>, vector<32x64xf32>, vector<144x64xf32> -> vector<144x64xf32>
    %6 = arith.addf %2, %5 : vector<144x64xf32>
    %c0_8 = arith.constant 0 : index
    %c0_9 = arith.constant 0 : index
    %7 = vector.load %arg5[%c0_8, %c0_9] : memref<1x64xf32, #tpu.memory_space<vmem>>, vector<1x64xf32>
    %8 = vector.broadcast %7 : vector<1x64xf32> to vector<144x64xf32>
    %9 = arith.addf %6, %8 : vector<144x64xf32>
    %10 = vector.extract_strided_slice %9 {offsets = [0, 0], sizes = [144, 32], strides = [1, 1]} : vector<144x64xf32> to vector<144x32xf32>
    %11 = math.tanh %10 : vector<144x32xf32>
    %12 = vector.extract_strided_slice %9 {offsets = [0, 32], sizes = [144, 32], strides = [1, 1]} : vector<144x64xf32> to vector<144x32xf32>
    %13 = arith.negf %12 : vector<144x32xf32>
    %14 = math.exp %13 : vector<144x32xf32>
    %cst_10 = arith.constant 1.000000e+00 : f32
    %15 = vector.broadcast %cst_10 : f32 to vector<144x32xf32>
    %16 = arith.addf %15, %14 : vector<144x32xf32>
    %17 = arith.divf %15, %16 : vector<144x32xf32>
    %18 = arith.mulf %11, %17 : vector<144x32xf32>
    %c0_11 = arith.constant 0 : index
    %c0_12 = arith.constant 0 : index
    %19 = vector.load %arg9[%c0_11, %c0_12] : memref<144x32xf32, #tpu.memory_space<vmem>>, vector<144x32xf32>
    tpu.vector_store %arg9[%c0_11, %c0_12], %18 {strides = array<i32>} : memref<144x32xf32, #tpu.memory_space<vmem>>, vector<144x32xf32>,
    %c0_13 = arith.constant 0 : index
    %c0_14 = arith.constant 0 : index
    %20 = vector.load %arg6[%c0_13, %c0_14] : memref<32x64xf32, #tpu.memory_space<vmem>>, vector<32x64xf32>
    %cst_15 = arith.constant dense<0.000000e+00> : vector<144x64xf32>
    %21 = tpu.matmul %18, %20, %cst_15 {dimension_numbers = #tpu.dot_dimension_numbers<[1], [0], [0], [1], [0, 0, 1, 1], [], []>} : vector<144x32xf32>, vector<32x64xf32>, vector<144x64xf32> -> vector<144x64xf32>
    %c0_16 = arith.constant 0 : index
    %c0_17 = arith.constant 0 : index
    %22 = vector.load %arg7[%c0_16, %c0_17] : memref<1x64xf32, #tpu.memory_space<vmem>>, vector<1x64xf32>
    %23 = vector.broadcast %22 : vector<1x64xf32> to vector<144x64xf32>
    %24 = arith.addf %21, %23 : vector<144x64xf32>
    %c0_18 = arith.constant 0 : index
    %c0_19 = arith.constant 0 : index
    %25 = vector.load %arg8[%c0_18, %c0_19] : memref<144x64xf32, #tpu.memory_space<vmem>>, vector<144x64xf32>
    %26 = arith.addf %24, %25 : vector<144x64xf32>
    %c0_20 = arith.constant 0 : index
    %c0_21 = arith.constant 0 : index
    %27 = vector.load %arg10[%c0_20, %c0_21] : memref<144x64xf32, #tpu.memory_space<vmem>>, vector<144x64xf32>
    tpu.vector_store %arg10[%c0_20, %c0_21], %26 {strides = array<i32>} : memref<144x64xf32, #tpu.memory_space<vmem>>, vector<144x64xf32>,
    return
  }
  func.func @transform_0(%arg0: i32) -> (i32, i32) {
    %c0_i32 = arith.constant 0 : i32
    %c0_i32_0 = arith.constant 0 : i32
    return %arg0, %c0_i32 : i32, i32
  }
  func.func @transform_1(%arg0: i32) -> (i32, i32) {
    %c0_i32 = arith.constant 0 : i32
    %c0_i32_0 = arith.constant 0 : i32
    return %arg0, %c0_i32 : i32, i32
  }
  func.func @transform_2(%arg0: i32) -> (i32, i32) {
    %c0_i32 = arith.constant 0 : i32
    %c0_i32_0 = arith.constant 0 : i32
    %c0_i32_1 = arith.constant 0 : i32
    return %c0_i32, %c0_i32_0 : i32, i32
  }
  func.func @transform_3(%arg0: i32) -> (i32, i32) {
    %c0_i32 = arith.constant 0 : i32
    %c0_i32_0 = arith.constant 0 : i32
    %c0_i32_1 = arith.constant 0 : i32
    return %c0_i32, %c0_i32_0 : i32, i32
  }
  func.func @transform_4(%arg0: i32) -> (i32, i32) {
    %c0_i32 = arith.constant 0 : i32
    %c0_i32_0 = arith.constant 0 : i32
    %c0_i32_1 = arith.constant 0 : i32
    return %c0_i32, %c0_i32_0 : i32, i32
  }
  func.func @transform_5(%arg0: i32) -> (i32, i32) {
    %c0_i32 = arith.constant 0 : i32
    %c0_i32_0 = arith.constant 0 : i32
    %c0_i32_1 = arith.constant 0 : i32
    return %c0_i32, %c0_i32_0 : i32, i32
  }
  func.func @transform_6(%arg0: i32) -> (i32, i32) {
    %c0_i32 = arith.constant 0 : i32
    %c0_i32_0 = arith.constant 0 : i32
    %c0_i32_1 = arith.constant 0 : i32
    return %c0_i32, %c0_i32_0 : i32, i32
  }
  func.func @transform_7(%arg0: i32) -> (i32, i32) {
    %c0_i32 = arith.constant 0 : i32
    %c0_i32_0 = arith.constant 0 : i32
    return %arg0, %c0_i32 : i32, i32
  }
  func.func @transform_8(%arg0: i32) -> (i32, i32) {
    %c0_i32 = arith.constant 0 : i32
    %c0_i32_0 = arith.constant 0 : i32
    return %arg0, %c0_i32 : i32, i32
  }
  func.func @transform_9(%arg0: i32) -> (i32, i32) {
    %c0_i32 = arith.constant 0 : i32
    %c0_i32_0 = arith.constant 0 : i32
    return %arg0, %c0_i32 : i32, i32
  }
}

module attributes {stable_mosaic.version = 11 : i64} {
  func.func @_gcn_bn_kernel(%arg0: i32, %arg1: memref<1x8x32xf32, #tpu.memory_space<vmem>>, %arg2: memref<8x8xf32, #tpu.memory_space<vmem>>, %arg3: memref<1x8x32xf32, #tpu.memory_space<vmem>>, %arg4: memref<32x32xf32, #tpu.memory_space<vmem>>, %arg5: memref<32x32xf32, #tpu.memory_space<vmem>>, %arg6: memref<32x32xf32, #tpu.memory_space<vmem>>, %arg7: memref<1x32xf32, #tpu.memory_space<vmem>>, %arg8: memref<1x32xf32, #tpu.memory_space<vmem>>, %arg9: memref<1x32xf32, #tpu.memory_space<vmem>>, %arg10: memref<1x8x32xf32, #tpu.memory_space<vmem>>) attributes {dimension_semantics = [#tpu.dimension_semantics<parallel>], iteration_bounds = array<i64: 18>, scalar_prefetch = 0 : i64, scratch_operands = 0 : i64, tpu.core_type = #tpu.core_type<tc>, window_params = [{transform_indices = @transform_0, window_bounds = array<i64: 1, 8, 32>}, {pipeline_mode = #tpu.pipeline_mode<synchronous>, transform_indices = @transform_1, window_bounds = array<i64: 8, 8>}, {transform_indices = @transform_2, window_bounds = array<i64: 1, 8, 32>}, {pipeline_mode = #tpu.pipeline_mode<synchronous>, transform_indices = @transform_3, window_bounds = array<i64: 32, 32>}, {pipeline_mode = #tpu.pipeline_mode<synchronous>, transform_indices = @transform_4, window_bounds = array<i64: 32, 32>}, {pipeline_mode = #tpu.pipeline_mode<synchronous>, transform_indices = @transform_5, window_bounds = array<i64: 32, 32>}, {pipeline_mode = #tpu.pipeline_mode<synchronous>, transform_indices = @transform_6, window_bounds = array<i64: 1, 32>}, {pipeline_mode = #tpu.pipeline_mode<synchronous>, transform_indices = @transform_7, window_bounds = array<i64: 1, 32>}, {pipeline_mode = #tpu.pipeline_mode<synchronous>, transform_indices = @transform_8, window_bounds = array<i64: 1, 32>}, {transform_indices = @transform_9, window_bounds = array<i64: 1, 8, 32>}]} {
    %c0 = arith.constant 0 : index
    %c0_0 = arith.constant 0 : index
    %c0_1 = arith.constant 0 : index
    %0 = vector.load %arg1[%c0, %c0_0, %c0_1] : memref<1x8x32xf32, #tpu.memory_space<vmem>>, vector<1x8x32xf32>
    %1 = vector.shape_cast %0 : vector<1x8x32xf32> to vector<8x32xf32>
    %c0_2 = arith.constant 0 : index
    %c0_3 = arith.constant 0 : index
    %2 = vector.load %arg2[%c0_2, %c0_3] : memref<8x8xf32, #tpu.memory_space<vmem>>, vector<8x8xf32>
    %cst = arith.constant dense<0.000000e+00> : vector<8x32xf32>
    %3 = tpu.matmul %2, %1, %cst {dimension_numbers = #tpu.dot_dimension_numbers<[1], [0], [0], [1], [0, 0, 1, 1], [], []>} : vector<8x8xf32>, vector<8x32xf32>, vector<8x32xf32> -> vector<8x32xf32>
    %cst_4 = arith.constant dense<0.000000e+00> : vector<8x32xf32>
    %4 = tpu.matmul %2, %3, %cst_4 {dimension_numbers = #tpu.dot_dimension_numbers<[1], [0], [0], [1], [0, 0, 1, 1], [], []>} : vector<8x8xf32>, vector<8x32xf32>, vector<8x32xf32> -> vector<8x32xf32>
    %c0_5 = arith.constant 0 : index
    %c0_6 = arith.constant 0 : index
    %5 = vector.load %arg4[%c0_5, %c0_6] : memref<32x32xf32, #tpu.memory_space<vmem>>, vector<32x32xf32>
    %cst_7 = arith.constant dense<0.000000e+00> : vector<8x32xf32>
    %6 = tpu.matmul %1, %5, %cst_7 {dimension_numbers = #tpu.dot_dimension_numbers<[1], [0], [0], [1], [0, 0, 1, 1], [], []>} : vector<8x32xf32>, vector<32x32xf32>, vector<8x32xf32> -> vector<8x32xf32>
    %c0_8 = arith.constant 0 : index
    %c0_9 = arith.constant 0 : index
    %7 = vector.load %arg5[%c0_8, %c0_9] : memref<32x32xf32, #tpu.memory_space<vmem>>, vector<32x32xf32>
    %cst_10 = arith.constant dense<0.000000e+00> : vector<8x32xf32>
    %8 = tpu.matmul %3, %7, %cst_10 {dimension_numbers = #tpu.dot_dimension_numbers<[1], [0], [0], [1], [0, 0, 1, 1], [], []>} : vector<8x32xf32>, vector<32x32xf32>, vector<8x32xf32> -> vector<8x32xf32>
    %9 = arith.addf %6, %8 : vector<8x32xf32>
    %c0_11 = arith.constant 0 : index
    %c0_12 = arith.constant 0 : index
    %10 = vector.load %arg6[%c0_11, %c0_12] : memref<32x32xf32, #tpu.memory_space<vmem>>, vector<32x32xf32>
    %cst_13 = arith.constant dense<0.000000e+00> : vector<8x32xf32>
    %11 = tpu.matmul %4, %10, %cst_13 {dimension_numbers = #tpu.dot_dimension_numbers<[1], [0], [0], [1], [0, 0, 1, 1], [], []>} : vector<8x32xf32>, vector<32x32xf32>, vector<8x32xf32> -> vector<8x32xf32>
    %12 = arith.addf %9, %11 : vector<8x32xf32>
    %c0_14 = arith.constant 0 : index
    %c0_15 = arith.constant 0 : index
    %13 = vector.load %arg7[%c0_14, %c0_15] : memref<1x32xf32, #tpu.memory_space<vmem>>, vector<1x32xf32>
    %14 = vector.broadcast %13 : vector<1x32xf32> to vector<8x32xf32>
    %15 = arith.addf %12, %14 : vector<8x32xf32>
    %c0_16 = arith.constant 0 : index
    %c0_17 = arith.constant 0 : index
    %c0_18 = arith.constant 0 : index
    %16 = vector.load %arg3[%c0_16, %c0_17, %c0_18] : memref<1x8x32xf32, #tpu.memory_space<vmem>>, vector<1x8x32xf32>
    %17 = vector.shape_cast %16 : vector<1x8x32xf32> to vector<8x32xf32>
    %18 = arith.addf %15, %17 : vector<8x32xf32>
    %c0_19 = arith.constant 0 : index
    %c0_20 = arith.constant 0 : index
    %19 = vector.load %arg8[%c0_19, %c0_20] : memref<1x32xf32, #tpu.memory_space<vmem>>, vector<1x32xf32>
    %20 = vector.broadcast %19 : vector<1x32xf32> to vector<8x32xf32>
    %21 = arith.mulf %18, %20 : vector<8x32xf32>
    %c0_21 = arith.constant 0 : index
    %c0_22 = arith.constant 0 : index
    %22 = vector.load %arg9[%c0_21, %c0_22] : memref<1x32xf32, #tpu.memory_space<vmem>>, vector<1x32xf32>
    %23 = vector.broadcast %22 : vector<1x32xf32> to vector<8x32xf32>
    %24 = arith.addf %21, %23 : vector<8x32xf32>
    %c0_23 = arith.constant 0 : index
    %c0_24 = arith.constant 0 : index
    %c0_25 = arith.constant 0 : index
    %25 = vector.load %arg10[%c0_23, %c0_24, %c0_25] : memref<1x8x32xf32, #tpu.memory_space<vmem>>, vector<1x8x32xf32>
    %26 = vector.shape_cast %25 : vector<1x8x32xf32> to vector<8x32xf32>
    %27 = vector.shape_cast %24 : vector<8x32xf32> to vector<1x8x32xf32>
    tpu.vector_store %arg10[%c0_23, %c0_24, %c0_25], %27 {strides = array<i32>} : memref<1x8x32xf32, #tpu.memory_space<vmem>>, vector<1x8x32xf32>,
    return
  }
  func.func @transform_0(%arg0: i32) -> (i32, i32, i32) {
    %c0_i32 = arith.constant 0 : i32
    %c0_i32_0 = arith.constant 0 : i32
    %c0_i32_1 = arith.constant 0 : i32
    return %arg0, %c0_i32, %c0_i32_0 : i32, i32, i32
  }
  func.func @transform_1(%arg0: i32) -> (i32, i32) {
    %c0_i32 = arith.constant 0 : i32
    %c0_i32_0 = arith.constant 0 : i32
    %c0_i32_1 = arith.constant 0 : i32
    return %c0_i32, %c0_i32_0 : i32, i32
  }
  func.func @transform_2(%arg0: i32) -> (i32, i32, i32) {
    %c0_i32 = arith.constant 0 : i32
    %c0_i32_0 = arith.constant 0 : i32
    %c0_i32_1 = arith.constant 0 : i32
    return %arg0, %c0_i32, %c0_i32_0 : i32, i32, i32
  }
  func.func @transform_3(%arg0: i32) -> (i32, i32) {
    %c0_i32 = arith.constant 0 : i32
    %c0_i32_0 = arith.constant 0 : i32
    %c0_i32_1 = arith.constant 0 : i32
    return %c0_i32, %c0_i32_0 : i32, i32
  }
  func.func @transform_4(%arg0: i32) -> (i32, i32) {
    %c0_i32 = arith.constant 0 : i32
    %c0_i32_0 = arith.constant 0 : i32
    %c0_i32_1 = arith.constant 0 : i32
    return %c0_i32, %c0_i32_0 : i32, i32
  }
  func.func @transform_5(%arg0: i32) -> (i32, i32) {
    %c0_i32 = arith.constant 0 : i32
    %c0_i32_0 = arith.constant 0 : i32
    %c0_i32_1 = arith.constant 0 : i32
    return %c0_i32, %c0_i32_0 : i32, i32
  }
  func.func @transform_6(%arg0: i32) -> (i32, i32) {
    %c0_i32 = arith.constant 0 : i32
    %c0_i32_0 = arith.constant 0 : i32
    %c0_i32_1 = arith.constant 0 : i32
    return %c0_i32, %c0_i32_0 : i32, i32
  }
  func.func @transform_7(%arg0: i32) -> (i32, i32) {
    %c0_i32 = arith.constant 0 : i32
    %c0_i32_0 = arith.constant 0 : i32
    %c0_i32_1 = arith.constant 0 : i32
    return %c0_i32, %c0_i32_0 : i32, i32
  }
  func.func @transform_8(%arg0: i32) -> (i32, i32) {
    %c0_i32 = arith.constant 0 : i32
    %c0_i32_0 = arith.constant 0 : i32
    %c0_i32_1 = arith.constant 0 : i32
    return %c0_i32, %c0_i32_0 : i32, i32
  }
  func.func @transform_9(%arg0: i32) -> (i32, i32, i32) {
    %c0_i32 = arith.constant 0 : i32
    %c0_i32_0 = arith.constant 0 : i32
    %c0_i32_1 = arith.constant 0 : i32
    return %arg0, %c0_i32, %c0_i32_0 : i32, i32, i32
  }
}

module attributes {stable_mosaic.version = 11 : i64} {
  func.func @_tcn_kernel(%arg0: i32, %arg1: memref<112x32xf32, #tpu.memory_space<vmem>>, %arg2: memref<112x32xf32, #tpu.memory_space<vmem>>, %arg3: memref<32x64xf32, #tpu.memory_space<vmem>>, %arg4: memref<32x64xf32, #tpu.memory_space<vmem>>, %arg5: memref<1x64xf32, #tpu.memory_space<vmem>>, %arg6: memref<32x64xf32, #tpu.memory_space<vmem>>, %arg7: memref<1x64xf32, #tpu.memory_space<vmem>>, %arg8: memref<112x64xf32, #tpu.memory_space<vmem>>, %arg9: memref<112x32xf32, #tpu.memory_space<vmem>>, %arg10: memref<112x64xf32, #tpu.memory_space<vmem>>) attributes {dimension_semantics = [#tpu.dimension_semantics<parallel>], iteration_bounds = array<i64: 1>, scalar_prefetch = 0 : i64, scratch_operands = 0 : i64, tpu.core_type = #tpu.core_type<tc>, window_params = [{transform_indices = @transform_0, window_bounds = array<i64: 112, 32>}, {transform_indices = @transform_1, window_bounds = array<i64: 112, 32>}, {pipeline_mode = #tpu.pipeline_mode<synchronous>, transform_indices = @transform_2, window_bounds = array<i64: 32, 64>}, {pipeline_mode = #tpu.pipeline_mode<synchronous>, transform_indices = @transform_3, window_bounds = array<i64: 32, 64>}, {pipeline_mode = #tpu.pipeline_mode<synchronous>, transform_indices = @transform_4, window_bounds = array<i64: 1, 64>}, {pipeline_mode = #tpu.pipeline_mode<synchronous>, transform_indices = @transform_5, window_bounds = array<i64: 32, 64>}, {pipeline_mode = #tpu.pipeline_mode<synchronous>, transform_indices = @transform_6, window_bounds = array<i64: 1, 64>}, {transform_indices = @transform_7, window_bounds = array<i64: 112, 64>}, {transform_indices = @transform_8, window_bounds = array<i64: 112, 32>}, {transform_indices = @transform_9, window_bounds = array<i64: 112, 64>}]} {
    %c0 = arith.constant 0 : index
    %c0_0 = arith.constant 0 : index
    %0 = vector.load %arg1[%c0, %c0_0] : memref<112x32xf32, #tpu.memory_space<vmem>>, vector<112x32xf32>
    %c0_1 = arith.constant 0 : index
    %c0_2 = arith.constant 0 : index
    %1 = vector.load %arg3[%c0_1, %c0_2] : memref<32x64xf32, #tpu.memory_space<vmem>>, vector<32x64xf32>
    %cst = arith.constant dense<0.000000e+00> : vector<112x64xf32>
    %2 = tpu.matmul %0, %1, %cst {dimension_numbers = #tpu.dot_dimension_numbers<[1], [0], [0], [1], [0, 0, 1, 1], [], []>} : vector<112x32xf32>, vector<32x64xf32>, vector<112x64xf32> -> vector<112x64xf32>
    %c0_3 = arith.constant 0 : index
    %c0_4 = arith.constant 0 : index
    %3 = vector.load %arg2[%c0_3, %c0_4] : memref<112x32xf32, #tpu.memory_space<vmem>>, vector<112x32xf32>
    %c0_5 = arith.constant 0 : index
    %c0_6 = arith.constant 0 : index
    %4 = vector.load %arg4[%c0_5, %c0_6] : memref<32x64xf32, #tpu.memory_space<vmem>>, vector<32x64xf32>
    %cst_7 = arith.constant dense<0.000000e+00> : vector<112x64xf32>
    %5 = tpu.matmul %3, %4, %cst_7 {dimension_numbers = #tpu.dot_dimension_numbers<[1], [0], [0], [1], [0, 0, 1, 1], [], []>} : vector<112x32xf32>, vector<32x64xf32>, vector<112x64xf32> -> vector<112x64xf32>
    %6 = arith.addf %2, %5 : vector<112x64xf32>
    %c0_8 = arith.constant 0 : index
    %c0_9 = arith.constant 0 : index
    %7 = vector.load %arg5[%c0_8, %c0_9] : memref<1x64xf32, #tpu.memory_space<vmem>>, vector<1x64xf32>
    %8 = vector.broadcast %7 : vector<1x64xf32> to vector<112x64xf32>
    %9 = arith.addf %6, %8 : vector<112x64xf32>
    %10 = vector.extract_strided_slice %9 {offsets = [0, 0], sizes = [112, 32], strides = [1, 1]} : vector<112x64xf32> to vector<112x32xf32>
    %11 = math.tanh %10 : vector<112x32xf32>
    %12 = vector.extract_strided_slice %9 {offsets = [0, 32], sizes = [112, 32], strides = [1, 1]} : vector<112x64xf32> to vector<112x32xf32>
    %13 = arith.negf %12 : vector<112x32xf32>
    %14 = math.exp %13 : vector<112x32xf32>
    %cst_10 = arith.constant 1.000000e+00 : f32
    %15 = vector.broadcast %cst_10 : f32 to vector<112x32xf32>
    %16 = arith.addf %15, %14 : vector<112x32xf32>
    %17 = arith.divf %15, %16 : vector<112x32xf32>
    %18 = arith.mulf %11, %17 : vector<112x32xf32>
    %c0_11 = arith.constant 0 : index
    %c0_12 = arith.constant 0 : index
    %19 = vector.load %arg9[%c0_11, %c0_12] : memref<112x32xf32, #tpu.memory_space<vmem>>, vector<112x32xf32>
    tpu.vector_store %arg9[%c0_11, %c0_12], %18 {strides = array<i32>} : memref<112x32xf32, #tpu.memory_space<vmem>>, vector<112x32xf32>,
    %c0_13 = arith.constant 0 : index
    %c0_14 = arith.constant 0 : index
    %20 = vector.load %arg6[%c0_13, %c0_14] : memref<32x64xf32, #tpu.memory_space<vmem>>, vector<32x64xf32>
    %cst_15 = arith.constant dense<0.000000e+00> : vector<112x64xf32>
    %21 = tpu.matmul %18, %20, %cst_15 {dimension_numbers = #tpu.dot_dimension_numbers<[1], [0], [0], [1], [0, 0, 1, 1], [], []>} : vector<112x32xf32>, vector<32x64xf32>, vector<112x64xf32> -> vector<112x64xf32>
    %c0_16 = arith.constant 0 : index
    %c0_17 = arith.constant 0 : index
    %22 = vector.load %arg7[%c0_16, %c0_17] : memref<1x64xf32, #tpu.memory_space<vmem>>, vector<1x64xf32>
    %23 = vector.broadcast %22 : vector<1x64xf32> to vector<112x64xf32>
    %24 = arith.addf %21, %23 : vector<112x64xf32>
    %c0_18 = arith.constant 0 : index
    %c0_19 = arith.constant 0 : index
    %25 = vector.load %arg8[%c0_18, %c0_19] : memref<112x64xf32, #tpu.memory_space<vmem>>, vector<112x64xf32>
    %26 = arith.addf %24, %25 : vector<112x64xf32>
    %c0_20 = arith.constant 0 : index
    %c0_21 = arith.constant 0 : index
    %27 = vector.load %arg10[%c0_20, %c0_21] : memref<112x64xf32, #tpu.memory_space<vmem>>, vector<112x64xf32>
    tpu.vector_store %arg10[%c0_20, %c0_21], %26 {strides = array<i32>} : memref<112x64xf32, #tpu.memory_space<vmem>>, vector<112x64xf32>,
    return
  }
  func.func @transform_0(%arg0: i32) -> (i32, i32) {
    %c0_i32 = arith.constant 0 : i32
    %c0_i32_0 = arith.constant 0 : i32
    return %arg0, %c0_i32 : i32, i32
  }
  func.func @transform_1(%arg0: i32) -> (i32, i32) {
    %c0_i32 = arith.constant 0 : i32
    %c0_i32_0 = arith.constant 0 : i32
    return %arg0, %c0_i32 : i32, i32
  }
  func.func @transform_2(%arg0: i32) -> (i32, i32) {
    %c0_i32 = arith.constant 0 : i32
    %c0_i32_0 = arith.constant 0 : i32
    %c0_i32_1 = arith.constant 0 : i32
    return %c0_i32, %c0_i32_0 : i32, i32
  }
  func.func @transform_3(%arg0: i32) -> (i32, i32) {
    %c0_i32 = arith.constant 0 : i32
    %c0_i32_0 = arith.constant 0 : i32
    %c0_i32_1 = arith.constant 0 : i32
    return %c0_i32, %c0_i32_0 : i32, i32
  }
  func.func @transform_4(%arg0: i32) -> (i32, i32) {
    %c0_i32 = arith.constant 0 : i32
    %c0_i32_0 = arith.constant 0 : i32
    %c0_i32_1 = arith.constant 0 : i32
    return %c0_i32, %c0_i32_0 : i32, i32
  }
  func.func @transform_5(%arg0: i32) -> (i32, i32) {
    %c0_i32 = arith.constant 0 : i32
    %c0_i32_0 = arith.constant 0 : i32
    %c0_i32_1 = arith.constant 0 : i32
    return %c0_i32, %c0_i32_0 : i32, i32
  }
  func.func @transform_6(%arg0: i32) -> (i32, i32) {
    %c0_i32 = arith.constant 0 : i32
    %c0_i32_0 = arith.constant 0 : i32
    %c0_i32_1 = arith.constant 0 : i32
    return %c0_i32, %c0_i32_0 : i32, i32
  }
  func.func @transform_7(%arg0: i32) -> (i32, i32) {
    %c0_i32 = arith.constant 0 : i32
    %c0_i32_0 = arith.constant 0 : i32
    return %arg0, %c0_i32 : i32, i32
  }
  func.func @transform_8(%arg0: i32) -> (i32, i32) {
    %c0_i32 = arith.constant 0 : i32
    %c0_i32_0 = arith.constant 0 : i32
    return %arg0, %c0_i32 : i32, i32
  }
  func.func @transform_9(%arg0: i32) -> (i32, i32) {
    %c0_i32 = arith.constant 0 : i32
    %c0_i32_0 = arith.constant 0 : i32
    return %arg0, %c0_i32 : i32, i32
  }
}

module attributes {stable_mosaic.version = 11 : i64} {
  func.func @_gcn_bn_kernel(%arg0: i32, %arg1: memref<1x8x32xf32, #tpu.memory_space<vmem>>, %arg2: memref<8x8xf32, #tpu.memory_space<vmem>>, %arg3: memref<1x8x32xf32, #tpu.memory_space<vmem>>, %arg4: memref<32x32xf32, #tpu.memory_space<vmem>>, %arg5: memref<32x32xf32, #tpu.memory_space<vmem>>, %arg6: memref<32x32xf32, #tpu.memory_space<vmem>>, %arg7: memref<1x32xf32, #tpu.memory_space<vmem>>, %arg8: memref<1x32xf32, #tpu.memory_space<vmem>>, %arg9: memref<1x32xf32, #tpu.memory_space<vmem>>, %arg10: memref<1x8x32xf32, #tpu.memory_space<vmem>>) attributes {dimension_semantics = [#tpu.dimension_semantics<parallel>], iteration_bounds = array<i64: 14>, scalar_prefetch = 0 : i64, scratch_operands = 0 : i64, tpu.core_type = #tpu.core_type<tc>, window_params = [{transform_indices = @transform_0, window_bounds = array<i64: 1, 8, 32>}, {pipeline_mode = #tpu.pipeline_mode<synchronous>, transform_indices = @transform_1, window_bounds = array<i64: 8, 8>}, {transform_indices = @transform_2, window_bounds = array<i64: 1, 8, 32>}, {pipeline_mode = #tpu.pipeline_mode<synchronous>, transform_indices = @transform_3, window_bounds = array<i64: 32, 32>}, {pipeline_mode = #tpu.pipeline_mode<synchronous>, transform_indices = @transform_4, window_bounds = array<i64: 32, 32>}, {pipeline_mode = #tpu.pipeline_mode<synchronous>, transform_indices = @transform_5, window_bounds = array<i64: 32, 32>}, {pipeline_mode = #tpu.pipeline_mode<synchronous>, transform_indices = @transform_6, window_bounds = array<i64: 1, 32>}, {pipeline_mode = #tpu.pipeline_mode<synchronous>, transform_indices = @transform_7, window_bounds = array<i64: 1, 32>}, {pipeline_mode = #tpu.pipeline_mode<synchronous>, transform_indices = @transform_8, window_bounds = array<i64: 1, 32>}, {transform_indices = @transform_9, window_bounds = array<i64: 1, 8, 32>}]} {
    %c0 = arith.constant 0 : index
    %c0_0 = arith.constant 0 : index
    %c0_1 = arith.constant 0 : index
    %0 = vector.load %arg1[%c0, %c0_0, %c0_1] : memref<1x8x32xf32, #tpu.memory_space<vmem>>, vector<1x8x32xf32>
    %1 = vector.shape_cast %0 : vector<1x8x32xf32> to vector<8x32xf32>
    %c0_2 = arith.constant 0 : index
    %c0_3 = arith.constant 0 : index
    %2 = vector.load %arg2[%c0_2, %c0_3] : memref<8x8xf32, #tpu.memory_space<vmem>>, vector<8x8xf32>
    %cst = arith.constant dense<0.000000e+00> : vector<8x32xf32>
    %3 = tpu.matmul %2, %1, %cst {dimension_numbers = #tpu.dot_dimension_numbers<[1], [0], [0], [1], [0, 0, 1, 1], [], []>} : vector<8x8xf32>, vector<8x32xf32>, vector<8x32xf32> -> vector<8x32xf32>
    %cst_4 = arith.constant dense<0.000000e+00> : vector<8x32xf32>
    %4 = tpu.matmul %2, %3, %cst_4 {dimension_numbers = #tpu.dot_dimension_numbers<[1], [0], [0], [1], [0, 0, 1, 1], [], []>} : vector<8x8xf32>, vector<8x32xf32>, vector<8x32xf32> -> vector<8x32xf32>
    %c0_5 = arith.constant 0 : index
    %c0_6 = arith.constant 0 : index
    %5 = vector.load %arg4[%c0_5, %c0_6] : memref<32x32xf32, #tpu.memory_space<vmem>>, vector<32x32xf32>
    %cst_7 = arith.constant dense<0.000000e+00> : vector<8x32xf32>
    %6 = tpu.matmul %1, %5, %cst_7 {dimension_numbers = #tpu.dot_dimension_numbers<[1], [0], [0], [1], [0, 0, 1, 1], [], []>} : vector<8x32xf32>, vector<32x32xf32>, vector<8x32xf32> -> vector<8x32xf32>
    %c0_8 = arith.constant 0 : index
    %c0_9 = arith.constant 0 : index
    %7 = vector.load %arg5[%c0_8, %c0_9] : memref<32x32xf32, #tpu.memory_space<vmem>>, vector<32x32xf32>
    %cst_10 = arith.constant dense<0.000000e+00> : vector<8x32xf32>
    %8 = tpu.matmul %3, %7, %cst_10 {dimension_numbers = #tpu.dot_dimension_numbers<[1], [0], [0], [1], [0, 0, 1, 1], [], []>} : vector<8x32xf32>, vector<32x32xf32>, vector<8x32xf32> -> vector<8x32xf32>
    %9 = arith.addf %6, %8 : vector<8x32xf32>
    %c0_11 = arith.constant 0 : index
    %c0_12 = arith.constant 0 : index
    %10 = vector.load %arg6[%c0_11, %c0_12] : memref<32x32xf32, #tpu.memory_space<vmem>>, vector<32x32xf32>
    %cst_13 = arith.constant dense<0.000000e+00> : vector<8x32xf32>
    %11 = tpu.matmul %4, %10, %cst_13 {dimension_numbers = #tpu.dot_dimension_numbers<[1], [0], [0], [1], [0, 0, 1, 1], [], []>} : vector<8x32xf32>, vector<32x32xf32>, vector<8x32xf32> -> vector<8x32xf32>
    %12 = arith.addf %9, %11 : vector<8x32xf32>
    %c0_14 = arith.constant 0 : index
    %c0_15 = arith.constant 0 : index
    %13 = vector.load %arg7[%c0_14, %c0_15] : memref<1x32xf32, #tpu.memory_space<vmem>>, vector<1x32xf32>
    %14 = vector.broadcast %13 : vector<1x32xf32> to vector<8x32xf32>
    %15 = arith.addf %12, %14 : vector<8x32xf32>
    %c0_16 = arith.constant 0 : index
    %c0_17 = arith.constant 0 : index
    %c0_18 = arith.constant 0 : index
    %16 = vector.load %arg3[%c0_16, %c0_17, %c0_18] : memref<1x8x32xf32, #tpu.memory_space<vmem>>, vector<1x8x32xf32>
    %17 = vector.shape_cast %16 : vector<1x8x32xf32> to vector<8x32xf32>
    %18 = arith.addf %15, %17 : vector<8x32xf32>
    %c0_19 = arith.constant 0 : index
    %c0_20 = arith.constant 0 : index
    %19 = vector.load %arg8[%c0_19, %c0_20] : memref<1x32xf32, #tpu.memory_space<vmem>>, vector<1x32xf32>
    %20 = vector.broadcast %19 : vector<1x32xf32> to vector<8x32xf32>
    %21 = arith.mulf %18, %20 : vector<8x32xf32>
    %c0_21 = arith.constant 0 : index
    %c0_22 = arith.constant 0 : index
    %22 = vector.load %arg9[%c0_21, %c0_22] : memref<1x32xf32, #tpu.memory_space<vmem>>, vector<1x32xf32>
    %23 = vector.broadcast %22 : vector<1x32xf32> to vector<8x32xf32>
    %24 = arith.addf %21, %23 : vector<8x32xf32>
    %c0_23 = arith.constant 0 : index
    %c0_24 = arith.constant 0 : index
    %c0_25 = arith.constant 0 : index
    %25 = vector.load %arg10[%c0_23, %c0_24, %c0_25] : memref<1x8x32xf32, #tpu.memory_space<vmem>>, vector<1x8x32xf32>
    %26 = vector.shape_cast %25 : vector<1x8x32xf32> to vector<8x32xf32>
    %27 = vector.shape_cast %24 : vector<8x32xf32> to vector<1x8x32xf32>
    tpu.vector_store %arg10[%c0_23, %c0_24, %c0_25], %27 {strides = array<i32>} : memref<1x8x32xf32, #tpu.memory_space<vmem>>, vector<1x8x32xf32>,
    return
  }
  func.func @transform_0(%arg0: i32) -> (i32, i32, i32) {
    %c0_i32 = arith.constant 0 : i32
    %c0_i32_0 = arith.constant 0 : i32
    %c0_i32_1 = arith.constant 0 : i32
    return %arg0, %c0_i32, %c0_i32_0 : i32, i32, i32
  }
  func.func @transform_1(%arg0: i32) -> (i32, i32) {
    %c0_i32 = arith.constant 0 : i32
    %c0_i32_0 = arith.constant 0 : i32
    %c0_i32_1 = arith.constant 0 : i32
    return %c0_i32, %c0_i32_0 : i32, i32
  }
  func.func @transform_2(%arg0: i32) -> (i32, i32, i32) {
    %c0_i32 = arith.constant 0 : i32
    %c0_i32_0 = arith.constant 0 : i32
    %c0_i32_1 = arith.constant 0 : i32
    return %arg0, %c0_i32, %c0_i32_0 : i32, i32, i32
  }
  func.func @transform_3(%arg0: i32) -> (i32, i32) {
    %c0_i32 = arith.constant 0 : i32
    %c0_i32_0 = arith.constant 0 : i32
    %c0_i32_1 = arith.constant 0 : i32
    return %c0_i32, %c0_i32_0 : i32, i32
  }
  func.func @transform_4(%arg0: i32) -> (i32, i32) {
    %c0_i32 = arith.constant 0 : i32
    %c0_i32_0 = arith.constant 0 : i32
    %c0_i32_1 = arith.constant 0 : i32
    return %c0_i32, %c0_i32_0 : i32, i32
  }
  func.func @transform_5(%arg0: i32) -> (i32, i32) {
    %c0_i32 = arith.constant 0 : i32
    %c0_i32_0 = arith.constant 0 : i32
    %c0_i32_1 = arith.constant 0 : i32
    return %c0_i32, %c0_i32_0 : i32, i32
  }
  func.func @transform_6(%arg0: i32) -> (i32, i32) {
    %c0_i32 = arith.constant 0 : i32
    %c0_i32_0 = arith.constant 0 : i32
    %c0_i32_1 = arith.constant 0 : i32
    return %c0_i32, %c0_i32_0 : i32, i32
  }
  func.func @transform_7(%arg0: i32) -> (i32, i32) {
    %c0_i32 = arith.constant 0 : i32
    %c0_i32_0 = arith.constant 0 : i32
    %c0_i32_1 = arith.constant 0 : i32
    return %c0_i32, %c0_i32_0 : i32, i32
  }
  func.func @transform_8(%arg0: i32) -> (i32, i32) {
    %c0_i32 = arith.constant 0 : i32
    %c0_i32_0 = arith.constant 0 : i32
    %c0_i32_1 = arith.constant 0 : i32
    return %c0_i32, %c0_i32_0 : i32, i32
  }
  func.func @transform_9(%arg0: i32) -> (i32, i32, i32) {
    %c0_i32 = arith.constant 0 : i32
    %c0_i32_0 = arith.constant 0 : i32
    %c0_i32_1 = arith.constant 0 : i32
    return %arg0, %c0_i32, %c0_i32_0 : i32, i32, i32
  }
}

module attributes {stable_mosaic.version = 11 : i64} {
  func.func @_tcn_kernel(%arg0: i32, %arg1: memref<96x32xf32, #tpu.memory_space<vmem>>, %arg2: memref<96x32xf32, #tpu.memory_space<vmem>>, %arg3: memref<32x64xf32, #tpu.memory_space<vmem>>, %arg4: memref<32x64xf32, #tpu.memory_space<vmem>>, %arg5: memref<1x64xf32, #tpu.memory_space<vmem>>, %arg6: memref<32x64xf32, #tpu.memory_space<vmem>>, %arg7: memref<1x64xf32, #tpu.memory_space<vmem>>, %arg8: memref<96x64xf32, #tpu.memory_space<vmem>>, %arg9: memref<96x32xf32, #tpu.memory_space<vmem>>, %arg10: memref<96x64xf32, #tpu.memory_space<vmem>>) attributes {dimension_semantics = [#tpu.dimension_semantics<parallel>], iteration_bounds = array<i64: 1>, scalar_prefetch = 0 : i64, scratch_operands = 0 : i64, tpu.core_type = #tpu.core_type<tc>, window_params = [{transform_indices = @transform_0, window_bounds = array<i64: 96, 32>}, {transform_indices = @transform_1, window_bounds = array<i64: 96, 32>}, {pipeline_mode = #tpu.pipeline_mode<synchronous>, transform_indices = @transform_2, window_bounds = array<i64: 32, 64>}, {pipeline_mode = #tpu.pipeline_mode<synchronous>, transform_indices = @transform_3, window_bounds = array<i64: 32, 64>}, {pipeline_mode = #tpu.pipeline_mode<synchronous>, transform_indices = @transform_4, window_bounds = array<i64: 1, 64>}, {pipeline_mode = #tpu.pipeline_mode<synchronous>, transform_indices = @transform_5, window_bounds = array<i64: 32, 64>}, {pipeline_mode = #tpu.pipeline_mode<synchronous>, transform_indices = @transform_6, window_bounds = array<i64: 1, 64>}, {transform_indices = @transform_7, window_bounds = array<i64: 96, 64>}, {transform_indices = @transform_8, window_bounds = array<i64: 96, 32>}, {transform_indices = @transform_9, window_bounds = array<i64: 96, 64>}]} {
    %c0 = arith.constant 0 : index
    %c0_0 = arith.constant 0 : index
    %0 = vector.load %arg1[%c0, %c0_0] : memref<96x32xf32, #tpu.memory_space<vmem>>, vector<96x32xf32>
    %c0_1 = arith.constant 0 : index
    %c0_2 = arith.constant 0 : index
    %1 = vector.load %arg3[%c0_1, %c0_2] : memref<32x64xf32, #tpu.memory_space<vmem>>, vector<32x64xf32>
    %cst = arith.constant dense<0.000000e+00> : vector<96x64xf32>
    %2 = tpu.matmul %0, %1, %cst {dimension_numbers = #tpu.dot_dimension_numbers<[1], [0], [0], [1], [0, 0, 1, 1], [], []>} : vector<96x32xf32>, vector<32x64xf32>, vector<96x64xf32> -> vector<96x64xf32>
    %c0_3 = arith.constant 0 : index
    %c0_4 = arith.constant 0 : index
    %3 = vector.load %arg2[%c0_3, %c0_4] : memref<96x32xf32, #tpu.memory_space<vmem>>, vector<96x32xf32>
    %c0_5 = arith.constant 0 : index
    %c0_6 = arith.constant 0 : index
    %4 = vector.load %arg4[%c0_5, %c0_6] : memref<32x64xf32, #tpu.memory_space<vmem>>, vector<32x64xf32>
    %cst_7 = arith.constant dense<0.000000e+00> : vector<96x64xf32>
    %5 = tpu.matmul %3, %4, %cst_7 {dimension_numbers = #tpu.dot_dimension_numbers<[1], [0], [0], [1], [0, 0, 1, 1], [], []>} : vector<96x32xf32>, vector<32x64xf32>, vector<96x64xf32> -> vector<96x64xf32>
    %6 = arith.addf %2, %5 : vector<96x64xf32>
    %c0_8 = arith.constant 0 : index
    %c0_9 = arith.constant 0 : index
    %7 = vector.load %arg5[%c0_8, %c0_9] : memref<1x64xf32, #tpu.memory_space<vmem>>, vector<1x64xf32>
    %8 = vector.broadcast %7 : vector<1x64xf32> to vector<96x64xf32>
    %9 = arith.addf %6, %8 : vector<96x64xf32>
    %10 = vector.extract_strided_slice %9 {offsets = [0, 0], sizes = [96, 32], strides = [1, 1]} : vector<96x64xf32> to vector<96x32xf32>
    %11 = math.tanh %10 : vector<96x32xf32>
    %12 = vector.extract_strided_slice %9 {offsets = [0, 32], sizes = [96, 32], strides = [1, 1]} : vector<96x64xf32> to vector<96x32xf32>
    %13 = arith.negf %12 : vector<96x32xf32>
    %14 = math.exp %13 : vector<96x32xf32>
    %cst_10 = arith.constant 1.000000e+00 : f32
    %15 = vector.broadcast %cst_10 : f32 to vector<96x32xf32>
    %16 = arith.addf %15, %14 : vector<96x32xf32>
    %17 = arith.divf %15, %16 : vector<96x32xf32>
    %18 = arith.mulf %11, %17 : vector<96x32xf32>
    %c0_11 = arith.constant 0 : index
    %c0_12 = arith.constant 0 : index
    %19 = vector.load %arg9[%c0_11, %c0_12] : memref<96x32xf32, #tpu.memory_space<vmem>>, vector<96x32xf32>
    tpu.vector_store %arg9[%c0_11, %c0_12], %18 {strides = array<i32>} : memref<96x32xf32, #tpu.memory_space<vmem>>, vector<96x32xf32>,
    %c0_13 = arith.constant 0 : index
    %c0_14 = arith.constant 0 : index
    %20 = vector.load %arg6[%c0_13, %c0_14] : memref<32x64xf32, #tpu.memory_space<vmem>>, vector<32x64xf32>
    %cst_15 = arith.constant dense<0.000000e+00> : vector<96x64xf32>
    %21 = tpu.matmul %18, %20, %cst_15 {dimension_numbers = #tpu.dot_dimension_numbers<[1], [0], [0], [1], [0, 0, 1, 1], [], []>} : vector<96x32xf32>, vector<32x64xf32>, vector<96x64xf32> -> vector<96x64xf32>
    %c0_16 = arith.constant 0 : index
    %c0_17 = arith.constant 0 : index
    %22 = vector.load %arg7[%c0_16, %c0_17] : memref<1x64xf32, #tpu.memory_space<vmem>>, vector<1x64xf32>
    %23 = vector.broadcast %22 : vector<1x64xf32> to vector<96x64xf32>
    %24 = arith.addf %21, %23 : vector<96x64xf32>
    %c0_18 = arith.constant 0 : index
    %c0_19 = arith.constant 0 : index
    %25 = vector.load %arg8[%c0_18, %c0_19] : memref<96x64xf32, #tpu.memory_space<vmem>>, vector<96x64xf32>
    %26 = arith.addf %24, %25 : vector<96x64xf32>
    %c0_20 = arith.constant 0 : index
    %c0_21 = arith.constant 0 : index
    %27 = vector.load %arg10[%c0_20, %c0_21] : memref<96x64xf32, #tpu.memory_space<vmem>>, vector<96x64xf32>
    tpu.vector_store %arg10[%c0_20, %c0_21], %26 {strides = array<i32>} : memref<96x64xf32, #tpu.memory_space<vmem>>, vector<96x64xf32>,
    return
  }
  func.func @transform_0(%arg0: i32) -> (i32, i32) {
    %c0_i32 = arith.constant 0 : i32
    %c0_i32_0 = arith.constant 0 : i32
    return %arg0, %c0_i32 : i32, i32
  }
  func.func @transform_1(%arg0: i32) -> (i32, i32) {
    %c0_i32 = arith.constant 0 : i32
    %c0_i32_0 = arith.constant 0 : i32
    return %arg0, %c0_i32 : i32, i32
  }
  func.func @transform_2(%arg0: i32) -> (i32, i32) {
    %c0_i32 = arith.constant 0 : i32
    %c0_i32_0 = arith.constant 0 : i32
    %c0_i32_1 = arith.constant 0 : i32
    return %c0_i32, %c0_i32_0 : i32, i32
  }
  func.func @transform_3(%arg0: i32) -> (i32, i32) {
    %c0_i32 = arith.constant 0 : i32
    %c0_i32_0 = arith.constant 0 : i32
    %c0_i32_1 = arith.constant 0 : i32
    return %c0_i32, %c0_i32_0 : i32, i32
  }
  func.func @transform_4(%arg0: i32) -> (i32, i32) {
    %c0_i32 = arith.constant 0 : i32
    %c0_i32_0 = arith.constant 0 : i32
    %c0_i32_1 = arith.constant 0 : i32
    return %c0_i32, %c0_i32_0 : i32, i32
  }
  func.func @transform_5(%arg0: i32) -> (i32, i32) {
    %c0_i32 = arith.constant 0 : i32
    %c0_i32_0 = arith.constant 0 : i32
    %c0_i32_1 = arith.constant 0 : i32
    return %c0_i32, %c0_i32_0 : i32, i32
  }
  func.func @transform_6(%arg0: i32) -> (i32, i32) {
    %c0_i32 = arith.constant 0 : i32
    %c0_i32_0 = arith.constant 0 : i32
    %c0_i32_1 = arith.constant 0 : i32
    return %c0_i32, %c0_i32_0 : i32, i32
  }
  func.func @transform_7(%arg0: i32) -> (i32, i32) {
    %c0_i32 = arith.constant 0 : i32
    %c0_i32_0 = arith.constant 0 : i32
    return %arg0, %c0_i32 : i32, i32
  }
  func.func @transform_8(%arg0: i32) -> (i32, i32) {
    %c0_i32 = arith.constant 0 : i32
    %c0_i32_0 = arith.constant 0 : i32
    return %arg0, %c0_i32 : i32, i32
  }
  func.func @transform_9(%arg0: i32) -> (i32, i32) {
    %c0_i32 = arith.constant 0 : i32
    %c0_i32_0 = arith.constant 0 : i32
    return %arg0, %c0_i32 : i32, i32
  }
}

module attributes {stable_mosaic.version = 11 : i64} {
  func.func @_gcn_bn_kernel(%arg0: i32, %arg1: memref<1x8x32xf32, #tpu.memory_space<vmem>>, %arg2: memref<8x8xf32, #tpu.memory_space<vmem>>, %arg3: memref<1x8x32xf32, #tpu.memory_space<vmem>>, %arg4: memref<32x32xf32, #tpu.memory_space<vmem>>, %arg5: memref<32x32xf32, #tpu.memory_space<vmem>>, %arg6: memref<32x32xf32, #tpu.memory_space<vmem>>, %arg7: memref<1x32xf32, #tpu.memory_space<vmem>>, %arg8: memref<1x32xf32, #tpu.memory_space<vmem>>, %arg9: memref<1x32xf32, #tpu.memory_space<vmem>>, %arg10: memref<1x8x32xf32, #tpu.memory_space<vmem>>) attributes {dimension_semantics = [#tpu.dimension_semantics<parallel>], iteration_bounds = array<i64: 12>, scalar_prefetch = 0 : i64, scratch_operands = 0 : i64, tpu.core_type = #tpu.core_type<tc>, window_params = [{transform_indices = @transform_0, window_bounds = array<i64: 1, 8, 32>}, {pipeline_mode = #tpu.pipeline_mode<synchronous>, transform_indices = @transform_1, window_bounds = array<i64: 8, 8>}, {transform_indices = @transform_2, window_bounds = array<i64: 1, 8, 32>}, {pipeline_mode = #tpu.pipeline_mode<synchronous>, transform_indices = @transform_3, window_bounds = array<i64: 32, 32>}, {pipeline_mode = #tpu.pipeline_mode<synchronous>, transform_indices = @transform_4, window_bounds = array<i64: 32, 32>}, {pipeline_mode = #tpu.pipeline_mode<synchronous>, transform_indices = @transform_5, window_bounds = array<i64: 32, 32>}, {pipeline_mode = #tpu.pipeline_mode<synchronous>, transform_indices = @transform_6, window_bounds = array<i64: 1, 32>}, {pipeline_mode = #tpu.pipeline_mode<synchronous>, transform_indices = @transform_7, window_bounds = array<i64: 1, 32>}, {pipeline_mode = #tpu.pipeline_mode<synchronous>, transform_indices = @transform_8, window_bounds = array<i64: 1, 32>}, {transform_indices = @transform_9, window_bounds = array<i64: 1, 8, 32>}]} {
    %c0 = arith.constant 0 : index
    %c0_0 = arith.constant 0 : index
    %c0_1 = arith.constant 0 : index
    %0 = vector.load %arg1[%c0, %c0_0, %c0_1] : memref<1x8x32xf32, #tpu.memory_space<vmem>>, vector<1x8x32xf32>
    %1 = vector.shape_cast %0 : vector<1x8x32xf32> to vector<8x32xf32>
    %c0_2 = arith.constant 0 : index
    %c0_3 = arith.constant 0 : index
    %2 = vector.load %arg2[%c0_2, %c0_3] : memref<8x8xf32, #tpu.memory_space<vmem>>, vector<8x8xf32>
    %cst = arith.constant dense<0.000000e+00> : vector<8x32xf32>
    %3 = tpu.matmul %2, %1, %cst {dimension_numbers = #tpu.dot_dimension_numbers<[1], [0], [0], [1], [0, 0, 1, 1], [], []>} : vector<8x8xf32>, vector<8x32xf32>, vector<8x32xf32> -> vector<8x32xf32>
    %cst_4 = arith.constant dense<0.000000e+00> : vector<8x32xf32>
    %4 = tpu.matmul %2, %3, %cst_4 {dimension_numbers = #tpu.dot_dimension_numbers<[1], [0], [0], [1], [0, 0, 1, 1], [], []>} : vector<8x8xf32>, vector<8x32xf32>, vector<8x32xf32> -> vector<8x32xf32>
    %c0_5 = arith.constant 0 : index
    %c0_6 = arith.constant 0 : index
    %5 = vector.load %arg4[%c0_5, %c0_6] : memref<32x32xf32, #tpu.memory_space<vmem>>, vector<32x32xf32>
    %cst_7 = arith.constant dense<0.000000e+00> : vector<8x32xf32>
    %6 = tpu.matmul %1, %5, %cst_7 {dimension_numbers = #tpu.dot_dimension_numbers<[1], [0], [0], [1], [0, 0, 1, 1], [], []>} : vector<8x32xf32>, vector<32x32xf32>, vector<8x32xf32> -> vector<8x32xf32>
    %c0_8 = arith.constant 0 : index
    %c0_9 = arith.constant 0 : index
    %7 = vector.load %arg5[%c0_8, %c0_9] : memref<32x32xf32, #tpu.memory_space<vmem>>, vector<32x32xf32>
    %cst_10 = arith.constant dense<0.000000e+00> : vector<8x32xf32>
    %8 = tpu.matmul %3, %7, %cst_10 {dimension_numbers = #tpu.dot_dimension_numbers<[1], [0], [0], [1], [0, 0, 1, 1], [], []>} : vector<8x32xf32>, vector<32x32xf32>, vector<8x32xf32> -> vector<8x32xf32>
    %9 = arith.addf %6, %8 : vector<8x32xf32>
    %c0_11 = arith.constant 0 : index
    %c0_12 = arith.constant 0 : index
    %10 = vector.load %arg6[%c0_11, %c0_12] : memref<32x32xf32, #tpu.memory_space<vmem>>, vector<32x32xf32>
    %cst_13 = arith.constant dense<0.000000e+00> : vector<8x32xf32>
    %11 = tpu.matmul %4, %10, %cst_13 {dimension_numbers = #tpu.dot_dimension_numbers<[1], [0], [0], [1], [0, 0, 1, 1], [], []>} : vector<8x32xf32>, vector<32x32xf32>, vector<8x32xf32> -> vector<8x32xf32>
    %12 = arith.addf %9, %11 : vector<8x32xf32>
    %c0_14 = arith.constant 0 : index
    %c0_15 = arith.constant 0 : index
    %13 = vector.load %arg7[%c0_14, %c0_15] : memref<1x32xf32, #tpu.memory_space<vmem>>, vector<1x32xf32>
    %14 = vector.broadcast %13 : vector<1x32xf32> to vector<8x32xf32>
    %15 = arith.addf %12, %14 : vector<8x32xf32>
    %c0_16 = arith.constant 0 : index
    %c0_17 = arith.constant 0 : index
    %c0_18 = arith.constant 0 : index
    %16 = vector.load %arg3[%c0_16, %c0_17, %c0_18] : memref<1x8x32xf32, #tpu.memory_space<vmem>>, vector<1x8x32xf32>
    %17 = vector.shape_cast %16 : vector<1x8x32xf32> to vector<8x32xf32>
    %18 = arith.addf %15, %17 : vector<8x32xf32>
    %c0_19 = arith.constant 0 : index
    %c0_20 = arith.constant 0 : index
    %19 = vector.load %arg8[%c0_19, %c0_20] : memref<1x32xf32, #tpu.memory_space<vmem>>, vector<1x32xf32>
    %20 = vector.broadcast %19 : vector<1x32xf32> to vector<8x32xf32>
    %21 = arith.mulf %18, %20 : vector<8x32xf32>
    %c0_21 = arith.constant 0 : index
    %c0_22 = arith.constant 0 : index
    %22 = vector.load %arg9[%c0_21, %c0_22] : memref<1x32xf32, #tpu.memory_space<vmem>>, vector<1x32xf32>
    %23 = vector.broadcast %22 : vector<1x32xf32> to vector<8x32xf32>
    %24 = arith.addf %21, %23 : vector<8x32xf32>
    %c0_23 = arith.constant 0 : index
    %c0_24 = arith.constant 0 : index
    %c0_25 = arith.constant 0 : index
    %25 = vector.load %arg10[%c0_23, %c0_24, %c0_25] : memref<1x8x32xf32, #tpu.memory_space<vmem>>, vector<1x8x32xf32>
    %26 = vector.shape_cast %25 : vector<1x8x32xf32> to vector<8x32xf32>
    %27 = vector.shape_cast %24 : vector<8x32xf32> to vector<1x8x32xf32>
    tpu.vector_store %arg10[%c0_23, %c0_24, %c0_25], %27 {strides = array<i32>} : memref<1x8x32xf32, #tpu.memory_space<vmem>>, vector<1x8x32xf32>,
    return
  }
  func.func @transform_0(%arg0: i32) -> (i32, i32, i32) {
    %c0_i32 = arith.constant 0 : i32
    %c0_i32_0 = arith.constant 0 : i32
    %c0_i32_1 = arith.constant 0 : i32
    return %arg0, %c0_i32, %c0_i32_0 : i32, i32, i32
  }
  func.func @transform_1(%arg0: i32) -> (i32, i32) {
    %c0_i32 = arith.constant 0 : i32
    %c0_i32_0 = arith.constant 0 : i32
    %c0_i32_1 = arith.constant 0 : i32
    return %c0_i32, %c0_i32_0 : i32, i32
  }
  func.func @transform_2(%arg0: i32) -> (i32, i32, i32) {
    %c0_i32 = arith.constant 0 : i32
    %c0_i32_0 = arith.constant 0 : i32
    %c0_i32_1 = arith.constant 0 : i32
    return %arg0, %c0_i32, %c0_i32_0 : i32, i32, i32
  }
  func.func @transform_3(%arg0: i32) -> (i32, i32) {
    %c0_i32 = arith.constant 0 : i32
    %c0_i32_0 = arith.constant 0 : i32
    %c0_i32_1 = arith.constant 0 : i32
    return %c0_i32, %c0_i32_0 : i32, i32
  }
  func.func @transform_4(%arg0: i32) -> (i32, i32) {
    %c0_i32 = arith.constant 0 : i32
    %c0_i32_0 = arith.constant 0 : i32
    %c0_i32_1 = arith.constant 0 : i32
    return %c0_i32, %c0_i32_0 : i32, i32
  }
  func.func @transform_5(%arg0: i32) -> (i32, i32) {
    %c0_i32 = arith.constant 0 : i32
    %c0_i32_0 = arith.constant 0 : i32
    %c0_i32_1 = arith.constant 0 : i32
    return %c0_i32, %c0_i32_0 : i32, i32
  }
  func.func @transform_6(%arg0: i32) -> (i32, i32) {
    %c0_i32 = arith.constant 0 : i32
    %c0_i32_0 = arith.constant 0 : i32
    %c0_i32_1 = arith.constant 0 : i32
    return %c0_i32, %c0_i32_0 : i32, i32
  }
  func.func @transform_7(%arg0: i32) -> (i32, i32) {
    %c0_i32 = arith.constant 0 : i32
    %c0_i32_0 = arith.constant 0 : i32
    %c0_i32_1 = arith.constant 0 : i32
    return %c0_i32, %c0_i32_0 : i32, i32
  }
  func.func @transform_8(%arg0: i32) -> (i32, i32) {
    %c0_i32 = arith.constant 0 : i32
    %c0_i32_0 = arith.constant 0 : i32
    %c0_i32_1 = arith.constant 0 : i32
    return %c0_i32, %c0_i32_0 : i32, i32
  }
  func.func @transform_9(%arg0: i32) -> (i32, i32, i32) {
    %c0_i32 = arith.constant 0 : i32
    %c0_i32_0 = arith.constant 0 : i32
    %c0_i32_1 = arith.constant 0 : i32
    return %arg0, %c0_i32, %c0_i32_0 : i32, i32, i32
  }
}

module attributes {stable_mosaic.version = 11 : i64} {
  func.func @_tcn_kernel(%arg0: i32, %arg1: memref<64x32xf32, #tpu.memory_space<vmem>>, %arg2: memref<64x32xf32, #tpu.memory_space<vmem>>, %arg3: memref<32x64xf32, #tpu.memory_space<vmem>>, %arg4: memref<32x64xf32, #tpu.memory_space<vmem>>, %arg5: memref<1x64xf32, #tpu.memory_space<vmem>>, %arg6: memref<32x64xf32, #tpu.memory_space<vmem>>, %arg7: memref<1x64xf32, #tpu.memory_space<vmem>>, %arg8: memref<64x64xf32, #tpu.memory_space<vmem>>, %arg9: memref<64x32xf32, #tpu.memory_space<vmem>>, %arg10: memref<64x64xf32, #tpu.memory_space<vmem>>) attributes {dimension_semantics = [#tpu.dimension_semantics<parallel>], iteration_bounds = array<i64: 1>, scalar_prefetch = 0 : i64, scratch_operands = 0 : i64, tpu.core_type = #tpu.core_type<tc>, window_params = [{transform_indices = @transform_0, window_bounds = array<i64: 64, 32>}, {transform_indices = @transform_1, window_bounds = array<i64: 64, 32>}, {pipeline_mode = #tpu.pipeline_mode<synchronous>, transform_indices = @transform_2, window_bounds = array<i64: 32, 64>}, {pipeline_mode = #tpu.pipeline_mode<synchronous>, transform_indices = @transform_3, window_bounds = array<i64: 32, 64>}, {pipeline_mode = #tpu.pipeline_mode<synchronous>, transform_indices = @transform_4, window_bounds = array<i64: 1, 64>}, {pipeline_mode = #tpu.pipeline_mode<synchronous>, transform_indices = @transform_5, window_bounds = array<i64: 32, 64>}, {pipeline_mode = #tpu.pipeline_mode<synchronous>, transform_indices = @transform_6, window_bounds = array<i64: 1, 64>}, {transform_indices = @transform_7, window_bounds = array<i64: 64, 64>}, {transform_indices = @transform_8, window_bounds = array<i64: 64, 32>}, {transform_indices = @transform_9, window_bounds = array<i64: 64, 64>}]} {
    %c0 = arith.constant 0 : index
    %c0_0 = arith.constant 0 : index
    %0 = vector.load %arg1[%c0, %c0_0] : memref<64x32xf32, #tpu.memory_space<vmem>>, vector<64x32xf32>
    %c0_1 = arith.constant 0 : index
    %c0_2 = arith.constant 0 : index
    %1 = vector.load %arg3[%c0_1, %c0_2] : memref<32x64xf32, #tpu.memory_space<vmem>>, vector<32x64xf32>
    %cst = arith.constant dense<0.000000e+00> : vector<64x64xf32>
    %2 = tpu.matmul %0, %1, %cst {dimension_numbers = #tpu.dot_dimension_numbers<[1], [0], [0], [1], [0, 0, 1, 1], [], []>} : vector<64x32xf32>, vector<32x64xf32>, vector<64x64xf32> -> vector<64x64xf32>
    %c0_3 = arith.constant 0 : index
    %c0_4 = arith.constant 0 : index
    %3 = vector.load %arg2[%c0_3, %c0_4] : memref<64x32xf32, #tpu.memory_space<vmem>>, vector<64x32xf32>
    %c0_5 = arith.constant 0 : index
    %c0_6 = arith.constant 0 : index
    %4 = vector.load %arg4[%c0_5, %c0_6] : memref<32x64xf32, #tpu.memory_space<vmem>>, vector<32x64xf32>
    %cst_7 = arith.constant dense<0.000000e+00> : vector<64x64xf32>
    %5 = tpu.matmul %3, %4, %cst_7 {dimension_numbers = #tpu.dot_dimension_numbers<[1], [0], [0], [1], [0, 0, 1, 1], [], []>} : vector<64x32xf32>, vector<32x64xf32>, vector<64x64xf32> -> vector<64x64xf32>
    %6 = arith.addf %2, %5 : vector<64x64xf32>
    %c0_8 = arith.constant 0 : index
    %c0_9 = arith.constant 0 : index
    %7 = vector.load %arg5[%c0_8, %c0_9] : memref<1x64xf32, #tpu.memory_space<vmem>>, vector<1x64xf32>
    %8 = vector.broadcast %7 : vector<1x64xf32> to vector<64x64xf32>
    %9 = arith.addf %6, %8 : vector<64x64xf32>
    %10 = vector.extract_strided_slice %9 {offsets = [0, 0], sizes = [64, 32], strides = [1, 1]} : vector<64x64xf32> to vector<64x32xf32>
    %11 = math.tanh %10 : vector<64x32xf32>
    %12 = vector.extract_strided_slice %9 {offsets = [0, 32], sizes = [64, 32], strides = [1, 1]} : vector<64x64xf32> to vector<64x32xf32>
    %13 = arith.negf %12 : vector<64x32xf32>
    %14 = math.exp %13 : vector<64x32xf32>
    %cst_10 = arith.constant 1.000000e+00 : f32
    %15 = vector.broadcast %cst_10 : f32 to vector<64x32xf32>
    %16 = arith.addf %15, %14 : vector<64x32xf32>
    %17 = arith.divf %15, %16 : vector<64x32xf32>
    %18 = arith.mulf %11, %17 : vector<64x32xf32>
    %c0_11 = arith.constant 0 : index
    %c0_12 = arith.constant 0 : index
    %19 = vector.load %arg9[%c0_11, %c0_12] : memref<64x32xf32, #tpu.memory_space<vmem>>, vector<64x32xf32>
    tpu.vector_store %arg9[%c0_11, %c0_12], %18 {strides = array<i32>} : memref<64x32xf32, #tpu.memory_space<vmem>>, vector<64x32xf32>,
    %c0_13 = arith.constant 0 : index
    %c0_14 = arith.constant 0 : index
    %20 = vector.load %arg6[%c0_13, %c0_14] : memref<32x64xf32, #tpu.memory_space<vmem>>, vector<32x64xf32>
    %cst_15 = arith.constant dense<0.000000e+00> : vector<64x64xf32>
    %21 = tpu.matmul %18, %20, %cst_15 {dimension_numbers = #tpu.dot_dimension_numbers<[1], [0], [0], [1], [0, 0, 1, 1], [], []>} : vector<64x32xf32>, vector<32x64xf32>, vector<64x64xf32> -> vector<64x64xf32>
    %c0_16 = arith.constant 0 : index
    %c0_17 = arith.constant 0 : index
    %22 = vector.load %arg7[%c0_16, %c0_17] : memref<1x64xf32, #tpu.memory_space<vmem>>, vector<1x64xf32>
    %23 = vector.broadcast %22 : vector<1x64xf32> to vector<64x64xf32>
    %24 = arith.addf %21, %23 : vector<64x64xf32>
    %c0_18 = arith.constant 0 : index
    %c0_19 = arith.constant 0 : index
    %25 = vector.load %arg8[%c0_18, %c0_19] : memref<64x64xf32, #tpu.memory_space<vmem>>, vector<64x64xf32>
    %26 = arith.addf %24, %25 : vector<64x64xf32>
    %c0_20 = arith.constant 0 : index
    %c0_21 = arith.constant 0 : index
    %27 = vector.load %arg10[%c0_20, %c0_21] : memref<64x64xf32, #tpu.memory_space<vmem>>, vector<64x64xf32>
    tpu.vector_store %arg10[%c0_20, %c0_21], %26 {strides = array<i32>} : memref<64x64xf32, #tpu.memory_space<vmem>>, vector<64x64xf32>,
    return
  }
  func.func @transform_0(%arg0: i32) -> (i32, i32) {
    %c0_i32 = arith.constant 0 : i32
    %c0_i32_0 = arith.constant 0 : i32
    return %arg0, %c0_i32 : i32, i32
  }
  func.func @transform_1(%arg0: i32) -> (i32, i32) {
    %c0_i32 = arith.constant 0 : i32
    %c0_i32_0 = arith.constant 0 : i32
    return %arg0, %c0_i32 : i32, i32
  }
  func.func @transform_2(%arg0: i32) -> (i32, i32) {
    %c0_i32 = arith.constant 0 : i32
    %c0_i32_0 = arith.constant 0 : i32
    %c0_i32_1 = arith.constant 0 : i32
    return %c0_i32, %c0_i32_0 : i32, i32
  }
  func.func @transform_3(%arg0: i32) -> (i32, i32) {
    %c0_i32 = arith.constant 0 : i32
    %c0_i32_0 = arith.constant 0 : i32
    %c0_i32_1 = arith.constant 0 : i32
    return %c0_i32, %c0_i32_0 : i32, i32
  }
  func.func @transform_4(%arg0: i32) -> (i32, i32) {
    %c0_i32 = arith.constant 0 : i32
    %c0_i32_0 = arith.constant 0 : i32
    %c0_i32_1 = arith.constant 0 : i32
    return %c0_i32, %c0_i32_0 : i32, i32
  }
  func.func @transform_5(%arg0: i32) -> (i32, i32) {
    %c0_i32 = arith.constant 0 : i32
    %c0_i32_0 = arith.constant 0 : i32
    %c0_i32_1 = arith.constant 0 : i32
    return %c0_i32, %c0_i32_0 : i32, i32
  }
  func.func @transform_6(%arg0: i32) -> (i32, i32) {
    %c0_i32 = arith.constant 0 : i32
    %c0_i32_0 = arith.constant 0 : i32
    %c0_i32_1 = arith.constant 0 : i32
    return %c0_i32, %c0_i32_0 : i32, i32
  }
  func.func @transform_7(%arg0: i32) -> (i32, i32) {
    %c0_i32 = arith.constant 0 : i32
    %c0_i32_0 = arith.constant 0 : i32
    return %arg0, %c0_i32 : i32, i32
  }
  func.func @transform_8(%arg0: i32) -> (i32, i32) {
    %c0_i32 = arith.constant 0 : i32
    %c0_i32_0 = arith.constant 0 : i32
    return %arg0, %c0_i32 : i32, i32
  }
  func.func @transform_9(%arg0: i32) -> (i32, i32) {
    %c0_i32 = arith.constant 0 : i32
    %c0_i32_0 = arith.constant 0 : i32
    return %arg0, %c0_i32 : i32, i32
  }
}

module attributes {stable_mosaic.version = 11 : i64} {
  func.func @_gcn_bn_kernel(%arg0: i32, %arg1: memref<1x8x32xf32, #tpu.memory_space<vmem>>, %arg2: memref<8x8xf32, #tpu.memory_space<vmem>>, %arg3: memref<1x8x32xf32, #tpu.memory_space<vmem>>, %arg4: memref<32x32xf32, #tpu.memory_space<vmem>>, %arg5: memref<32x32xf32, #tpu.memory_space<vmem>>, %arg6: memref<32x32xf32, #tpu.memory_space<vmem>>, %arg7: memref<1x32xf32, #tpu.memory_space<vmem>>, %arg8: memref<1x32xf32, #tpu.memory_space<vmem>>, %arg9: memref<1x32xf32, #tpu.memory_space<vmem>>, %arg10: memref<1x8x32xf32, #tpu.memory_space<vmem>>) attributes {dimension_semantics = [#tpu.dimension_semantics<parallel>], iteration_bounds = array<i64: 8>, scalar_prefetch = 0 : i64, scratch_operands = 0 : i64, tpu.core_type = #tpu.core_type<tc>, window_params = [{transform_indices = @transform_0, window_bounds = array<i64: 1, 8, 32>}, {pipeline_mode = #tpu.pipeline_mode<synchronous>, transform_indices = @transform_1, window_bounds = array<i64: 8, 8>}, {transform_indices = @transform_2, window_bounds = array<i64: 1, 8, 32>}, {pipeline_mode = #tpu.pipeline_mode<synchronous>, transform_indices = @transform_3, window_bounds = array<i64: 32, 32>}, {pipeline_mode = #tpu.pipeline_mode<synchronous>, transform_indices = @transform_4, window_bounds = array<i64: 32, 32>}, {pipeline_mode = #tpu.pipeline_mode<synchronous>, transform_indices = @transform_5, window_bounds = array<i64: 32, 32>}, {pipeline_mode = #tpu.pipeline_mode<synchronous>, transform_indices = @transform_6, window_bounds = array<i64: 1, 32>}, {pipeline_mode = #tpu.pipeline_mode<synchronous>, transform_indices = @transform_7, window_bounds = array<i64: 1, 32>}, {pipeline_mode = #tpu.pipeline_mode<synchronous>, transform_indices = @transform_8, window_bounds = array<i64: 1, 32>}, {transform_indices = @transform_9, window_bounds = array<i64: 1, 8, 32>}]} {
    %c0 = arith.constant 0 : index
    %c0_0 = arith.constant 0 : index
    %c0_1 = arith.constant 0 : index
    %0 = vector.load %arg1[%c0, %c0_0, %c0_1] : memref<1x8x32xf32, #tpu.memory_space<vmem>>, vector<1x8x32xf32>
    %1 = vector.shape_cast %0 : vector<1x8x32xf32> to vector<8x32xf32>
    %c0_2 = arith.constant 0 : index
    %c0_3 = arith.constant 0 : index
    %2 = vector.load %arg2[%c0_2, %c0_3] : memref<8x8xf32, #tpu.memory_space<vmem>>, vector<8x8xf32>
    %cst = arith.constant dense<0.000000e+00> : vector<8x32xf32>
    %3 = tpu.matmul %2, %1, %cst {dimension_numbers = #tpu.dot_dimension_numbers<[1], [0], [0], [1], [0, 0, 1, 1], [], []>} : vector<8x8xf32>, vector<8x32xf32>, vector<8x32xf32> -> vector<8x32xf32>
    %cst_4 = arith.constant dense<0.000000e+00> : vector<8x32xf32>
    %4 = tpu.matmul %2, %3, %cst_4 {dimension_numbers = #tpu.dot_dimension_numbers<[1], [0], [0], [1], [0, 0, 1, 1], [], []>} : vector<8x8xf32>, vector<8x32xf32>, vector<8x32xf32> -> vector<8x32xf32>
    %c0_5 = arith.constant 0 : index
    %c0_6 = arith.constant 0 : index
    %5 = vector.load %arg4[%c0_5, %c0_6] : memref<32x32xf32, #tpu.memory_space<vmem>>, vector<32x32xf32>
    %cst_7 = arith.constant dense<0.000000e+00> : vector<8x32xf32>
    %6 = tpu.matmul %1, %5, %cst_7 {dimension_numbers = #tpu.dot_dimension_numbers<[1], [0], [0], [1], [0, 0, 1, 1], [], []>} : vector<8x32xf32>, vector<32x32xf32>, vector<8x32xf32> -> vector<8x32xf32>
    %c0_8 = arith.constant 0 : index
    %c0_9 = arith.constant 0 : index
    %7 = vector.load %arg5[%c0_8, %c0_9] : memref<32x32xf32, #tpu.memory_space<vmem>>, vector<32x32xf32>
    %cst_10 = arith.constant dense<0.000000e+00> : vector<8x32xf32>
    %8 = tpu.matmul %3, %7, %cst_10 {dimension_numbers = #tpu.dot_dimension_numbers<[1], [0], [0], [1], [0, 0, 1, 1], [], []>} : vector<8x32xf32>, vector<32x32xf32>, vector<8x32xf32> -> vector<8x32xf32>
    %9 = arith.addf %6, %8 : vector<8x32xf32>
    %c0_11 = arith.constant 0 : index
    %c0_12 = arith.constant 0 : index
    %10 = vector.load %arg6[%c0_11, %c0_12] : memref<32x32xf32, #tpu.memory_space<vmem>>, vector<32x32xf32>
    %cst_13 = arith.constant dense<0.000000e+00> : vector<8x32xf32>
    %11 = tpu.matmul %4, %10, %cst_13 {dimension_numbers = #tpu.dot_dimension_numbers<[1], [0], [0], [1], [0, 0, 1, 1], [], []>} : vector<8x32xf32>, vector<32x32xf32>, vector<8x32xf32> -> vector<8x32xf32>
    %12 = arith.addf %9, %11 : vector<8x32xf32>
    %c0_14 = arith.constant 0 : index
    %c0_15 = arith.constant 0 : index
    %13 = vector.load %arg7[%c0_14, %c0_15] : memref<1x32xf32, #tpu.memory_space<vmem>>, vector<1x32xf32>
    %14 = vector.broadcast %13 : vector<1x32xf32> to vector<8x32xf32>
    %15 = arith.addf %12, %14 : vector<8x32xf32>
    %c0_16 = arith.constant 0 : index
    %c0_17 = arith.constant 0 : index
    %c0_18 = arith.constant 0 : index
    %16 = vector.load %arg3[%c0_16, %c0_17, %c0_18] : memref<1x8x32xf32, #tpu.memory_space<vmem>>, vector<1x8x32xf32>
    %17 = vector.shape_cast %16 : vector<1x8x32xf32> to vector<8x32xf32>
    %18 = arith.addf %15, %17 : vector<8x32xf32>
    %c0_19 = arith.constant 0 : index
    %c0_20 = arith.constant 0 : index
    %19 = vector.load %arg8[%c0_19, %c0_20] : memref<1x32xf32, #tpu.memory_space<vmem>>, vector<1x32xf32>
    %20 = vector.broadcast %19 : vector<1x32xf32> to vector<8x32xf32>
    %21 = arith.mulf %18, %20 : vector<8x32xf32>
    %c0_21 = arith.constant 0 : index
    %c0_22 = arith.constant 0 : index
    %22 = vector.load %arg9[%c0_21, %c0_22] : memref<1x32xf32, #tpu.memory_space<vmem>>, vector<1x32xf32>
    %23 = vector.broadcast %22 : vector<1x32xf32> to vector<8x32xf32>
    %24 = arith.addf %21, %23 : vector<8x32xf32>
    %c0_23 = arith.constant 0 : index
    %c0_24 = arith.constant 0 : index
    %c0_25 = arith.constant 0 : index
    %25 = vector.load %arg10[%c0_23, %c0_24, %c0_25] : memref<1x8x32xf32, #tpu.memory_space<vmem>>, vector<1x8x32xf32>
    %26 = vector.shape_cast %25 : vector<1x8x32xf32> to vector<8x32xf32>
    %27 = vector.shape_cast %24 : vector<8x32xf32> to vector<1x8x32xf32>
    tpu.vector_store %arg10[%c0_23, %c0_24, %c0_25], %27 {strides = array<i32>} : memref<1x8x32xf32, #tpu.memory_space<vmem>>, vector<1x8x32xf32>,
    return
  }
  func.func @transform_0(%arg0: i32) -> (i32, i32, i32) {
    %c0_i32 = arith.constant 0 : i32
    %c0_i32_0 = arith.constant 0 : i32
    %c0_i32_1 = arith.constant 0 : i32
    return %arg0, %c0_i32, %c0_i32_0 : i32, i32, i32
  }
  func.func @transform_1(%arg0: i32) -> (i32, i32) {
    %c0_i32 = arith.constant 0 : i32
    %c0_i32_0 = arith.constant 0 : i32
    %c0_i32_1 = arith.constant 0 : i32
    return %c0_i32, %c0_i32_0 : i32, i32
  }
  func.func @transform_2(%arg0: i32) -> (i32, i32, i32) {
    %c0_i32 = arith.constant 0 : i32
    %c0_i32_0 = arith.constant 0 : i32
    %c0_i32_1 = arith.constant 0 : i32
    return %arg0, %c0_i32, %c0_i32_0 : i32, i32, i32
  }
  func.func @transform_3(%arg0: i32) -> (i32, i32) {
    %c0_i32 = arith.constant 0 : i32
    %c0_i32_0 = arith.constant 0 : i32
    %c0_i32_1 = arith.constant 0 : i32
    return %c0_i32, %c0_i32_0 : i32, i32
  }
  func.func @transform_4(%arg0: i32) -> (i32, i32) {
    %c0_i32 = arith.constant 0 : i32
    %c0_i32_0 = arith.constant 0 : i32
    %c0_i32_1 = arith.constant 0 : i32
    return %c0_i32, %c0_i32_0 : i32, i32
  }
  func.func @transform_5(%arg0: i32) -> (i32, i32) {
    %c0_i32 = arith.constant 0 : i32
    %c0_i32_0 = arith.constant 0 : i32
    %c0_i32_1 = arith.constant 0 : i32
    return %c0_i32, %c0_i32_0 : i32, i32
  }
  func.func @transform_6(%arg0: i32) -> (i32, i32) {
    %c0_i32 = arith.constant 0 : i32
    %c0_i32_0 = arith.constant 0 : i32
    %c0_i32_1 = arith.constant 0 : i32
    return %c0_i32, %c0_i32_0 : i32, i32
  }
  func.func @transform_7(%arg0: i32) -> (i32, i32) {
    %c0_i32 = arith.constant 0 : i32
    %c0_i32_0 = arith.constant 0 : i32
    %c0_i32_1 = arith.constant 0 : i32
    return %c0_i32, %c0_i32_0 : i32, i32
  }
  func.func @transform_8(%arg0: i32) -> (i32, i32) {
    %c0_i32 = arith.constant 0 : i32
    %c0_i32_0 = arith.constant 0 : i32
    %c0_i32_1 = arith.constant 0 : i32
    return %c0_i32, %c0_i32_0 : i32, i32
  }
  func.func @transform_9(%arg0: i32) -> (i32, i32, i32) {
    %c0_i32 = arith.constant 0 : i32
    %c0_i32_0 = arith.constant 0 : i32
    %c0_i32_1 = arith.constant 0 : i32
    return %arg0, %c0_i32, %c0_i32_0 : i32, i32, i32
  }
}

module attributes {stable_mosaic.version = 11 : i64} {
  func.func @_tcn_kernel(%arg0: i32, %arg1: memref<48x32xf32, #tpu.memory_space<vmem>>, %arg2: memref<48x32xf32, #tpu.memory_space<vmem>>, %arg3: memref<32x64xf32, #tpu.memory_space<vmem>>, %arg4: memref<32x64xf32, #tpu.memory_space<vmem>>, %arg5: memref<1x64xf32, #tpu.memory_space<vmem>>, %arg6: memref<32x64xf32, #tpu.memory_space<vmem>>, %arg7: memref<1x64xf32, #tpu.memory_space<vmem>>, %arg8: memref<48x64xf32, #tpu.memory_space<vmem>>, %arg9: memref<48x32xf32, #tpu.memory_space<vmem>>, %arg10: memref<48x64xf32, #tpu.memory_space<vmem>>) attributes {dimension_semantics = [#tpu.dimension_semantics<parallel>], iteration_bounds = array<i64: 1>, scalar_prefetch = 0 : i64, scratch_operands = 0 : i64, tpu.core_type = #tpu.core_type<tc>, window_params = [{transform_indices = @transform_0, window_bounds = array<i64: 48, 32>}, {transform_indices = @transform_1, window_bounds = array<i64: 48, 32>}, {pipeline_mode = #tpu.pipeline_mode<synchronous>, transform_indices = @transform_2, window_bounds = array<i64: 32, 64>}, {pipeline_mode = #tpu.pipeline_mode<synchronous>, transform_indices = @transform_3, window_bounds = array<i64: 32, 64>}, {pipeline_mode = #tpu.pipeline_mode<synchronous>, transform_indices = @transform_4, window_bounds = array<i64: 1, 64>}, {pipeline_mode = #tpu.pipeline_mode<synchronous>, transform_indices = @transform_5, window_bounds = array<i64: 32, 64>}, {pipeline_mode = #tpu.pipeline_mode<synchronous>, transform_indices = @transform_6, window_bounds = array<i64: 1, 64>}, {transform_indices = @transform_7, window_bounds = array<i64: 48, 64>}, {transform_indices = @transform_8, window_bounds = array<i64: 48, 32>}, {transform_indices = @transform_9, window_bounds = array<i64: 48, 64>}]} {
    %c0 = arith.constant 0 : index
    %c0_0 = arith.constant 0 : index
    %0 = vector.load %arg1[%c0, %c0_0] : memref<48x32xf32, #tpu.memory_space<vmem>>, vector<48x32xf32>
    %c0_1 = arith.constant 0 : index
    %c0_2 = arith.constant 0 : index
    %1 = vector.load %arg3[%c0_1, %c0_2] : memref<32x64xf32, #tpu.memory_space<vmem>>, vector<32x64xf32>
    %cst = arith.constant dense<0.000000e+00> : vector<48x64xf32>
    %2 = tpu.matmul %0, %1, %cst {dimension_numbers = #tpu.dot_dimension_numbers<[1], [0], [0], [1], [0, 0, 1, 1], [], []>} : vector<48x32xf32>, vector<32x64xf32>, vector<48x64xf32> -> vector<48x64xf32>
    %c0_3 = arith.constant 0 : index
    %c0_4 = arith.constant 0 : index
    %3 = vector.load %arg2[%c0_3, %c0_4] : memref<48x32xf32, #tpu.memory_space<vmem>>, vector<48x32xf32>
    %c0_5 = arith.constant 0 : index
    %c0_6 = arith.constant 0 : index
    %4 = vector.load %arg4[%c0_5, %c0_6] : memref<32x64xf32, #tpu.memory_space<vmem>>, vector<32x64xf32>
    %cst_7 = arith.constant dense<0.000000e+00> : vector<48x64xf32>
    %5 = tpu.matmul %3, %4, %cst_7 {dimension_numbers = #tpu.dot_dimension_numbers<[1], [0], [0], [1], [0, 0, 1, 1], [], []>} : vector<48x32xf32>, vector<32x64xf32>, vector<48x64xf32> -> vector<48x64xf32>
    %6 = arith.addf %2, %5 : vector<48x64xf32>
    %c0_8 = arith.constant 0 : index
    %c0_9 = arith.constant 0 : index
    %7 = vector.load %arg5[%c0_8, %c0_9] : memref<1x64xf32, #tpu.memory_space<vmem>>, vector<1x64xf32>
    %8 = vector.broadcast %7 : vector<1x64xf32> to vector<48x64xf32>
    %9 = arith.addf %6, %8 : vector<48x64xf32>
    %10 = vector.extract_strided_slice %9 {offsets = [0, 0], sizes = [48, 32], strides = [1, 1]} : vector<48x64xf32> to vector<48x32xf32>
    %11 = math.tanh %10 : vector<48x32xf32>
    %12 = vector.extract_strided_slice %9 {offsets = [0, 32], sizes = [48, 32], strides = [1, 1]} : vector<48x64xf32> to vector<48x32xf32>
    %13 = arith.negf %12 : vector<48x32xf32>
    %14 = math.exp %13 : vector<48x32xf32>
    %cst_10 = arith.constant 1.000000e+00 : f32
    %15 = vector.broadcast %cst_10 : f32 to vector<48x32xf32>
    %16 = arith.addf %15, %14 : vector<48x32xf32>
    %17 = arith.divf %15, %16 : vector<48x32xf32>
    %18 = arith.mulf %11, %17 : vector<48x32xf32>
    %c0_11 = arith.constant 0 : index
    %c0_12 = arith.constant 0 : index
    %19 = vector.load %arg9[%c0_11, %c0_12] : memref<48x32xf32, #tpu.memory_space<vmem>>, vector<48x32xf32>
    tpu.vector_store %arg9[%c0_11, %c0_12], %18 {strides = array<i32>} : memref<48x32xf32, #tpu.memory_space<vmem>>, vector<48x32xf32>,
    %c0_13 = arith.constant 0 : index
    %c0_14 = arith.constant 0 : index
    %20 = vector.load %arg6[%c0_13, %c0_14] : memref<32x64xf32, #tpu.memory_space<vmem>>, vector<32x64xf32>
    %cst_15 = arith.constant dense<0.000000e+00> : vector<48x64xf32>
    %21 = tpu.matmul %18, %20, %cst_15 {dimension_numbers = #tpu.dot_dimension_numbers<[1], [0], [0], [1], [0, 0, 1, 1], [], []>} : vector<48x32xf32>, vector<32x64xf32>, vector<48x64xf32> -> vector<48x64xf32>
    %c0_16 = arith.constant 0 : index
    %c0_17 = arith.constant 0 : index
    %22 = vector.load %arg7[%c0_16, %c0_17] : memref<1x64xf32, #tpu.memory_space<vmem>>, vector<1x64xf32>
    %23 = vector.broadcast %22 : vector<1x64xf32> to vector<48x64xf32>
    %24 = arith.addf %21, %23 : vector<48x64xf32>
    %c0_18 = arith.constant 0 : index
    %c0_19 = arith.constant 0 : index
    %25 = vector.load %arg8[%c0_18, %c0_19] : memref<48x64xf32, #tpu.memory_space<vmem>>, vector<48x64xf32>
    %26 = arith.addf %24, %25 : vector<48x64xf32>
    %c0_20 = arith.constant 0 : index
    %c0_21 = arith.constant 0 : index
    %27 = vector.load %arg10[%c0_20, %c0_21] : memref<48x64xf32, #tpu.memory_space<vmem>>, vector<48x64xf32>
    tpu.vector_store %arg10[%c0_20, %c0_21], %26 {strides = array<i32>} : memref<48x64xf32, #tpu.memory_space<vmem>>, vector<48x64xf32>,
    return
  }
  func.func @transform_0(%arg0: i32) -> (i32, i32) {
    %c0_i32 = arith.constant 0 : i32
    %c0_i32_0 = arith.constant 0 : i32
    return %arg0, %c0_i32 : i32, i32
  }
  func.func @transform_1(%arg0: i32) -> (i32, i32) {
    %c0_i32 = arith.constant 0 : i32
    %c0_i32_0 = arith.constant 0 : i32
    return %arg0, %c0_i32 : i32, i32
  }
  func.func @transform_2(%arg0: i32) -> (i32, i32) {
    %c0_i32 = arith.constant 0 : i32
    %c0_i32_0 = arith.constant 0 : i32
    %c0_i32_1 = arith.constant 0 : i32
    return %c0_i32, %c0_i32_0 : i32, i32
  }
  func.func @transform_3(%arg0: i32) -> (i32, i32) {
    %c0_i32 = arith.constant 0 : i32
    %c0_i32_0 = arith.constant 0 : i32
    %c0_i32_1 = arith.constant 0 : i32
    return %c0_i32, %c0_i32_0 : i32, i32
  }
  func.func @transform_4(%arg0: i32) -> (i32, i32) {
    %c0_i32 = arith.constant 0 : i32
    %c0_i32_0 = arith.constant 0 : i32
    %c0_i32_1 = arith.constant 0 : i32
    return %c0_i32, %c0_i32_0 : i32, i32
  }
  func.func @transform_5(%arg0: i32) -> (i32, i32) {
    %c0_i32 = arith.constant 0 : i32
    %c0_i32_0 = arith.constant 0 : i32
    %c0_i32_1 = arith.constant 0 : i32
    return %c0_i32, %c0_i32_0 : i32, i32
  }
  func.func @transform_6(%arg0: i32) -> (i32, i32) {
    %c0_i32 = arith.constant 0 : i32
    %c0_i32_0 = arith.constant 0 : i32
    %c0_i32_1 = arith.constant 0 : i32
    return %c0_i32, %c0_i32_0 : i32, i32
  }
  func.func @transform_7(%arg0: i32) -> (i32, i32) {
    %c0_i32 = arith.constant 0 : i32
    %c0_i32_0 = arith.constant 0 : i32
    return %arg0, %c0_i32 : i32, i32
  }
  func.func @transform_8(%arg0: i32) -> (i32, i32) {
    %c0_i32 = arith.constant 0 : i32
    %c0_i32_0 = arith.constant 0 : i32
    return %arg0, %c0_i32 : i32, i32
  }
  func.func @transform_9(%arg0: i32) -> (i32, i32) {
    %c0_i32 = arith.constant 0 : i32
    %c0_i32_0 = arith.constant 0 : i32
    return %arg0, %c0_i32 : i32, i32
  }
}

module attributes {stable_mosaic.version = 11 : i64} {
  func.func @_gcn_bn_kernel(%arg0: i32, %arg1: memref<1x8x32xf32, #tpu.memory_space<vmem>>, %arg2: memref<8x8xf32, #tpu.memory_space<vmem>>, %arg3: memref<1x8x32xf32, #tpu.memory_space<vmem>>, %arg4: memref<32x32xf32, #tpu.memory_space<vmem>>, %arg5: memref<32x32xf32, #tpu.memory_space<vmem>>, %arg6: memref<32x32xf32, #tpu.memory_space<vmem>>, %arg7: memref<1x32xf32, #tpu.memory_space<vmem>>, %arg8: memref<1x32xf32, #tpu.memory_space<vmem>>, %arg9: memref<1x32xf32, #tpu.memory_space<vmem>>, %arg10: memref<1x8x32xf32, #tpu.memory_space<vmem>>) attributes {dimension_semantics = [#tpu.dimension_semantics<parallel>], iteration_bounds = array<i64: 6>, scalar_prefetch = 0 : i64, scratch_operands = 0 : i64, tpu.core_type = #tpu.core_type<tc>, window_params = [{transform_indices = @transform_0, window_bounds = array<i64: 1, 8, 32>}, {pipeline_mode = #tpu.pipeline_mode<synchronous>, transform_indices = @transform_1, window_bounds = array<i64: 8, 8>}, {transform_indices = @transform_2, window_bounds = array<i64: 1, 8, 32>}, {pipeline_mode = #tpu.pipeline_mode<synchronous>, transform_indices = @transform_3, window_bounds = array<i64: 32, 32>}, {pipeline_mode = #tpu.pipeline_mode<synchronous>, transform_indices = @transform_4, window_bounds = array<i64: 32, 32>}, {pipeline_mode = #tpu.pipeline_mode<synchronous>, transform_indices = @transform_5, window_bounds = array<i64: 32, 32>}, {pipeline_mode = #tpu.pipeline_mode<synchronous>, transform_indices = @transform_6, window_bounds = array<i64: 1, 32>}, {pipeline_mode = #tpu.pipeline_mode<synchronous>, transform_indices = @transform_7, window_bounds = array<i64: 1, 32>}, {pipeline_mode = #tpu.pipeline_mode<synchronous>, transform_indices = @transform_8, window_bounds = array<i64: 1, 32>}, {transform_indices = @transform_9, window_bounds = array<i64: 1, 8, 32>}]} {
    %c0 = arith.constant 0 : index
    %c0_0 = arith.constant 0 : index
    %c0_1 = arith.constant 0 : index
    %0 = vector.load %arg1[%c0, %c0_0, %c0_1] : memref<1x8x32xf32, #tpu.memory_space<vmem>>, vector<1x8x32xf32>
    %1 = vector.shape_cast %0 : vector<1x8x32xf32> to vector<8x32xf32>
    %c0_2 = arith.constant 0 : index
    %c0_3 = arith.constant 0 : index
    %2 = vector.load %arg2[%c0_2, %c0_3] : memref<8x8xf32, #tpu.memory_space<vmem>>, vector<8x8xf32>
    %cst = arith.constant dense<0.000000e+00> : vector<8x32xf32>
    %3 = tpu.matmul %2, %1, %cst {dimension_numbers = #tpu.dot_dimension_numbers<[1], [0], [0], [1], [0, 0, 1, 1], [], []>} : vector<8x8xf32>, vector<8x32xf32>, vector<8x32xf32> -> vector<8x32xf32>
    %cst_4 = arith.constant dense<0.000000e+00> : vector<8x32xf32>
    %4 = tpu.matmul %2, %3, %cst_4 {dimension_numbers = #tpu.dot_dimension_numbers<[1], [0], [0], [1], [0, 0, 1, 1], [], []>} : vector<8x8xf32>, vector<8x32xf32>, vector<8x32xf32> -> vector<8x32xf32>
    %c0_5 = arith.constant 0 : index
    %c0_6 = arith.constant 0 : index
    %5 = vector.load %arg4[%c0_5, %c0_6] : memref<32x32xf32, #tpu.memory_space<vmem>>, vector<32x32xf32>
    %cst_7 = arith.constant dense<0.000000e+00> : vector<8x32xf32>
    %6 = tpu.matmul %1, %5, %cst_7 {dimension_numbers = #tpu.dot_dimension_numbers<[1], [0], [0], [1], [0, 0, 1, 1], [], []>} : vector<8x32xf32>, vector<32x32xf32>, vector<8x32xf32> -> vector<8x32xf32>
    %c0_8 = arith.constant 0 : index
    %c0_9 = arith.constant 0 : index
    %7 = vector.load %arg5[%c0_8, %c0_9] : memref<32x32xf32, #tpu.memory_space<vmem>>, vector<32x32xf32>
    %cst_10 = arith.constant dense<0.000000e+00> : vector<8x32xf32>
    %8 = tpu.matmul %3, %7, %cst_10 {dimension_numbers = #tpu.dot_dimension_numbers<[1], [0], [0], [1], [0, 0, 1, 1], [], []>} : vector<8x32xf32>, vector<32x32xf32>, vector<8x32xf32> -> vector<8x32xf32>
    %9 = arith.addf %6, %8 : vector<8x32xf32>
    %c0_11 = arith.constant 0 : index
    %c0_12 = arith.constant 0 : index
    %10 = vector.load %arg6[%c0_11, %c0_12] : memref<32x32xf32, #tpu.memory_space<vmem>>, vector<32x32xf32>
    %cst_13 = arith.constant dense<0.000000e+00> : vector<8x32xf32>
    %11 = tpu.matmul %4, %10, %cst_13 {dimension_numbers = #tpu.dot_dimension_numbers<[1], [0], [0], [1], [0, 0, 1, 1], [], []>} : vector<8x32xf32>, vector<32x32xf32>, vector<8x32xf32> -> vector<8x32xf32>
    %12 = arith.addf %9, %11 : vector<8x32xf32>
    %c0_14 = arith.constant 0 : index
    %c0_15 = arith.constant 0 : index
    %13 = vector.load %arg7[%c0_14, %c0_15] : memref<1x32xf32, #tpu.memory_space<vmem>>, vector<1x32xf32>
    %14 = vector.broadcast %13 : vector<1x32xf32> to vector<8x32xf32>
    %15 = arith.addf %12, %14 : vector<8x32xf32>
    %c0_16 = arith.constant 0 : index
    %c0_17 = arith.constant 0 : index
    %c0_18 = arith.constant 0 : index
    %16 = vector.load %arg3[%c0_16, %c0_17, %c0_18] : memref<1x8x32xf32, #tpu.memory_space<vmem>>, vector<1x8x32xf32>
    %17 = vector.shape_cast %16 : vector<1x8x32xf32> to vector<8x32xf32>
    %18 = arith.addf %15, %17 : vector<8x32xf32>
    %c0_19 = arith.constant 0 : index
    %c0_20 = arith.constant 0 : index
    %19 = vector.load %arg8[%c0_19, %c0_20] : memref<1x32xf32, #tpu.memory_space<vmem>>, vector<1x32xf32>
    %20 = vector.broadcast %19 : vector<1x32xf32> to vector<8x32xf32>
    %21 = arith.mulf %18, %20 : vector<8x32xf32>
    %c0_21 = arith.constant 0 : index
    %c0_22 = arith.constant 0 : index
    %22 = vector.load %arg9[%c0_21, %c0_22] : memref<1x32xf32, #tpu.memory_space<vmem>>, vector<1x32xf32>
    %23 = vector.broadcast %22 : vector<1x32xf32> to vector<8x32xf32>
    %24 = arith.addf %21, %23 : vector<8x32xf32>
    %c0_23 = arith.constant 0 : index
    %c0_24 = arith.constant 0 : index
    %c0_25 = arith.constant 0 : index
    %25 = vector.load %arg10[%c0_23, %c0_24, %c0_25] : memref<1x8x32xf32, #tpu.memory_space<vmem>>, vector<1x8x32xf32>
    %26 = vector.shape_cast %25 : vector<1x8x32xf32> to vector<8x32xf32>
    %27 = vector.shape_cast %24 : vector<8x32xf32> to vector<1x8x32xf32>
    tpu.vector_store %arg10[%c0_23, %c0_24, %c0_25], %27 {strides = array<i32>} : memref<1x8x32xf32, #tpu.memory_space<vmem>>, vector<1x8x32xf32>,
    return
  }
  func.func @transform_0(%arg0: i32) -> (i32, i32, i32) {
    %c0_i32 = arith.constant 0 : i32
    %c0_i32_0 = arith.constant 0 : i32
    %c0_i32_1 = arith.constant 0 : i32
    return %arg0, %c0_i32, %c0_i32_0 : i32, i32, i32
  }
  func.func @transform_1(%arg0: i32) -> (i32, i32) {
    %c0_i32 = arith.constant 0 : i32
    %c0_i32_0 = arith.constant 0 : i32
    %c0_i32_1 = arith.constant 0 : i32
    return %c0_i32, %c0_i32_0 : i32, i32
  }
  func.func @transform_2(%arg0: i32) -> (i32, i32, i32) {
    %c0_i32 = arith.constant 0 : i32
    %c0_i32_0 = arith.constant 0 : i32
    %c0_i32_1 = arith.constant 0 : i32
    return %arg0, %c0_i32, %c0_i32_0 : i32, i32, i32
  }
  func.func @transform_3(%arg0: i32) -> (i32, i32) {
    %c0_i32 = arith.constant 0 : i32
    %c0_i32_0 = arith.constant 0 : i32
    %c0_i32_1 = arith.constant 0 : i32
    return %c0_i32, %c0_i32_0 : i32, i32
  }
  func.func @transform_4(%arg0: i32) -> (i32, i32) {
    %c0_i32 = arith.constant 0 : i32
    %c0_i32_0 = arith.constant 0 : i32
    %c0_i32_1 = arith.constant 0 : i32
    return %c0_i32, %c0_i32_0 : i32, i32
  }
  func.func @transform_5(%arg0: i32) -> (i32, i32) {
    %c0_i32 = arith.constant 0 : i32
    %c0_i32_0 = arith.constant 0 : i32
    %c0_i32_1 = arith.constant 0 : i32
    return %c0_i32, %c0_i32_0 : i32, i32
  }
  func.func @transform_6(%arg0: i32) -> (i32, i32) {
    %c0_i32 = arith.constant 0 : i32
    %c0_i32_0 = arith.constant 0 : i32
    %c0_i32_1 = arith.constant 0 : i32
    return %c0_i32, %c0_i32_0 : i32, i32
  }
  func.func @transform_7(%arg0: i32) -> (i32, i32) {
    %c0_i32 = arith.constant 0 : i32
    %c0_i32_0 = arith.constant 0 : i32
    %c0_i32_1 = arith.constant 0 : i32
    return %c0_i32, %c0_i32_0 : i32, i32
  }
  func.func @transform_8(%arg0: i32) -> (i32, i32) {
    %c0_i32 = arith.constant 0 : i32
    %c0_i32_0 = arith.constant 0 : i32
    %c0_i32_1 = arith.constant 0 : i32
    return %c0_i32, %c0_i32_0 : i32, i32
  }
  func.func @transform_9(%arg0: i32) -> (i32, i32, i32) {
    %c0_i32 = arith.constant 0 : i32
    %c0_i32_0 = arith.constant 0 : i32
    %c0_i32_1 = arith.constant 0 : i32
    return %arg0, %c0_i32, %c0_i32_0 : i32, i32, i32
  }
}

module attributes {stable_mosaic.version = 11 : i64} {
  func.func @_tcn_kernel(%arg0: i32, %arg1: memref<16x32xf32, #tpu.memory_space<vmem>>, %arg2: memref<16x32xf32, #tpu.memory_space<vmem>>, %arg3: memref<32x64xf32, #tpu.memory_space<vmem>>, %arg4: memref<32x64xf32, #tpu.memory_space<vmem>>, %arg5: memref<1x64xf32, #tpu.memory_space<vmem>>, %arg6: memref<32x64xf32, #tpu.memory_space<vmem>>, %arg7: memref<1x64xf32, #tpu.memory_space<vmem>>, %arg8: memref<16x64xf32, #tpu.memory_space<vmem>>, %arg9: memref<16x32xf32, #tpu.memory_space<vmem>>, %arg10: memref<16x64xf32, #tpu.memory_space<vmem>>) attributes {dimension_semantics = [#tpu.dimension_semantics<parallel>], iteration_bounds = array<i64: 1>, scalar_prefetch = 0 : i64, scratch_operands = 0 : i64, tpu.core_type = #tpu.core_type<tc>, window_params = [{transform_indices = @transform_0, window_bounds = array<i64: 16, 32>}, {transform_indices = @transform_1, window_bounds = array<i64: 16, 32>}, {pipeline_mode = #tpu.pipeline_mode<synchronous>, transform_indices = @transform_2, window_bounds = array<i64: 32, 64>}, {pipeline_mode = #tpu.pipeline_mode<synchronous>, transform_indices = @transform_3, window_bounds = array<i64: 32, 64>}, {pipeline_mode = #tpu.pipeline_mode<synchronous>, transform_indices = @transform_4, window_bounds = array<i64: 1, 64>}, {pipeline_mode = #tpu.pipeline_mode<synchronous>, transform_indices = @transform_5, window_bounds = array<i64: 32, 64>}, {pipeline_mode = #tpu.pipeline_mode<synchronous>, transform_indices = @transform_6, window_bounds = array<i64: 1, 64>}, {transform_indices = @transform_7, window_bounds = array<i64: 16, 64>}, {transform_indices = @transform_8, window_bounds = array<i64: 16, 32>}, {transform_indices = @transform_9, window_bounds = array<i64: 16, 64>}]} {
    %c0 = arith.constant 0 : index
    %c0_0 = arith.constant 0 : index
    %0 = vector.load %arg1[%c0, %c0_0] : memref<16x32xf32, #tpu.memory_space<vmem>>, vector<16x32xf32>
    %c0_1 = arith.constant 0 : index
    %c0_2 = arith.constant 0 : index
    %1 = vector.load %arg3[%c0_1, %c0_2] : memref<32x64xf32, #tpu.memory_space<vmem>>, vector<32x64xf32>
    %cst = arith.constant dense<0.000000e+00> : vector<16x64xf32>
    %2 = tpu.matmul %0, %1, %cst {dimension_numbers = #tpu.dot_dimension_numbers<[1], [0], [0], [1], [0, 0, 1, 1], [], []>} : vector<16x32xf32>, vector<32x64xf32>, vector<16x64xf32> -> vector<16x64xf32>
    %c0_3 = arith.constant 0 : index
    %c0_4 = arith.constant 0 : index
    %3 = vector.load %arg2[%c0_3, %c0_4] : memref<16x32xf32, #tpu.memory_space<vmem>>, vector<16x32xf32>
    %c0_5 = arith.constant 0 : index
    %c0_6 = arith.constant 0 : index
    %4 = vector.load %arg4[%c0_5, %c0_6] : memref<32x64xf32, #tpu.memory_space<vmem>>, vector<32x64xf32>
    %cst_7 = arith.constant dense<0.000000e+00> : vector<16x64xf32>
    %5 = tpu.matmul %3, %4, %cst_7 {dimension_numbers = #tpu.dot_dimension_numbers<[1], [0], [0], [1], [0, 0, 1, 1], [], []>} : vector<16x32xf32>, vector<32x64xf32>, vector<16x64xf32> -> vector<16x64xf32>
    %6 = arith.addf %2, %5 : vector<16x64xf32>
    %c0_8 = arith.constant 0 : index
    %c0_9 = arith.constant 0 : index
    %7 = vector.load %arg5[%c0_8, %c0_9] : memref<1x64xf32, #tpu.memory_space<vmem>>, vector<1x64xf32>
    %8 = vector.broadcast %7 : vector<1x64xf32> to vector<16x64xf32>
    %9 = arith.addf %6, %8 : vector<16x64xf32>
    %10 = vector.extract_strided_slice %9 {offsets = [0, 0], sizes = [16, 32], strides = [1, 1]} : vector<16x64xf32> to vector<16x32xf32>
    %11 = math.tanh %10 : vector<16x32xf32>
    %12 = vector.extract_strided_slice %9 {offsets = [0, 32], sizes = [16, 32], strides = [1, 1]} : vector<16x64xf32> to vector<16x32xf32>
    %13 = arith.negf %12 : vector<16x32xf32>
    %14 = math.exp %13 : vector<16x32xf32>
    %cst_10 = arith.constant 1.000000e+00 : f32
    %15 = vector.broadcast %cst_10 : f32 to vector<16x32xf32>
    %16 = arith.addf %15, %14 : vector<16x32xf32>
    %17 = arith.divf %15, %16 : vector<16x32xf32>
    %18 = arith.mulf %11, %17 : vector<16x32xf32>
    %c0_11 = arith.constant 0 : index
    %c0_12 = arith.constant 0 : index
    %19 = vector.load %arg9[%c0_11, %c0_12] : memref<16x32xf32, #tpu.memory_space<vmem>>, vector<16x32xf32>
    tpu.vector_store %arg9[%c0_11, %c0_12], %18 {strides = array<i32>} : memref<16x32xf32, #tpu.memory_space<vmem>>, vector<16x32xf32>,
    %c0_13 = arith.constant 0 : index
    %c0_14 = arith.constant 0 : index
    %20 = vector.load %arg6[%c0_13, %c0_14] : memref<32x64xf32, #tpu.memory_space<vmem>>, vector<32x64xf32>
    %cst_15 = arith.constant dense<0.000000e+00> : vector<16x64xf32>
    %21 = tpu.matmul %18, %20, %cst_15 {dimension_numbers = #tpu.dot_dimension_numbers<[1], [0], [0], [1], [0, 0, 1, 1], [], []>} : vector<16x32xf32>, vector<32x64xf32>, vector<16x64xf32> -> vector<16x64xf32>
    %c0_16 = arith.constant 0 : index
    %c0_17 = arith.constant 0 : index
    %22 = vector.load %arg7[%c0_16, %c0_17] : memref<1x64xf32, #tpu.memory_space<vmem>>, vector<1x64xf32>
    %23 = vector.broadcast %22 : vector<1x64xf32> to vector<16x64xf32>
    %24 = arith.addf %21, %23 : vector<16x64xf32>
    %c0_18 = arith.constant 0 : index
    %c0_19 = arith.constant 0 : index
    %25 = vector.load %arg8[%c0_18, %c0_19] : memref<16x64xf32, #tpu.memory_space<vmem>>, vector<16x64xf32>
    %26 = arith.addf %24, %25 : vector<16x64xf32>
    %c0_20 = arith.constant 0 : index
    %c0_21 = arith.constant 0 : index
    %27 = vector.load %arg10[%c0_20, %c0_21] : memref<16x64xf32, #tpu.memory_space<vmem>>, vector<16x64xf32>
    tpu.vector_store %arg10[%c0_20, %c0_21], %26 {strides = array<i32>} : memref<16x64xf32, #tpu.memory_space<vmem>>, vector<16x64xf32>,
    return
  }
  func.func @transform_0(%arg0: i32) -> (i32, i32) {
    %c0_i32 = arith.constant 0 : i32
    %c0_i32_0 = arith.constant 0 : i32
    return %arg0, %c0_i32 : i32, i32
  }
  func.func @transform_1(%arg0: i32) -> (i32, i32) {
    %c0_i32 = arith.constant 0 : i32
    %c0_i32_0 = arith.constant 0 : i32
    return %arg0, %c0_i32 : i32, i32
  }
  func.func @transform_2(%arg0: i32) -> (i32, i32) {
    %c0_i32 = arith.constant 0 : i32
    %c0_i32_0 = arith.constant 0 : i32
    %c0_i32_1 = arith.constant 0 : i32
    return %c0_i32, %c0_i32_0 : i32, i32
  }
  func.func @transform_3(%arg0: i32) -> (i32, i32) {
    %c0_i32 = arith.constant 0 : i32
    %c0_i32_0 = arith.constant 0 : i32
    %c0_i32_1 = arith.constant 0 : i32
    return %c0_i32, %c0_i32_0 : i32, i32
  }
  func.func @transform_4(%arg0: i32) -> (i32, i32) {
    %c0_i32 = arith.constant 0 : i32
    %c0_i32_0 = arith.constant 0 : i32
    %c0_i32_1 = arith.constant 0 : i32
    return %c0_i32, %c0_i32_0 : i32, i32
  }
  func.func @transform_5(%arg0: i32) -> (i32, i32) {
    %c0_i32 = arith.constant 0 : i32
    %c0_i32_0 = arith.constant 0 : i32
    %c0_i32_1 = arith.constant 0 : i32
    return %c0_i32, %c0_i32_0 : i32, i32
  }
  func.func @transform_6(%arg0: i32) -> (i32, i32) {
    %c0_i32 = arith.constant 0 : i32
    %c0_i32_0 = arith.constant 0 : i32
    %c0_i32_1 = arith.constant 0 : i32
    return %c0_i32, %c0_i32_0 : i32, i32
  }
  func.func @transform_7(%arg0: i32) -> (i32, i32) {
    %c0_i32 = arith.constant 0 : i32
    %c0_i32_0 = arith.constant 0 : i32
    return %arg0, %c0_i32 : i32, i32
  }
  func.func @transform_8(%arg0: i32) -> (i32, i32) {
    %c0_i32 = arith.constant 0 : i32
    %c0_i32_0 = arith.constant 0 : i32
    return %arg0, %c0_i32 : i32, i32
  }
  func.func @transform_9(%arg0: i32) -> (i32, i32) {
    %c0_i32 = arith.constant 0 : i32
    %c0_i32_0 = arith.constant 0 : i32
    return %arg0, %c0_i32 : i32, i32
  }
}

module attributes {stable_mosaic.version = 11 : i64} {
  func.func @_end_kernel(%arg0: i32, %arg1: memref<16x64xf32, #tpu.memory_space<vmem>>, %arg2: memref<64x128xf32, #tpu.memory_space<vmem>>, %arg3: memref<1x128xf32, #tpu.memory_space<vmem>>, %arg4: memref<128x12xf32, #tpu.memory_space<vmem>>, %arg5: memref<1x12xf32, #tpu.memory_space<vmem>>, %arg6: memref<16x12xf32, #tpu.memory_space<vmem>>) attributes {dimension_semantics = [#tpu.dimension_semantics<parallel>], iteration_bounds = array<i64: 1>, scalar_prefetch = 0 : i64, scratch_operands = 0 : i64, tpu.core_type = #tpu.core_type<tc>, window_params = [{transform_indices = @transform_0, window_bounds = array<i64: 16, 64>}, {pipeline_mode = #tpu.pipeline_mode<synchronous>, transform_indices = @transform_1, window_bounds = array<i64: 64, 128>}, {pipeline_mode = #tpu.pipeline_mode<synchronous>, transform_indices = @transform_2, window_bounds = array<i64: 1, 128>}, {pipeline_mode = #tpu.pipeline_mode<synchronous>, transform_indices = @transform_3, window_bounds = array<i64: 128, 12>}, {pipeline_mode = #tpu.pipeline_mode<synchronous>, transform_indices = @transform_4, window_bounds = array<i64: 1, 12>}, {transform_indices = @transform_5, window_bounds = array<i64: 16, 12>}]} {
    %c0 = arith.constant 0 : index
    %c0_0 = arith.constant 0 : index
    %0 = vector.load %arg1[%c0, %c0_0] : memref<16x64xf32, #tpu.memory_space<vmem>>, vector<16x64xf32>
    %cst = arith.constant 0.000000e+00 : f32
    %1 = vector.broadcast %cst : f32 to vector<16x64xf32>
    %2 = arith.maximumf %0, %1 : vector<16x64xf32>
    %c0_1 = arith.constant 0 : index
    %c0_2 = arith.constant 0 : index
    %3 = vector.load %arg2[%c0_1, %c0_2] : memref<64x128xf32, #tpu.memory_space<vmem>>, vector<64x128xf32>
    %cst_3 = arith.constant dense<0.000000e+00> : vector<16x128xf32>
    %4 = tpu.matmul %2, %3, %cst_3 {dimension_numbers = #tpu.dot_dimension_numbers<[1], [0], [0], [1], [0, 0, 1, 1], [], []>} : vector<16x64xf32>, vector<64x128xf32>, vector<16x128xf32> -> vector<16x128xf32>
    %c0_4 = arith.constant 0 : index
    %c0_5 = arith.constant 0 : index
    %5 = vector.load %arg3[%c0_4, %c0_5] : memref<1x128xf32, #tpu.memory_space<vmem>>, vector<1x128xf32>
    %6 = vector.broadcast %5 : vector<1x128xf32> to vector<16x128xf32>
    %7 = arith.addf %4, %6 : vector<16x128xf32>
    %cst_6 = arith.constant 0.000000e+00 : f32
    %8 = vector.broadcast %cst_6 : f32 to vector<16x128xf32>
    %9 = arith.maximumf %7, %8 : vector<16x128xf32>
    %c0_7 = arith.constant 0 : index
    %c0_8 = arith.constant 0 : index
    %10 = vector.load %arg4[%c0_7, %c0_8] : memref<128x12xf32, #tpu.memory_space<vmem>>, vector<128x12xf32>
    %cst_9 = arith.constant dense<0.000000e+00> : vector<16x12xf32>
    %11 = tpu.matmul %9, %10, %cst_9 {dimension_numbers = #tpu.dot_dimension_numbers<[1], [0], [0], [1], [0, 0, 1, 1], [], []>} : vector<16x128xf32>, vector<128x12xf32>, vector<16x12xf32> -> vector<16x12xf32>
    %c0_10 = arith.constant 0 : index
    %c0_11 = arith.constant 0 : index
    %12 = vector.load %arg5[%c0_10, %c0_11] : memref<1x12xf32, #tpu.memory_space<vmem>>, vector<1x12xf32>
    %13 = vector.broadcast %12 : vector<1x12xf32> to vector<16x12xf32>
    %14 = arith.addf %11, %13 : vector<16x12xf32>
    %c0_12 = arith.constant 0 : index
    %c0_13 = arith.constant 0 : index
    %15 = vector.load %arg6[%c0_12, %c0_13] : memref<16x12xf32, #tpu.memory_space<vmem>>, vector<16x12xf32>
    tpu.vector_store %arg6[%c0_12, %c0_13], %14 {strides = array<i32>} : memref<16x12xf32, #tpu.memory_space<vmem>>, vector<16x12xf32>,
    return
  }
  func.func @transform_0(%arg0: i32) -> (i32, i32) {
    %c0_i32 = arith.constant 0 : i32
    %c0_i32_0 = arith.constant 0 : i32
    return %arg0, %c0_i32 : i32, i32
  }
  func.func @transform_1(%arg0: i32) -> (i32, i32) {
    %c0_i32 = arith.constant 0 : i32
    %c0_i32_0 = arith.constant 0 : i32
    %c0_i32_1 = arith.constant 0 : i32
    return %c0_i32, %c0_i32_0 : i32, i32
  }
  func.func @transform_2(%arg0: i32) -> (i32, i32) {
    %c0_i32 = arith.constant 0 : i32
    %c0_i32_0 = arith.constant 0 : i32
    %c0_i32_1 = arith.constant 0 : i32
    return %c0_i32, %c0_i32_0 : i32, i32
  }
  func.func @transform_3(%arg0: i32) -> (i32, i32) {
    %c0_i32 = arith.constant 0 : i32
    %c0_i32_0 = arith.constant 0 : i32
    %c0_i32_1 = arith.constant 0 : i32
    return %c0_i32, %c0_i32_0 : i32, i32
  }
  func.func @transform_4(%arg0: i32) -> (i32, i32) {
    %c0_i32 = arith.constant 0 : i32
    %c0_i32_0 = arith.constant 0 : i32
    %c0_i32_1 = arith.constant 0 : i32
    return %c0_i32, %c0_i32_0 : i32, i32
  }
  func.func @transform_5(%arg0: i32) -> (i32, i32) {
    %c0_i32 = arith.constant 0 : i32
    %c0_i32_0 = arith.constant 0 : i32
    return %arg0, %c0_i32 : i32, i32
  }
}

</mosaic_0001>

<bundles_post_ra>
// kernel: _lambda_.18
= control target key start
LH: loop header
LB: loop body
LE: loop exit
PB: predicated region body
PF: predicated region fallthrough
CT: control target
= control target key end

     0   :  { %vm127_vm0 = vcmask 1041408   ;;  %vm48_vm1 = vcmask 15360   ;;  %vm326_vm2 = vcmask 261120   ;;  %s717_s1 = inlined_call_operand.vmem [shape: f32[2,32], index: 1, kind: input, shape index: {}]   ;;  %s718_s0 = inlined_call_operand.vmem [shape: f32[208,2], index: 0, kind: input, shape index: {}]   ;;  %s719_s2 = inlined_call_operand.vmem [shape: f32[1,32], index: 2, kind: input, shape index: {}]   ;;  %s720_s3 = inlined_call_operand.vmem [shape: f32[208,32], index: 3, kind: output, shape index: {}]  }
   0x1   :  { %v40_v0 = vld [vmem:[%s717_s1] sm:$0x3]  ;;  %v15_v2 = vld [vmem:[%s718_s0 + $0x8] sm:$0xff]  ;;  %v28_v3 = vld [vmem:[%s718_s0 + $0x70] sm:$0xff] }
   0x2   :  { %v14_v1 = vld [vmem:[%s718_s0] sm:$0xff]  ;;  %412 = vmatprep.subr.msk.mxu0 %vm127_vm0, %v40_v0  ;;  %v16_v4 = vld [vmem:[%s718_s0 + $0x10] sm:$0xff]  ;;  %453 = vmatprep.subr.msk.mxu1 %vm127_vm0, %v40_v0  ;;  %v29_v5 = vld [vmem:[%s718_s0 + $0x78] sm:$0xff] }
   0x3   :  { %414 = vmatprep.mubr.msk.f32.mxu0 %vm48_vm1, %v14_v1  ;;  %413 = vmatpush3.msk.msra.mxu0 %vm127_vm0, %v40_v0  ;;  %v30_v6 = vld [vmem:[%s718_s0 + $0x80] sm:$0xff]  ;;  %v17_v7 = vld [vmem:[%s718_s0 + $0x18] sm:$0xff]  ;;  %v31_v9 = vld [vmem:[%s718_s0 + $0x88] sm:$0xff] }
   0x4   :  { %415 = vmatmul.mubr.msk.f32.vlgmr.msra.gmra.mrb[0].mxu0 %vm48_vm1, %v15_v2  ;;  %454 = vmatpush3.msk.msra.mxu1 %vm127_vm0, %v40_v0  ;;  %v18_v8 = vld [vmem:[%s718_s0 + $0x20] sm:$0xff]  ;;  %v32_v10 = vld [vmem:[%s718_s0 + $0x90] sm:$0xff]  ;;  %v19_v11 = vld [vmem:[%s718_s0 + $0x28] sm:$0xff] }
   0x5   :  { %435 = vmatprep.mubr.msk.f32.mxu1 %vm48_vm1, %v28_v3  ;;  %417 = vmatprep.mubr.msk.f32.mxu0 %vm48_vm1, %v16_v4  ;;  %v20_v12 = vld [vmem:[%s718_s0 + $0x30] sm:$0xff]  ;;  %v33_v13 = vld [vmem:[%s718_s0 + $0x98] sm:$0xff]  ;;  %v34_v14 = vld [vmem:[%s718_s0 + $0xa0] sm:$0xff] }
   0x6   :  { %436 = vmatmul.mubr.msk.f32.vlgmr.msra.gmra.mrb[0].mxu1 %vm48_vm1, %v29_v5  ;;  %v21_v15 = vld [vmem:[%s718_s0 + $0x38] sm:$0xff]  ;;  %v22_v16 = vld [vmem:[%s718_s0 + $0x40] sm:$0xff]  ;;  %v35_v17 = vld [vmem:[%s718_s0 + $0xa8] sm:$0xff] }
   0x7   :  { %438 = vmatprep.mubr.msk.f32.mxu1 %vm48_vm1, %v30_v6  ;;  %v36_v18 = vld [vmem:[%s718_s0 + $0xb0] sm:$0xff]  ;;  %v23_v19 = vld [vmem:[%s718_s0 + $0x48] sm:$0xff]  ;;  %v37_v21 = vld [vmem:[%s718_s0 + $0xb8] sm:$0xff] }
   0x8   :  { %418 = vmatmul.mubr.msk.f32.gmra.mrb[2].mxu0 %vm48_vm1, %v17_v7  ;;  %v24_v20 = vld [vmem:[%s718_s0 + $0x50] sm:$0xff]  ;;  %v38_v22 = vld [vmem:[%s718_s0 + $0xc0] sm:$0xff]  ;;  %v25_v23 = vld [vmem:[%s718_s0 + $0x58] sm:$0xff] }
   0x9   :  { %420 = vmatprep.mubr.msk.f32.mxu0 %vm48_vm1, %v18_v8  ;;  %v26_v24 = vld [vmem:[%s718_s0 + $0x60] sm:$0xff]  ;;  %v39_v25 = vld [vmem:[%s718_s0 + $0xc8] sm:$0xff] }
   0xa   :  { %439 = vmatmul.mubr.msk.f32.gmra.mrb[2].mxu1 %vm48_vm1, %v31_v9  ;;  %v27_v26 = vld [vmem:[%s718_s0 + $0x68] sm:$0xff]  ;;  %v585_v27 = vld [vmem:[%s719_s2] ss:$0 sm:$0xff] }
   0xb   :  { %441 = vmatprep.mubr.msk.f32.mxu1 %vm48_vm1, %v32_v10 }
   0xc   :  { %421 = vmatmul.mubr.msk.f32.gmra.mrb[4].mxu0 %vm48_vm1, %v19_v11 }
   0xd   :  { %423 = vmatprep.mubr.msk.f32.mxu0 %vm48_vm1, %v20_v12 }
   0xe   :  { %442 = vmatmul.mubr.msk.f32.gmra.mrb[4].mxu1 %vm48_vm1, %v33_v13 }
   0xf   :  { %444 = vmatprep.mubr.msk.f32.mxu1 %vm48_vm1, %v34_v14 }
  0x10   :  { %424 = vmatmul.mubr.msk.f32.gmra.mrb[6].mxu0 %vm48_vm1, %v21_v15 }
  0x11   :  { %426 = vmatprep.mubr.msk.f32.mxu0 %vm48_vm1, %v22_v16 }
  0x12   :  { %445 = vmatmul.mubr.msk.f32.gmra.mrb[6].mxu1 %vm48_vm1, %v35_v17 }
  0x13   :  { %447 = vmatprep.mubr.msk.f32.mxu1 %vm48_vm1, %v36_v18 }
  0x14   :  { %427 = vmatmul.mubr.msk.f32.gmra.mrb[8].mxu0 %vm48_vm1, %v23_v19 }
  0x15   :  { %429 = vmatprep.mubr.msk.f32.mxu0 %vm48_vm1, %v24_v20 }
  0x16   :  { %448 = vmatmul.mubr.msk.f32.gmra.mrb[8].mxu1 %vm48_vm1, %v37_v21 }
  0x17   :  { %450 = vmatprep.mubr.msk.f32.mxu1 %vm48_vm1, %v38_v22 }
  0x18   :  { %430 = vmatmul.mubr.msk.f32.gmra.mrb[10].mxu0 %vm48_vm1, %v25_v23 }
  0x19   :  { %432 = vmatprep.mubr.msk.f32.mxu0 %vm48_vm1, %v26_v24 }
  0x1a   :  { %451 = vmatmul.mubr.msk.f32.gmra.mrb[10].mxu1 %vm48_vm1, %v39_v25 }
  0x1c   :  { %433 = vmatmul.mubr.msk.f32.gmra.mrb[12].mxu0 %vm48_vm1, %v27_v26 }
  0xd7   :  { %v416_v28 = vpop.f32.mrb[0].mxu0 }
  0xd8   :  { %v203_v29 = vadd.f32 %v416_v28, %v585_v27  ;;  %v197_v30 = vpop.f32.mrb[1].mxu0 }
  0xd9   :  { %v198_v31 = vadd.f32 %v585_v27, %v197_v30  ;;  %v437_v32 = vpop.f32.mrb[0].mxu1 }
  0xda   :  { %328 = vst.msk [vmem:[%s720_s3 + $0x8] sm:$0xff] %vm326_vm2, %v203_v29  ;;  %v273_v33 = vadd.f32 %v437_v32, %v585_v27  ;;  %v267_v34 = vpop.f32.mrb[1].mxu1 }
  0xdb   :  { %327 = vst.msk [vmem:[%s720_s3] sm:$0xff] %vm326_vm2, %v198_v31  ;;  %v419_v35 = vpop.f32.mrb[2].mxu0  ;;  %v268_v36 = vadd.f32 %v585_v27, %v267_v34 }
  0xdc   :  { %342 = vst.msk [vmem:[%s720_s3 + $0x78] sm:$0xff] %vm326_vm2, %v273_v33  ;;  %v213_v37 = vadd.f32 %v419_v35, %v585_v27  ;;  %v207_v38 = vpop.f32.mrb[3].mxu0 }
  0xdd   :  { %341 = vst.msk [vmem:[%s720_s3 + $0x70] sm:$0xff] %vm326_vm2, %v268_v36  ;;  %v208_v39 = vadd.f32 %v585_v27, %v207_v38  ;;  %v440_v40 = vpop.f32.mrb[2].mxu1 }
  0xde   :  { %330 = vst.msk [vmem:[%s720_s3 + $0x18] sm:$0xff] %vm326_vm2, %v213_v37  ;;  %v283_v41 = vadd.f32 %v440_v40, %v585_v27  ;;  %v277_v42 = vpop.f32.mrb[3].mxu1 }
  0xdf   :  { %329 = vst.msk [vmem:[%s720_s3 + $0x10] sm:$0xff] %vm326_vm2, %v208_v39  ;;  %v422_v43 = vpop.f32.mrb[4].mxu0  ;;  %v278_v44 = vadd.f32 %v585_v27, %v277_v42 }
  0xe0   :  { %344 = vst.msk [vmem:[%s720_s3 + $0x88] sm:$0xff] %vm326_vm2, %v283_v41  ;;  %v223_v45 = vadd.f32 %v422_v43, %v585_v27  ;;  %v217_v46 = vpop.f32.mrb[5].mxu0 }
  0xe1   :  { %343 = vst.msk [vmem:[%s720_s3 + $0x80] sm:$0xff] %vm326_vm2, %v278_v44  ;;  %v218_v47 = vadd.f32 %v585_v27, %v217_v46  ;;  %v443_v48 = vpop.f32.mrb[4].mxu1 }
  0xe2   :  { %332 = vst.msk [vmem:[%s720_s3 + $0x28] sm:$0xff] %vm326_vm2, %v223_v45  ;;  %v293_v49 = vadd.f32 %v443_v48, %v585_v27  ;;  %v287_v50 = vpop.f32.mrb[5].mxu1 }
  0xe3   :  { %331 = vst.msk [vmem:[%s720_s3 + $0x20] sm:$0xff] %vm326_vm2, %v218_v47  ;;  %v425_v51 = vpop.f32.mrb[6].mxu0  ;;  %v288_v52 = vadd.f32 %v585_v27, %v287_v50 }
  0xe4   :  { %346 = vst.msk [vmem:[%s720_s3 + $0x98] sm:$0xff] %vm326_vm2, %v293_v49  ;;  %v233_v53 = vadd.f32 %v425_v51, %v585_v27  ;;  %v227_v54 = vpop.f32.mrb[7].mxu0 }
  0xe5   :  { %345 = vst.msk [vmem:[%s720_s3 + $0x90] sm:$0xff] %vm326_vm2, %v288_v52  ;;  %v228_v55 = vadd.f32 %v585_v27, %v227_v54  ;;  %v446_v56 = vpop.f32.mrb[6].mxu1 }
  0xe6   :  { %334 = vst.msk [vmem:[%s720_s3 + $0x38] sm:$0xff] %vm326_vm2, %v233_v53  ;;  %v303_v57 = vadd.f32 %v446_v56, %v585_v27  ;;  %v297_v58 = vpop.f32.mrb[7].mxu1 }
  0xe7   :  { %333 = vst.msk [vmem:[%s720_s3 + $0x30] sm:$0xff] %vm326_vm2, %v228_v55  ;;  %v428_v59 = vpop.f32.mrb[8].mxu0  ;;  %v298_v60 = vadd.f32 %v585_v27, %v297_v58 }
  0xe8   :  { %348 = vst.msk [vmem:[%s720_s3 + $0xa8] sm:$0xff] %vm326_vm2, %v303_v57  ;;  %v243_v61 = vadd.f32 %v428_v59, %v585_v27  ;;  %v237_v62 = vpop.f32.mrb[9].mxu0 }
  0xe9   :  { %347 = vst.msk [vmem:[%s720_s3 + $0xa0] sm:$0xff] %vm326_vm2, %v298_v60  ;;  %v238_v63 = vadd.f32 %v585_v27, %v237_v62  ;;  %v449_v0 = vpop.f32.mrb[8].mxu1 }
  0xea   :  { %336 = vst.msk [vmem:[%s720_s3 + $0x48] sm:$0xff] %vm326_vm2, %v243_v61  ;;  %v313_v1 = vadd.f32 %v449_v0, %v585_v27  ;;  %v307_v2 = vpop.f32.mrb[9].mxu1 }
  0xeb   :  { %335 = vst.msk [vmem:[%s720_s3 + $0x40] sm:$0xff] %vm326_vm2, %v238_v63  ;;  %v431_v3 = vpop.f32.mrb[10].mxu0  ;;  %v308_v4 = vadd.f32 %v585_v27, %v307_v2 }
  0xec   :  { %350 = vst.msk [vmem:[%s720_s3 + $0xb8] sm:$0xff] %vm326_vm2, %v313_v1  ;;  %v253_v5 = vadd.f32 %v431_v3, %v585_v27  ;;  %v247_v6 = vpop.f32.mrb[11].mxu0 }
  0xed   :  { %349 = vst.msk [vmem:[%s720_s3 + $0xb0] sm:$0xff] %vm326_vm2, %v308_v4  ;;  %v248_v7 = vadd.f32 %v585_v27, %v247_v6  ;;  %v452_v8 = vpop.f32.mrb[10].mxu1 }
  0xee   :  { %338 = vst.msk [vmem:[%s720_s3 + $0x58] sm:$0xff] %vm326_vm2, %v253_v5  ;;  %v323_v9 = vadd.f32 %v452_v8, %v585_v27  ;;  %v317_v10 = vpop.f32.mrb[11].mxu1 }
  0xef   :  { %337 = vst.msk [vmem:[%s720_s3 + $0x50] sm:$0xff] %vm326_vm2, %v248_v7  ;;  %v434_v11 = vpop.f32.mrb[12].mxu0  ;;  %v318_v12 = vadd.f32 %v585_v27, %v317_v10 }
  0xf0   :  { %352 = vst.msk [vmem:[%s720_s3 + $0xc8] sm:$0xff] %vm326_vm2, %v323_v9  ;;  %v263_v13 = vadd.f32 %v434_v11, %v585_v27  ;;  %v257_v14 = vpop.f32.mrb[13].mxu0 }
  0xf1   :  { %351 = vst.msk [vmem:[%s720_s3 + $0xc0] sm:$0xff] %vm326_vm2, %v318_v12  ;;  %v258_v15 = vadd.f32 %v585_v27, %v257_v14 }
  0xf2   :  { %340 = vst.msk [vmem:[%s720_s3 + $0x68] sm:$0xff] %vm326_vm2, %v263_v13 }
  0xf3   :  { %339 = vst.msk [vmem:[%s720_s3 + $0x60] sm:$0xff] %vm326_vm2, %v258_v15 }

// kernel: _lambda_.19
= control target key start
LH: loop header
LB: loop body
LE: loop exit
PB: predicated region body
PF: predicated region fallthrough
CT: control target
= control target key end

     0   :  { %vm18_vm0 = vcmask 1041408   ;;  %v134_v0 = vmov 0.0|0.0   ;;  %vm135_vm1 = vmmov 1   ;;  %vm136_vm3 = vmmov 0   ;;  %s168_s1 = inlined_call_operand.vmem [shape: f32[10,8], index: 1, kind: input, shape index: {}]   ;;  %s169_s0 = inlined_call_operand.vmem [shape: f32[8,10], index: 0, kind: input, shape index: {}]   ;;  %s170_s2 = inlined_call_operand.vmem [shape: f32[8,8], index: 2, kind: output, shape index: {}]  }
   0x1   :  { %122 = vmatprep.subr.bf16.mxu0 %v134_v0  ;;  %v12_v1 = vld [vmem:[%s168_s1] sm:$0xff]  ;;  %v13_v2 = vld [vmem:[%s168_s1 + $0x8] sm:$0x3]  ;;  %vm124_vm2 = vmpackc.low %vm18_vm0, %vm135_vm1  ;;  %v137_v4 = vmov 0.0   ;;  %vm14_vm4 = vcmask 80896   ;;  %vm93_vm5 = vcmask 64512  }
   0x2   :  { %v123_v3 = vpack.c.bf16 %v13_v2, %v12_v1  ;;  %119 = vmatprep.mubr.msk.f32.mxu0 %vm136_vm3, %v137_v4  ;;  %v11_v5 = vld [vmem:[%s169_s0] sm:$0xff] }
   0x4   :  { %125 = vmatpush3.bf16.msk.msra.mxu0 %vm124_vm2, %v123_v3 }
   0x7   :  { %120 = vmatmul.mubr.msk.f32.vlgmr.msra.gmra.mrb[0].mxu0 %vm14_vm4, %v11_v5 }
  0xda   :  { %v88_v6 = vpop.f32.mrb[0].mxu0 }
  0xdb   :  { %v92_v7 = vmax.f32 %v88_v6, 0.0  ;;  %v121_v8 = vpop.f32.mrb[1].mxu0 }
  0xdd   :  { %v94_v9 = vsel %vm93_vm5, %v92_v7, -inf }
  0xde   :  { %95 = vmax.xlane.f32.xlu0 %v94_v9 }
 0x16b   :  { %v96_v10 = vpop.xlane.xlu0 %95 }
 0x16c   :  { %v97_v11 = vsub.f32 %v92_v7, %v96_v10 }
 0x16e   :  { %v98_v12 = vmul.f32 1.442695, %v97_v11 }
 0x170   :  { %130 = vpow2.f32 %v98_v12 }
 0x17a   :  { %v131_v13 = vpop.eup %130 }
 0x17b   :  { %v100_v14 = vsel %vm93_vm5, %v131_v13, 0.0 }
 0x17c   :  { %101 = vadd.xlane.f32.xlu0 %v100_v14 }
 0x209   :  { %v102_v15 = vpop.xlane.xlu0 %101 }
 0x20a   :  { %132 = vrcp.f32 %v102_v15 }
 0x214   :  { %v133_v16 = vpop.eup %132 }
 0x215   :  { %v104_v17 = vmul.f32 %v133_v16, %v131_v13 }
 0x217   :  { %105 = vst.msk [vmem:[%s170_s2] sm:$0xff] %vm93_vm5, %v104_v17 }

// kernel: _lambda_.21
= control target key start
LH: loop header
LB: loop body
LE: loop exit
PB: predicated region body
PF: predicated region fallthrough
CT: control target
= control target key end

     0   :  { %s986_s30 = smov 0   ;;  %s1070_s0 = inlined_call_operand.vmem [shape: f32[24,8,32], index: 0, kind: input, shape index: {}]   ;;  %s1071_s1 = inlined_call_operand.vmem [shape: f32[8,8], index: 1, kind: input, shape index: {}]   ;;  %s1072_s2 = inlined_call_operand.vmem [shape: f32[24,8,32], index: 2, kind: input, shape index: {}]   ;;  %s1073_s3 = inlined_call_operand.vmem [shape: f32[32,32], index: 3, kind: input, shape index: {}]   ;;  %s1074_s4 = inlined_call_operand.vmem [shape: f32[32,32], index: 4, kind: input, shape index: {}]   ;;  %s1075_s5 = inlined_call_operand.vmem [shape: f32[32,32], index: 5, kind: input, shape index: {}]   ;;  %s1076_s6 = inlined_call_operand.vmem [shape: f32[1,32], index: 6, kind: input, shape index: {}]   ;;  %s1077_s7 = inlined_call_operand.vmem [shape: f32[1,32], index: 7, kind: input, shape index: {}]   ;;  %s1078_s8 = inlined_call_operand.vmem [shape: f32[1,32], index: 8, kind: input, shape index: {}]   ;;  %s1079_s9 = inlined_call_operand.vmem [shape: f32[24,8,32], index: 9, kind: output, shape index: {}]  }
   0x1 LB: > { %s816_s10 = sadd.s32 4294967295, %s931_s30   ;;  %p820_p0 = scmp.ge.s32.totalorder %s931_s30, 1  ;;  %s931_s30 = sphi %s986_s30, %s19_s30  }
   0x2   : > { %p295_p1 = scmp.lt.s32.totalorder %s931_s30, 25 }
   0x4   : > { %p296_p2 = pnand %p820_p0, %p295_p1 }
   0x5   : > { %p333_p3 = scmp.lt.s32.totalorder (!%p296_p2), %s816_s10, 23  ;;  %v933_v0 = vmov (!%p296_p2), 0.0   ;;  %vm934_vm0 = vmmov (!%p296_p2), 0   ;;  %v495_v1 = vld [vmem:[%s1074_s4] sm:$0xff] (!%p296_p2)  ;;  %v496_v2 = vld [vmem:[%s1074_s4 + $0x8] sm:$0xff] (!%p296_p2)  ;;  %v497_v3 = vld [vmem:[%s1074_s4 + $0x10] sm:$0xff] (!%p296_p2) }
   0x6   : > { %299 = sbr.rel (%p296_p2) target bundleno = 666 (0x29a), region = 56  ;;  %853 = vmatprep.subr.mxu1 (!%p296_p2), %v933_v0  ;;  %855 = vmatprep.mubr.msk.f32.mxu1 (!%p296_p2), %vm934_vm0, %v933_v0  ;;  %v935_v4 = vmov (!%p296_p2), 0.0|0.0   ;;  %v897_v5 = vpack.c.bf16 (!%p296_p2), %v496_v2, %v495_v1  ;;  %v498_v6 = vld [vmem:[%s1074_s4 + $0x18] sm:$0xff] (!%p296_p2)  ;;  %v346_v8 = vld [vmem:[%s1071_s1] sm:$0xff] (!%p296_p2)  ;;  %vm347_vm1 = vcmask (!%p296_p2), 64512   ;;  %v492_v11 = vld [vmem:[%s1073_s3 + $0x8] sm:$0xff] (!%p296_p2) }
   0x7   : > { %896 = vmatprep.subr.bf16.mxu0 (!%p296_p2), %v935_v4  ;;  %871 = vmatprep.mubr.msk.f32.mxu0 (!%p296_p2), %vm934_vm0, %v933_v0  ;;  %v900_v7 = vpack.c.bf16 (!%p296_p2), %v498_v6, %v497_v3  ;;  %v491_v10 = vld [vmem:[%s1073_s3] sm:$0xff] (!%p296_p2)  ;;  %v647_v13 = vld [vmem:[%s1075_s5 + $0x8] sm:$0xff] (!%p296_p2)  ;;  %vm499_vm2 = vcmask (!%p296_p2), 261120   ;;  %v493_v16 = vld [vmem:[%s1073_s3 + $0x10] sm:$0xff] (!%p296_p2) }
   0x8   : > { %898 = vmatpush3.bf16.msra.mxu0 (!%p296_p2), %v897_v5  ;;  %v646_v12 = vld [vmem:[%s1075_s5] sm:$0xff] (!%p296_p2)  ;;  %v903_v14 = vpack.c.bf16 (!%p296_p2), %v492_v11, %v491_v10  ;;  %v494_v17 = vld [vmem:[%s1073_s3 + $0x18] sm:$0xff] (!%p296_p2)  ;;  %v648_v20 = vld [vmem:[%s1075_s5 + $0x10] sm:$0xff] (!%p296_p2) }
   0x9   : > { %899 = vmatprep.subr.bf16.mxu0 (!%p296_p2), %v935_v4  ;;  %v909_v18 = vpack.c.bf16 (!%p296_p2), %v647_v13, %v646_v12  ;;  %v649_v21 = vld [vmem:[%s1075_s5 + $0x18] sm:$0xff] (!%p296_p2)  ;;  %v906_v22 = vpack.c.bf16 (!%p296_p2), %v494_v17, %v493_v16  ;;  %v829_v32 = vld [vmem:[%s1076_s6] ss:$0 sm:$0xff] (!%p296_p2) }
   0xa   : > { %v912_v23 = vpack.c.bf16 (!%p296_p2), %v649_v21, %v648_v20  ;;  %v830_v37 = vld [vmem:[%s1077_s7] ss:$0 sm:$0xff] (!%p296_p2) }
   0xb   : > { %v831_v39 = vld [vmem:[%s1078_s8] ss:$0 sm:$0xff] (!%p296_p2) }
   0xc   : > { %901 = vmatpush3.bf16.msra.mxu0 (!%p296_p2), %v900_v7 }
   0xd   : > { %s1081_s10 = smov (!%p333_p3, %s816_s10), 23  ;;  %908 = vmatprep.subr.bf16.mxu0 %v935_v4 }
   0xe   : > { %s1008_s19 = sshll.u32 %s1081_s10, 3 }
   0xf   : > { %s336_s22 = scalar_lea.vmem %s1070_s0, %s1008_s19  ;;  %s340_s24 = scalar_lea.vmem %s1072_s2, %s1008_s19 }
  0x10   : > { %v345_v9 = vld [vmem:[%s336_s22] sm:$0xff]  ;;  %s344_s13 = scalar_lea.vmem %s1079_s9, %s1008_s19 }
  0x11   : > { %854 = vmatpush3.msra.mxu1 %v345_v9  ;;  %v732_v35 = vld [vmem:[%s340_s24] sm:$0xff] }
  0x12   : > { %856 = vmatmul.mubr.msk.f32.vlgmr.msra.gmra.mrb[0].mxu1 %vm347_vm1, %v346_v8  ;;  %858 = vmatprep.subr.mxu1 %v933_v0 }
  0x13   : > { %860 = vmatprep.mubr.msk.f32.mxu1 %vm934_vm0, %v933_v0 }
  0xe5   : > { %v417_v15 = vpop.f32.mrb[0].mxu1 }
  0xe6   : > { %v857_v19 = vpop.f32.mrb[1].mxu1  ;;  %859 = vmatpush3.msra.mxu1 %v417_v15  ;;  %872 = vmatmul.mubr.msk.f32.vlgmr.msra.gmra.mrb[0].mxu0 %vm499_vm2, %v417_v15 }
  0xe7   : > { %861 = vmatmul.mubr.msk.f32.vlgmr.msra.gmra.mrb[2].mxu1 %vm347_vm1, %v346_v8  ;;  %902 = vmatprep.subr.bf16.mxu1 %v935_v4 }
  0xe8   : > { %904 = vmatpush3.bf16.msra.mxu1 %v903_v14  ;;  %882 = vmatprep.mubr.msk.f32.mxu1 %vm934_vm0, %v933_v0 }
  0xe9   : > { %905 = vmatprep.subr.bf16.mxu1 %v935_v4  ;;  %910 = vmatpush3.bf16.msra.mxu0 %v909_v18 }
  0xea   : > { %911 = vmatprep.subr.bf16.mxu0 %v935_v4  ;;  %893 = vmatprep.mubr.msk.f32.mxu0 %vm934_vm0, %v933_v0 }
  0xec   : > { %907 = vmatpush3.bf16.msra.mxu1 %v906_v22 }
  0xed   : > { %913 = vmatpush3.bf16.msra.mxu0 %v912_v23 }
  0xef   : > { %883 = vmatmul.mubr.msk.f32.vlgmr.msra.gmra.mrb[4].mxu1 %vm499_vm2, %v345_v9 }
 0x1b9   : > { %v569_v24 = vpop.f32.mrb[0].mxu0 }
 0x1ba   : > { %v487_v25 = vpop.f32.mrb[2].mxu1  ;;  %v873_v26 = vpop.f32.mrb[1].mxu0 }
 0x1bb   : > { %894 = vmatmul.mubr.msk.f32.vlgmr.msra.gmra.mrb[2].mxu0 %vm499_vm2, %v487_v25  ;;  %v862_v27 = vpop.f32.mrb[3].mxu1 }
 0x1c2   : > { %v642_v28 = vpop.f32.mrb[4].mxu1 }
 0x1c3   : > { %v643_v29 = vadd.f32 %v642_v28, %v569_v24  ;;  %v884_v30 = vpop.f32.mrb[5].mxu1 }
 0x28e   : > { %v719_v31 = vpop.f32.mrb[2].mxu0 }
 0x28f   : > { %v723_v33 = vadd.f32 %v719_v31, %v643_v29  ;;  %v895_v34 = vpop.f32.mrb[3].mxu0 }
 0x291   : > { %v731_v36 = vadd.f32 %v829_v32, %v723_v33 }
 0x293   : > { %v733_v38 = vadd.f32 %v732_v35, %v731_v36 }
 0x295   : > { %v741_v40 = vmul.f32 %v830_v37, %v733_v38 }
 0x297   : > { %v749_v41 = vadd.f32 %v831_v39, %v741_v40 }
 0x299   : > { %750 = vst.msk [vmem:[%s344_s13] sm:$0xff] %vm499_vm2, %v749_v41 }
 0x29a PF: > { %s19_s30 = sadd.s32 1, %s931_s30  }
 0x29b   : > { %p16_p4 = scmp.ge.s32.totalorder %s19_s30, 26  }
 0x29d   :  { %18 = sbr.rel (!%p16_p4) target bundleno = 1 (0x1), region = 89 }

// kernel: _lambda_.20
= control target key start
LH: loop header
LB: loop body
LE: loop exit
PB: predicated region body
PF: predicated region fallthrough
CT: control target
= control target key end

     0   :  { %vm87_vm0 = vcmask 261120   ;;  %vm1261_vm1 = vcmask 523264   ;;  %s2586_s3 = inlined_call_operand.vmem [shape: f32[32,64], index: 3, kind: input, shape index: {}]   ;;  %s2587_s1 = inlined_call_operand.vmem [shape: f32[192,32], index: 1, kind: input, shape index: {}]   ;;  %s2588_s2 = inlined_call_operand.vmem [shape: f32[32,64], index: 2, kind: input, shape index: {}]   ;;  %s2589_s0 = inlined_call_operand.vmem [shape: f32[192,32], index: 0, kind: input, shape index: {}]   ;;  %s2590_s5 = inlined_call_operand.vmem [shape: f32[32,64], index: 5, kind: input, shape index: {}]   ;;  %s2591_s4 = inlined_call_operand.vmem [shape: f32[1,64], index: 4, kind: input, shape index: {}]   ;;  %s2592_s8 = inlined_call_operand.vmem [shape: f32[192,32], index: 8, kind: output, shape index: {0}]   ;;  %s2593_s6 = inlined_call_operand.vmem [shape: f32[1,64], index: 6, kind: input, shape index: {}]   ;;  %s2594_s7 = inlined_call_operand.vmem [shape: f32[192,64], index: 7, kind: input, shape index: {}]   ;;  %s2595_s9 = inlined_call_operand.vmem [shape: f32[192,64], index: 9, kind: output, shape index: {1}]  }
   0x1   :  { %v83_v0 = vld [vmem:[%s2586_s3] sm:$0xff]  ;;  %v84_v1 = vld [vmem:[%s2586_s3 + $0x8] sm:$0xff]  ;;  %v85_v2 = vld [vmem:[%s2586_s3 + $0x10] sm:$0xff] }
   0x2   :  { %v1608_v3 = vpack.c.bf16 %v84_v1, %v83_v0  ;;  %v86_v4 = vld [vmem:[%s2586_s3 + $0x18] sm:$0xff]  ;;  %v59_v5 = vld [vmem:[%s2587_s1] sm:$0xff]  ;;  %v56_v8 = vld [vmem:[%s2588_s2 + $0x8] sm:$0xff] }
   0x3   :  { %v1612_v6 = vpack.c.bf16 %v86_v4, %v85_v2  ;;  %1484 = vmatprep.mubr.msk.f32.mxu0 %vm87_vm0, %v59_v5  ;;  %v55_v7 = vld [vmem:[%s2588_s2] sm:$0xff]  ;;  %v57_v10 = vld [vmem:[%s2588_s2 + $0x10] sm:$0xff]  ;;  %v58_v11 = vld [vmem:[%s2588_s2 + $0x18] sm:$0xff] }
   0x4   :  { %1609 = vmatprep.subr.bf16.mxu0 %v1608_v3  ;;  %1632 = vmatprep.subr.bf16.mxu1 %v1608_v3  ;;  %v1616_v9 = vpack.c.bf16 %v56_v8, %v55_v7  ;;  %v60_v12 = vld [vmem:[%s2587_s1 + $0x8] sm:$0xff]  ;;  %v61_v13 = vld [vmem:[%s2587_s1 + $0x10] sm:$0xff]  ;;  %v1620_v14 = vpack.c.bf16 %v58_v11, %v57_v10  ;;  %v71_v15 = vld [vmem:[%s2587_s1 + $0x60] sm:$0xff] }
   0x5   :  { %1611 = vmatpush3.bf16.msra.mxu0 %v1608_v3  ;;  %1634 = vmatpush3.bf16.msra.mxu1 %v1608_v3  ;;  %v72_v16 = vld [vmem:[%s2587_s1 + $0x68] sm:$0xff]  ;;  %v62_v17 = vld [vmem:[%s2587_s1 + $0x18] sm:$0xff]  ;;  %v73_v18 = vld [vmem:[%s2587_s1 + $0x70] sm:$0xff] }
   0x6   :  { %1613 = vmatprep.subr.bf16.mxu0 %v1612_v6  ;;  %1633 = vmatprep.subr.bf16.mxu1 %v1612_v6  ;;  %v63_v19 = vld [vmem:[%s2587_s1 + $0x20] sm:$0xff]  ;;  %v74_v20 = vld [vmem:[%s2587_s1 + $0x78] sm:$0xff]  ;;  %v64_v22 = vld [vmem:[%s2587_s1 + $0x28] sm:$0xff] }
   0x7   :  { %1502 = vmatprep.mubr.msk.f32.mxu1 %vm87_vm0, %v71_v15  ;;  %v75_v21 = vld [vmem:[%s2587_s1 + $0x80] sm:$0xff]  ;;  %v65_v23 = vld [vmem:[%s2587_s1 + $0x30] sm:$0xff]  ;;  %v76_v24 = vld [vmem:[%s2587_s1 + $0x88] sm:$0xff] }
   0x8   :  { %v77_v25 = vld [vmem:[%s2587_s1 + $0x90] sm:$0xff]  ;;  %v66_v26 = vld [vmem:[%s2587_s1 + $0x38] sm:$0xff]  ;;  %v67_v27 = vld [vmem:[%s2587_s1 + $0x40] sm:$0xff] }
   0x9   :  { %1615 = vmatpush3.bf16.msra.mxu0 %v1612_v6  ;;  %1635 = vmatpush3.bf16.msra.mxu1 %v1612_v6  ;;  %v78_v28 = vld [vmem:[%s2587_s1 + $0x98] sm:$0xff]  ;;  %v79_v29 = vld [vmem:[%s2587_s1 + $0xa0] sm:$0xff]  ;;  %v68_v30 = vld [vmem:[%s2587_s1 + $0x48] sm:$0xff] }
   0xa   :  { %1617 = vmatprep.subr.bf16.mxu0 %v1616_v9  ;;  %v69_v31 = vld [vmem:[%s2587_s1 + $0x50] sm:$0xff]  ;;  %v80_v32 = vld [vmem:[%s2587_s1 + $0xa8] sm:$0xff]  ;;  %v70_v34 = vld [vmem:[%s2587_s1 + $0x58] sm:$0xff] }
   0xb   :  { %v81_v33 = vld [vmem:[%s2587_s1 + $0xb0] sm:$0xff]  ;;  %v31_v35 = vld [vmem:[%s2589_s0] sm:$0xff]  ;;  %v82_v36 = vld [vmem:[%s2587_s1 + $0xb8] sm:$0xff] }
   0xc   :  { %1485 = vmatmul.mubr.msk.f32.vlgmr.msra.gmra.mrb[0].mxu0 %vm87_vm0, %v60_v12  ;;  %1503 = vmatmul.mubr.msk.f32.vlgmr.msra.gmra.mrb[0].mxu1 %vm87_vm0, %v72_v16  ;;  %v32_v37 = vld [vmem:[%s2589_s0 + $0x8] sm:$0xff]  ;;  %v33_v38 = vld [vmem:[%s2589_s0 + $0x10] sm:$0xff]  ;;  %v34_v39 = vld [vmem:[%s2589_s0 + $0x18] sm:$0xff] }
   0xd   :  { %1619 = vmatpush3.bf16.msra.mxu0 %v1616_v9  ;;  %1487 = vmatprep.mubr.msk.f32.mxu0 %vm87_vm0, %v61_v13  ;;  %v35_v40 = vld [vmem:[%s2589_s0 + $0x20] sm:$0xff]  ;;  %v36_v41 = vld [vmem:[%s2589_s0 + $0x28] sm:$0xff]  ;;  %v37_v42 = vld [vmem:[%s2589_s0 + $0x30] sm:$0xff] }
   0xe   :  { %1621 = vmatprep.subr.bf16.mxu0 %v1620_v14  ;;  %1505 = vmatprep.mubr.msk.f32.mxu1 %vm87_vm0, %v73_v18  ;;  %v38_v43 = vld [vmem:[%s2589_s0 + $0x38] sm:$0xff]  ;;  %v39_v44 = vld [vmem:[%s2589_s0 + $0x40] sm:$0xff]  ;;  %v40_v45 = vld [vmem:[%s2589_s0 + $0x48] sm:$0xff] }
   0xf   :  { %v41_v46 = vld [vmem:[%s2589_s0 + $0x50] sm:$0xff]  ;;  %v42_v47 = vld [vmem:[%s2589_s0 + $0x58] sm:$0xff]  ;;  %v43_v48 = vld [vmem:[%s2589_s0 + $0x60] sm:$0xff] }
  0x10   :  { %1488 = vmatmul.mubr.msk.f32.gmra.mrb[2].mxu0 %vm87_vm0, %v62_v17  ;;  %1506 = vmatmul.mubr.msk.f32.gmra.mrb[2].mxu1 %vm87_vm0, %v74_v20  ;;  %v44_v49 = vld [vmem:[%s2589_s0 + $0x68] sm:$0xff]  ;;  %v45_v50 = vld [vmem:[%s2589_s0 + $0x70] sm:$0xff]  ;;  %v46_v51 = vld [vmem:[%s2589_s0 + $0x78] sm:$0xff] }
  0x11   :  { %1490 = vmatprep.mubr.msk.f32.mxu0 %vm87_vm0, %v63_v19  ;;  %1623 = vmatpush3.bf16.msra.mxu0 %v1620_v14  ;;  %v47_v52 = vld [vmem:[%s2589_s0 + $0x80] sm:$0xff]  ;;  %v48_v53 = vld [vmem:[%s2589_s0 + $0x88] sm:$0xff]  ;;  %v49_v54 = vld [vmem:[%s2589_s0 + $0x90] sm:$0xff] }
  0x12   :  { %1508 = vmatprep.mubr.msk.f32.mxu1 %vm87_vm0, %v75_v21  ;;  %v50_v55 = vld [vmem:[%s2589_s0 + $0x98] sm:$0xff]  ;;  %v51_v56 = vld [vmem:[%s2589_s0 + $0xa0] sm:$0xff]  ;;  %v52_v57 = vld [vmem:[%s2589_s0 + $0xa8] sm:$0xff] }
  0x13   :  { %v53_v58 = vld [vmem:[%s2589_s0 + $0xb0] sm:$0xff]  ;;  %v54_v59 = vld [vmem:[%s2589_s0 + $0xb8] sm:$0xff]  ;;  %v945_v60 = vld [vmem:[%s2590_s5] sm:$0xff] }
  0x14   :  { %1491 = vmatmul.mubr.msk.f32.gmra.mrb[4].mxu0 %vm87_vm0, %v64_v22  ;;  %1509 = vmatmul.mubr.msk.f32.gmra.mrb[4].mxu1 %vm87_vm0, %v76_v24  ;;  %v946_v61 = vld [vmem:[%s2590_s5 + $0x8] sm:$0xff]  ;;  %v947_v62 = vld [vmem:[%s2590_s5 + $0x10] sm:$0xff]  ;;  %v948_v0 = vld [vmem:[%s2590_s5 + $0x18] sm:$0xff] }
  0x15   :  { %1493 = vmatprep.mubr.msk.f32.mxu0 %vm87_vm0, %v65_v23  ;;  %1511 = vmatprep.mubr.msk.f32.mxu1 %vm87_vm0, %v77_v25  ;;  %v1624_v63 = vpack.c.bf16 %v946_v61, %v945_v60  ;;  %v1628_v1 = vpack.c.bf16 %v948_v0, %v947_v62  ;;  %v2107_v12 = vld [vmem:[%s2591_s4] ss:$0 sm:$0xff]  ;;  %s1805_s4 = smov 96  }
  0x17   :  { %1625 = vmatprep.subr.bf16.mxu1 %v1624_v63 }
  0x18   :  { %1494 = vmatmul.mubr.msk.f32.gmra.mrb[6].mxu0 %vm87_vm0, %v66_v26  ;;  %1512 = vmatmul.mubr.msk.f32.gmra.mrb[6].mxu1 %vm87_vm0, %v78_v28 }
  0x19   :  { %1496 = vmatprep.mubr.msk.f32.mxu0 %vm87_vm0, %v67_v27  ;;  %1514 = vmatprep.mubr.msk.f32.mxu1 %vm87_vm0, %v79_v29 }
  0x1a   :  { %1627 = vmatpush3.bf16.msra.mxu1 %v1624_v63 }
  0x1b   :  { %1629 = vmatprep.subr.bf16.mxu1 %v1628_v1 }
  0x1c   :  { %1497 = vmatmul.mubr.msk.f32.gmra.mrb[8].mxu0 %vm87_vm0, %v68_v30  ;;  %1515 = vmatmul.mubr.msk.f32.gmra.mrb[8].mxu1 %vm87_vm0, %v80_v32 }
  0x1d   :  { %1499 = vmatprep.mubr.msk.f32.mxu0 %vm87_vm0, %v69_v31  ;;  %1517 = vmatprep.mubr.msk.f32.mxu1 %vm87_vm0, %v81_v33 }
  0x1e   :  { %1631 = vmatpush3.bf16.msra.mxu1 %v1628_v1 }
  0x20   :  { %1500 = vmatmul.mubr.msk.f32.gmra.mrb[10].mxu0 %vm87_vm0, %v70_v34  ;;  %1518 = vmatmul.mubr.msk.f32.gmra.mrb[10].mxu1 %vm87_vm0, %v82_v36 }
  0x21   :  { %1528 = vmatprep.mubr.msk.f32.mxu0 %vm87_vm0, %v31_v35 }
  0x24   :  { %1529 = vmatmul.mubr.msk.f32.vlgmr.msra.gmra.mrb[0].mxu0 %vm87_vm0, %v32_v37 }
  0x25   :  { %1531 = vmatprep.mubr.msk.f32.mxu0 %vm87_vm0, %v33_v38 }
  0x28   :  { %1532 = vmatmul.mubr.msk.f32.gmra.mrb[2].mxu0 %vm87_vm0, %v34_v39 }
  0x29   :  { %1534 = vmatprep.mubr.msk.f32.mxu0 %vm87_vm0, %v35_v40 }
  0x2c   :  { %1535 = vmatmul.mubr.msk.f32.gmra.mrb[4].mxu0 %vm87_vm0, %v36_v41 }
  0x2d   :  { %1537 = vmatprep.mubr.msk.f32.mxu0 %vm87_vm0, %v37_v42 }
  0x30   :  { %1538 = vmatmul.mubr.msk.f32.gmra.mrb[6].mxu0 %vm87_vm0, %v38_v43 }
  0x31   :  { %1540 = vmatprep.mubr.msk.f32.mxu0 %vm87_vm0, %v39_v44 }
  0x34   :  { %1541 = vmatmul.mubr.msk.f32.gmra.mrb[8].mxu0 %vm87_vm0, %v40_v45 }
  0x35   :  { %1543 = vmatprep.mubr.msk.f32.mxu0 %vm87_vm0, %v41_v46 }
  0x38   :  { %1544 = vmatmul.mubr.msk.f32.gmra.mrb[10].mxu0 %vm87_vm0, %v42_v47 }
  0x39   :  { %1546 = vmatprep.mubr.msk.f32.mxu0 %vm87_vm0, %v43_v48 }
  0x3c   :  { %1547 = vmatmul.mubr.msk.f32.gmra.mrb[12].mxu0 %vm87_vm0, %v44_v49 }
  0x3d   :  { %1549 = vmatprep.mubr.msk.f32.mxu0 %vm87_vm0, %v45_v50 }
  0x40   :  { %1550 = vmatmul.mubr.msk.f32.gmra.mrb[14].mxu0 %vm87_vm0, %v46_v51 }
  0x41   :  { %1552 = vmatprep.mubr.msk.f32.mxu0 %vm87_vm0, %v47_v52 }
  0x44   :  { %1553 = vmatmul.mubr.msk.f32.gmra.mrb[16].mxu0 %vm87_vm0, %v48_v53 }
  0x45   :  { %1555 = vmatprep.mubr.msk.f32.mxu0 %vm87_vm0, %v49_v54 }
  0x48   :  { %1556 = vmatmul.mubr.msk.f32.gmra.mrb[18].mxu0 %vm87_vm0, %v50_v55 }
  0x49   :  { %1558 = vmatprep.mubr.msk.f32.mxu0 %vm87_vm0, %v51_v56 }
  0x4c   :  { %1559 = vmatmul.mubr.msk.f32.gmra.mrb[20].mxu0 %vm87_vm0, %v52_v57 }
  0x4d   :  { %1561 = vmatprep.mubr.msk.f32.mxu0 %vm87_vm0, %v53_v58 }
  0x50   :  { %1562 = vmatmul.mubr.msk.f32.gmra.mrb[22].mxu0 %vm87_vm0, %v54_v59 }
  0xdf   :  { %v2084_v2 = vpop.f32.mrb[0].mxu1 }
  0xe0   :  { %v2086_v3 = vpop.f32.mrb[1].mxu1 }
  0xe3   :  { %v2088_v4 = vpop.f32.mrb[2].mxu1 }
  0xe4   :  { %v2090_v5 = vpop.f32.mrb[3].mxu1 }
  0xe7   :  { %v2092_v6 = vpop.f32.mrb[4].mxu1 }
  0xe8   :  { %v2094_v7 = vpop.f32.mrb[5].mxu1 }
  0xeb   :  { %v2096_v8 = vpop.f32.mrb[6].mxu1 }
  0xec   :  { %v2098_v9 = vpop.f32.mrb[7].mxu1 }
  0xef   :  { %v2100_v10 = vpop.f32.mrb[8].mxu1 }
  0xf0   :  { %v2102_v11 = vpop.f32.mrb[9].mxu1 }
  0xf3   :  { %v2109_v13 = vpop.f32.mrb[10].mxu1 }
  0xf4   :  { %v2111_v14 = vpop.f32.mrb[11].mxu1 }
  0xf7   :  { %v1530_v15 = vpop.f32.mrb[0].mxu0 }
  0xf8   :  { %v2114_v16 = vadd.f32 %v1530_v15, %v2107_v12  ;;  %v483_v17 = vpop.f32.mrb[1].mxu0 }
  0xf9   :  { %v2117_v18 = vadd.f32 %v2107_v12, %v483_v17 }
  0xfa   :  { %v1344_v19 = vmul.f32 -1.442695, %v2114_v16 }
  0xfb   :  { %v1343_v20 = vmul.f32 -1.442695, %v2117_v18  ;;  %v1533_v21 = vpop.f32.mrb[2].mxu0 }
  0xfc   :  { %1661 = vpow2.f32 %v1344_v19  ;;  %v2122_v22 = vadd.f32 %v1533_v21, %v2107_v12  ;;  %v493_v23 = vpop.f32.mrb[3].mxu0 }
  0xfd   :  { %1663 = vpow2.f32 %v1343_v20  ;;  %v2125_v24 = vadd.f32 %v2107_v12, %v493_v23 }
  0xfe   :  { %v1346_v25 = vmul.f32 -1.442695, %v2122_v22 }
  0xff   :  { %v1345_v26 = vmul.f32 -1.442695, %v2125_v24  ;;  %v1536_v27 = vpop.f32.mrb[4].mxu0 }
 0x100   :  { %1665 = vpow2.f32 %v1346_v25  ;;  %v2130_v28 = vadd.f32 %v1536_v27, %v2107_v12  ;;  %v503_v29 = vpop.f32.mrb[5].mxu0 }
 0x101   :  { %1667 = vpow2.f32 %v1345_v26  ;;  %v2133_v30 = vadd.f32 %v2107_v12, %v503_v29 }
 0x102   :  { %v1348_v31 = vmul.f32 -1.442695, %v2130_v28 }
 0x103   :  { %v1347_v32 = vmul.f32 -1.442695, %v2133_v30  ;;  %v1539_v33 = vpop.f32.mrb[6].mxu0 }
 0x104   :  { %1669 = vpow2.f32 %v1348_v31  ;;  %v2138_v34 = vadd.f32 %v1539_v33, %v2107_v12  ;;  %v513_v35 = vpop.f32.mrb[7].mxu0 }
 0x105   :  { %1671 = vpow2.f32 %v1347_v32  ;;  %v2141_v36 = vadd.f32 %v2107_v12, %v513_v35 }
 0x106   :  { %v1662_v37 = vpop.eup %1661  ;;  %v1350_v38 = vmul.f32 -1.442695, %v2138_v34 }
 0x107   :  { %v1664_v39 = vpop.eup %1663  ;;  %v1349_v40 = vmul.f32 -1.442695, %v2141_v36  ;;  %v1542_v41 = vpop.f32.mrb[8].mxu0  ;;  %v730_v45 = vadd.f32 1.0, %v1662_v37 }
 0x108   :  { %v729_v42 = vadd.f32 1.0, %v1664_v39  ;;  %v2146_v43 = vadd.f32 %v1542_v41, %v2107_v12  ;;  %v523_v44 = vpop.f32.mrb[9].mxu0  ;;  %1673 = vpow2.f32 %v1350_v38 }
 0x109   :  { %v2150_v49 = vadd.f32 %v2107_v12, %v523_v44 }
 0x10a   :  { %v1666_v46 = vpop.eup %1665  ;;  %1675 = vrcp.f32 %v729_v42  ;;  %v1352_v48 = vmul.f32 -1.442695, %v2146_v43 }
 0x10b   :  { %v1668_v47 = vpop.eup %1667  ;;  %1677 = vpow2.f32 %v1349_v40  ;;  %v1545_v50 = vpop.f32.mrb[10].mxu0  ;;  %v732_v53 = vadd.f32 1.0, %v1666_v46  ;;  %v1351_v57 = vmul.f32 -1.442695, %v2150_v49 }
 0x10c   :  { %v731_v51 = vadd.f32 1.0, %v1668_v47  ;;  %v533_v52 = vpop.f32.mrb[11].mxu0  ;;  %1679 = vrcp.f32 %v730_v45  ;;  %v2153_v55 = vadd.f32 %v1545_v50, %v2107_v12 }
 0x10d   :  { %v2158_v63 = vadd.f32 %v2107_v12, %v533_v52 }
 0x10e   :  { %v1670_v54 = vpop.eup %1669  ;;  %1681 = vrcp.f32 %v731_v51  ;;  %v1354_v1 = vmul.f32 -1.442695, %v2153_v55 }
 0x10f   :  { %v1672_v56 = vpop.eup %1671  ;;  %1683 = vpow2.f32 %v1352_v48  ;;  %v1548_v58 = vpop.f32.mrb[12].mxu0  ;;  %v734_v62 = vadd.f32 1.0, %v1670_v54  ;;  %v1353_v25 = vmul.f32 -1.442695, %v2158_v63 }
 0x110   :  { %v733_v59 = vadd.f32 1.0, %v1672_v56  ;;  %v549_v60 = vadd.f32 %v1548_v58, %v2084_v2  ;;  %v543_v61 = vpop.f32.mrb[13].mxu0  ;;  %1685 = vrcp.f32 %v732_v53 }
 0x111   :  { %v544_v0 = vadd.f32 %v543_v61, %v2086_v3 }
 0x112   :  { %1687 = vrcp.f32 %v733_v59  ;;  %v1674_v15 = vpop.eup %1673  ;;  %v2163_v17 = vadd.f32 %v2107_v12, %v549_v60 }
 0x113   :  { %1689 = vpow2.f32 %v1351_v57  ;;  %v1551_v19 = vpop.f32.mrb[14].mxu0  ;;  %v736_v3 = vadd.f32 1.0, %v1674_v15  ;;  %v2170_v29 = vadd.f32 %v2107_v12, %v544_v0 }
 0x114   :  { %v1676_v20 = vpop.eup %1675  ;;  %v559_v2 = vadd.f32 %v1551_v19, %v2088_v4  ;;  %v553_v21 = vpop.f32.mrb[15].mxu0  ;;  %1691 = vrcp.f32 %v734_v62  ;;  %v1356_v32 = vmul.f32 -1.442695, %v2163_v17 }
 0x115   :  { %v1678_v23 = vpop.eup %1677  ;;  %v554_v26 = vadd.f32 %v553_v21, %v2090_v5  ;;  %825 = vrot.lane.b32.xlu0 %v1676_v20, %s1805_s4  ;;  %1693 = vpow2.f32 %v1354_v1  ;;  %v1355_v41 = vmul.f32 -1.442695, %v2170_v29 }
 0x116   :  { %v735_v27 = vadd.f32 1.0, %v1678_v23  ;;  %v1680_v31 = vpop.eup %1679  ;;  %v2175_v5 = vadd.f32 %v2107_v12, %v559_v2 }
 0x117   :  { %v1554_v4 = vpop.f32.mrb[16].mxu0  ;;  %v2182_v45 = vadd.f32 %v2107_v12, %v554_v26 }
 0x118   :  { %v1682_v33 = vpop.eup %1681  ;;  %1695 = vrcp.f32 %v735_v27  ;;  %v569_v35 = vadd.f32 %v1554_v4, %v2092_v6  ;;  %v563_v37 = vpop.f32.mrb[17].mxu0 }
 0x119   :  { %v1684_v38 = vpop.eup %1683  ;;  %1697 = vpow2.f32 %v1353_v25  ;;  %v564_v39 = vadd.f32 %v563_v37, %v2094_v7  ;;  %827 = vrot.lane.b32.xlu0 %v1680_v31, %s1805_s4  ;;  %829 = vrot.lane.b32.xlu1 %v1682_v33, %s1805_s4  ;;  %v1358_v7 = vmul.f32 -1.442695, %v2175_v5 }
 0x11a   :  { %1699 = vrcp.f32 %v736_v3  ;;  %v738_v40 = vadd.f32 1.0, %v1684_v38  ;;  %v1686_v42 = vpop.eup %1685  ;;  %v2190_v53 = vadd.f32 %v2107_v12, %v569_v35 }
 0x11b   :  { %1701 = vpow2.f32 %v1356_v32  ;;  %v1557_v44 = vpop.f32.mrb[18].mxu0  ;;  %v2197_v61 = vadd.f32 %v2107_v12, %v564_v39 }
 0x11c   :  { %v1688_v6 = vpop.eup %1687  ;;  %v579_v46 = vadd.f32 %v1557_v44, %v2096_v8  ;;  %v573_v47 = vpop.f32.mrb[19].mxu0  ;;  %1703 = vrcp.f32 %v738_v40  ;;  %v1357_v8 = vmul.f32 -1.442695, %v2182_v45  ;;  %v1360_v0 = vmul.f32 -1.442695, %v2190_v53 }
 0x11d   :  { %v1690_v48 = vpop.eup %1689  ;;  %v574_v50 = vadd.f32 %v573_v47, %v2098_v9  ;;  %831 = vrot.lane.b32.xlu1 %v1686_v42, %s1805_s4  ;;  %833 = vrot.lane.b32.xlu0 %v1688_v6, %s1805_s4  ;;  %1705 = vpow2.f32 %v1355_v41  ;;  %v1359_v25 = vmul.f32 -1.442695, %v2197_v61 }
 0x11e   :  { %v737_v51 = vadd.f32 1.0, %v1690_v48  ;;  %v1692_v52 = vpop.eup %1691  ;;  %v2203_v2 = vadd.f32 %v2107_v12, %v579_v46 }
 0x11f   :  { %v1560_v54 = vpop.f32.mrb[20].mxu0  ;;  %v1694_v56 = vpop.eup %1693  ;;  %v2209_v27 = vadd.f32 %v2107_v12, %v574_v50 }
 0x120   :  { %1707 = vrcp.f32 %v737_v51  ;;  %v589_v57 = vadd.f32 %v1560_v54, %v2100_v10  ;;  %v583_v58 = vpop.f32.mrb[21].mxu0  ;;  %v740_v59 = vadd.f32 1.0, %v1694_v56  ;;  %v1362_v31 = vmul.f32 -1.442695, %v2203_v2 }
 0x121   :  { %1709 = vpow2.f32 %v1358_v7  ;;  %v584_v9 = vadd.f32 %v583_v58, %v2102_v11  ;;  %835 = vrot.lane.b32.xlu1 %v1692_v52, %s1805_s4  ;;  %v1361_v35 = vmul.f32 -1.442695, %v2209_v27 }
 0x122   :  { %v1696_v60 = vpop.eup %1695  ;;  %1711 = vrcp.f32 %v740_v59  ;;  %v2214_v4 = vadd.f32 %v2107_v12, %v589_v57 }
 0x123   :  { %v1698_v62 = vpop.eup %1697  ;;  %837 = vrot.lane.b32.xlu0 %v1696_v60, %s1805_s4  ;;  %v1563_v1 = vpop.f32.mrb[22].mxu0  ;;  %1713 = vpow2.f32 %v1357_v8  ;;  %v2219_v39 = vadd.f32 %v2107_v12, %v584_v9 }
 0x124   :  { %v1700_v15 = vpop.eup %1699  ;;  %v739_v10 = vadd.f32 1.0, %v1698_v62  ;;  %v599_v19 = vadd.f32 %v1563_v1, %v2109_v13  ;;  %v593_v20 = vpop.f32.mrb[23].mxu0  ;;  %v1364_v41 = vmul.f32 -1.442695, %v2214_v4 }
 0x125   :  { %v1702_v11 = vpop.eup %1701  ;;  %v594_v21 = vadd.f32 %v593_v20, %v2111_v14  ;;  %839 = vrot.lane.b32.xlu1 %v1700_v15, %s1805_s4  ;;  %v1363_v48 = vmul.f32 -1.442695, %v2219_v39 }
 0x126   :  { %1715 = vrcp.f32 %v739_v10  ;;  %v742_v23 = vadd.f32 1.0, %v1702_v11  ;;  %v1704_v26 = vpop.eup %1703  ;;  %v2224_v6 = vadd.f32 %v2107_v12, %v599_v19 }
 0x127   :  { %1717 = vpow2.f32 %v1360_v0  ;;  %v1706_v3 = vpop.eup %1705  ;;  %v2230_v50 = vadd.f32 %v2107_v12, %v594_v21 }
 0x128   :  { %1719 = vrcp.f32 %v742_v23  ;;  %v741_v13 = vadd.f32 1.0, %v1706_v3  ;;  %v1366_v54 = vmul.f32 -1.442695, %v2224_v6 }
 0x129   :  { %843 = vrot.lane.b32.xlu1 %v1704_v26, %s1805_s4  ;;  %1721 = vpow2.f32 %v1359_v25  ;;  %v1365_v58 = vmul.f32 -1.442695, %v2230_v50 }
 0x12a   :  { %v1708_v32 = vpop.eup %1707  ;;  %1723 = vrcp.f32 %v741_v13 }
 0x12b   :  { %v1710_v14 = vpop.eup %1709  ;;  %841 = vrot.lane.b32.xlu0 %v1708_v32, %s1805_s4  ;;  %1725 = vpow2.f32 %v1362_v31 }
 0x12c   :  { %v744_v33 = vadd.f32 1.0, %v1710_v14  ;;  %v1712_v37 = vpop.eup %1711 }
 0x12d   :  { %v1714_v38 = vpop.eup %1713  ;;  %847 = vrot.lane.b32.xlu1 %v1712_v37, %s1805_s4 }
 0x12e   :  { %1727 = vrcp.f32 %v744_v33  ;;  %v743_v40 = vadd.f32 1.0, %v1714_v38 }
 0x12f   :  { %1729 = vpow2.f32 %v1361_v35 }
 0x130   :  { %v1716_v42 = vpop.eup %1715  ;;  %1731 = vrcp.f32 %v743_v40 }
 0x131   :  { %v1718_v44 = vpop.eup %1717  ;;  %845 = vrot.lane.b32.xlu0 %v1716_v42, %s1805_s4  ;;  %1733 = vpow2.f32 %v1364_v41 }
 0x132   :  { %v1720_v46 = vpop.eup %1719  ;;  %v746_v47 = vadd.f32 1.0, %v1718_v44 }
 0x133   :  { %851 = vrot.lane.b32.xlu1 %v1720_v46, %s1805_s4  ;;  %v1722_v7 = vpop.eup %1721 }
 0x134   :  { %1735 = vrcp.f32 %v746_v47  ;;  %v1724_v51 = vpop.eup %1723  ;;  %v745_v52 = vadd.f32 1.0, %v1722_v7 }
 0x135   :  { %1737 = vpow2.f32 %v1363_v48  ;;  %849 = vrot.lane.b32.xlu0 %v1724_v51, %s1805_s4  ;;  %v1726_v56 = vpop.eup %1725 }
 0x136   :  { %1739 = vrcp.f32 %v745_v52  ;;  %v748_v57 = vadd.f32 1.0, %v1726_v56 }
 0x137   :  { %1741 = vpow2.f32 %v1366_v54 }
 0x138   :  { %v1728_v8 = vpop.eup %1727  ;;  %1743 = vrcp.f32 %v748_v57 }
 0x139   :  { %855 = vrot.lane.b32.xlu1 %v1728_v8, %s1805_s4  ;;  %v1730_v59 = vpop.eup %1729  ;;  %1745 = vpow2.f32 %v1365_v58 }
 0x13a   :  { %v1732_v12 = vpop.eup %1731  ;;  %v747_v9 = vadd.f32 1.0, %v1730_v59 }
 0x13b   :  { %853 = vrot.lane.b32.xlu0 %v1732_v12, %s1805_s4  ;;  %v1734_v60 = vpop.eup %1733 }
 0x13c   :  { %1747 = vrcp.f32 %v747_v9  ;;  %v750_v0 = vadd.f32 1.0, %v1734_v60 }
 0x13e   :  { %v1736_v62 = vpop.eup %1735  ;;  %1749 = vrcp.f32 %v750_v0 }
 0x13f   :  { %859 = vrot.lane.b32.xlu1 %v1736_v62, %s1805_s4  ;;  %v1738_v1 = vpop.eup %1737 }
 0x140   :  { %v1740_v15 = vpop.eup %1739  ;;  %v749_v10 = vadd.f32 1.0, %v1738_v1 }
 0x141   :  { %857 = vrot.lane.b32.xlu0 %v1740_v15, %s1805_s4  ;;  %v1742_v19 = vpop.eup %1741 }
 0x142   :  { %1751 = vrcp.f32 %v749_v10  ;;  %v1744_v20 = vpop.eup %1743  ;;  %v752_v11 = vadd.f32 1.0, %v1742_v19 }
 0x143   :  { %863 = vrot.lane.b32.xlu1 %v1744_v20, %s1805_s4  ;;  %v1746_v21 = vpop.eup %1745 }
 0x144   :  { %1753 = vrcp.f32 %v752_v11  ;;  %v751_v25 = vadd.f32 1.0, %v1746_v21 }
 0x146   :  { %v1748_v23 = vpop.eup %1747  ;;  %1755 = vrcp.f32 %v751_v25 }
 0x147   :  { %861 = vrot.lane.b32.xlu0 %v1748_v23, %s1805_s4  ;;  %1757 = vtanh.f32 %v2117_v18 }
 0x148   :  { %v1750_v26 = vpop.eup %1749  ;;  %1759 = vtanh.f32 %v2114_v16 }
 0x149   :  { %867 = vrot.lane.b32.xlu1 %v1750_v26, %s1805_s4  ;;  %1761 = vtanh.f32 %v2125_v24 }
 0x14a   :  { %1763 = vtanh.f32 %v2122_v22 }
 0x14b   :  { %1765 = vtanh.f32 %v2133_v30 }
 0x14c   :  { %v1752_v3 = vpop.eup %1751  ;;  %1767 = vtanh.f32 %v2130_v28 }
 0x14d   :  { %865 = vrot.lane.b32.xlu0 %v1752_v3, %s1805_s4  ;;  %1769 = vtanh.f32 %v2141_v36 }
 0x14e   :  { %v1754_v13 = vpop.eup %1753  ;;  %1771 = vtanh.f32 %v2138_v34 }
 0x14f   :  { %871 = vrot.lane.b32.xlu1 %v1754_v13, %s1805_s4  ;;  %1773 = vtanh.f32 %v2146_v43 }
 0x150   :  { %v1756_v31 = vpop.eup %1755  ;;  %1775 = vtanh.f32 %v2150_v49 }
 0x151   :  { %869 = vrot.lane.b32.xlu0 %v1756_v31, %s1805_s4  ;;  %v1758_v32 = vpop.eup %1757  ;;  %1777 = vtanh.f32 %v2153_v55 }
 0x152   :  { %v1760_v35 = vpop.eup %1759  ;;  %1779 = vtanh.f32 %v2158_v63 }
 0x153   :  { %v1762_v16 = vpop.eup %1761  ;;  %1781 = vtanh.f32 %v2163_v17 }
 0x154   :  { %v1764_v37 = vpop.eup %1763  ;;  %1783 = vtanh.f32 %v2170_v29 }
 0x155   :  { %v1766_v28 = vpop.eup %1765  ;;  %1785 = vtanh.f32 %v2175_v5 }
 0x156   :  { %v1768_v41 = vpop.eup %1767  ;;  %1787 = vtanh.f32 %v2182_v45 }
 0x157   :  { %v1770_v43 = vpop.eup %1769  ;;  %1789 = vtanh.f32 %v2190_v53 }
 0x158   :  { %v1772_v48 = vpop.eup %1771  ;;  %1791 = vtanh.f32 %v2197_v61 }
 0x159   :  { %v1774_v55 = vpop.eup %1773  ;;  %1793 = vtanh.f32 %v2203_v2 }
 0x15a   :  { %v1776_v54 = vpop.eup %1775  ;;  %1795 = vtanh.f32 %v2209_v27 }
 0x15b   :  { %v1778_v63 = vpop.eup %1777  ;;  %1797 = vtanh.f32 %v2214_v4 }
 0x15c   :  { %v1780_v57 = vpop.eup %1779  ;;  %1799 = vtanh.f32 %v2219_v39 }
 0x15d   :  { %v1782_v12 = vpop.eup %1781  ;;  %1801 = vtanh.f32 %v2224_v6 }
 0x15e   :  { %v1784_v60 = vpop.eup %1783  ;;  %1803 = vtanh.f32 %v2230_v50 }
 0x15f   :  { %v1786_v0 = vpop.eup %1785 }
 0x160   :  { %v1788_v15 = vpop.eup %1787 }
 0x161   :  { %v1790_v19 = vpop.eup %1789 }
 0x162   :  { %v1792_v11 = vpop.eup %1791 }
 0x163   :  { %v1794_v23 = vpop.eup %1793 }
 0x164   :  { %v1796_v26 = vpop.eup %1795 }
 0x165   :  { %v1798_v13 = vpop.eup %1797 }
 0x187   :  { %v826_v14 = vpop.permute.xlu0 %825 }
 0x188   :  { %v897_v33 = vmul.f32 %v1758_v32, %v826_v14  ;;  %v1800_v32 = vpop.eup %1799 }
 0x18a   :  { %921 = vst.msk [vmem:[%s2592_s8] sm:$0xff] %vm87_vm0, %v897_v33  ;;  %1572 = vmatprep.mubr.msk.f32.mxu1 %vm87_vm0, %v897_v33  ;;  %v1802_v33 = vpop.eup %1801 }
 0x18b   :  { %v828_v18 = vpop.permute.xlu0 %827  ;;  %v830_v22 = vpop.permute.xlu1 %829 }
 0x18c   :  { %v898_v24 = vmul.f32 %v1760_v35, %v828_v18  ;;  %v899_v30 = vmul.f32 %v1762_v16, %v830_v22  ;;  %v1804_v18 = vpop.eup %1803 }
 0x18e   :  { %922 = vst.msk [vmem:[%s2592_s8 + $0x8] sm:$0xff] %vm87_vm0, %v898_v24  ;;  %923 = vst.msk [vmem:[%s2592_s8 + $0x10] sm:$0xff] %vm87_vm0, %v899_v30  ;;  %1573 = vmatmul.mubr.msk.f32.vlgmr.msra.gmra.mrb[12].mxu1 %vm87_vm0, %v898_v24 }
 0x18f   :  { %v832_v36 = vpop.permute.xlu1 %831  ;;  %1575 = vmatprep.mubr.msk.f32.mxu1 %vm87_vm0, %v899_v30  ;;  %v834_v38 = vpop.permute.xlu0 %833  ;;  %v2392_v30 = vld [vmem:[%s2593_s6] ss:$0 sm:$0xff] }
 0x190   :  { %v900_v40 = vmul.f32 %v1764_v37, %v832_v36  ;;  %v901_v34 = vmul.f32 %v1766_v28, %v834_v38  ;;  %v1214_v28 = vld [vmem:[%s2594_s7 + $0x8] sm:$0xff] }
 0x192   :  { %924 = vst.msk [vmem:[%s2592_s8 + $0x18] sm:$0xff] %vm87_vm0, %v900_v40  ;;  %925 = vst.msk [vmem:[%s2592_s8 + $0x20] sm:$0xff] %vm87_vm0, %v901_v34  ;;  %1576 = vmatmul.mubr.msk.f32.gmra.mrb[14].mxu1 %vm87_vm0, %v900_v40  ;;  %v1213_v40 = vld [vmem:[%s2594_s7] sm:$0xff] }
 0x193   :  { %v836_v42 = vpop.permute.xlu1 %835  ;;  %1578 = vmatprep.mubr.msk.f32.mxu1 %vm87_vm0, %v901_v34 }
 0x194   :  { %v902_v44 = vmul.f32 %v1768_v41, %v836_v42 }
 0x195   :  { %v838_v46 = vpop.permute.xlu0 %837 }
 0x196   :  { %926 = vst.msk [vmem:[%s2592_s8 + $0x28] sm:$0xff] %vm87_vm0, %v902_v44  ;;  %v903_v47 = vmul.f32 %v1770_v43, %v838_v46  ;;  %1579 = vmatmul.mubr.msk.f32.gmra.mrb[16].mxu1 %vm87_vm0, %v902_v44  ;;  %v1216_v43 = vld [vmem:[%s2594_s7 + $0x18] sm:$0xff] }
 0x197   :  { %v840_v7 = vpop.permute.xlu1 %839 }
 0x198   :  { %927 = vst.msk [vmem:[%s2592_s8 + $0x30] sm:$0xff] %vm87_vm0, %v903_v47  ;;  %v904_v49 = vmul.f32 %v1772_v48, %v840_v7  ;;  %1581 = vmatprep.mubr.msk.f32.mxu1 %vm87_vm0, %v903_v47  ;;  %v1215_v48 = vld [vmem:[%s2594_s7 + $0x10] sm:$0xff] }
 0x19a   :  { %928 = vst.msk [vmem:[%s2592_s8 + $0x38] sm:$0xff] %vm87_vm0, %v904_v49  ;;  %1582 = vmatmul.mubr.msk.f32.gmra.mrb[18].mxu1 %vm87_vm0, %v904_v49 }
 0x19b   :  { %v844_v51 = vpop.permute.xlu1 %843 }
 0x19c   :  { %v906_v52 = vmul.f32 %v1774_v55, %v844_v51 }
 0x19d   :  { %v842_v56 = vpop.permute.xlu0 %841 }
 0x19e   :  { %v905_v8 = vmul.f32 %v1776_v54, %v842_v56  ;;  %930 = vst.msk [vmem:[%s2592_s8 + $0x48] sm:$0xff] %vm87_vm0, %v906_v52 }
 0x19f   :  { %v848_v17 = vpop.permute.xlu1 %847 }
 0x1a0   :  { %929 = vst.msk [vmem:[%s2592_s8 + $0x40] sm:$0xff] %vm87_vm0, %v905_v8  ;;  %1584 = vmatprep.mubr.msk.f32.mxu1 %vm87_vm0, %v905_v8  ;;  %v908_v29 = vmul.f32 %v1778_v63, %v848_v17  ;;  %v1217_v8 = vld [vmem:[%s2594_s7 + $0x20] sm:$0xff] }
 0x1a1   :  { %1585 = vmatmul.mubr.msk.f32.gmra.mrb[20].mxu1 %vm87_vm0, %v906_v52  ;;  %v1218_v52 = vld [vmem:[%s2594_s7 + $0x28] sm:$0xff] }
 0x1a2   :  { %932 = vst.msk [vmem:[%s2592_s8 + $0x58] sm:$0xff] %vm87_vm0, %v908_v29 }
 0x1a3   :  { %v846_v58 = vpop.permute.xlu0 %845 }
 0x1a4   :  { %v907_v59 = vmul.f32 %v1780_v57, %v846_v58  ;;  %v1220_v58 = vld [vmem:[%s2594_s7 + $0x38] sm:$0xff] }
 0x1a5   :  { %v852_v9 = vpop.permute.xlu1 %851 }
 0x1a6   :  { %931 = vst.msk [vmem:[%s2592_s8 + $0x50] sm:$0xff] %vm87_vm0, %v907_v59  ;;  %1587 = vmatprep.mubr.msk.f32.mxu1 %vm87_vm0, %v907_v59  ;;  %v910_v5 = vmul.f32 %v1782_v12, %v852_v9  ;;  %v1219_v9 = vld [vmem:[%s2594_s7 + $0x30] sm:$0xff] }
 0x1a7   :  { %1588 = vmatmul.mubr.msk.f32.gmra.mrb[22].mxu1 %vm87_vm0, %v908_v29  ;;  %v850_v62 = vpop.permute.xlu0 %849 }
 0x1a8   :  { %934 = vst.msk [vmem:[%s2592_s8 + $0x68] sm:$0xff] %vm87_vm0, %v910_v5  ;;  %v909_v45 = vmul.f32 %v1784_v60, %v850_v62 }
 0x1aa   :  { %933 = vst.msk [vmem:[%s2592_s8 + $0x60] sm:$0xff] %vm87_vm0, %v909_v45  ;;  %1590 = vmatprep.mubr.msk.f32.mxu1 %vm87_vm0, %v909_v45 }
 0x1ab   :  { %v856_v53 = vpop.permute.xlu1 %855  ;;  %1591 = vmatmul.mubr.msk.f32.gmra.mrb[24].mxu1 %vm87_vm0, %v910_v5 }
 0x1ac   :  { %v912_v1 = vmul.f32 %v1786_v0, %v856_v53  ;;  %v1222_v0 = vld [vmem:[%s2594_s7 + $0x48] sm:$0xff] }
 0x1ad   :  { %v854_v10 = vpop.permute.xlu0 %853 }
 0x1ae   :  { %936 = vst.msk [vmem:[%s2592_s8 + $0x78] sm:$0xff] %vm87_vm0, %v912_v1  ;;  %v911_v61 = vmul.f32 %v1788_v15, %v854_v10  ;;  %v1221_v15 = vld [vmem:[%s2594_s7 + $0x40] sm:$0xff] }
 0x1b0   :  { %935 = vst.msk [vmem:[%s2592_s8 + $0x70] sm:$0xff] %vm87_vm0, %v911_v61  ;;  %1593 = vmatprep.mubr.msk.f32.mxu1 %vm87_vm0, %v911_v61 }
 0x1b1   :  { %v860_v20 = vpop.permute.xlu1 %859  ;;  %1594 = vmatmul.mubr.msk.f32.gmra.mrb[26].mxu1 %vm87_vm0, %v912_v1 }
 0x1b2   :  { %v914_v2 = vmul.f32 %v1790_v19, %v860_v20 }
 0x1b3   :  { %v858_v21 = vpop.permute.xlu0 %857 }
 0x1b4   :  { %938 = vst.msk [vmem:[%s2592_s8 + $0x88] sm:$0xff] %vm87_vm0, %v914_v2  ;;  %v913_v27 = vmul.f32 %v1792_v11, %v858_v21 }
 0x1b5   :  { %v864_v25 = vpop.permute.xlu1 %863 }
 0x1b6   :  { %937 = vst.msk [vmem:[%s2592_s8 + $0x80] sm:$0xff] %vm87_vm0, %v913_v27  ;;  %1596 = vmatprep.mubr.msk.f32.mxu1 %vm87_vm0, %v913_v27  ;;  %v916_v4 = vmul.f32 %v1794_v23, %v864_v25  ;;  %v1223_v27 = vld [vmem:[%s2594_s7 + $0x50] sm:$0xff] }
 0x1b7   :  { %1597 = vmatmul.mubr.msk.f32.gmra.mrb[28].mxu1 %vm87_vm0, %v914_v2  ;;  %v1224_v2 = vld [vmem:[%s2594_s7 + $0x58] sm:$0xff] }
 0x1b8   :  { %940 = vst.msk [vmem:[%s2592_s8 + $0x98] sm:$0xff] %vm87_vm0, %v916_v4 }
 0x1b9   :  { %v862_v3 = vpop.permute.xlu0 %861 }
 0x1ba   :  { %v915_v39 = vmul.f32 %v1796_v26, %v862_v3  ;;  %v1226_v3 = vld [vmem:[%s2594_s7 + $0x68] sm:$0xff] }
 0x1bb   :  { %v868_v31 = vpop.permute.xlu1 %867 }
 0x1bc   :  { %939 = vst.msk [vmem:[%s2592_s8 + $0x90] sm:$0xff] %vm87_vm0, %v915_v39  ;;  %1599 = vmatprep.mubr.msk.f32.mxu1 %vm87_vm0, %v915_v39  ;;  %v918_v6 = vmul.f32 %v1798_v13, %v868_v31  ;;  %v1225_v31 = vld [vmem:[%s2594_s7 + $0x60] sm:$0xff] }
 0x1bd   :  { %1600 = vmatmul.mubr.msk.f32.gmra.mrb[30].mxu1 %vm87_vm0, %v916_v4 }
 0x1be   :  { %942 = vst.msk [vmem:[%s2592_s8 + $0xa8] sm:$0xff] %vm87_vm0, %v918_v6 }
 0x1bf   :  { %v866_v14 = vpop.permute.xlu0 %865 }
 0x1c0   :  { %v917_v50 = vmul.f32 %v1800_v32, %v866_v14 }
 0x1c1   :  { %v872_v35 = vpop.permute.xlu1 %871 }
 0x1c2   :  { %941 = vst.msk [vmem:[%s2592_s8 + $0xa0] sm:$0xff] %vm87_vm0, %v917_v50  ;;  %1602 = vmatprep.mubr.msk.f32.mxu1 %vm87_vm0, %v917_v50  ;;  %v920_v16 = vmul.f32 %v1802_v33, %v872_v35  ;;  %v1228_v33 = vld [vmem:[%s2594_s7 + $0x78] sm:$0xff] }
 0x1c3   :  { %1603 = vmatmul.mubr.msk.f32.gmra.mrb[32].mxu1 %vm87_vm0, %v918_v6  ;;  %v870_v22 = vpop.permute.xlu0 %869 }
 0x1c4   :  { %944 = vst.msk [vmem:[%s2592_s8 + $0xb8] sm:$0xff] %vm87_vm0, %v920_v16  ;;  %v919_v24 = vmul.f32 %v1804_v18, %v870_v22  ;;  %v1227_v18 = vld [vmem:[%s2594_s7 + $0x70] sm:$0xff] }
 0x1c6   :  { %943 = vst.msk [vmem:[%s2592_s8 + $0xb0] sm:$0xff] %vm87_vm0, %v919_v24  ;;  %1605 = vmatprep.mubr.msk.f32.mxu1 %vm87_vm0, %v919_v24 }
 0x1c7   :  { %1606 = vmatmul.mubr.msk.f32.gmra.mrb[34].mxu1 %vm87_vm0, %v920_v16 }
 0x261   :  { %v1574_v37 = vpop.f32.mrb[12].mxu1 }
 0x262   :  { %v1100_v36 = vadd.f32 %v1574_v37, %v2392_v30  ;;  %v1094_v38 = vpop.f32.mrb[13].mxu1 }
 0x263   :  { %v1095_v34 = vadd.f32 %v2392_v30, %v1094_v38 }
 0x264   :  { %v1238_v41 = vadd.f32 %v1214_v28, %v1100_v36  ;;  %v1230_v36 = vld [vmem:[%s2594_s7 + $0x88] sm:$0xff] }
 0x265   :  { %v1237_v42 = vadd.f32 %v1213_v40, %v1095_v34  ;;  %v1577_v44 = vpop.f32.mrb[14].mxu1  ;;  %v1229_v34 = vld [vmem:[%s2594_s7 + $0x80] sm:$0xff] }
 0x266   :  { %1263 = vst.msk [vmem:[%s2595_s9 + $0x8] sm:$0xff] %vm1261_vm1, %v1238_v41  ;;  %v1110_v46 = vadd.f32 %v1577_v44, %v2392_v30  ;;  %v1104_v47 = vpop.f32.mrb[15].mxu1 }
 0x267   :  { %1262 = vst.msk [vmem:[%s2595_s9] sm:$0xff] %vm1261_vm1, %v1237_v42  ;;  %v1105_v7 = vadd.f32 %v2392_v30, %v1104_v47 }
 0x268   :  { %v1240_v49 = vadd.f32 %v1216_v43, %v1110_v46  ;;  %v1232_v46 = vld [vmem:[%s2594_s7 + $0x98] sm:$0xff] }
 0x269   :  { %v1239_v55 = vadd.f32 %v1215_v48, %v1105_v7  ;;  %v1580_v51 = vpop.f32.mrb[16].mxu1  ;;  %v1231_v7 = vld [vmem:[%s2594_s7 + $0x90] sm:$0xff] }
 0x26a   :  { %1265 = vst.msk [vmem:[%s2595_s9 + $0x18] sm:$0xff] %vm1261_vm1, %v1240_v49  ;;  %v1120_v54 = vadd.f32 %v1580_v51, %v2392_v30  ;;  %v1114_v56 = vpop.f32.mrb[17].mxu1 }
 0x26b   :  { %1264 = vst.msk [vmem:[%s2595_s9 + $0x10] sm:$0xff] %vm1261_vm1, %v1239_v55  ;;  %v1115_v63 = vadd.f32 %v2392_v30, %v1114_v56 }
 0x26c   :  { %v1242_v17 = vadd.f32 %v1218_v52, %v1120_v54  ;;  %v1234_v54 = vld [vmem:[%s2594_s7 + $0xa8] sm:$0xff] }
 0x26d   :  { %v1241_v29 = vadd.f32 %v1217_v8, %v1115_v63  ;;  %v1583_v57 = vpop.f32.mrb[18].mxu1  ;;  %v1233_v63 = vld [vmem:[%s2594_s7 + $0xa0] sm:$0xff] }
 0x26e   :  { %1267 = vst.msk [vmem:[%s2595_s9 + $0x28] sm:$0xff] %vm1261_vm1, %v1242_v17  ;;  %v1130_v59 = vadd.f32 %v1583_v57, %v2392_v30  ;;  %v1124_v12 = vpop.f32.mrb[19].mxu1 }
 0x26f   :  { %1266 = vst.msk [vmem:[%s2595_s9 + $0x20] sm:$0xff] %vm1261_vm1, %v1241_v29  ;;  %v1125_v5 = vadd.f32 %v2392_v30, %v1124_v12 }
 0x270   :  { %v1244_v60 = vadd.f32 %v1220_v58, %v1130_v59  ;;  %v1236_v59 = vld [vmem:[%s2594_s7 + $0xb8] sm:$0xff] }
 0x271   :  { %v1243_v62 = vadd.f32 %v1219_v9, %v1125_v5  ;;  %v1235_v5 = vld [vmem:[%s2594_s7 + $0xb0] sm:$0xff] }
 0x272   :  { %1269 = vst.msk [vmem:[%s2595_s9 + $0x38] sm:$0xff] %vm1261_vm1, %v1244_v60 }
 0x273   :  { %1268 = vst.msk [vmem:[%s2595_s9 + $0x30] sm:$0xff] %vm1261_vm1, %v1243_v62 }
 0x274   :  { %v1586_v45 = vpop.f32.mrb[20].mxu1 }
 0x275   :  { %v1140_v53 = vadd.f32 %v1586_v45, %v2392_v30  ;;  %v1134_v1 = vpop.f32.mrb[21].mxu1 }
 0x276   :  { %v1135_v10 = vadd.f32 %v2392_v30, %v1134_v1 }
 0x277   :  { %v1246_v61 = vadd.f32 %v1222_v0, %v1140_v53 }
 0x278   :  { %v1245_v19 = vadd.f32 %v1221_v15, %v1135_v10 }
 0x279   :  { %1271 = vst.msk [vmem:[%s2595_s9 + $0x48] sm:$0xff] %vm1261_vm1, %v1246_v61 }
 0x27a   :  { %1270 = vst.msk [vmem:[%s2595_s9 + $0x40] sm:$0xff] %vm1261_vm1, %v1245_v19  ;;  %v1589_v20 = vpop.f32.mrb[22].mxu1 }
 0x27b   :  { %v1150_v11 = vadd.f32 %v1589_v20, %v2392_v30  ;;  %v1144_v21 = vpop.f32.mrb[23].mxu1 }
 0x27c   :  { %v1145_v23 = vadd.f32 %v2392_v30, %v1144_v21 }
 0x27d   :  { %v1248_v25 = vadd.f32 %v1224_v2, %v1150_v11 }
 0x27e   :  { %v1247_v4 = vadd.f32 %v1223_v27, %v1145_v23  ;;  %v1592_v26 = vpop.f32.mrb[24].mxu1 }
 0x27f   :  { %1273 = vst.msk [vmem:[%s2595_s9 + $0x58] sm:$0xff] %vm1261_vm1, %v1248_v25  ;;  %v1160_v39 = vadd.f32 %v1592_v26, %v2392_v30  ;;  %v1154_v13 = vpop.f32.mrb[25].mxu1 }
 0x280   :  { %1272 = vst.msk [vmem:[%s2595_s9 + $0x50] sm:$0xff] %vm1261_vm1, %v1247_v4  ;;  %v1155_v6 = vadd.f32 %v2392_v30, %v1154_v13 }
 0x281   :  { %v1250_v32 = vadd.f32 %v1226_v3, %v1160_v39 }
 0x282   :  { %v1249_v14 = vadd.f32 %v1225_v31, %v1155_v6 }
 0x283   :  { %1275 = vst.msk [vmem:[%s2595_s9 + $0x68] sm:$0xff] %vm1261_vm1, %v1250_v32 }
 0x284   :  { %1274 = vst.msk [vmem:[%s2595_s9 + $0x60] sm:$0xff] %vm1261_vm1, %v1249_v14  ;;  %v1595_v50 = vpop.f32.mrb[26].mxu1 }
 0x285   :  { %v1170_v35 = vadd.f32 %v1595_v50, %v2392_v30  ;;  %v1164_v16 = vpop.f32.mrb[27].mxu1 }
 0x286   :  { %v1165_v22 = vadd.f32 %v2392_v30, %v1164_v16 }
 0x287   :  { %v1252_v24 = vadd.f32 %v1228_v33, %v1170_v35 }
 0x288   :  { %v1251_v37 = vadd.f32 %v1227_v18, %v1165_v22 }
 0x289   :  { %1277 = vst.msk [vmem:[%s2595_s9 + $0x78] sm:$0xff] %vm1261_vm1, %v1252_v24 }
 0x28a   :  { %1276 = vst.msk [vmem:[%s2595_s9 + $0x70] sm:$0xff] %vm1261_vm1, %v1251_v37  ;;  %v1598_v28 = vpop.f32.mrb[28].mxu1 }
 0x28b   :  { %v1180_v38 = vadd.f32 %v1598_v28, %v2392_v30  ;;  %v1174_v40 = vpop.f32.mrb[29].mxu1 }
 0x28c   :  { %v1175_v41 = vadd.f32 %v2392_v30, %v1174_v40 }
 0x28d   :  { %v1254_v42 = vadd.f32 %v1230_v36, %v1180_v38 }
 0x28e   :  { %v1253_v44 = vadd.f32 %v1229_v34, %v1175_v41 }
 0x28f   :  { %1279 = vst.msk [vmem:[%s2595_s9 + $0x88] sm:$0xff] %vm1261_vm1, %v1254_v42 }
 0x290   :  { %1278 = vst.msk [vmem:[%s2595_s9 + $0x80] sm:$0xff] %vm1261_vm1, %v1253_v44  ;;  %v1601_v43 = vpop.f32.mrb[30].mxu1 }
 0x291   :  { %v1190_v47 = vadd.f32 %v1601_v43, %v2392_v30  ;;  %v1184_v48 = vpop.f32.mrb[31].mxu1 }
 0x292   :  { %v1185_v49 = vadd.f32 %v2392_v30, %v1184_v48 }
 0x293   :  { %v1256_v55 = vadd.f32 %v1232_v46, %v1190_v47 }
 0x294   :  { %v1255_v51 = vadd.f32 %v1231_v7, %v1185_v49 }
 0x295   :  { %1281 = vst.msk [vmem:[%s2595_s9 + $0x98] sm:$0xff] %vm1261_vm1, %v1256_v55 }
 0x296   :  { %1280 = vst.msk [vmem:[%s2595_s9 + $0x90] sm:$0xff] %vm1261_vm1, %v1255_v51  ;;  %v1604_v52 = vpop.f32.mrb[32].mxu1 }
 0x297   :  { %v1200_v56 = vadd.f32 %v1604_v52, %v2392_v30  ;;  %v1194_v8 = vpop.f32.mrb[33].mxu1 }
 0x298   :  { %v1195_v17 = vadd.f32 %v2392_v30, %v1194_v8 }
 0x299   :  { %v1258_v29 = vadd.f32 %v1234_v54, %v1200_v56 }
 0x29a   :  { %v1257_v57 = vadd.f32 %v1233_v63, %v1195_v17  ;;  %v1607_v58 = vpop.f32.mrb[34].mxu1 }
 0x29b   :  { %1283 = vst.msk [vmem:[%s2595_s9 + $0xa8] sm:$0xff] %vm1261_vm1, %v1258_v29  ;;  %v1210_v12 = vadd.f32 %v1607_v58, %v2392_v30  ;;  %v1204_v9 = vpop.f32.mrb[35].mxu1 }
 0x29c   :  { %1282 = vst.msk [vmem:[%s2595_s9 + $0xa0] sm:$0xff] %vm1261_vm1, %v1257_v57  ;;  %v1205_v60 = vadd.f32 %v2392_v30, %v1204_v9 }
 0x29d   :  { %v1260_v62 = vadd.f32 %v1236_v59, %v1210_v12 }
 0x29e   :  { %v1259_v45 = vadd.f32 %v1235_v5, %v1205_v60 }
 0x29f   :  { %1285 = vst.msk [vmem:[%s2595_s9 + $0xb8] sm:$0xff] %vm1261_vm1, %v1260_v62 }
 0x2a0   :  { %1284 = vst.msk [vmem:[%s2595_s9 + $0xb0] sm:$0xff] %vm1261_vm1, %v1259_v45 }

// kernel: _lambda_.23
= control target key start
LH: loop header
LB: loop body
LE: loop exit
PB: predicated region body
PF: predicated region fallthrough
CT: control target
= control target key end

     0   :  { %s986_s30 = smov 0   ;;  %s1070_s0 = inlined_call_operand.vmem [shape: f32[20,8,32], index: 0, kind: input, shape index: {}]   ;;  %s1071_s1 = inlined_call_operand.vmem [shape: f32[8,8], index: 1, kind: input, shape index: {}]   ;;  %s1072_s2 = inlined_call_operand.vmem [shape: f32[20,8,32], index: 2, kind: input, shape index: {}]   ;;  %s1073_s3 = inlined_call_operand.vmem [shape: f32[32,32], index: 3, kind: input, shape index: {}]   ;;  %s1074_s4 = inlined_call_operand.vmem [shape: f32[32,32], index: 4, kind: input, shape index: {}]   ;;  %s1075_s5 = inlined_call_operand.vmem [shape: f32[32,32], index: 5, kind: input, shape index: {}]   ;;  %s1076_s6 = inlined_call_operand.vmem [shape: f32[1,32], index: 6, kind: input, shape index: {}]   ;;  %s1077_s7 = inlined_call_operand.vmem [shape: f32[1,32], index: 7, kind: input, shape index: {}]   ;;  %s1078_s8 = inlined_call_operand.vmem [shape: f32[1,32], index: 8, kind: input, shape index: {}]   ;;  %s1079_s9 = inlined_call_operand.vmem [shape: f32[20,8,32], index: 9, kind: output, shape index: {}]  }
   0x1 LB: > { %s816_s10 = sadd.s32 4294967295, %s931_s30   ;;  %p820_p0 = scmp.ge.s32.totalorder %s931_s30, 1  ;;  %s931_s30 = sphi %s986_s30, %s19_s30  }
   0x2   : > { %p295_p1 = scmp.lt.s32.totalorder %s931_s30, 21 }
   0x4   : > { %p296_p2 = pnand %p820_p0, %p295_p1 }
   0x5   : > { %p333_p3 = scmp.lt.s32.totalorder (!%p296_p2), %s816_s10, 19  ;;  %v933_v0 = vmov (!%p296_p2), 0.0   ;;  %vm934_vm0 = vmmov (!%p296_p2), 0   ;;  %v495_v1 = vld [vmem:[%s1074_s4] sm:$0xff] (!%p296_p2)  ;;  %v496_v2 = vld [vmem:[%s1074_s4 + $0x8] sm:$0xff] (!%p296_p2)  ;;  %v497_v3 = vld [vmem:[%s1074_s4 + $0x10] sm:$0xff] (!%p296_p2) }
   0x6   : > { %299 = sbr.rel (%p296_p2) target bundleno = 666 (0x29a), region = 56  ;;  %853 = vmatprep.subr.mxu1 (!%p296_p2), %v933_v0  ;;  %855 = vmatprep.mubr.msk.f32.mxu1 (!%p296_p2), %vm934_vm0, %v933_v0  ;;  %v935_v4 = vmov (!%p296_p2), 0.0|0.0   ;;  %v897_v5 = vpack.c.bf16 (!%p296_p2), %v496_v2, %v495_v1  ;;  %v498_v6 = vld [vmem:[%s1074_s4 + $0x18] sm:$0xff] (!%p296_p2)  ;;  %v346_v8 = vld [vmem:[%s1071_s1] sm:$0xff] (!%p296_p2)  ;;  %vm347_vm1 = vcmask (!%p296_p2), 64512   ;;  %v492_v11 = vld [vmem:[%s1073_s3 + $0x8] sm:$0xff] (!%p296_p2) }
   0x7   : > { %896 = vmatprep.subr.bf16.mxu0 (!%p296_p2), %v935_v4  ;;  %871 = vmatprep.mubr.msk.f32.mxu0 (!%p296_p2), %vm934_vm0, %v933_v0  ;;  %v900_v7 = vpack.c.bf16 (!%p296_p2), %v498_v6, %v497_v3  ;;  %v491_v10 = vld [vmem:[%s1073_s3] sm:$0xff] (!%p296_p2)  ;;  %v647_v13 = vld [vmem:[%s1075_s5 + $0x8] sm:$0xff] (!%p296_p2)  ;;  %vm499_vm2 = vcmask (!%p296_p2), 261120   ;;  %v493_v16 = vld [vmem:[%s1073_s3 + $0x10] sm:$0xff] (!%p296_p2) }
   0x8   : > { %898 = vmatpush3.bf16.msra.mxu0 (!%p296_p2), %v897_v5  ;;  %v646_v12 = vld [vmem:[%s1075_s5] sm:$0xff] (!%p296_p2)  ;;  %v903_v14 = vpack.c.bf16 (!%p296_p2), %v492_v11, %v491_v10  ;;  %v494_v17 = vld [vmem:[%s1073_s3 + $0x18] sm:$0xff] (!%p296_p2)  ;;  %v648_v20 = vld [vmem:[%s1075_s5 + $0x10] sm:$0xff] (!%p296_p2) }
   0x9   : > { %899 = vmatprep.subr.bf16.mxu0 (!%p296_p2), %v935_v4  ;;  %v909_v18 = vpack.c.bf16 (!%p296_p2), %v647_v13, %v646_v12  ;;  %v649_v21 = vld [vmem:[%s1075_s5 + $0x18] sm:$0xff] (!%p296_p2)  ;;  %v906_v22 = vpack.c.bf16 (!%p296_p2), %v494_v17, %v493_v16  ;;  %v829_v32 = vld [vmem:[%s1076_s6] ss:$0 sm:$0xff] (!%p296_p2) }
   0xa   : > { %v912_v23 = vpack.c.bf16 (!%p296_p2), %v649_v21, %v648_v20  ;;  %v830_v37 = vld [vmem:[%s1077_s7] ss:$0 sm:$0xff] (!%p296_p2) }
   0xb   : > { %v831_v39 = vld [vmem:[%s1078_s8] ss:$0 sm:$0xff] (!%p296_p2) }
   0xc   : > { %901 = vmatpush3.bf16.msra.mxu0 (!%p296_p2), %v900_v7 }
   0xd   : > { %s1081_s10 = smov (!%p333_p3, %s816_s10), 19  ;;  %908 = vmatprep.subr.bf16.mxu0 %v935_v4 }
   0xe   : > { %s1008_s19 = sshll.u32 %s1081_s10, 3 }
   0xf   : > { %s336_s22 = scalar_lea.vmem %s1070_s0, %s1008_s19  ;;  %s340_s24 = scalar_lea.vmem %s1072_s2, %s1008_s19 }
  0x10   : > { %v345_v9 = vld [vmem:[%s336_s22] sm:$0xff]  ;;  %s344_s13 = scalar_lea.vmem %s1079_s9, %s1008_s19 }
  0x11   : > { %854 = vmatpush3.msra.mxu1 %v345_v9  ;;  %v732_v35 = vld [vmem:[%s340_s24] sm:$0xff] }
  0x12   : > { %856 = vmatmul.mubr.msk.f32.vlgmr.msra.gmra.mrb[0].mxu1 %vm347_vm1, %v346_v8  ;;  %858 = vmatprep.subr.mxu1 %v933_v0 }
  0x13   : > { %860 = vmatprep.mubr.msk.f32.mxu1 %vm934_vm0, %v933_v0 }
  0xe5   : > { %v417_v15 = vpop.f32.mrb[0].mxu1 }
  0xe6   : > { %v857_v19 = vpop.f32.mrb[1].mxu1  ;;  %859 = vmatpush3.msra.mxu1 %v417_v15  ;;  %872 = vmatmul.mubr.msk.f32.vlgmr.msra.gmra.mrb[0].mxu0 %vm499_vm2, %v417_v15 }
  0xe7   : > { %861 = vmatmul.mubr.msk.f32.vlgmr.msra.gmra.mrb[2].mxu1 %vm347_vm1, %v346_v8  ;;  %902 = vmatprep.subr.bf16.mxu1 %v935_v4 }
  0xe8   : > { %904 = vmatpush3.bf16.msra.mxu1 %v903_v14  ;;  %882 = vmatprep.mubr.msk.f32.mxu1 %vm934_vm0, %v933_v0 }
  0xe9   : > { %905 = vmatprep.subr.bf16.mxu1 %v935_v4  ;;  %910 = vmatpush3.bf16.msra.mxu0 %v909_v18 }
  0xea   : > { %911 = vmatprep.subr.bf16.mxu0 %v935_v4  ;;  %893 = vmatprep.mubr.msk.f32.mxu0 %vm934_vm0, %v933_v0 }
  0xec   : > { %907 = vmatpush3.bf16.msra.mxu1 %v906_v22 }
  0xed   : > { %913 = vmatpush3.bf16.msra.mxu0 %v912_v23 }
  0xef   : > { %883 = vmatmul.mubr.msk.f32.vlgmr.msra.gmra.mrb[4].mxu1 %vm499_vm2, %v345_v9 }
 0x1b9   : > { %v569_v24 = vpop.f32.mrb[0].mxu0 }
 0x1ba   : > { %v487_v25 = vpop.f32.mrb[2].mxu1  ;;  %v873_v26 = vpop.f32.mrb[1].mxu0 }
 0x1bb   : > { %894 = vmatmul.mubr.msk.f32.vlgmr.msra.gmra.mrb[2].mxu0 %vm499_vm2, %v487_v25  ;;  %v862_v27 = vpop.f32.mrb[3].mxu1 }
 0x1c2   : > { %v642_v28 = vpop.f32.mrb[4].mxu1 }
 0x1c3   : > { %v643_v29 = vadd.f32 %v642_v28, %v569_v24  ;;  %v884_v30 = vpop.f32.mrb[5].mxu1 }
 0x28e   : > { %v719_v31 = vpop.f32.mrb[2].mxu0 }
 0x28f   : > { %v723_v33 = vadd.f32 %v719_v31, %v643_v29  ;;  %v895_v34 = vpop.f32.mrb[3].mxu0 }
 0x291   : > { %v731_v36 = vadd.f32 %v829_v32, %v723_v33 }
 0x293   : > { %v733_v38 = vadd.f32 %v732_v35, %v731_v36 }
 0x295   : > { %v741_v40 = vmul.f32 %v830_v37, %v733_v38 }
 0x297   : > { %v749_v41 = vadd.f32 %v831_v39, %v741_v40 }
 0x299   : > { %750 = vst.msk [vmem:[%s344_s13] sm:$0xff] %vm499_vm2, %v749_v41 }
 0x29a PF: > { %s19_s30 = sadd.s32 1, %s931_s30  }
 0x29b   : > { %p16_p4 = scmp.ge.s32.totalorder %s19_s30, 22  }
 0x29d   :  { %18 = sbr.rel (!%p16_p4) target bundleno = 1 (0x1), region = 89 }

// kernel: _lambda_.22
= control target key start
LH: loop header
LB: loop body
LE: loop exit
PB: predicated region body
PF: predicated region fallthrough
CT: control target
= control target key end

     0   :  { %vm79_vm0 = vcmask 261120   ;;  %vm1093_vm1 = vcmask 523264   ;;  %s2220_s3 = inlined_call_operand.vmem [shape: f32[32,64], index: 3, kind: input, shape index: {}]   ;;  %s2221_s1 = inlined_call_operand.vmem [shape: f32[160,32], index: 1, kind: input, shape index: {}]   ;;  %s2222_s2 = inlined_call_operand.vmem [shape: f32[32,64], index: 2, kind: input, shape index: {}]   ;;  %s2223_s0 = inlined_call_operand.vmem [shape: f32[160,32], index: 0, kind: input, shape index: {}]   ;;  %s2224_s5 = inlined_call_operand.vmem [shape: f32[32,64], index: 5, kind: input, shape index: {}]   ;;  %s2225_s4 = inlined_call_operand.vmem [shape: f32[1,64], index: 4, kind: input, shape index: {}]   ;;  %s2226_s8 = inlined_call_operand.vmem [shape: f32[160,32], index: 8, kind: output, shape index: {0}]   ;;  %s2227_s6 = inlined_call_operand.vmem [shape: f32[1,64], index: 6, kind: input, shape index: {}]   ;;  %s2228_s7 = inlined_call_operand.vmem [shape: f32[160,64], index: 7, kind: input, shape index: {}]   ;;  %s2229_s9 = inlined_call_operand.vmem [shape: f32[160,64], index: 9, kind: output, shape index: {1}]  }
   0x1   :  { %v75_v0 = vld [vmem:[%s2220_s3] sm:$0xff]  ;;  %v76_v1 = vld [vmem:[%s2220_s3 + $0x8] sm:$0xff]  ;;  %v77_v2 = vld [vmem:[%s2220_s3 + $0x10] sm:$0xff] }
   0x2   :  { %v1390_v3 = vpack.c.bf16 %v76_v1, %v75_v0  ;;  %v78_v4 = vld [vmem:[%s2220_s3 + $0x18] sm:$0xff]  ;;  %v55_v5 = vld [vmem:[%s2221_s1] sm:$0xff]  ;;  %v52_v8 = vld [vmem:[%s2222_s2 + $0x8] sm:$0xff] }
   0x3   :  { %v1394_v6 = vpack.c.bf16 %v78_v4, %v77_v2  ;;  %1284 = vmatprep.mubr.msk.f32.mxu0 %vm79_vm0, %v55_v5  ;;  %v51_v7 = vld [vmem:[%s2222_s2] sm:$0xff]  ;;  %v53_v10 = vld [vmem:[%s2222_s2 + $0x10] sm:$0xff]  ;;  %v54_v11 = vld [vmem:[%s2222_s2 + $0x18] sm:$0xff] }
   0x4   :  { %1391 = vmatprep.subr.bf16.mxu0 %v1390_v3  ;;  %1414 = vmatprep.subr.bf16.mxu1 %v1390_v3  ;;  %v1398_v9 = vpack.c.bf16 %v52_v8, %v51_v7  ;;  %v56_v12 = vld [vmem:[%s2221_s1 + $0x8] sm:$0xff]  ;;  %v57_v13 = vld [vmem:[%s2221_s1 + $0x10] sm:$0xff]  ;;  %v1402_v14 = vpack.c.bf16 %v54_v11, %v53_v10  ;;  %v66_v16 = vld [vmem:[%s2221_s1 + $0x58] sm:$0xff] }
   0x5   :  { %1393 = vmatpush3.bf16.msra.mxu0 %v1390_v3  ;;  %1416 = vmatpush3.bf16.msra.mxu1 %v1390_v3  ;;  %v65_v15 = vld [vmem:[%s2221_s1 + $0x50] sm:$0xff]  ;;  %v67_v17 = vld [vmem:[%s2221_s1 + $0x60] sm:$0xff]  ;;  %v58_v18 = vld [vmem:[%s2221_s1 + $0x18] sm:$0xff] }
   0x6   :  { %1395 = vmatprep.subr.bf16.mxu0 %v1394_v6  ;;  %1415 = vmatprep.subr.bf16.mxu1 %v1394_v6  ;;  %v68_v19 = vld [vmem:[%s2221_s1 + $0x68] sm:$0xff]  ;;  %v59_v20 = vld [vmem:[%s2221_s1 + $0x20] sm:$0xff]  ;;  %v69_v21 = vld [vmem:[%s2221_s1 + $0x70] sm:$0xff] }
   0x7   :  { %1299 = vmatprep.mubr.msk.f32.mxu1 %vm79_vm0, %v65_v15  ;;  %v60_v22 = vld [vmem:[%s2221_s1 + $0x28] sm:$0xff]  ;;  %v70_v23 = vld [vmem:[%s2221_s1 + $0x78] sm:$0xff]  ;;  %v61_v24 = vld [vmem:[%s2221_s1 + $0x30] sm:$0xff] }
   0x8   :  { %v71_v25 = vld [vmem:[%s2221_s1 + $0x80] sm:$0xff]  ;;  %v62_v26 = vld [vmem:[%s2221_s1 + $0x38] sm:$0xff]  ;;  %v72_v27 = vld [vmem:[%s2221_s1 + $0x88] sm:$0xff] }
   0x9   :  { %1397 = vmatpush3.bf16.msra.mxu0 %v1394_v6  ;;  %1417 = vmatpush3.bf16.msra.mxu1 %v1394_v6  ;;  %v63_v28 = vld [vmem:[%s2221_s1 + $0x40] sm:$0xff]  ;;  %v73_v29 = vld [vmem:[%s2221_s1 + $0x90] sm:$0xff]  ;;  %v64_v30 = vld [vmem:[%s2221_s1 + $0x48] sm:$0xff] }
   0xa   :  { %1399 = vmatprep.subr.bf16.mxu0 %v1398_v9  ;;  %v74_v31 = vld [vmem:[%s2221_s1 + $0x98] sm:$0xff]  ;;  %v31_v32 = vld [vmem:[%s2223_s0] sm:$0xff]  ;;  %v32_v33 = vld [vmem:[%s2223_s0 + $0x8] sm:$0xff] }
   0xb   :  { %v33_v34 = vld [vmem:[%s2223_s0 + $0x10] sm:$0xff]  ;;  %v34_v35 = vld [vmem:[%s2223_s0 + $0x18] sm:$0xff]  ;;  %v35_v36 = vld [vmem:[%s2223_s0 + $0x20] sm:$0xff] }
   0xc   :  { %1285 = vmatmul.mubr.msk.f32.vlgmr.msra.gmra.mrb[0].mxu0 %vm79_vm0, %v56_v12  ;;  %1300 = vmatmul.mubr.msk.f32.vlgmr.msra.gmra.mrb[0].mxu1 %vm79_vm0, %v66_v16  ;;  %v36_v37 = vld [vmem:[%s2223_s0 + $0x28] sm:$0xff]  ;;  %v37_v38 = vld [vmem:[%s2223_s0 + $0x30] sm:$0xff]  ;;  %v38_v39 = vld [vmem:[%s2223_s0 + $0x38] sm:$0xff] }
   0xd   :  { %1401 = vmatpush3.bf16.msra.mxu0 %v1398_v9  ;;  %1287 = vmatprep.mubr.msk.f32.mxu0 %vm79_vm0, %v57_v13  ;;  %v39_v40 = vld [vmem:[%s2223_s0 + $0x40] sm:$0xff]  ;;  %v40_v41 = vld [vmem:[%s2223_s0 + $0x48] sm:$0xff]  ;;  %v41_v42 = vld [vmem:[%s2223_s0 + $0x50] sm:$0xff] }
   0xe   :  { %1403 = vmatprep.subr.bf16.mxu0 %v1402_v14  ;;  %1302 = vmatprep.mubr.msk.f32.mxu1 %vm79_vm0, %v67_v17  ;;  %v42_v43 = vld [vmem:[%s2223_s0 + $0x58] sm:$0xff]  ;;  %v43_v44 = vld [vmem:[%s2223_s0 + $0x60] sm:$0xff]  ;;  %v44_v45 = vld [vmem:[%s2223_s0 + $0x68] sm:$0xff] }
   0xf   :  { %v45_v46 = vld [vmem:[%s2223_s0 + $0x70] sm:$0xff]  ;;  %v46_v47 = vld [vmem:[%s2223_s0 + $0x78] sm:$0xff]  ;;  %v47_v48 = vld [vmem:[%s2223_s0 + $0x80] sm:$0xff] }
  0x10   :  { %1288 = vmatmul.mubr.msk.f32.gmra.mrb[2].mxu0 %vm79_vm0, %v58_v18  ;;  %1303 = vmatmul.mubr.msk.f32.gmra.mrb[2].mxu1 %vm79_vm0, %v68_v19  ;;  %v48_v49 = vld [vmem:[%s2223_s0 + $0x88] sm:$0xff]  ;;  %v49_v50 = vld [vmem:[%s2223_s0 + $0x90] sm:$0xff]  ;;  %v50_v51 = vld [vmem:[%s2223_s0 + $0x98] sm:$0xff] }
  0x11   :  { %1290 = vmatprep.mubr.msk.f32.mxu0 %vm79_vm0, %v59_v20  ;;  %1405 = vmatpush3.bf16.msra.mxu0 %v1402_v14  ;;  %v817_v52 = vld [vmem:[%s2224_s5] sm:$0xff]  ;;  %v818_v53 = vld [vmem:[%s2224_s5 + $0x8] sm:$0xff]  ;;  %v819_v54 = vld [vmem:[%s2224_s5 + $0x10] sm:$0xff] }
  0x12   :  { %1305 = vmatprep.mubr.msk.f32.mxu1 %vm79_vm0, %v69_v21  ;;  %v1406_v55 = vpack.c.bf16 %v818_v53, %v817_v52  ;;  %v820_v56 = vld [vmem:[%s2224_s5 + $0x18] sm:$0xff]  ;;  %v1825_v4 = vld [vmem:[%s2225_s4] ss:$0 sm:$0xff]  ;;  %s1559_s4 = smov 96  }
  0x13   :  { %v1410_v57 = vpack.c.bf16 %v820_v56, %v819_v54 }
  0x14   :  { %1291 = vmatmul.mubr.msk.f32.gmra.mrb[4].mxu0 %vm79_vm0, %v60_v22  ;;  %1306 = vmatmul.mubr.msk.f32.gmra.mrb[4].mxu1 %vm79_vm0, %v70_v23 }
  0x15   :  { %1293 = vmatprep.mubr.msk.f32.mxu0 %vm79_vm0, %v61_v24  ;;  %1308 = vmatprep.mubr.msk.f32.mxu1 %vm79_vm0, %v71_v25 }
  0x16   :  { %1407 = vmatprep.subr.bf16.mxu1 %v1406_v55 }
  0x17   :  { %1409 = vmatpush3.bf16.msra.mxu1 %v1406_v55 }
  0x18   :  { %1294 = vmatmul.mubr.msk.f32.gmra.mrb[6].mxu0 %vm79_vm0, %v62_v26  ;;  %1309 = vmatmul.mubr.msk.f32.gmra.mrb[6].mxu1 %vm79_vm0, %v72_v27 }
  0x19   :  { %1296 = vmatprep.mubr.msk.f32.mxu0 %vm79_vm0, %v63_v28  ;;  %1311 = vmatprep.mubr.msk.f32.mxu1 %vm79_vm0, %v73_v29 }
  0x1a   :  { %1411 = vmatprep.subr.bf16.mxu1 %v1410_v57 }
  0x1b   :  { %1413 = vmatpush3.bf16.msra.mxu1 %v1410_v57 }
  0x1c   :  { %1297 = vmatmul.mubr.msk.f32.gmra.mrb[8].mxu0 %vm79_vm0, %v64_v30  ;;  %1312 = vmatmul.mubr.msk.f32.gmra.mrb[8].mxu1 %vm79_vm0, %v74_v31 }
  0x1d   :  { %1322 = vmatprep.mubr.msk.f32.mxu0 %vm79_vm0, %v31_v32 }
  0x20   :  { %1323 = vmatmul.mubr.msk.f32.vlgmr.msra.gmra.mrb[0].mxu0 %vm79_vm0, %v32_v33 }
  0x21   :  { %1325 = vmatprep.mubr.msk.f32.mxu0 %vm79_vm0, %v33_v34 }
  0x24   :  { %1326 = vmatmul.mubr.msk.f32.gmra.mrb[2].mxu0 %vm79_vm0, %v34_v35 }
  0x25   :  { %1328 = vmatprep.mubr.msk.f32.mxu0 %vm79_vm0, %v35_v36 }
  0x28   :  { %1329 = vmatmul.mubr.msk.f32.gmra.mrb[4].mxu0 %vm79_vm0, %v36_v37 }
  0x29   :  { %1331 = vmatprep.mubr.msk.f32.mxu0 %vm79_vm0, %v37_v38 }
  0x2c   :  { %1332 = vmatmul.mubr.msk.f32.gmra.mrb[6].mxu0 %vm79_vm0, %v38_v39 }
  0x2d   :  { %1334 = vmatprep.mubr.msk.f32.mxu0 %vm79_vm0, %v39_v40 }
  0x30   :  { %1335 = vmatmul.mubr.msk.f32.gmra.mrb[8].mxu0 %vm79_vm0, %v40_v41 }
  0x31   :  { %1337 = vmatprep.mubr.msk.f32.mxu0 %vm79_vm0, %v41_v42 }
  0x34   :  { %1338 = vmatmul.mubr.msk.f32.gmra.mrb[10].mxu0 %vm79_vm0, %v42_v43 }
  0x35   :  { %1340 = vmatprep.mubr.msk.f32.mxu0 %vm79_vm0, %v43_v44 }
  0x38   :  { %1341 = vmatmul.mubr.msk.f32.gmra.mrb[12].mxu0 %vm79_vm0, %v44_v45 }
  0x39   :  { %1343 = vmatprep.mubr.msk.f32.mxu0 %vm79_vm0, %v45_v46 }
  0x3c   :  { %1344 = vmatmul.mubr.msk.f32.gmra.mrb[14].mxu0 %vm79_vm0, %v46_v47 }
  0x3d   :  { %1346 = vmatprep.mubr.msk.f32.mxu0 %vm79_vm0, %v47_v48 }
  0x40   :  { %1347 = vmatmul.mubr.msk.f32.gmra.mrb[16].mxu0 %vm79_vm0, %v48_v49 }
  0x41   :  { %1349 = vmatprep.mubr.msk.f32.mxu0 %vm79_vm0, %v49_v50 }
  0x44   :  { %1350 = vmatmul.mubr.msk.f32.gmra.mrb[18].mxu0 %vm79_vm0, %v50_v51 }
  0xdf   :  { %v1301_v58 = vpop.f32.mrb[0].mxu1 }
  0xe0   :  { %v256_v59 = vpop.f32.mrb[1].mxu1 }
  0xe3   :  { %v1806_v60 = vpop.f32.mrb[2].mxu1 }
  0xe4   :  { %v1808_v61 = vpop.f32.mrb[3].mxu1 }
  0xe7   :  { %v1810_v62 = vpop.f32.mrb[4].mxu1 }
  0xe8   :  { %v1812_v63 = vpop.f32.mrb[5].mxu1 }
  0xeb   :  { %v1814_v0 = vpop.f32.mrb[6].mxu1 }
  0xec   :  { %v1816_v1 = vpop.f32.mrb[7].mxu1 }
  0xef   :  { %v1818_v2 = vpop.f32.mrb[8].mxu1 }
  0xf0   :  { %v1820_v3 = vpop.f32.mrb[9].mxu1 }
  0xf3   :  { %v1324_v5 = vpop.f32.mrb[0].mxu0 }
  0xf4   :  { %v1828_v6 = vadd.f32 %v1324_v5, %v1825_v4  ;;  %v431_v7 = vpop.f32.mrb[1].mxu0 }
  0xf5   :  { %v1831_v8 = vadd.f32 %v1825_v4, %v431_v7 }
  0xf6   :  { %v1164_v9 = vmul.f32 -1.442695, %v1828_v6 }
  0xf7   :  { %v1163_v10 = vmul.f32 -1.442695, %v1831_v8  ;;  %v1327_v11 = vpop.f32.mrb[2].mxu0 }
  0xf8   :  { %1439 = vpow2.f32 %v1164_v9  ;;  %v1836_v12 = vadd.f32 %v1327_v11, %v1825_v4  ;;  %v441_v13 = vpop.f32.mrb[3].mxu0 }
  0xf9   :  { %1441 = vpow2.f32 %v1163_v10  ;;  %v1839_v14 = vadd.f32 %v1825_v4, %v441_v13 }
  0xfa   :  { %v1166_v15 = vmul.f32 -1.442695, %v1836_v12 }
  0xfb   :  { %v1165_v16 = vmul.f32 -1.442695, %v1839_v14  ;;  %v1330_v17 = vpop.f32.mrb[4].mxu0 }
  0xfc   :  { %1443 = vpow2.f32 %v1166_v15  ;;  %v1844_v18 = vadd.f32 %v1330_v17, %v1825_v4  ;;  %v451_v19 = vpop.f32.mrb[5].mxu0 }
  0xfd   :  { %1445 = vpow2.f32 %v1165_v16  ;;  %v1847_v20 = vadd.f32 %v1825_v4, %v451_v19 }
  0xfe   :  { %v1168_v21 = vmul.f32 -1.442695, %v1844_v18 }
  0xff   :  { %v1167_v22 = vmul.f32 -1.442695, %v1847_v20  ;;  %v1333_v23 = vpop.f32.mrb[6].mxu0 }
 0x100   :  { %1447 = vpow2.f32 %v1168_v21  ;;  %v1852_v24 = vadd.f32 %v1333_v23, %v1825_v4  ;;  %v461_v25 = vpop.f32.mrb[7].mxu0 }
 0x101   :  { %1449 = vpow2.f32 %v1167_v22  ;;  %v1855_v26 = vadd.f32 %v1825_v4, %v461_v25 }
 0x102   :  { %v1440_v27 = vpop.eup %1439  ;;  %v1170_v28 = vmul.f32 -1.442695, %v1852_v24 }
 0x103   :  { %v1442_v29 = vpop.eup %1441  ;;  %v1169_v30 = vmul.f32 -1.442695, %v1855_v26  ;;  %v1336_v31 = vpop.f32.mrb[8].mxu0  ;;  %v638_v35 = vadd.f32 1.0, %v1440_v27 }
 0x104   :  { %v637_v32 = vadd.f32 1.0, %v1442_v29  ;;  %v1860_v33 = vadd.f32 %v1336_v31, %v1825_v4  ;;  %v471_v34 = vpop.f32.mrb[9].mxu0  ;;  %1451 = vpow2.f32 %v1170_v28 }
 0x105   :  { %v1864_v39 = vadd.f32 %v1825_v4, %v471_v34 }
 0x106   :  { %v1444_v36 = vpop.eup %1443  ;;  %1453 = vrcp.f32 %v637_v32  ;;  %v1172_v38 = vmul.f32 -1.442695, %v1860_v33 }
 0x107   :  { %v1446_v37 = vpop.eup %1445  ;;  %1455 = vpow2.f32 %v1169_v30  ;;  %v1339_v40 = vpop.f32.mrb[10].mxu0  ;;  %v640_v44 = vadd.f32 1.0, %v1444_v36  ;;  %v1171_v49 = vmul.f32 -1.442695, %v1864_v39 }
 0x108   :  { %v639_v41 = vadd.f32 1.0, %v1446_v37  ;;  %v487_v42 = vadd.f32 %v1339_v40, %v1301_v58  ;;  %v481_v43 = vpop.f32.mrb[11].mxu0  ;;  %1457 = vrcp.f32 %v638_v35 }
 0x109   :  { %v482_v45 = vadd.f32 %v481_v43, %v256_v59 }
 0x10a   :  { %v1448_v46 = vpop.eup %1447  ;;  %1459 = vrcp.f32 %v639_v41  ;;  %v1867_v47 = vadd.f32 %v1825_v4, %v487_v42 }
 0x10b   :  { %v1450_v48 = vpop.eup %1449  ;;  %1461 = vpow2.f32 %v1172_v38  ;;  %v1342_v50 = vpop.f32.mrb[12].mxu0  ;;  %v642_v54 = vadd.f32 1.0, %v1448_v46  ;;  %v1872_v55 = vadd.f32 %v1825_v4, %v482_v45 }
 0x10c   :  { %v641_v51 = vadd.f32 1.0, %v1450_v48  ;;  %v497_v52 = vadd.f32 %v1342_v50, %v1806_v60  ;;  %v491_v53 = vpop.f32.mrb[13].mxu0  ;;  %1463 = vrcp.f32 %v640_v44  ;;  %v1174_v57 = vmul.f32 -1.442695, %v1867_v47 }
 0x10d   :  { %v492_v56 = vadd.f32 %v491_v53, %v1808_v61  ;;  %v1173_v11 = vmul.f32 -1.442695, %v1872_v55 }
 0x10e   :  { %1465 = vrcp.f32 %v641_v51  ;;  %v1452_v58 = vpop.eup %1451  ;;  %v1877_v59 = vadd.f32 %v1825_v4, %v497_v52 }
 0x10f   :  { %1467 = vpow2.f32 %v1171_v49  ;;  %v1345_v5 = vpop.f32.mrb[14].mxu0  ;;  %v644_v61 = vadd.f32 1.0, %v1452_v58  ;;  %v1884_v16 = vadd.f32 %v1825_v4, %v492_v56 }
 0x110   :  { %v1454_v7 = vpop.eup %1453  ;;  %v507_v60 = vadd.f32 %v1345_v5, %v1810_v62  ;;  %v501_v9 = vpop.f32.mrb[15].mxu0  ;;  %1469 = vrcp.f32 %v642_v54  ;;  %v1176_v19 = vmul.f32 -1.442695, %v1877_v59 }
 0x111   :  { %v1456_v10 = vpop.eup %1455  ;;  %v502_v13 = vadd.f32 %v501_v9, %v1812_v63  ;;  %717 = vrot.lane.b32.xlu0 %v1454_v7, %s1559_s4  ;;  %1471 = vpow2.f32 %v1174_v57  ;;  %v1175_v29 = vmul.f32 -1.442695, %v1884_v16 }
 0x112   :  { %v643_v15 = vadd.f32 1.0, %v1456_v10  ;;  %v1458_v17 = vpop.eup %1457  ;;  %v1889_v63 = vadd.f32 %v1825_v4, %v507_v60 }
 0x113   :  { %v1348_v62 = vpop.f32.mrb[16].mxu0  ;;  %v1896_v32 = vadd.f32 %v1825_v4, %v502_v13 }
 0x114   :  { %v1460_v21 = vpop.eup %1459  ;;  %1473 = vrcp.f32 %v643_v15  ;;  %v517_v22 = vadd.f32 %v1348_v62, %v1814_v0  ;;  %v511_v23 = vpop.f32.mrb[17].mxu0 }
 0x115   :  { %v1462_v25 = vpop.eup %1461  ;;  %1475 = vpow2.f32 %v1173_v11  ;;  %v512_v27 = vadd.f32 %v511_v23, %v1816_v1  ;;  %719 = vrot.lane.b32.xlu0 %v1458_v17, %s1559_s4  ;;  %721 = vrot.lane.b32.xlu1 %v1460_v21, %s1559_s4  ;;  %v1178_v1 = vmul.f32 -1.442695, %v1889_v63 }
 0x116   :  { %1477 = vrcp.f32 %v644_v61  ;;  %v646_v28 = vadd.f32 1.0, %v1462_v25  ;;  %v1464_v30 = vpop.eup %1463  ;;  %v1904_v41 = vadd.f32 %v1825_v4, %v517_v22 }
 0x117   :  { %1479 = vpow2.f32 %v1176_v19  ;;  %v1351_v31 = vpop.f32.mrb[18].mxu0 }
 0x118   :  { %v1466_v0 = vpop.eup %1465  ;;  %v527_v34 = vadd.f32 %v1351_v31, %v1818_v2  ;;  %v521_v35 = vpop.f32.mrb[19].mxu0  ;;  %1481 = vrcp.f32 %v646_v28  ;;  %v1177_v2 = vmul.f32 -1.442695, %v1896_v32  ;;  %v1180_v46 = vmul.f32 -1.442695, %v1904_v41 }
 0x119   :  { %v1468_v36 = vpop.eup %1467  ;;  %v522_v37 = vadd.f32 %v521_v35, %v1820_v3  ;;  %723 = vrot.lane.b32.xlu1 %v1464_v30, %s1559_s4  ;;  %725 = vrot.lane.b32.xlu0 %v1466_v0, %s1559_s4  ;;  %1483 = vpow2.f32 %v1175_v29  ;;  %v1909_v3 = vadd.f32 %v1825_v4, %v512_v27 }
 0x11a   :  { %v645_v38 = vadd.f32 1.0, %v1468_v36  ;;  %v1470_v40 = vpop.eup %1469  ;;  %v1914_v51 = vadd.f32 %v1825_v4, %v527_v34 }
 0x11b   :  { %v1472_v42 = vpop.eup %1471  ;;  %v1179_v53 = vmul.f32 -1.442695, %v1909_v3  ;;  %v1919_v57 = vadd.f32 %v1825_v4, %v522_v37 }
 0x11c   :  { %1485 = vrcp.f32 %v645_v38  ;;  %v648_v43 = vadd.f32 1.0, %v1472_v42  ;;  %v1182_v5 = vmul.f32 -1.442695, %v1914_v51 }
 0x11d   :  { %1487 = vpow2.f32 %v1178_v1  ;;  %727 = vrot.lane.b32.xlu1 %v1470_v40, %s1559_s4  ;;  %v1181_v10 = vmul.f32 -1.442695, %v1919_v57 }
 0x11e   :  { %v1474_v44 = vpop.eup %1473  ;;  %1489 = vrcp.f32 %v648_v43 }
 0x11f   :  { %v1476_v45 = vpop.eup %1475  ;;  %729 = vrot.lane.b32.xlu0 %v1474_v44, %s1559_s4  ;;  %1491 = vpow2.f32 %v1177_v2 }
 0x120   :  { %v1478_v48 = vpop.eup %1477  ;;  %v647_v49 = vadd.f32 1.0, %v1476_v45 }
 0x121   :  { %v1480_v50 = vpop.eup %1479  ;;  %731 = vrot.lane.b32.xlu1 %v1478_v48, %s1559_s4 }
 0x122   :  { %1493 = vrcp.f32 %v647_v49  ;;  %v650_v52 = vadd.f32 1.0, %v1480_v50  ;;  %v1482_v54 = vpop.eup %1481 }
 0x123   :  { %1495 = vpow2.f32 %v1180_v46  ;;  %v1484_v56 = vpop.eup %1483 }
 0x124   :  { %1497 = vrcp.f32 %v650_v52  ;;  %v649_v58 = vadd.f32 1.0, %v1484_v56 }
 0x125   :  { %735 = vrot.lane.b32.xlu1 %v1482_v54, %s1559_s4  ;;  %1499 = vpow2.f32 %v1179_v53 }
 0x126   :  { %v1486_v7 = vpop.eup %1485  ;;  %1501 = vrcp.f32 %v649_v58 }
 0x127   :  { %v1488_v60 = vpop.eup %1487  ;;  %733 = vrot.lane.b32.xlu0 %v1486_v7, %s1559_s4  ;;  %1503 = vpow2.f32 %v1182_v5 }
 0x128   :  { %v652_v9 = vadd.f32 1.0, %v1488_v60  ;;  %v1490_v11 = vpop.eup %1489 }
 0x129   :  { %v1492_v13 = vpop.eup %1491  ;;  %739 = vrot.lane.b32.xlu1 %v1490_v11, %s1559_s4 }
 0x12a   :  { %1505 = vrcp.f32 %v652_v9  ;;  %v651_v4 = vadd.f32 1.0, %v1492_v13 }
 0x12b   :  { %1507 = vpow2.f32 %v1181_v10 }
 0x12c   :  { %v1494_v61 = vpop.eup %1493  ;;  %1509 = vrcp.f32 %v651_v4 }
 0x12d   :  { %v1496_v15 = vpop.eup %1495  ;;  %737 = vrot.lane.b32.xlu0 %v1494_v61, %s1559_s4 }
 0x12e   :  { %v1498_v17 = vpop.eup %1497  ;;  %v654_v19 = vadd.f32 1.0, %v1496_v15 }
 0x12f   :  { %743 = vrot.lane.b32.xlu1 %v1498_v17, %s1559_s4  ;;  %v1500_v62 = vpop.eup %1499 }
 0x130   :  { %1511 = vrcp.f32 %v654_v19  ;;  %v1502_v21 = vpop.eup %1501  ;;  %v653_v22 = vadd.f32 1.0, %v1500_v62 }
 0x131   :  { %741 = vrot.lane.b32.xlu0 %v1502_v21, %s1559_s4  ;;  %v1504_v23 = vpop.eup %1503 }
 0x132   :  { %1513 = vrcp.f32 %v653_v22  ;;  %v656_v27 = vadd.f32 1.0, %v1504_v23 }
 0x134   :  { %v1506_v25 = vpop.eup %1505  ;;  %1515 = vrcp.f32 %v656_v27 }
 0x135   :  { %747 = vrot.lane.b32.xlu1 %v1506_v25, %s1559_s4  ;;  %v1508_v28 = vpop.eup %1507 }
 0x136   :  { %v1510_v29 = vpop.eup %1509  ;;  %v655_v30 = vadd.f32 1.0, %v1508_v28 }
 0x137   :  { %745 = vrot.lane.b32.xlu0 %v1510_v29, %s1559_s4 }
 0x138   :  { %1517 = vrcp.f32 %v655_v30 }
 0x139   :  { %1519 = vtanh.f32 %v1831_v8 }
 0x13a   :  { %v1512_v31 = vpop.eup %1511  ;;  %1521 = vtanh.f32 %v1828_v6 }
 0x13b   :  { %751 = vrot.lane.b32.xlu1 %v1512_v31, %s1559_s4  ;;  %1523 = vtanh.f32 %v1839_v14  ;;  %v2058_v31 = vld [vmem:[%s2227_s6] ss:$0 sm:$0xff] }
 0x13c   :  { %v1514_v0 = vpop.eup %1513  ;;  %1525 = vtanh.f32 %v1836_v12 }
 0x13d   :  { %749 = vrot.lane.b32.xlu0 %v1514_v0, %s1559_s4  ;;  %1527 = vtanh.f32 %v1847_v20 }
 0x13e   :  { %v1516_v34 = vpop.eup %1515  ;;  %1529 = vtanh.f32 %v1844_v18 }
 0x13f   :  { %755 = vrot.lane.b32.xlu1 %v1516_v34, %s1559_s4  ;;  %1531 = vtanh.f32 %v1855_v26  ;;  %v1054_v34 = vld [vmem:[%s2228_s7 + $0x8] sm:$0xff] }
 0x140   :  { %1533 = vtanh.f32 %v1852_v24 }
 0x141   :  { %1535 = vtanh.f32 %v1860_v33 }
 0x142   :  { %v1518_v35 = vpop.eup %1517  ;;  %1537 = vtanh.f32 %v1864_v39 }
 0x143   :  { %753 = vrot.lane.b32.xlu0 %v1518_v35, %s1559_s4  ;;  %v1520_v36 = vpop.eup %1519  ;;  %1539 = vtanh.f32 %v1867_v47 }
 0x144   :  { %v1522_v38 = vpop.eup %1521  ;;  %1541 = vtanh.f32 %v1872_v55 }
 0x145   :  { %v1524_v6 = vpop.eup %1523  ;;  %1543 = vtanh.f32 %v1877_v59 }
 0x146   :  { %v1526_v40 = vpop.eup %1525  ;;  %1545 = vtanh.f32 %v1884_v16 }
 0x147   :  { %v1528_v18 = vpop.eup %1527  ;;  %1547 = vtanh.f32 %v1889_v63 }
 0x148   :  { %v1530_v43 = vpop.eup %1529  ;;  %1549 = vtanh.f32 %v1896_v32 }
 0x149   :  { %v1532_v33 = vpop.eup %1531  ;;  %1551 = vtanh.f32 %v1904_v41 }
 0x14a   :  { %v1534_v49 = vpop.eup %1533  ;;  %1553 = vtanh.f32 %v1909_v3 }
 0x14b   :  { %v1536_v47 = vpop.eup %1535  ;;  %1555 = vtanh.f32 %v1914_v51 }
 0x14c   :  { %v1538_v54 = vpop.eup %1537  ;;  %1557 = vtanh.f32 %v1919_v57 }
 0x14d   :  { %v1540_v55 = vpop.eup %1539 }
 0x14e   :  { %v1542_v5 = vpop.eup %1541 }
 0x14f   :  { %v1544_v9 = vpop.eup %1543 }
 0x150   :  { %v1546_v11 = vpop.eup %1545 }
 0x151   :  { %v1548_v4 = vpop.eup %1547 }
 0x152   :  { %v1550_v15 = vpop.eup %1549 }
 0x153   :  { %v1552_v19 = vpop.eup %1551 }
 0x154   :  { %v1554_v21 = vpop.eup %1553 }
 0x155   :  { %v1556_v23 = vpop.eup %1555 }
 0x156   :  { %v1558_v28 = vpop.eup %1557 }
 0x183   :  { %v718_v1 = vpop.permute.xlu0 %717 }
 0x184   :  { %v777_v37 = vmul.f32 %v1520_v36, %v718_v1  ;;  %v1053_v1 = vld [vmem:[%s2228_s7] sm:$0xff] }
 0x186   :  { %797 = vst.msk [vmem:[%s2226_s8] sm:$0xff] %vm79_vm0, %v777_v37  ;;  %1360 = vmatprep.mubr.msk.f32.mxu1 %vm79_vm0, %v777_v37 }
 0x187   :  { %v720_v8 = vpop.permute.xlu0 %719  ;;  %v722_v12 = vpop.permute.xlu1 %721 }
 0x188   :  { %v778_v14 = vmul.f32 %v1522_v38, %v720_v8  ;;  %v779_v20 = vmul.f32 %v1524_v6, %v722_v12  ;;  %v1056_v12 = vld [vmem:[%s2228_s7 + $0x18] sm:$0xff] }
 0x18a   :  { %798 = vst.msk [vmem:[%s2226_s8 + $0x8] sm:$0xff] %vm79_vm0, %v778_v14  ;;  %799 = vst.msk [vmem:[%s2226_s8 + $0x10] sm:$0xff] %vm79_vm0, %v779_v20  ;;  %1361 = vmatmul.mubr.msk.f32.vlgmr.msra.gmra.mrb[10].mxu1 %vm79_vm0, %v778_v14 }
 0x18b   :  { %v724_v26 = vpop.permute.xlu1 %723  ;;  %1363 = vmatprep.mubr.msk.f32.mxu1 %vm79_vm0, %v779_v20  ;;  %v726_v42 = vpop.permute.xlu0 %725 }
 0x18c   :  { %v780_v2 = vmul.f32 %v1526_v40, %v724_v26  ;;  %v781_v24 = vmul.f32 %v1528_v18, %v726_v42  ;;  %v1055_v40 = vld [vmem:[%s2228_s7 + $0x10] sm:$0xff] }
 0x18e   :  { %800 = vst.msk [vmem:[%s2226_s8 + $0x18] sm:$0xff] %vm79_vm0, %v780_v2  ;;  %801 = vst.msk [vmem:[%s2226_s8 + $0x20] sm:$0xff] %vm79_vm0, %v781_v24  ;;  %1364 = vmatmul.mubr.msk.f32.gmra.mrb[12].mxu1 %vm79_vm0, %v780_v2 }
 0x18f   :  { %v728_v44 = vpop.permute.xlu1 %727  ;;  %1366 = vmatprep.mubr.msk.f32.mxu1 %vm79_vm0, %v781_v24  ;;  %v1058_v24 = vld [vmem:[%s2228_s7 + $0x28] sm:$0xff] }
 0x190   :  { %v782_v45 = vmul.f32 %v1530_v43, %v728_v44 }
 0x191   :  { %v730_v46 = vpop.permute.xlu0 %729 }
 0x192   :  { %802 = vst.msk [vmem:[%s2226_s8 + $0x28] sm:$0xff] %vm79_vm0, %v782_v45  ;;  %v783_v48 = vmul.f32 %v1532_v33, %v730_v46  ;;  %1367 = vmatmul.mubr.msk.f32.gmra.mrb[14].mxu1 %vm79_vm0, %v782_v45  ;;  %v1057_v45 = vld [vmem:[%s2228_s7 + $0x20] sm:$0xff] }
 0x193   :  { %v732_v50 = vpop.permute.xlu1 %731 }
 0x194   :  { %803 = vst.msk [vmem:[%s2226_s8 + $0x30] sm:$0xff] %vm79_vm0, %v783_v48  ;;  %v784_v39 = vmul.f32 %v1534_v49, %v732_v50  ;;  %1369 = vmatprep.mubr.msk.f32.mxu1 %vm79_vm0, %v783_v48  ;;  %v1060_v50 = vld [vmem:[%s2228_s7 + $0x38] sm:$0xff] }
 0x196   :  { %804 = vst.msk [vmem:[%s2226_s8 + $0x38] sm:$0xff] %vm79_vm0, %v784_v39  ;;  %1370 = vmatmul.mubr.msk.f32.gmra.mrb[16].mxu1 %vm79_vm0, %v784_v39 }
 0x197   :  { %v736_v52 = vpop.permute.xlu1 %735 }
 0x198   :  { %v786_v53 = vmul.f32 %v1536_v47, %v736_v52  ;;  %v1059_v52 = vld [vmem:[%s2228_s7 + $0x30] sm:$0xff] }
 0x199   :  { %v734_v56 = vpop.permute.xlu0 %733 }
 0x19a   :  { %v785_v58 = vmul.f32 %v1538_v54, %v734_v56  ;;  %806 = vst.msk [vmem:[%s2226_s8 + $0x48] sm:$0xff] %vm79_vm0, %v786_v53 }
 0x19b   :  { %v740_v59 = vpop.permute.xlu1 %739 }
 0x19c   :  { %805 = vst.msk [vmem:[%s2226_s8 + $0x40] sm:$0xff] %vm79_vm0, %v785_v58  ;;  %1372 = vmatprep.mubr.msk.f32.mxu1 %vm79_vm0, %v785_v58  ;;  %v788_v16 = vmul.f32 %v1540_v55, %v740_v59  ;;  %v1062_v55 = vld [vmem:[%s2228_s7 + $0x48] sm:$0xff] }
 0x19d   :  { %1373 = vmatmul.mubr.msk.f32.gmra.mrb[18].mxu1 %vm79_vm0, %v786_v53 }
 0x19e   :  { %808 = vst.msk [vmem:[%s2226_s8 + $0x58] sm:$0xff] %vm79_vm0, %v788_v16 }
 0x19f   :  { %v738_v7 = vpop.permute.xlu0 %737 }
 0x1a0   :  { %v787_v60 = vmul.f32 %v1542_v5, %v738_v7  ;;  %v1061_v5 = vld [vmem:[%s2228_s7 + $0x40] sm:$0xff] }
 0x1a1   :  { %v744_v10 = vpop.permute.xlu1 %743 }
 0x1a2   :  { %807 = vst.msk [vmem:[%s2226_s8 + $0x50] sm:$0xff] %vm79_vm0, %v787_v60  ;;  %1375 = vmatprep.mubr.msk.f32.mxu1 %vm79_vm0, %v787_v60  ;;  %v790_v63 = vmul.f32 %v1544_v9, %v744_v10 }
 0x1a3   :  { %1376 = vmatmul.mubr.msk.f32.gmra.mrb[20].mxu1 %vm79_vm0, %v788_v16  ;;  %v742_v13 = vpop.permute.xlu0 %741 }
 0x1a4   :  { %810 = vst.msk [vmem:[%s2226_s8 + $0x68] sm:$0xff] %vm79_vm0, %v790_v63  ;;  %v789_v32 = vmul.f32 %v1546_v11, %v742_v13 }
 0x1a6   :  { %809 = vst.msk [vmem:[%s2226_s8 + $0x60] sm:$0xff] %vm79_vm0, %v789_v32  ;;  %1378 = vmatprep.mubr.msk.f32.mxu1 %vm79_vm0, %v789_v32  ;;  %v1063_v32 = vld [vmem:[%s2228_s7 + $0x50] sm:$0xff] }
 0x1a7   :  { %v748_v41 = vpop.permute.xlu1 %747  ;;  %1379 = vmatmul.mubr.msk.f32.gmra.mrb[22].mxu1 %vm79_vm0, %v790_v63  ;;  %v1064_v63 = vld [vmem:[%s2228_s7 + $0x58] sm:$0xff] }
 0x1a8   :  { %v792_v61 = vmul.f32 %v1548_v4, %v748_v41 }
 0x1a9   :  { %v746_v17 = vpop.permute.xlu0 %745 }
 0x1aa   :  { %812 = vst.msk [vmem:[%s2226_s8 + $0x78] sm:$0xff] %vm79_vm0, %v792_v61  ;;  %v791_v3 = vmul.f32 %v1550_v15, %v746_v17  ;;  %v1066_v17 = vld [vmem:[%s2228_s7 + $0x68] sm:$0xff] }
 0x1ac   :  { %811 = vst.msk [vmem:[%s2226_s8 + $0x70] sm:$0xff] %vm79_vm0, %v791_v3  ;;  %1381 = vmatprep.mubr.msk.f32.mxu1 %vm79_vm0, %v791_v3 }
 0x1ad   :  { %v752_v62 = vpop.permute.xlu1 %751  ;;  %1382 = vmatmul.mubr.msk.f32.gmra.mrb[24].mxu1 %vm79_vm0, %v792_v61 }
 0x1ae   :  { %v794_v51 = vmul.f32 %v1552_v19, %v752_v62  ;;  %v1065_v62 = vld [vmem:[%s2228_s7 + $0x60] sm:$0xff] }
 0x1af   :  { %v750_v22 = vpop.permute.xlu0 %749 }
 0x1b0   :  { %814 = vst.msk [vmem:[%s2226_s8 + $0x88] sm:$0xff] %vm79_vm0, %v794_v51  ;;  %v793_v57 = vmul.f32 %v1554_v21, %v750_v22 }
 0x1b1   :  { %v756_v25 = vpop.permute.xlu1 %755 }
 0x1b2   :  { %813 = vst.msk [vmem:[%s2226_s8 + $0x80] sm:$0xff] %vm79_vm0, %v793_v57  ;;  %1384 = vmatprep.mubr.msk.f32.mxu1 %vm79_vm0, %v793_v57  ;;  %v796_v27 = vmul.f32 %v1556_v23, %v756_v25  ;;  %v1068_v23 = vld [vmem:[%s2228_s7 + $0x78] sm:$0xff] }
 0x1b3   :  { %1385 = vmatmul.mubr.msk.f32.gmra.mrb[26].mxu1 %vm79_vm0, %v794_v51 }
 0x1b4   :  { %816 = vst.msk [vmem:[%s2226_s8 + $0x98] sm:$0xff] %vm79_vm0, %v796_v27 }
 0x1b5   :  { %v754_v29 = vpop.permute.xlu0 %753 }
 0x1b6   :  { %v795_v30 = vmul.f32 %v1558_v28, %v754_v29  ;;  %v1067_v28 = vld [vmem:[%s2228_s7 + $0x70] sm:$0xff] }
 0x1b8   :  { %815 = vst.msk [vmem:[%s2226_s8 + $0x90] sm:$0xff] %vm79_vm0, %v795_v30  ;;  %1387 = vmatprep.mubr.msk.f32.mxu1 %vm79_vm0, %v795_v30 }
 0x1b9   :  { %1388 = vmatmul.mubr.msk.f32.gmra.mrb[28].mxu1 %vm79_vm0, %v796_v27 }
 0x25d   :  { %v1362_v0 = vpop.f32.mrb[10].mxu1 }
 0x25e   :  { %v960_v35 = vadd.f32 %v1362_v0, %v2058_v31  ;;  %v954_v36 = vpop.f32.mrb[11].mxu1 }
 0x25f   :  { %v955_v37 = vadd.f32 %v2058_v31, %v954_v36 }
 0x260   :  { %v1074_v38 = vadd.f32 %v1054_v34, %v960_v35  ;;  %v1070_v35 = vld [vmem:[%s2228_s7 + $0x88] sm:$0xff] }
 0x261   :  { %v1073_v6 = vadd.f32 %v1053_v1, %v955_v37  ;;  %v1365_v8 = vpop.f32.mrb[12].mxu1  ;;  %v1069_v37 = vld [vmem:[%s2228_s7 + $0x80] sm:$0xff] }
 0x262   :  { %1095 = vst.msk [vmem:[%s2229_s9 + $0x8] sm:$0xff] %vm1093_vm1, %v1074_v38  ;;  %v970_v14 = vadd.f32 %v1365_v8, %v2058_v31  ;;  %v964_v20 = vpop.f32.mrb[13].mxu1 }
 0x263   :  { %1094 = vst.msk [vmem:[%s2229_s9] sm:$0xff] %vm1093_vm1, %v1073_v6  ;;  %v965_v18 = vadd.f32 %v2058_v31, %v964_v20 }
 0x264   :  { %v1076_v26 = vadd.f32 %v1056_v12, %v970_v14  ;;  %v1072_v14 = vld [vmem:[%s2228_s7 + $0x98] sm:$0xff] }
 0x265   :  { %v1075_v42 = vadd.f32 %v1055_v40, %v965_v18  ;;  %v1368_v2 = vpop.f32.mrb[14].mxu1  ;;  %v1071_v18 = vld [vmem:[%s2228_s7 + $0x90] sm:$0xff] }
 0x266   :  { %1097 = vst.msk [vmem:[%s2229_s9 + $0x18] sm:$0xff] %vm1093_vm1, %v1076_v26  ;;  %v980_v43 = vadd.f32 %v1368_v2, %v2058_v31  ;;  %v974_v44 = vpop.f32.mrb[15].mxu1 }
 0x267   :  { %1096 = vst.msk [vmem:[%s2229_s9 + $0x10] sm:$0xff] %vm1093_vm1, %v1075_v42  ;;  %v975_v33 = vadd.f32 %v2058_v31, %v974_v44 }
 0x268   :  { %v1078_v46 = vadd.f32 %v1058_v24, %v980_v43 }
 0x269   :  { %v1077_v48 = vadd.f32 %v1057_v45, %v975_v33  ;;  %v1371_v49 = vpop.f32.mrb[16].mxu1 }
 0x26a   :  { %1099 = vst.msk [vmem:[%s2229_s9 + $0x28] sm:$0xff] %vm1093_vm1, %v1078_v46  ;;  %v990_v39 = vadd.f32 %v1371_v49, %v2058_v31  ;;  %v984_v47 = vpop.f32.mrb[17].mxu1 }
 0x26b   :  { %1098 = vst.msk [vmem:[%s2229_s9 + $0x20] sm:$0xff] %vm1093_vm1, %v1077_v48  ;;  %v985_v53 = vadd.f32 %v2058_v31, %v984_v47 }
 0x26c   :  { %v1080_v54 = vadd.f32 %v1060_v50, %v990_v39 }
 0x26d   :  { %v1079_v56 = vadd.f32 %v1059_v52, %v985_v53 }
 0x26e   :  { %1101 = vst.msk [vmem:[%s2229_s9 + $0x38] sm:$0xff] %vm1093_vm1, %v1080_v54 }
 0x26f   :  { %1100 = vst.msk [vmem:[%s2229_s9 + $0x30] sm:$0xff] %vm1093_vm1, %v1079_v56 }
 0x270   :  { %v1374_v58 = vpop.f32.mrb[18].mxu1 }
 0x271   :  { %v1000_v59 = vadd.f32 %v1374_v58, %v2058_v31  ;;  %v994_v16 = vpop.f32.mrb[19].mxu1 }
 0x272   :  { %v995_v7 = vadd.f32 %v2058_v31, %v994_v16 }
 0x273   :  { %v1082_v60 = vadd.f32 %v1062_v55, %v1000_v59 }
 0x274   :  { %v1081_v9 = vadd.f32 %v1061_v5, %v995_v7 }
 0x275   :  { %1103 = vst.msk [vmem:[%s2229_s9 + $0x48] sm:$0xff] %vm1093_vm1, %v1082_v60 }
 0x276   :  { %1102 = vst.msk [vmem:[%s2229_s9 + $0x40] sm:$0xff] %vm1093_vm1, %v1081_v9  ;;  %v1377_v10 = vpop.f32.mrb[20].mxu1 }
 0x277   :  { %v1010_v11 = vadd.f32 %v1377_v10, %v2058_v31  ;;  %v1004_v13 = vpop.f32.mrb[21].mxu1 }
 0x278   :  { %v1005_v4 = vadd.f32 %v2058_v31, %v1004_v13 }
 0x279   :  { %v1084_v41 = vadd.f32 %v1064_v63, %v1010_v11 }
 0x27a   :  { %v1083_v61 = vadd.f32 %v1063_v32, %v1005_v4  ;;  %v1380_v15 = vpop.f32.mrb[22].mxu1 }
 0x27b   :  { %1105 = vst.msk [vmem:[%s2229_s9 + $0x58] sm:$0xff] %vm1093_vm1, %v1084_v41  ;;  %v1020_v3 = vadd.f32 %v1380_v15, %v2058_v31  ;;  %v1014_v19 = vpop.f32.mrb[23].mxu1 }
 0x27c   :  { %1104 = vst.msk [vmem:[%s2229_s9 + $0x50] sm:$0xff] %vm1093_vm1, %v1083_v61  ;;  %v1015_v51 = vadd.f32 %v2058_v31, %v1014_v19 }
 0x27d   :  { %v1086_v21 = vadd.f32 %v1066_v17, %v1020_v3 }
 0x27e   :  { %v1085_v22 = vadd.f32 %v1065_v62, %v1015_v51 }
 0x27f   :  { %1107 = vst.msk [vmem:[%s2229_s9 + $0x68] sm:$0xff] %vm1093_vm1, %v1086_v21 }
 0x280   :  { %1106 = vst.msk [vmem:[%s2229_s9 + $0x60] sm:$0xff] %vm1093_vm1, %v1085_v22  ;;  %v1383_v57 = vpop.f32.mrb[24].mxu1 }
 0x281   :  { %v1030_v25 = vadd.f32 %v1383_v57, %v2058_v31  ;;  %v1024_v27 = vpop.f32.mrb[25].mxu1 }
 0x282   :  { %v1025_v29 = vadd.f32 %v2058_v31, %v1024_v27 }
 0x283   :  { %v1088_v30 = vadd.f32 %v1068_v23, %v1030_v25 }
 0x284   :  { %v1087_v0 = vadd.f32 %v1067_v28, %v1025_v29 }
 0x285   :  { %1109 = vst.msk [vmem:[%s2229_s9 + $0x78] sm:$0xff] %vm1093_vm1, %v1088_v30 }
 0x286   :  { %1108 = vst.msk [vmem:[%s2229_s9 + $0x70] sm:$0xff] %vm1093_vm1, %v1087_v0  ;;  %v1386_v34 = vpop.f32.mrb[26].mxu1 }
 0x287   :  { %v1040_v36 = vadd.f32 %v1386_v34, %v2058_v31  ;;  %v1034_v1 = vpop.f32.mrb[27].mxu1 }
 0x288   :  { %v1035_v38 = vadd.f32 %v2058_v31, %v1034_v1 }
 0x289   :  { %v1090_v6 = vadd.f32 %v1070_v35, %v1040_v36 }
 0x28a   :  { %v1089_v8 = vadd.f32 %v1069_v37, %v1035_v38 }
 0x28b   :  { %1111 = vst.msk [vmem:[%s2229_s9 + $0x88] sm:$0xff] %vm1093_vm1, %v1090_v6 }
 0x28c   :  { %1110 = vst.msk [vmem:[%s2229_s9 + $0x80] sm:$0xff] %vm1093_vm1, %v1089_v8  ;;  %v1389_v12 = vpop.f32.mrb[28].mxu1 }
 0x28d   :  { %v1050_v20 = vadd.f32 %v1389_v12, %v2058_v31  ;;  %v1044_v40 = vpop.f32.mrb[29].mxu1 }
 0x28e   :  { %v1045_v26 = vadd.f32 %v2058_v31, %v1044_v40 }
 0x28f   :  { %v1092_v42 = vadd.f32 %v1072_v14, %v1050_v20 }
 0x290   :  { %v1091_v2 = vadd.f32 %v1071_v18, %v1045_v26 }
 0x291   :  { %1113 = vst.msk [vmem:[%s2229_s9 + $0x98] sm:$0xff] %vm1093_vm1, %v1092_v42 }
 0x292   :  { %1112 = vst.msk [vmem:[%s2229_s9 + $0x90] sm:$0xff] %vm1093_vm1, %v1091_v2 }

// kernel: _lambda_.25
= control target key start
LH: loop header
LB: loop body
LE: loop exit
PB: predicated region body
PF: predicated region fallthrough
CT: control target
= control target key end

     0   :  { %s986_s30 = smov 0   ;;  %s1070_s0 = inlined_call_operand.vmem [shape: f32[18,8,32], index: 0, kind: input, shape index: {}]   ;;  %s1071_s1 = inlined_call_operand.vmem [shape: f32[8,8], index: 1, kind: input, shape index: {}]   ;;  %s1072_s2 = inlined_call_operand.vmem [shape: f32[18,8,32], index: 2, kind: input, shape index: {}]   ;;  %s1073_s3 = inlined_call_operand.vmem [shape: f32[32,32], index: 3, kind: input, shape index: {}]   ;;  %s1074_s4 = inlined_call_operand.vmem [shape: f32[32,32], index: 4, kind: input, shape index: {}]   ;;  %s1075_s5 = inlined_call_operand.vmem [shape: f32[32,32], index: 5, kind: input, shape index: {}]   ;;  %s1076_s6 = inlined_call_operand.vmem [shape: f32[1,32], index: 6, kind: input, shape index: {}]   ;;  %s1077_s7 = inlined_call_operand.vmem [shape: f32[1,32], index: 7, kind: input, shape index: {}]   ;;  %s1078_s8 = inlined_call_operand.vmem [shape: f32[1,32], index: 8, kind: input, shape index: {}]   ;;  %s1079_s9 = inlined_call_operand.vmem [shape: f32[18,8,32], index: 9, kind: output, shape index: {}]  }
   0x1 LB: > { %s816_s10 = sadd.s32 4294967295, %s931_s30   ;;  %p820_p0 = scmp.ge.s32.totalorder %s931_s30, 1  ;;  %s931_s30 = sphi %s986_s30, %s19_s30  }
   0x2   : > { %p295_p1 = scmp.lt.s32.totalorder %s931_s30, 19 }
   0x4   : > { %p296_p2 = pnand %p820_p0, %p295_p1 }
   0x5   : > { %p333_p3 = scmp.lt.s32.totalorder (!%p296_p2), %s816_s10, 17  ;;  %v933_v0 = vmov (!%p296_p2), 0.0   ;;  %vm934_vm0 = vmmov (!%p296_p2), 0   ;;  %v495_v1 = vld [vmem:[%s1074_s4] sm:$0xff] (!%p296_p2)  ;;  %v496_v2 = vld [vmem:[%s1074_s4 + $0x8] sm:$0xff] (!%p296_p2)  ;;  %v497_v3 = vld [vmem:[%s1074_s4 + $0x10] sm:$0xff] (!%p296_p2) }
   0x6   : > { %299 = sbr.rel (%p296_p2) target bundleno = 666 (0x29a), region = 56  ;;  %853 = vmatprep.subr.mxu1 (!%p296_p2), %v933_v0  ;;  %855 = vmatprep.mubr.msk.f32.mxu1 (!%p296_p2), %vm934_vm0, %v933_v0  ;;  %v935_v4 = vmov (!%p296_p2), 0.0|0.0   ;;  %v897_v5 = vpack.c.bf16 (!%p296_p2), %v496_v2, %v495_v1  ;;  %v498_v6 = vld [vmem:[%s1074_s4 + $0x18] sm:$0xff] (!%p296_p2)  ;;  %v346_v8 = vld [vmem:[%s1071_s1] sm:$0xff] (!%p296_p2)  ;;  %vm347_vm1 = vcmask (!%p296_p2), 64512   ;;  %v492_v11 = vld [vmem:[%s1073_s3 + $0x8] sm:$0xff] (!%p296_p2) }
   0x7   : > { %896 = vmatprep.subr.bf16.mxu0 (!%p296_p2), %v935_v4  ;;  %871 = vmatprep.mubr.msk.f32.mxu0 (!%p296_p2), %vm934_vm0, %v933_v0  ;;  %v900_v7 = vpack.c.bf16 (!%p296_p2), %v498_v6, %v497_v3  ;;  %v491_v10 = vld [vmem:[%s1073_s3] sm:$0xff] (!%p296_p2)  ;;  %v647_v13 = vld [vmem:[%s1075_s5 + $0x8] sm:$0xff] (!%p296_p2)  ;;  %vm499_vm2 = vcmask (!%p296_p2), 261120   ;;  %v493_v16 = vld [vmem:[%s1073_s3 + $0x10] sm:$0xff] (!%p296_p2) }
   0x8   : > { %898 = vmatpush3.bf16.msra.mxu0 (!%p296_p2), %v897_v5  ;;  %v646_v12 = vld [vmem:[%s1075_s5] sm:$0xff] (!%p296_p2)  ;;  %v903_v14 = vpack.c.bf16 (!%p296_p2), %v492_v11, %v491_v10  ;;  %v494_v17 = vld [vmem:[%s1073_s3 + $0x18] sm:$0xff] (!%p296_p2)  ;;  %v648_v20 = vld [vmem:[%s1075_s5 + $0x10] sm:$0xff] (!%p296_p2) }
   0x9   : > { %899 = vmatprep.subr.bf16.mxu0 (!%p296_p2), %v935_v4  ;;  %v909_v18 = vpack.c.bf16 (!%p296_p2), %v647_v13, %v646_v12  ;;  %v649_v21 = vld [vmem:[%s1075_s5 + $0x18] sm:$0xff] (!%p296_p2)  ;;  %v906_v22 = vpack.c.bf16 (!%p296_p2), %v494_v17, %v493_v16  ;;  %v829_v32 = vld [vmem:[%s1076_s6] ss:$0 sm:$0xff] (!%p296_p2) }
   0xa   : > { %v912_v23 = vpack.c.bf16 (!%p296_p2), %v649_v21, %v648_v20  ;;  %v830_v37 = vld [vmem:[%s1077_s7] ss:$0 sm:$0xff] (!%p296_p2) }
   0xb   : > { %v831_v39 = vld [vmem:[%s1078_s8] ss:$0 sm:$0xff] (!%p296_p2) }
   0xc   : > { %901 = vmatpush3.bf16.msra.mxu0 (!%p296_p2), %v900_v7 }
   0xd   : > { %s1081_s10 = smov (!%p333_p3, %s816_s10), 17  ;;  %908 = vmatprep.subr.bf16.mxu0 %v935_v4 }
   0xe   : > { %s1008_s19 = sshll.u32 %s1081_s10, 3 }
   0xf   : > { %s336_s22 = scalar_lea.vmem %s1070_s0, %s1008_s19  ;;  %s340_s24 = scalar_lea.vmem %s1072_s2, %s1008_s19 }
  0x10   : > { %v345_v9 = vld [vmem:[%s336_s22] sm:$0xff]  ;;  %s344_s13 = scalar_lea.vmem %s1079_s9, %s1008_s19 }
  0x11   : > { %854 = vmatpush3.msra.mxu1 %v345_v9  ;;  %v732_v35 = vld [vmem:[%s340_s24] sm:$0xff] }
  0x12   : > { %856 = vmatmul.mubr.msk.f32.vlgmr.msra.gmra.mrb[0].mxu1 %vm347_vm1, %v346_v8  ;;  %858 = vmatprep.subr.mxu1 %v933_v0 }
  0x13   : > { %860 = vmatprep.mubr.msk.f32.mxu1 %vm934_vm0, %v933_v0 }
  0xe5   : > { %v417_v15 = vpop.f32.mrb[0].mxu1 }
  0xe6   : > { %v857_v19 = vpop.f32.mrb[1].mxu1  ;;  %859 = vmatpush3.msra.mxu1 %v417_v15  ;;  %872 = vmatmul.mubr.msk.f32.vlgmr.msra.gmra.mrb[0].mxu0 %vm499_vm2, %v417_v15 }
  0xe7   : > { %861 = vmatmul.mubr.msk.f32.vlgmr.msra.gmra.mrb[2].mxu1 %vm347_vm1, %v346_v8  ;;  %902 = vmatprep.subr.bf16.mxu1 %v935_v4 }
  0xe8   : > { %904 = vmatpush3.bf16.msra.mxu1 %v903_v14  ;;  %882 = vmatprep.mubr.msk.f32.mxu1 %vm934_vm0, %v933_v0 }
  0xe9   : > { %905 = vmatprep.subr.bf16.mxu1 %v935_v4  ;;  %910 = vmatpush3.bf16.msra.mxu0 %v909_v18 }
  0xea   : > { %911 = vmatprep.subr.bf16.mxu0 %v935_v4  ;;  %893 = vmatprep.mubr.msk.f32.mxu0 %vm934_vm0, %v933_v0 }
  0xec   : > { %907 = vmatpush3.bf16.msra.mxu1 %v906_v22 }
  0xed   : > { %913 = vmatpush3.bf16.msra.mxu0 %v912_v23 }
  0xef   : > { %883 = vmatmul.mubr.msk.f32.vlgmr.msra.gmra.mrb[4].mxu1 %vm499_vm2, %v345_v9 }
 0x1b9   : > { %v569_v24 = vpop.f32.mrb[0].mxu0 }
 0x1ba   : > { %v487_v25 = vpop.f32.mrb[2].mxu1  ;;  %v873_v26 = vpop.f32.mrb[1].mxu0 }
 0x1bb   : > { %894 = vmatmul.mubr.msk.f32.vlgmr.msra.gmra.mrb[2].mxu0 %vm499_vm2, %v487_v25  ;;  %v862_v27 = vpop.f32.mrb[3].mxu1 }
 0x1c2   : > { %v642_v28 = vpop.f32.mrb[4].mxu1 }
 0x1c3   : > { %v643_v29 = vadd.f32 %v642_v28, %v569_v24  ;;  %v884_v30 = vpop.f32.mrb[5].mxu1 }
 0x28e   : > { %v719_v31 = vpop.f32.mrb[2].mxu0 }
 0x28f   : > { %v723_v33 = vadd.f32 %v719_v31, %v643_v29  ;;  %v895_v34 = vpop.f32.mrb[3].mxu0 }
 0x291   : > { %v731_v36 = vadd.f32 %v829_v32, %v723_v33 }
 0x293   : > { %v733_v38 = vadd.f32 %v732_v35, %v731_v36 }
 0x295   : > { %v741_v40 = vmul.f32 %v830_v37, %v733_v38 }
 0x297   : > { %v749_v41 = vadd.f32 %v831_v39, %v741_v40 }
 0x299   : > { %750 = vst.msk [vmem:[%s344_s13] sm:$0xff] %vm499_vm2, %v749_v41 }
 0x29a PF: > { %s19_s30 = sadd.s32 1, %s931_s30  }
 0x29b   : > { %p16_p4 = scmp.ge.s32.totalorder %s19_s30, 20  }
 0x29d   :  { %18 = sbr.rel (!%p16_p4) target bundleno = 1 (0x1), region = 89 }

// kernel: _lambda_.24
= control target key start
LH: loop header
LB: loop body
LE: loop exit
PB: predicated region body
PF: predicated region fallthrough
CT: control target
= control target key end

     0   :  { %vm75_vm0 = vcmask 261120   ;;  %vm1009_vm1 = vcmask 523264   ;;  %s2037_s3 = inlined_call_operand.vmem [shape: f32[32,64], index: 3, kind: input, shape index: {}]   ;;  %s2038_s1 = inlined_call_operand.vmem [shape: f32[144,32], index: 1, kind: input, shape index: {}]   ;;  %s2039_s2 = inlined_call_operand.vmem [shape: f32[32,64], index: 2, kind: input, shape index: {}]   ;;  %s2040_s0 = inlined_call_operand.vmem [shape: f32[144,32], index: 0, kind: input, shape index: {}]   ;;  %s2041_s5 = inlined_call_operand.vmem [shape: f32[32,64], index: 5, kind: input, shape index: {}]   ;;  %s2042_s4 = inlined_call_operand.vmem [shape: f32[1,64], index: 4, kind: input, shape index: {}]   ;;  %s2043_s8 = inlined_call_operand.vmem [shape: f32[144,32], index: 8, kind: output, shape index: {0}]   ;;  %s2044_s6 = inlined_call_operand.vmem [shape: f32[1,64], index: 6, kind: input, shape index: {}]   ;;  %s2045_s7 = inlined_call_operand.vmem [shape: f32[144,64], index: 7, kind: input, shape index: {}]   ;;  %s2046_s9 = inlined_call_operand.vmem [shape: f32[144,64], index: 9, kind: output, shape index: {1}]  }
   0x1   :  { %v71_v0 = vld [vmem:[%s2037_s3] sm:$0xff]  ;;  %v72_v1 = vld [vmem:[%s2037_s3 + $0x8] sm:$0xff]  ;;  %v73_v2 = vld [vmem:[%s2037_s3 + $0x10] sm:$0xff] }
   0x2   :  { %v1281_v3 = vpack.c.bf16 %v72_v1, %v71_v0  ;;  %v74_v4 = vld [vmem:[%s2037_s3 + $0x18] sm:$0xff]  ;;  %v53_v5 = vld [vmem:[%s2038_s1] sm:$0xff]  ;;  %v50_v8 = vld [vmem:[%s2039_s2 + $0x8] sm:$0xff] }
   0x3   :  { %v1285_v6 = vpack.c.bf16 %v74_v4, %v73_v2  ;;  %1184 = vmatprep.mubr.msk.f32.mxu0 %vm75_vm0, %v53_v5  ;;  %v49_v7 = vld [vmem:[%s2039_s2] sm:$0xff]  ;;  %v51_v10 = vld [vmem:[%s2039_s2 + $0x10] sm:$0xff]  ;;  %v52_v11 = vld [vmem:[%s2039_s2 + $0x18] sm:$0xff] }
   0x4   :  { %1282 = vmatprep.subr.bf16.mxu0 %v1281_v3  ;;  %1305 = vmatprep.subr.bf16.mxu1 %v1281_v3  ;;  %v1289_v9 = vpack.c.bf16 %v50_v8, %v49_v7  ;;  %v54_v12 = vld [vmem:[%s2038_s1 + $0x8] sm:$0xff]  ;;  %v55_v13 = vld [vmem:[%s2038_s1 + $0x10] sm:$0xff]  ;;  %v1293_v14 = vpack.c.bf16 %v52_v11, %v51_v10  ;;  %v64_v16 = vld [vmem:[%s2038_s1 + $0x58] sm:$0xff] }
   0x5   :  { %1284 = vmatpush3.bf16.msra.mxu0 %v1281_v3  ;;  %1307 = vmatpush3.bf16.msra.mxu1 %v1281_v3  ;;  %v63_v15 = vld [vmem:[%s2038_s1 + $0x50] sm:$0xff]  ;;  %v65_v17 = vld [vmem:[%s2038_s1 + $0x60] sm:$0xff]  ;;  %v56_v18 = vld [vmem:[%s2038_s1 + $0x18] sm:$0xff] }
   0x6   :  { %1286 = vmatprep.subr.bf16.mxu0 %v1285_v6  ;;  %1306 = vmatprep.subr.bf16.mxu1 %v1285_v6  ;;  %v66_v19 = vld [vmem:[%s2038_s1 + $0x68] sm:$0xff]  ;;  %v57_v20 = vld [vmem:[%s2038_s1 + $0x20] sm:$0xff]  ;;  %v67_v21 = vld [vmem:[%s2038_s1 + $0x70] sm:$0xff] }
   0x7   :  { %1199 = vmatprep.mubr.msk.f32.mxu1 %vm75_vm0, %v63_v15  ;;  %v58_v22 = vld [vmem:[%s2038_s1 + $0x28] sm:$0xff]  ;;  %v68_v23 = vld [vmem:[%s2038_s1 + $0x78] sm:$0xff]  ;;  %v59_v24 = vld [vmem:[%s2038_s1 + $0x30] sm:$0xff] }
   0x8   :  { %v69_v25 = vld [vmem:[%s2038_s1 + $0x80] sm:$0xff]  ;;  %v60_v26 = vld [vmem:[%s2038_s1 + $0x38] sm:$0xff]  ;;  %v70_v27 = vld [vmem:[%s2038_s1 + $0x88] sm:$0xff] }
   0x9   :  { %1288 = vmatpush3.bf16.msra.mxu0 %v1285_v6  ;;  %1308 = vmatpush3.bf16.msra.mxu1 %v1285_v6  ;;  %v61_v28 = vld [vmem:[%s2038_s1 + $0x40] sm:$0xff]  ;;  %v62_v29 = vld [vmem:[%s2038_s1 + $0x48] sm:$0xff]  ;;  %v33_v32 = vld [vmem:[%s2040_s0 + $0x10] sm:$0xff] }
   0xa   :  { %1290 = vmatprep.subr.bf16.mxu0 %v1289_v9  ;;  %v31_v30 = vld [vmem:[%s2040_s0] sm:$0xff]  ;;  %v32_v31 = vld [vmem:[%s2040_s0 + $0x8] sm:$0xff]  ;;  %v34_v33 = vld [vmem:[%s2040_s0 + $0x18] sm:$0xff] }
   0xb   :  { %v35_v34 = vld [vmem:[%s2040_s0 + $0x20] sm:$0xff]  ;;  %v36_v35 = vld [vmem:[%s2040_s0 + $0x28] sm:$0xff]  ;;  %v37_v36 = vld [vmem:[%s2040_s0 + $0x30] sm:$0xff] }
   0xc   :  { %1185 = vmatmul.mubr.msk.f32.vlgmr.msra.gmra.mrb[0].mxu0 %vm75_vm0, %v54_v12  ;;  %1200 = vmatmul.mubr.msk.f32.vlgmr.msra.gmra.mrb[0].mxu1 %vm75_vm0, %v64_v16  ;;  %v38_v37 = vld [vmem:[%s2040_s0 + $0x38] sm:$0xff]  ;;  %v39_v38 = vld [vmem:[%s2040_s0 + $0x40] sm:$0xff]  ;;  %v40_v39 = vld [vmem:[%s2040_s0 + $0x48] sm:$0xff] }
   0xd   :  { %1292 = vmatpush3.bf16.msra.mxu0 %v1289_v9  ;;  %1187 = vmatprep.mubr.msk.f32.mxu0 %vm75_vm0, %v55_v13  ;;  %v41_v40 = vld [vmem:[%s2040_s0 + $0x50] sm:$0xff]  ;;  %v42_v41 = vld [vmem:[%s2040_s0 + $0x58] sm:$0xff]  ;;  %v43_v42 = vld [vmem:[%s2040_s0 + $0x60] sm:$0xff] }
   0xe   :  { %1294 = vmatprep.subr.bf16.mxu0 %v1293_v14  ;;  %1202 = vmatprep.mubr.msk.f32.mxu1 %vm75_vm0, %v65_v17  ;;  %v44_v43 = vld [vmem:[%s2040_s0 + $0x68] sm:$0xff]  ;;  %v45_v44 = vld [vmem:[%s2040_s0 + $0x70] sm:$0xff]  ;;  %v46_v45 = vld [vmem:[%s2040_s0 + $0x78] sm:$0xff] }
   0xf   :  { %v47_v46 = vld [vmem:[%s2040_s0 + $0x80] sm:$0xff]  ;;  %v48_v47 = vld [vmem:[%s2040_s0 + $0x88] sm:$0xff]  ;;  %v755_v50 = vld [vmem:[%s2041_s5 + $0x10] sm:$0xff] }
  0x10   :  { %1188 = vmatmul.mubr.msk.f32.gmra.mrb[2].mxu0 %vm75_vm0, %v56_v18  ;;  %1203 = vmatmul.mubr.msk.f32.gmra.mrb[2].mxu1 %vm75_vm0, %v66_v19  ;;  %v753_v48 = vld [vmem:[%s2041_s5] sm:$0xff]  ;;  %v754_v49 = vld [vmem:[%s2041_s5 + $0x8] sm:$0xff]  ;;  %v756_v52 = vld [vmem:[%s2041_s5 + $0x18] sm:$0xff] }
  0x11   :  { %1190 = vmatprep.mubr.msk.f32.mxu0 %vm75_vm0, %v57_v20  ;;  %1296 = vmatpush3.bf16.msra.mxu0 %v1293_v14  ;;  %v1297_v51 = vpack.c.bf16 %v754_v49, %v753_v48  ;;  %v1301_v53 = vpack.c.bf16 %v756_v52, %v755_v50  ;;  %v1682_v62 = vld [vmem:[%s2042_s4] ss:$0 sm:$0xff]  ;;  %s1436_s4 = smov 96  }
  0x12   :  { %1205 = vmatprep.mubr.msk.f32.mxu1 %vm75_vm0, %v67_v21 }
  0x13   :  { %1298 = vmatprep.subr.bf16.mxu1 %v1297_v51 }
  0x14   :  { %1191 = vmatmul.mubr.msk.f32.gmra.mrb[4].mxu0 %vm75_vm0, %v58_v22  ;;  %1206 = vmatmul.mubr.msk.f32.gmra.mrb[4].mxu1 %vm75_vm0, %v68_v23 }
  0x15   :  { %1193 = vmatprep.mubr.msk.f32.mxu0 %vm75_vm0, %v59_v24  ;;  %1208 = vmatprep.mubr.msk.f32.mxu1 %vm75_vm0, %v69_v25 }
  0x16   :  { %1300 = vmatpush3.bf16.msra.mxu1 %v1297_v51 }
  0x17   :  { %1302 = vmatprep.subr.bf16.mxu1 %v1301_v53 }
  0x18   :  { %1194 = vmatmul.mubr.msk.f32.gmra.mrb[6].mxu0 %vm75_vm0, %v60_v26  ;;  %1209 = vmatmul.mubr.msk.f32.gmra.mrb[6].mxu1 %vm75_vm0, %v70_v27 }
  0x19   :  { %1196 = vmatprep.mubr.msk.f32.mxu0 %vm75_vm0, %v61_v28 }
  0x1a   :  { %1304 = vmatpush3.bf16.msra.mxu1 %v1301_v53 }
  0x1c   :  { %1197 = vmatmul.mubr.msk.f32.gmra.mrb[8].mxu0 %vm75_vm0, %v62_v29 }
  0x1d   :  { %1219 = vmatprep.mubr.msk.f32.mxu0 %vm75_vm0, %v31_v30 }
  0x20   :  { %1220 = vmatmul.mubr.msk.f32.vlgmr.msra.gmra.mrb[0].mxu0 %vm75_vm0, %v32_v31 }
  0x21   :  { %1222 = vmatprep.mubr.msk.f32.mxu0 %vm75_vm0, %v33_v32 }
  0x24   :  { %1223 = vmatmul.mubr.msk.f32.gmra.mrb[2].mxu0 %vm75_vm0, %v34_v33 }
  0x25   :  { %1225 = vmatprep.mubr.msk.f32.mxu0 %vm75_vm0, %v35_v34 }
  0x28   :  { %1226 = vmatmul.mubr.msk.f32.gmra.mrb[4].mxu0 %vm75_vm0, %v36_v35 }
  0x29   :  { %1228 = vmatprep.mubr.msk.f32.mxu0 %vm75_vm0, %v37_v36 }
  0x2c   :  { %1229 = vmatmul.mubr.msk.f32.gmra.mrb[6].mxu0 %vm75_vm0, %v38_v37 }
  0x2d   :  { %1231 = vmatprep.mubr.msk.f32.mxu0 %vm75_vm0, %v39_v38 }
  0x30   :  { %1232 = vmatmul.mubr.msk.f32.gmra.mrb[8].mxu0 %vm75_vm0, %v40_v39 }
  0x31   :  { %1234 = vmatprep.mubr.msk.f32.mxu0 %vm75_vm0, %v41_v40 }
  0x34   :  { %1235 = vmatmul.mubr.msk.f32.gmra.mrb[10].mxu0 %vm75_vm0, %v42_v41 }
  0x35   :  { %1237 = vmatprep.mubr.msk.f32.mxu0 %vm75_vm0, %v43_v42 }
  0x38   :  { %1238 = vmatmul.mubr.msk.f32.gmra.mrb[12].mxu0 %vm75_vm0, %v44_v43 }
  0x39   :  { %1240 = vmatprep.mubr.msk.f32.mxu0 %vm75_vm0, %v45_v44 }
  0x3c   :  { %1241 = vmatmul.mubr.msk.f32.gmra.mrb[14].mxu0 %vm75_vm0, %v46_v45 }
  0x3d   :  { %1243 = vmatprep.mubr.msk.f32.mxu0 %vm75_vm0, %v47_v46 }
  0x40   :  { %1244 = vmatmul.mubr.msk.f32.gmra.mrb[16].mxu0 %vm75_vm0, %v48_v47 }
  0xdf   :  { %v1201_v54 = vpop.f32.mrb[0].mxu1 }
  0xe0   :  { %v246_v55 = vpop.f32.mrb[1].mxu1 }
  0xe3   :  { %v1667_v56 = vpop.f32.mrb[2].mxu1 }
  0xe4   :  { %v1669_v57 = vpop.f32.mrb[3].mxu1 }
  0xe7   :  { %v1671_v58 = vpop.f32.mrb[4].mxu1 }
  0xe8   :  { %v1673_v59 = vpop.f32.mrb[5].mxu1 }
  0xeb   :  { %v1675_v60 = vpop.f32.mrb[6].mxu1 }
  0xec   :  { %v1677_v61 = vpop.f32.mrb[7].mxu1 }
  0xf3   :  { %v1221_v63 = vpop.f32.mrb[0].mxu0 }
  0xf4   :  { %v1685_v0 = vadd.f32 %v1221_v63, %v1682_v62  ;;  %v405_v1 = vpop.f32.mrb[1].mxu0 }
  0xf5   :  { %v1688_v2 = vadd.f32 %v1682_v62, %v405_v1 }
  0xf6   :  { %v1074_v3 = vmul.f32 -1.442695, %v1685_v0 }
  0xf7   :  { %v1073_v4 = vmul.f32 -1.442695, %v1688_v2  ;;  %v1224_v5 = vpop.f32.mrb[2].mxu0 }
  0xf8   :  { %1328 = vpow2.f32 %v1074_v3  ;;  %v1693_v6 = vadd.f32 %v1224_v5, %v1682_v62  ;;  %v415_v7 = vpop.f32.mrb[3].mxu0 }
  0xf9   :  { %1330 = vpow2.f32 %v1073_v4  ;;  %v1696_v8 = vadd.f32 %v1682_v62, %v415_v7 }
  0xfa   :  { %v1076_v9 = vmul.f32 -1.442695, %v1693_v6 }
  0xfb   :  { %v1075_v10 = vmul.f32 -1.442695, %v1696_v8  ;;  %v1227_v11 = vpop.f32.mrb[4].mxu0 }
  0xfc   :  { %1332 = vpow2.f32 %v1076_v9  ;;  %v1701_v12 = vadd.f32 %v1227_v11, %v1682_v62  ;;  %v425_v13 = vpop.f32.mrb[5].mxu0 }
  0xfd   :  { %1334 = vpow2.f32 %v1075_v10  ;;  %v1704_v14 = vadd.f32 %v1682_v62, %v425_v13 }
  0xfe   :  { %v1078_v15 = vmul.f32 -1.442695, %v1701_v12 }
  0xff   :  { %v1077_v16 = vmul.f32 -1.442695, %v1704_v14  ;;  %v1230_v17 = vpop.f32.mrb[6].mxu0 }
 0x100   :  { %1336 = vpow2.f32 %v1078_v15  ;;  %v1709_v18 = vadd.f32 %v1230_v17, %v1682_v62  ;;  %v435_v19 = vpop.f32.mrb[7].mxu0 }
 0x101   :  { %1338 = vpow2.f32 %v1077_v16  ;;  %v1712_v20 = vadd.f32 %v1682_v62, %v435_v19 }
 0x102   :  { %v1329_v21 = vpop.eup %1328  ;;  %v1080_v22 = vmul.f32 -1.442695, %v1709_v18 }
 0x103   :  { %v1331_v23 = vpop.eup %1330  ;;  %v1079_v24 = vmul.f32 -1.442695, %v1712_v20  ;;  %v1233_v25 = vpop.f32.mrb[8].mxu0  ;;  %v592_v29 = vadd.f32 1.0, %v1329_v21 }
 0x104   :  { %v591_v26 = vadd.f32 1.0, %v1331_v23  ;;  %v1717_v27 = vadd.f32 %v1233_v25, %v1682_v62  ;;  %v445_v28 = vpop.f32.mrb[9].mxu0  ;;  %1340 = vpow2.f32 %v1080_v22 }
 0x105   :  { %v1721_v33 = vadd.f32 %v1682_v62, %v445_v28 }
 0x106   :  { %v1333_v30 = vpop.eup %1332  ;;  %1342 = vrcp.f32 %v591_v26  ;;  %v1082_v32 = vmul.f32 -1.442695, %v1717_v27 }
 0x107   :  { %v1335_v31 = vpop.eup %1334  ;;  %1344 = vpow2.f32 %v1079_v24  ;;  %v1236_v34 = vpop.f32.mrb[10].mxu0  ;;  %v594_v38 = vadd.f32 1.0, %v1333_v30  ;;  %v1081_v43 = vmul.f32 -1.442695, %v1721_v33 }
 0x108   :  { %v593_v35 = vadd.f32 1.0, %v1335_v31  ;;  %v461_v36 = vadd.f32 %v1236_v34, %v1201_v54  ;;  %v455_v37 = vpop.f32.mrb[11].mxu0  ;;  %1346 = vrcp.f32 %v592_v29 }
 0x109   :  { %v456_v39 = vadd.f32 %v455_v37, %v246_v55 }
 0x10a   :  { %v1337_v40 = vpop.eup %1336  ;;  %1348 = vrcp.f32 %v593_v35  ;;  %v1724_v41 = vadd.f32 %v1682_v62, %v461_v36 }
 0x10b   :  { %v1339_v42 = vpop.eup %1338  ;;  %1350 = vpow2.f32 %v1082_v32  ;;  %v1239_v44 = vpop.f32.mrb[12].mxu0  ;;  %v596_v48 = vadd.f32 1.0, %v1337_v40  ;;  %v1729_v49 = vadd.f32 %v1682_v62, %v456_v39 }
 0x10c   :  { %v595_v45 = vadd.f32 1.0, %v1339_v42  ;;  %v471_v46 = vadd.f32 %v1239_v44, %v1667_v56  ;;  %v465_v47 = vpop.f32.mrb[13].mxu0  ;;  %1352 = vrcp.f32 %v594_v38  ;;  %v1084_v51 = vmul.f32 -1.442695, %v1724_v41 }
 0x10d   :  { %v466_v50 = vadd.f32 %v465_v47, %v1669_v57  ;;  %v1083_v3 = vmul.f32 -1.442695, %v1729_v49 }
 0x10e   :  { %1354 = vrcp.f32 %v595_v45  ;;  %v1341_v52 = vpop.eup %1340  ;;  %v1734_v53 = vadd.f32 %v1682_v62, %v471_v46 }
 0x10f   :  { %1356 = vpow2.f32 %v1081_v43  ;;  %v1242_v54 = vpop.f32.mrb[14].mxu0  ;;  %v598_v57 = vadd.f32 1.0, %v1341_v52  ;;  %v1741_v7 = vadd.f32 %v1682_v62, %v466_v50 }
 0x110   :  { %v1343_v55 = vpop.eup %1342  ;;  %v481_v56 = vadd.f32 %v1242_v54, %v1671_v58  ;;  %v475_v63 = vpop.f32.mrb[15].mxu0  ;;  %1358 = vrcp.f32 %v596_v48  ;;  %v1086_v10 = vmul.f32 -1.442695, %v1734_v53 }
 0x111   :  { %v1345_v1 = vpop.eup %1344  ;;  %v476_v4 = vadd.f32 %v475_v63, %v1673_v59  ;;  %663 = vrot.lane.b32.xlu0 %v1343_v55, %s1436_s4  ;;  %1360 = vpow2.f32 %v1084_v51  ;;  %v1085_v21 = vmul.f32 -1.442695, %v1741_v7 }
 0x112   :  { %v597_v5 = vadd.f32 1.0, %v1345_v1  ;;  %v1347_v9 = vpop.eup %1346  ;;  %v1746_v59 = vadd.f32 %v1682_v62, %v481_v56 }
 0x113   :  { %v1245_v58 = vpop.f32.mrb[16].mxu0 }
 0x114   :  { %v1349_v11 = vpop.eup %1348  ;;  %1362 = vrcp.f32 %v597_v5  ;;  %v491_v13 = vadd.f32 %v1245_v58, %v1675_v60  ;;  %v485_v15 = vpop.f32.mrb[17].mxu0  ;;  %v1753_v60 = vadd.f32 %v1682_v62, %v476_v4  ;;  %v1088_v25 = vmul.f32 -1.442695, %v1746_v59 }
 0x115   :  { %v1351_v16 = vpop.eup %1350  ;;  %1364 = vpow2.f32 %v1083_v3  ;;  %v486_v17 = vadd.f32 %v485_v15, %v1677_v61  ;;  %665 = vrot.lane.b32.xlu0 %v1347_v9, %s1436_s4  ;;  %667 = vrot.lane.b32.xlu1 %v1349_v11, %s1436_s4 }
 0x116   :  { %1366 = vrcp.f32 %v598_v57  ;;  %v600_v19 = vadd.f32 1.0, %v1351_v16  ;;  %v1353_v22 = vpop.eup %1352  ;;  %v1759_v28 = vadd.f32 %v1682_v62, %v491_v13  ;;  %v1087_v30 = vmul.f32 -1.442695, %v1753_v60 }
 0x117   :  { %1368 = vpow2.f32 %v1086_v10  ;;  %v1764_v34 = vadd.f32 %v1682_v62, %v486_v17 }
 0x118   :  { %v1355_v23 = vpop.eup %1354  ;;  %1370 = vrcp.f32 %v600_v19  ;;  %v1090_v36 = vmul.f32 -1.442695, %v1759_v28 }
 0x119   :  { %v1357_v24 = vpop.eup %1356  ;;  %669 = vrot.lane.b32.xlu1 %v1353_v22, %s1436_s4  ;;  %671 = vrot.lane.b32.xlu0 %v1355_v23, %s1436_s4  ;;  %1372 = vpow2.f32 %v1085_v21  ;;  %v1089_v42 = vmul.f32 -1.442695, %v1764_v34 }
 0x11a   :  { %v599_v61 = vadd.f32 1.0, %v1357_v24  ;;  %v1359_v26 = vpop.eup %1358 }
 0x11b   :  { %v1361_v29 = vpop.eup %1360 }
 0x11c   :  { %1374 = vrcp.f32 %v599_v61  ;;  %v602_v31 = vadd.f32 1.0, %v1361_v29 }
 0x11d   :  { %1376 = vpow2.f32 %v1088_v25  ;;  %673 = vrot.lane.b32.xlu1 %v1359_v26, %s1436_s4 }
 0x11e   :  { %v1363_v32 = vpop.eup %1362  ;;  %1378 = vrcp.f32 %v602_v31 }
 0x11f   :  { %v1365_v35 = vpop.eup %1364  ;;  %675 = vrot.lane.b32.xlu0 %v1363_v32, %s1436_s4  ;;  %1380 = vpow2.f32 %v1087_v30 }
 0x120   :  { %v1367_v37 = vpop.eup %1366  ;;  %v601_v38 = vadd.f32 1.0, %v1365_v35 }
 0x121   :  { %v1369_v39 = vpop.eup %1368  ;;  %677 = vrot.lane.b32.xlu1 %v1367_v37, %s1436_s4 }
 0x122   :  { %1382 = vrcp.f32 %v601_v38  ;;  %v604_v40 = vadd.f32 1.0, %v1369_v39  ;;  %v1371_v43 = vpop.eup %1370 }
 0x123   :  { %1384 = vpow2.f32 %v1090_v36  ;;  %v1373_v62 = vpop.eup %1372 }
 0x124   :  { %1386 = vrcp.f32 %v604_v40  ;;  %v603_v44 = vadd.f32 1.0, %v1373_v62 }
 0x125   :  { %681 = vrot.lane.b32.xlu1 %v1371_v43, %s1436_s4  ;;  %1388 = vpow2.f32 %v1089_v42 }
 0x126   :  { %v1375_v45 = vpop.eup %1374  ;;  %1390 = vrcp.f32 %v603_v44 }
 0x127   :  { %v1377_v46 = vpop.eup %1376  ;;  %679 = vrot.lane.b32.xlu0 %v1375_v45, %s1436_s4 }
 0x128   :  { %v606_v47 = vadd.f32 1.0, %v1377_v46  ;;  %v1379_v48 = vpop.eup %1378 }
 0x129   :  { %v1381_v50 = vpop.eup %1380  ;;  %685 = vrot.lane.b32.xlu1 %v1379_v48, %s1436_s4 }
 0x12a   :  { %1392 = vrcp.f32 %v606_v47  ;;  %v605_v51 = vadd.f32 1.0, %v1381_v50 }
 0x12c   :  { %v1383_v52 = vpop.eup %1382  ;;  %1394 = vrcp.f32 %v605_v51 }
 0x12d   :  { %v1385_v54 = vpop.eup %1384  ;;  %683 = vrot.lane.b32.xlu0 %v1383_v52, %s1436_s4 }
 0x12e   :  { %v1387_v55 = vpop.eup %1386  ;;  %v608_v56 = vadd.f32 1.0, %v1385_v54  ;;  %v1891_v54 = vld [vmem:[%s2044_s6] ss:$0 sm:$0xff] }
 0x12f   :  { %689 = vrot.lane.b32.xlu1 %v1387_v55, %s1436_s4  ;;  %v1389_v63 = vpop.eup %1388 }
 0x130   :  { %1396 = vrcp.f32 %v608_v56  ;;  %v1391_v1 = vpop.eup %1390  ;;  %v607_v3 = vadd.f32 1.0, %v1389_v63  ;;  %v974_v56 = vld [vmem:[%s2045_s7 + $0x8] sm:$0xff] }
 0x131   :  { %687 = vrot.lane.b32.xlu0 %v1391_v1, %s1436_s4 }
 0x132   :  { %1398 = vrcp.f32 %v607_v3  ;;  %v973_v3 = vld [vmem:[%s2045_s7] sm:$0xff] }
 0x133   :  { %1400 = vtanh.f32 %v1688_v2 }
 0x134   :  { %v1393_v4 = vpop.eup %1392  ;;  %1402 = vtanh.f32 %v1685_v0 }
 0x135   :  { %693 = vrot.lane.b32.xlu1 %v1393_v4, %s1436_s4  ;;  %1404 = vtanh.f32 %v1696_v8 }
 0x136   :  { %v1395_v57 = vpop.eup %1394  ;;  %1406 = vtanh.f32 %v1693_v6 }
 0x137   :  { %691 = vrot.lane.b32.xlu0 %v1395_v57, %s1436_s4  ;;  %1408 = vtanh.f32 %v1704_v14 }
 0x138   :  { %1410 = vtanh.f32 %v1701_v12 }
 0x139   :  { %1412 = vtanh.f32 %v1712_v20 }
 0x13a   :  { %v1397_v5 = vpop.eup %1396  ;;  %1414 = vtanh.f32 %v1709_v18 }
 0x13b   :  { %697 = vrot.lane.b32.xlu1 %v1397_v5, %s1436_s4  ;;  %1416 = vtanh.f32 %v1717_v27 }
 0x13c   :  { %v1399_v9 = vpop.eup %1398  ;;  %1418 = vtanh.f32 %v1721_v33 }
 0x13d   :  { %695 = vrot.lane.b32.xlu0 %v1399_v9, %s1436_s4  ;;  %v1401_v10 = vpop.eup %1400  ;;  %1420 = vtanh.f32 %v1724_v41 }
 0x13e   :  { %v1403_v13 = vpop.eup %1402  ;;  %1422 = vtanh.f32 %v1729_v49 }
 0x13f   :  { %v1405_v0 = vpop.eup %1404  ;;  %1424 = vtanh.f32 %v1734_v53 }
 0x140   :  { %v1407_v15 = vpop.eup %1406  ;;  %1426 = vtanh.f32 %v1741_v7 }
 0x141   :  { %v1409_v12 = vpop.eup %1408  ;;  %1428 = vtanh.f32 %v1746_v59 }
 0x142   :  { %v1411_v19 = vpop.eup %1410  ;;  %1430 = vtanh.f32 %v1753_v60 }
 0x143   :  { %v1413_v27 = vpop.eup %1412  ;;  %1432 = vtanh.f32 %v1759_v28 }
 0x144   :  { %v1415_v25 = vpop.eup %1414  ;;  %1434 = vtanh.f32 %v1764_v34 }
 0x145   :  { %v1417_v41 = vpop.eup %1416 }
 0x146   :  { %v1419_v30 = vpop.eup %1418 }
 0x147   :  { %v1421_v49 = vpop.eup %1420 }
 0x148   :  { %v1423_v35 = vpop.eup %1422 }
 0x149   :  { %v1425_v38 = vpop.eup %1424 }
 0x14a   :  { %v1427_v40 = vpop.eup %1426 }
 0x14b   :  { %v1429_v43 = vpop.eup %1428 }
 0x14c   :  { %v1431_v44 = vpop.eup %1430 }
 0x14d   :  { %v1433_v46 = vpop.eup %1432 }
 0x14e   :  { %v1435_v50 = vpop.eup %1434 }
 0x183   :  { %v664_v58 = vpop.permute.xlu0 %663 }
 0x184   :  { %v717_v11 = vmul.f32 %v1401_v10, %v664_v58  ;;  %v976_v10 = vld [vmem:[%s2045_s7 + $0x18] sm:$0xff] }
 0x186   :  { %735 = vst.msk [vmem:[%s2043_s8] sm:$0xff] %vm75_vm0, %v717_v11  ;;  %1254 = vmatprep.mubr.msk.f32.mxu1 %vm75_vm0, %v717_v11 }
 0x187   :  { %v666_v2 = vpop.permute.xlu0 %665  ;;  %v668_v6 = vpop.permute.xlu1 %667 }
 0x188   :  { %v718_v8 = vmul.f32 %v1403_v13, %v666_v2  ;;  %v719_v14 = vmul.f32 %v1405_v0, %v668_v6  ;;  %v975_v13 = vld [vmem:[%s2045_s7 + $0x10] sm:$0xff] }
 0x18a   :  { %736 = vst.msk [vmem:[%s2043_s8 + $0x8] sm:$0xff] %vm75_vm0, %v718_v8  ;;  %737 = vst.msk [vmem:[%s2043_s8 + $0x10] sm:$0xff] %vm75_vm0, %v719_v14  ;;  %1255 = vmatmul.mubr.msk.f32.vlgmr.msra.gmra.mrb[8].mxu1 %vm75_vm0, %v718_v8 }
 0x18b   :  { %v670_v20 = vpop.permute.xlu1 %669  ;;  %1257 = vmatprep.mubr.msk.f32.mxu1 %vm75_vm0, %v719_v14  ;;  %v672_v16 = vpop.permute.xlu0 %671  ;;  %v978_v14 = vld [vmem:[%s2045_s7 + $0x28] sm:$0xff] }
 0x18c   :  { %v720_v17 = vmul.f32 %v1407_v15, %v670_v20  ;;  %v721_v18 = vmul.f32 %v1409_v12, %v672_v16  ;;  %v977_v20 = vld [vmem:[%s2045_s7 + $0x20] sm:$0xff] }
 0x18e   :  { %738 = vst.msk [vmem:[%s2043_s8 + $0x18] sm:$0xff] %vm75_vm0, %v720_v17  ;;  %739 = vst.msk [vmem:[%s2043_s8 + $0x20] sm:$0xff] %vm75_vm0, %v721_v18  ;;  %1258 = vmatmul.mubr.msk.f32.gmra.mrb[10].mxu1 %vm75_vm0, %v720_v17 }
 0x18f   :  { %v674_v21 = vpop.permute.xlu1 %673  ;;  %1260 = vmatprep.mubr.msk.f32.mxu1 %vm75_vm0, %v721_v18 }
 0x190   :  { %v722_v22 = vmul.f32 %v1411_v19, %v674_v21  ;;  %v980_v21 = vld [vmem:[%s2045_s7 + $0x38] sm:$0xff] }
 0x191   :  { %v676_v23 = vpop.permute.xlu0 %675 }
 0x192   :  { %740 = vst.msk [vmem:[%s2043_s8 + $0x28] sm:$0xff] %vm75_vm0, %v722_v22  ;;  %v723_v24 = vmul.f32 %v1413_v27, %v676_v23  ;;  %1261 = vmatmul.mubr.msk.f32.gmra.mrb[12].mxu1 %vm75_vm0, %v722_v22  ;;  %v979_v23 = vld [vmem:[%s2045_s7 + $0x30] sm:$0xff] }
 0x193   :  { %v678_v61 = vpop.permute.xlu1 %677 }
 0x194   :  { %741 = vst.msk [vmem:[%s2043_s8 + $0x30] sm:$0xff] %vm75_vm0, %v723_v24  ;;  %v724_v33 = vmul.f32 %v1415_v25, %v678_v61  ;;  %1263 = vmatprep.mubr.msk.f32.mxu1 %vm75_vm0, %v723_v24 }
 0x196   :  { %742 = vst.msk [vmem:[%s2043_s8 + $0x38] sm:$0xff] %vm75_vm0, %v724_v33  ;;  %1264 = vmatmul.mubr.msk.f32.gmra.mrb[14].mxu1 %vm75_vm0, %v724_v33 }
 0x197   :  { %v682_v26 = vpop.permute.xlu1 %681 }
 0x198   :  { %v726_v29 = vmul.f32 %v1417_v41, %v682_v26  ;;  %v982_v41 = vld [vmem:[%s2045_s7 + $0x48] sm:$0xff] }
 0x199   :  { %v680_v31 = vpop.permute.xlu0 %679 }
 0x19a   :  { %v725_v32 = vmul.f32 %v1419_v30, %v680_v31  ;;  %744 = vst.msk [vmem:[%s2043_s8 + $0x48] sm:$0xff] %vm75_vm0, %v726_v29  ;;  %v981_v30 = vld [vmem:[%s2045_s7 + $0x40] sm:$0xff] }
 0x19b   :  { %v686_v53 = vpop.permute.xlu1 %685 }
 0x19c   :  { %743 = vst.msk [vmem:[%s2043_s8 + $0x40] sm:$0xff] %vm75_vm0, %v725_v32  ;;  %1266 = vmatprep.mubr.msk.f32.mxu1 %vm75_vm0, %v725_v32  ;;  %v728_v7 = vmul.f32 %v1421_v49, %v686_v53 }
 0x19d   :  { %1267 = vmatmul.mubr.msk.f32.gmra.mrb[16].mxu1 %vm75_vm0, %v726_v29 }
 0x19e   :  { %746 = vst.msk [vmem:[%s2043_s8 + $0x58] sm:$0xff] %vm75_vm0, %v728_v7 }
 0x19f   :  { %v684_v36 = vpop.permute.xlu0 %683 }
 0x1a0   :  { %v727_v37 = vmul.f32 %v1423_v35, %v684_v36 }
 0x1a1   :  { %v690_v39 = vpop.permute.xlu1 %689 }
 0x1a2   :  { %745 = vst.msk [vmem:[%s2043_s8 + $0x50] sm:$0xff] %vm75_vm0, %v727_v37  ;;  %1269 = vmatprep.mubr.msk.f32.mxu1 %vm75_vm0, %v727_v37  ;;  %v730_v59 = vmul.f32 %v1425_v38, %v690_v39  ;;  %v983_v37 = vld [vmem:[%s2045_s7 + $0x50] sm:$0xff] }
 0x1a3   :  { %1270 = vmatmul.mubr.msk.f32.gmra.mrb[18].mxu1 %vm75_vm0, %v728_v7  ;;  %v688_v42 = vpop.permute.xlu0 %687  ;;  %v984_v7 = vld [vmem:[%s2045_s7 + $0x58] sm:$0xff] }
 0x1a4   :  { %748 = vst.msk [vmem:[%s2043_s8 + $0x68] sm:$0xff] %vm75_vm0, %v730_v59  ;;  %v729_v60 = vmul.f32 %v1427_v40, %v688_v42  ;;  %v986_v42 = vld [vmem:[%s2045_s7 + $0x68] sm:$0xff] }
 0x1a6   :  { %747 = vst.msk [vmem:[%s2043_s8 + $0x60] sm:$0xff] %vm75_vm0, %v729_v60  ;;  %1272 = vmatprep.mubr.msk.f32.mxu1 %vm75_vm0, %v729_v60 }
 0x1a7   :  { %v694_v28 = vpop.permute.xlu1 %693  ;;  %1273 = vmatmul.mubr.msk.f32.gmra.mrb[20].mxu1 %vm75_vm0, %v730_v59 }
 0x1a8   :  { %v732_v62 = vmul.f32 %v1429_v43, %v694_v28  ;;  %v985_v28 = vld [vmem:[%s2045_s7 + $0x60] sm:$0xff] }
 0x1a9   :  { %v692_v45 = vpop.permute.xlu0 %691 }
 0x1aa   :  { %750 = vst.msk [vmem:[%s2043_s8 + $0x78] sm:$0xff] %vm75_vm0, %v732_v62  ;;  %v731_v34 = vmul.f32 %v1431_v44, %v692_v45 }
 0x1ac   :  { %749 = vst.msk [vmem:[%s2043_s8 + $0x70] sm:$0xff] %vm75_vm0, %v731_v34  ;;  %1275 = vmatprep.mubr.msk.f32.mxu1 %vm75_vm0, %v731_v34 }
 0x1ad   :  { %v698_v47 = vpop.permute.xlu1 %697  ;;  %1276 = vmatmul.mubr.msk.f32.gmra.mrb[22].mxu1 %vm75_vm0, %v732_v62 }
 0x1ae   :  { %v734_v48 = vmul.f32 %v1433_v46, %v698_v47  ;;  %v988_v46 = vld [vmem:[%s2045_s7 + $0x78] sm:$0xff] }
 0x1af   :  { %v696_v51 = vpop.permute.xlu0 %695 }
 0x1b0   :  { %752 = vst.msk [vmem:[%s2043_s8 + $0x88] sm:$0xff] %vm75_vm0, %v734_v48  ;;  %v733_v52 = vmul.f32 %v1435_v50, %v696_v51  ;;  %v987_v50 = vld [vmem:[%s2045_s7 + $0x70] sm:$0xff] }
 0x1b2   :  { %751 = vst.msk [vmem:[%s2043_s8 + $0x80] sm:$0xff] %vm75_vm0, %v733_v52  ;;  %1278 = vmatprep.mubr.msk.f32.mxu1 %vm75_vm0, %v733_v52 }
 0x1b3   :  { %1279 = vmatmul.mubr.msk.f32.gmra.mrb[24].mxu1 %vm75_vm0, %v734_v48 }
 0x25d   :  { %v1256_v55 = vpop.f32.mrb[8].mxu1 }
 0x25e   :  { %v890_v63 = vadd.f32 %v1256_v55, %v1891_v54  ;;  %v884_v1 = vpop.f32.mrb[9].mxu1 }
 0x25f   :  { %v885_v4 = vadd.f32 %v1891_v54, %v884_v1 }
 0x260   :  { %v992_v57 = vadd.f32 %v974_v56, %v890_v63  ;;  %v990_v63 = vld [vmem:[%s2045_s7 + $0x88] sm:$0xff] }
 0x261   :  { %v991_v5 = vadd.f32 %v973_v3, %v885_v4  ;;  %v1259_v9 = vpop.f32.mrb[10].mxu1  ;;  %v989_v4 = vld [vmem:[%s2045_s7 + $0x80] sm:$0xff] }
 0x262   :  { %1011 = vst.msk [vmem:[%s2046_s9 + $0x8] sm:$0xff] %vm1009_vm1, %v992_v57  ;;  %v900_v58 = vadd.f32 %v1259_v9, %v1891_v54  ;;  %v894_v11 = vpop.f32.mrb[11].mxu1 }
 0x263   :  { %1010 = vst.msk [vmem:[%s2046_s9] sm:$0xff] %vm1009_vm1, %v991_v5  ;;  %v895_v0 = vadd.f32 %v1891_v54, %v894_v11 }
 0x264   :  { %v994_v2 = vadd.f32 %v976_v10, %v900_v58 }
 0x265   :  { %v993_v6 = vadd.f32 %v975_v13, %v895_v0  ;;  %v1262_v8 = vpop.f32.mrb[12].mxu1 }
 0x266   :  { %1013 = vst.msk [vmem:[%s2046_s9 + $0x18] sm:$0xff] %vm1009_vm1, %v994_v2  ;;  %v910_v15 = vadd.f32 %v1262_v8, %v1891_v54  ;;  %v904_v12 = vpop.f32.mrb[13].mxu1 }
 0x267   :  { %1012 = vst.msk [vmem:[%s2046_s9 + $0x10] sm:$0xff] %vm1009_vm1, %v993_v6  ;;  %v905_v16 = vadd.f32 %v1891_v54, %v904_v12 }
 0x268   :  { %v996_v17 = vadd.f32 %v978_v14, %v910_v15 }
 0x269   :  { %v995_v18 = vadd.f32 %v977_v20, %v905_v16  ;;  %v1265_v19 = vpop.f32.mrb[14].mxu1 }
 0x26a   :  { %1015 = vst.msk [vmem:[%s2046_s9 + $0x28] sm:$0xff] %vm1009_vm1, %v996_v17  ;;  %v920_v22 = vadd.f32 %v1265_v19, %v1891_v54  ;;  %v914_v27 = vpop.f32.mrb[15].mxu1 }
 0x26b   :  { %1014 = vst.msk [vmem:[%s2046_s9 + $0x20] sm:$0xff] %vm1009_vm1, %v995_v18  ;;  %v915_v24 = vadd.f32 %v1891_v54, %v914_v27 }
 0x26c   :  { %v998_v25 = vadd.f32 %v980_v21, %v920_v22 }
 0x26d   :  { %v997_v61 = vadd.f32 %v979_v23, %v915_v24 }
 0x26e   :  { %1017 = vst.msk [vmem:[%s2046_s9 + $0x38] sm:$0xff] %vm1009_vm1, %v998_v25 }
 0x26f   :  { %1016 = vst.msk [vmem:[%s2046_s9 + $0x30] sm:$0xff] %vm1009_vm1, %v997_v61 }
 0x270   :  { %v1268_v33 = vpop.f32.mrb[16].mxu1 }
 0x271   :  { %v930_v26 = vadd.f32 %v1268_v33, %v1891_v54  ;;  %v924_v29 = vpop.f32.mrb[17].mxu1 }
 0x272   :  { %v925_v31 = vadd.f32 %v1891_v54, %v924_v29 }
 0x273   :  { %v1000_v32 = vadd.f32 %v982_v41, %v930_v26 }
 0x274   :  { %v999_v49 = vadd.f32 %v981_v30, %v925_v31 }
 0x275   :  { %1019 = vst.msk [vmem:[%s2046_s9 + $0x48] sm:$0xff] %vm1009_vm1, %v1000_v32 }
 0x276   :  { %1018 = vst.msk [vmem:[%s2046_s9 + $0x40] sm:$0xff] %vm1009_vm1, %v999_v49  ;;  %v1271_v53 = vpop.f32.mrb[18].mxu1 }
 0x277   :  { %v940_v35 = vadd.f32 %v1271_v53, %v1891_v54  ;;  %v934_v36 = vpop.f32.mrb[19].mxu1 }
 0x278   :  { %v935_v38 = vadd.f32 %v1891_v54, %v934_v36 }
 0x279   :  { %v1002_v39 = vadd.f32 %v984_v7, %v940_v35 }
 0x27a   :  { %v1001_v59 = vadd.f32 %v983_v37, %v935_v38  ;;  %v1274_v40 = vpop.f32.mrb[20].mxu1 }
 0x27b   :  { %1021 = vst.msk [vmem:[%s2046_s9 + $0x58] sm:$0xff] %vm1009_vm1, %v1002_v39  ;;  %v950_v60 = vadd.f32 %v1274_v40, %v1891_v54  ;;  %v944_v43 = vpop.f32.mrb[21].mxu1 }
 0x27c   :  { %1020 = vst.msk [vmem:[%s2046_s9 + $0x50] sm:$0xff] %vm1009_vm1, %v1001_v59  ;;  %v945_v62 = vadd.f32 %v1891_v54, %v944_v43 }
 0x27d   :  { %v1004_v44 = vadd.f32 %v986_v42, %v950_v60 }
 0x27e   :  { %v1003_v45 = vadd.f32 %v985_v28, %v945_v62 }
 0x27f   :  { %1023 = vst.msk [vmem:[%s2046_s9 + $0x68] sm:$0xff] %vm1009_vm1, %v1004_v44 }
 0x280   :  { %1022 = vst.msk [vmem:[%s2046_s9 + $0x60] sm:$0xff] %vm1009_vm1, %v1003_v45  ;;  %v1277_v34 = vpop.f32.mrb[22].mxu1 }
 0x281   :  { %v960_v47 = vadd.f32 %v1277_v34, %v1891_v54  ;;  %v954_v48 = vpop.f32.mrb[23].mxu1 }
 0x282   :  { %v955_v51 = vadd.f32 %v1891_v54, %v954_v48 }
 0x283   :  { %v1006_v52 = vadd.f32 %v988_v46, %v960_v47 }
 0x284   :  { %v1005_v55 = vadd.f32 %v987_v50, %v955_v51 }
 0x285   :  { %1025 = vst.msk [vmem:[%s2046_s9 + $0x78] sm:$0xff] %vm1009_vm1, %v1006_v52 }
 0x286   :  { %1024 = vst.msk [vmem:[%s2046_s9 + $0x70] sm:$0xff] %vm1009_vm1, %v1005_v55  ;;  %v1280_v56 = vpop.f32.mrb[24].mxu1 }
 0x287   :  { %v970_v1 = vadd.f32 %v1280_v56, %v1891_v54  ;;  %v964_v3 = vpop.f32.mrb[25].mxu1 }
 0x288   :  { %v965_v57 = vadd.f32 %v1891_v54, %v964_v3 }
 0x289   :  { %v1008_v5 = vadd.f32 %v990_v63, %v970_v1 }
 0x28a   :  { %v1007_v9 = vadd.f32 %v989_v4, %v965_v57 }
 0x28b   :  { %1027 = vst.msk [vmem:[%s2046_s9 + $0x88] sm:$0xff] %vm1009_vm1, %v1008_v5 }
 0x28c   :  { %1026 = vst.msk [vmem:[%s2046_s9 + $0x80] sm:$0xff] %vm1009_vm1, %v1007_v9 }

// kernel: _lambda_.27
= control target key start
LH: loop header
LB: loop body
LE: loop exit
PB: predicated region body
PF: predicated region fallthrough
CT: control target
= control target key end

     0   :  { %s986_s30 = smov 0   ;;  %s1070_s0 = inlined_call_operand.vmem [shape: f32[14,8,32], index: 0, kind: input, shape index: {}]   ;;  %s1071_s1 = inlined_call_operand.vmem [shape: f32[8,8], index: 1, kind: input, shape index: {}]   ;;  %s1072_s2 = inlined_call_operand.vmem [shape: f32[14,8,32], index: 2, kind: input, shape index: {}]   ;;  %s1073_s3 = inlined_call_operand.vmem [shape: f32[32,32], index: 3, kind: input, shape index: {}]   ;;  %s1074_s4 = inlined_call_operand.vmem [shape: f32[32,32], index: 4, kind: input, shape index: {}]   ;;  %s1075_s5 = inlined_call_operand.vmem [shape: f32[32,32], index: 5, kind: input, shape index: {}]   ;;  %s1076_s6 = inlined_call_operand.vmem [shape: f32[1,32], index: 6, kind: input, shape index: {}]   ;;  %s1077_s7 = inlined_call_operand.vmem [shape: f32[1,32], index: 7, kind: input, shape index: {}]   ;;  %s1078_s8 = inlined_call_operand.vmem [shape: f32[1,32], index: 8, kind: input, shape index: {}]   ;;  %s1079_s9 = inlined_call_operand.vmem [shape: f32[14,8,32], index: 9, kind: output, shape index: {}]  }
   0x1 LB: > { %s816_s10 = sadd.s32 4294967295, %s931_s30   ;;  %p820_p0 = scmp.ge.s32.totalorder %s931_s30, 1  ;;  %s931_s30 = sphi %s986_s30, %s19_s30  }
   0x2   : > { %p295_p1 = scmp.lt.s32.totalorder %s931_s30, 15 }
   0x4   : > { %p296_p2 = pnand %p820_p0, %p295_p1 }
   0x5   : > { %p333_p3 = scmp.lt.s32.totalorder (!%p296_p2), %s816_s10, 13  ;;  %v933_v0 = vmov (!%p296_p2), 0.0   ;;  %vm934_vm0 = vmmov (!%p296_p2), 0   ;;  %v495_v1 = vld [vmem:[%s1074_s4] sm:$0xff] (!%p296_p2)  ;;  %v496_v2 = vld [vmem:[%s1074_s4 + $0x8] sm:$0xff] (!%p296_p2)  ;;  %v497_v3 = vld [vmem:[%s1074_s4 + $0x10] sm:$0xff] (!%p296_p2) }
   0x6   : > { %299 = sbr.rel (%p296_p2) target bundleno = 666 (0x29a), region = 56  ;;  %853 = vmatprep.subr.mxu1 (!%p296_p2), %v933_v0  ;;  %855 = vmatprep.mubr.msk.f32.mxu1 (!%p296_p2), %vm934_vm0, %v933_v0  ;;  %v935_v4 = vmov (!%p296_p2), 0.0|0.0   ;;  %v897_v5 = vpack.c.bf16 (!%p296_p2), %v496_v2, %v495_v1  ;;  %v498_v6 = vld [vmem:[%s1074_s4 + $0x18] sm:$0xff] (!%p296_p2)  ;;  %v346_v8 = vld [vmem:[%s1071_s1] sm:$0xff] (!%p296_p2)  ;;  %vm347_vm1 = vcmask (!%p296_p2), 64512   ;;  %v492_v11 = vld [vmem:[%s1073_s3 + $0x8] sm:$0xff] (!%p296_p2) }
   0x7   : > { %896 = vmatprep.subr.bf16.mxu0 (!%p296_p2), %v935_v4  ;;  %871 = vmatprep.mubr.msk.f32.mxu0 (!%p296_p2), %vm934_vm0, %v933_v0  ;;  %v900_v7 = vpack.c.bf16 (!%p296_p2), %v498_v6, %v497_v3  ;;  %v491_v10 = vld [vmem:[%s1073_s3] sm:$0xff] (!%p296_p2)  ;;  %v647_v13 = vld [vmem:[%s1075_s5 + $0x8] sm:$0xff] (!%p296_p2)  ;;  %vm499_vm2 = vcmask (!%p296_p2), 261120   ;;  %v493_v16 = vld [vmem:[%s1073_s3 + $0x10] sm:$0xff] (!%p296_p2) }
   0x8   : > { %898 = vmatpush3.bf16.msra.mxu0 (!%p296_p2), %v897_v5  ;;  %v646_v12 = vld [vmem:[%s1075_s5] sm:$0xff] (!%p296_p2)  ;;  %v903_v14 = vpack.c.bf16 (!%p296_p2), %v492_v11, %v491_v10  ;;  %v494_v17 = vld [vmem:[%s1073_s3 + $0x18] sm:$0xff] (!%p296_p2)  ;;  %v648_v20 = vld [vmem:[%s1075_s5 + $0x10] sm:$0xff] (!%p296_p2) }
   0x9   : > { %899 = vmatprep.subr.bf16.mxu0 (!%p296_p2), %v935_v4  ;;  %v909_v18 = vpack.c.bf16 (!%p296_p2), %v647_v13, %v646_v12  ;;  %v649_v21 = vld [vmem:[%s1075_s5 + $0x18] sm:$0xff] (!%p296_p2)  ;;  %v906_v22 = vpack.c.bf16 (!%p296_p2), %v494_v17, %v493_v16  ;;  %v829_v32 = vld [vmem:[%s1076_s6] ss:$0 sm:$0xff] (!%p296_p2) }
   0xa   : > { %v912_v23 = vpack.c.bf16 (!%p296_p2), %v649_v21, %v648_v20  ;;  %v830_v37 = vld [vmem:[%s1077_s7] ss:$0 sm:$0xff] (!%p296_p2) }
   0xb   : > { %v831_v39 = vld [vmem:[%s1078_s8] ss:$0 sm:$0xff] (!%p296_p2) }
   0xc   : > { %901 = vmatpush3.bf16.msra.mxu0 (!%p296_p2), %v900_v7 }
   0xd   : > { %s1081_s10 = smov (!%p333_p3, %s816_s10), 13  ;;  %908 = vmatprep.subr.bf16.mxu0 %v935_v4 }
   0xe   : > { %s1008_s19 = sshll.u32 %s1081_s10, 3 }
   0xf   : > { %s336_s22 = scalar_lea.vmem %s1070_s0, %s1008_s19  ;;  %s340_s24 = scalar_lea.vmem %s1072_s2, %s1008_s19 }
  0x10   : > { %v345_v9 = vld [vmem:[%s336_s22] sm:$0xff]  ;;  %s344_s13 = scalar_lea.vmem %s1079_s9, %s1008_s19 }
  0x11   : > { %854 = vmatpush3.msra.mxu1 %v345_v9  ;;  %v732_v35 = vld [vmem:[%s340_s24] sm:$0xff] }
  0x12   : > { %856 = vmatmul.mubr.msk.f32.vlgmr.msra.gmra.mrb[0].mxu1 %vm347_vm1, %v346_v8  ;;  %858 = vmatprep.subr.mxu1 %v933_v0 }
  0x13   : > { %860 = vmatprep.mubr.msk.f32.mxu1 %vm934_vm0, %v933_v0 }
  0xe5   : > { %v417_v15 = vpop.f32.mrb[0].mxu1 }
  0xe6   : > { %v857_v19 = vpop.f32.mrb[1].mxu1  ;;  %859 = vmatpush3.msra.mxu1 %v417_v15  ;;  %872 = vmatmul.mubr.msk.f32.vlgmr.msra.gmra.mrb[0].mxu0 %vm499_vm2, %v417_v15 }
  0xe7   : > { %861 = vmatmul.mubr.msk.f32.vlgmr.msra.gmra.mrb[2].mxu1 %vm347_vm1, %v346_v8  ;;  %902 = vmatprep.subr.bf16.mxu1 %v935_v4 }
  0xe8   : > { %904 = vmatpush3.bf16.msra.mxu1 %v903_v14  ;;  %882 = vmatprep.mubr.msk.f32.mxu1 %vm934_vm0, %v933_v0 }
  0xe9   : > { %905 = vmatprep.subr.bf16.mxu1 %v935_v4  ;;  %910 = vmatpush3.bf16.msra.mxu0 %v909_v18 }
  0xea   : > { %911 = vmatprep.subr.bf16.mxu0 %v935_v4  ;;  %893 = vmatprep.mubr.msk.f32.mxu0 %vm934_vm0, %v933_v0 }
  0xec   : > { %907 = vmatpush3.bf16.msra.mxu1 %v906_v22 }
  0xed   : > { %913 = vmatpush3.bf16.msra.mxu0 %v912_v23 }
  0xef   : > { %883 = vmatmul.mubr.msk.f32.vlgmr.msra.gmra.mrb[4].mxu1 %vm499_vm2, %v345_v9 }
 0x1b9   : > { %v569_v24 = vpop.f32.mrb[0].mxu0 }
 0x1ba   : > { %v487_v25 = vpop.f32.mrb[2].mxu1  ;;  %v873_v26 = vpop.f32.mrb[1].mxu0 }
 0x1bb   : > { %894 = vmatmul.mubr.msk.f32.vlgmr.msra.gmra.mrb[2].mxu0 %vm499_vm2, %v487_v25  ;;  %v862_v27 = vpop.f32.mrb[3].mxu1 }
 0x1c2   : > { %v642_v28 = vpop.f32.mrb[4].mxu1 }
 0x1c3   : > { %v643_v29 = vadd.f32 %v642_v28, %v569_v24  ;;  %v884_v30 = vpop.f32.mrb[5].mxu1 }
 0x28e   : > { %v719_v31 = vpop.f32.mrb[2].mxu0 }
 0x28f   : > { %v723_v33 = vadd.f32 %v719_v31, %v643_v29  ;;  %v895_v34 = vpop.f32.mrb[3].mxu0 }
 0x291   : > { %v731_v36 = vadd.f32 %v829_v32, %v723_v33 }
 0x293   : > { %v733_v38 = vadd.f32 %v732_v35, %v731_v36 }
 0x295   : > { %v741_v40 = vmul.f32 %v830_v37, %v733_v38 }
 0x297   : > { %v749_v41 = vadd.f32 %v831_v39, %v741_v40 }
 0x299   : > { %750 = vst.msk [vmem:[%s344_s13] sm:$0xff] %vm499_vm2, %v749_v41 }
 0x29a PF: > { %s19_s30 = sadd.s32 1, %s931_s30  }
 0x29b   : > { %p16_p4 = scmp.ge.s32.totalorder %s19_s30, 16  }
 0x29d   :  { %18 = sbr.rel (!%p16_p4) target bundleno = 1 (0x1), region = 89 }

// kernel: _lambda_.26
= control target key start
LH: loop header
LB: loop body
LE: loop exit
PB: predicated region body
PF: predicated region fallthrough
CT: control target
= control target key end

     0   :  { %vm67_vm0 = vcmask 261120   ;;  %vm841_vm1 = vcmask 523264   ;;  %s1671_s3 = inlined_call_operand.vmem [shape: f32[32,64], index: 3, kind: input, shape index: {}]   ;;  %s1672_s1 = inlined_call_operand.vmem [shape: f32[112,32], index: 1, kind: input, shape index: {}]   ;;  %s1673_s2 = inlined_call_operand.vmem [shape: f32[32,64], index: 2, kind: input, shape index: {}]   ;;  %s1674_s0 = inlined_call_operand.vmem [shape: f32[112,32], index: 0, kind: input, shape index: {}]   ;;  %s1675_s5 = inlined_call_operand.vmem [shape: f32[32,64], index: 5, kind: input, shape index: {}]   ;;  %s1676_s4 = inlined_call_operand.vmem [shape: f32[1,64], index: 4, kind: input, shape index: {}]   ;;  %s1677_s8 = inlined_call_operand.vmem [shape: f32[112,32], index: 8, kind: output, shape index: {0}]   ;;  %s1678_s6 = inlined_call_operand.vmem [shape: f32[1,64], index: 6, kind: input, shape index: {}]   ;;  %s1679_s7 = inlined_call_operand.vmem [shape: f32[112,64], index: 7, kind: input, shape index: {}]   ;;  %s1680_s9 = inlined_call_operand.vmem [shape: f32[112,64], index: 9, kind: output, shape index: {1}]  }
   0x1   :  { %v63_v0 = vld [vmem:[%s1671_s3] sm:$0xff]  ;;  %v64_v1 = vld [vmem:[%s1671_s3 + $0x8] sm:$0xff]  ;;  %v65_v2 = vld [vmem:[%s1671_s3 + $0x10] sm:$0xff] }
   0x2   :  { %v1063_v3 = vpack.c.bf16 %v64_v1, %v63_v0  ;;  %v66_v4 = vld [vmem:[%s1671_s3 + $0x18] sm:$0xff]  ;;  %v49_v5 = vld [vmem:[%s1672_s1] sm:$0xff]  ;;  %v46_v8 = vld [vmem:[%s1673_s2 + $0x8] sm:$0xff] }
   0x3   :  { %v1067_v6 = vpack.c.bf16 %v66_v4, %v65_v2  ;;  %984 = vmatprep.mubr.msk.f32.mxu0 %vm67_vm0, %v49_v5  ;;  %v45_v7 = vld [vmem:[%s1673_s2] sm:$0xff]  ;;  %v47_v10 = vld [vmem:[%s1673_s2 + $0x10] sm:$0xff]  ;;  %v48_v11 = vld [vmem:[%s1673_s2 + $0x18] sm:$0xff] }
   0x4   :  { %1064 = vmatprep.subr.bf16.mxu0 %v1063_v3  ;;  %1087 = vmatprep.subr.bf16.mxu1 %v1063_v3  ;;  %v1071_v9 = vpack.c.bf16 %v46_v8, %v45_v7  ;;  %v50_v12 = vld [vmem:[%s1672_s1 + $0x8] sm:$0xff]  ;;  %v57_v13 = vld [vmem:[%s1672_s1 + $0x40] sm:$0xff]  ;;  %v51_v15 = vld [vmem:[%s1672_s1 + $0x10] sm:$0xff]  ;;  %v1075_v16 = vpack.c.bf16 %v48_v11, %v47_v10 }
   0x5   :  { %1066 = vmatpush3.bf16.msra.mxu0 %v1063_v3  ;;  %1089 = vmatpush3.bf16.msra.mxu1 %v1063_v3  ;;  %v58_v14 = vld [vmem:[%s1672_s1 + $0x48] sm:$0xff]  ;;  %v59_v17 = vld [vmem:[%s1672_s1 + $0x50] sm:$0xff]  ;;  %v52_v18 = vld [vmem:[%s1672_s1 + $0x18] sm:$0xff] }
   0x6   :  { %1068 = vmatprep.subr.bf16.mxu0 %v1067_v6  ;;  %1088 = vmatprep.subr.bf16.mxu1 %v1067_v6  ;;  %v60_v19 = vld [vmem:[%s1672_s1 + $0x58] sm:$0xff]  ;;  %v53_v20 = vld [vmem:[%s1672_s1 + $0x20] sm:$0xff]  ;;  %v54_v22 = vld [vmem:[%s1672_s1 + $0x28] sm:$0xff] }
   0x7   :  { %996 = vmatprep.mubr.msk.f32.mxu1 %vm67_vm0, %v57_v13  ;;  %v61_v21 = vld [vmem:[%s1672_s1 + $0x60] sm:$0xff]  ;;  %v62_v23 = vld [vmem:[%s1672_s1 + $0x68] sm:$0xff]  ;;  %v55_v24 = vld [vmem:[%s1672_s1 + $0x30] sm:$0xff] }
   0x8   :  { %v56_v25 = vld [vmem:[%s1672_s1 + $0x38] sm:$0xff]  ;;  %v31_v26 = vld [vmem:[%s1674_s0] sm:$0xff]  ;;  %v32_v27 = vld [vmem:[%s1674_s0 + $0x8] sm:$0xff] }
   0x9   :  { %1070 = vmatpush3.bf16.msra.mxu0 %v1067_v6  ;;  %1090 = vmatpush3.bf16.msra.mxu1 %v1067_v6  ;;  %v33_v28 = vld [vmem:[%s1674_s0 + $0x10] sm:$0xff]  ;;  %v34_v29 = vld [vmem:[%s1674_s0 + $0x18] sm:$0xff]  ;;  %v35_v30 = vld [vmem:[%s1674_s0 + $0x20] sm:$0xff] }
   0xa   :  { %1072 = vmatprep.subr.bf16.mxu0 %v1071_v9  ;;  %v36_v31 = vld [vmem:[%s1674_s0 + $0x28] sm:$0xff]  ;;  %v37_v32 = vld [vmem:[%s1674_s0 + $0x30] sm:$0xff]  ;;  %v38_v33 = vld [vmem:[%s1674_s0 + $0x38] sm:$0xff] }
   0xb   :  { %v39_v34 = vld [vmem:[%s1674_s0 + $0x40] sm:$0xff]  ;;  %v40_v35 = vld [vmem:[%s1674_s0 + $0x48] sm:$0xff]  ;;  %v41_v36 = vld [vmem:[%s1674_s0 + $0x50] sm:$0xff] }
   0xc   :  { %985 = vmatmul.mubr.msk.f32.vlgmr.msra.gmra.mrb[0].mxu0 %vm67_vm0, %v50_v12  ;;  %997 = vmatmul.mubr.msk.f32.vlgmr.msra.gmra.mrb[0].mxu1 %vm67_vm0, %v58_v14  ;;  %v42_v37 = vld [vmem:[%s1674_s0 + $0x58] sm:$0xff]  ;;  %v43_v38 = vld [vmem:[%s1674_s0 + $0x60] sm:$0xff]  ;;  %v44_v39 = vld [vmem:[%s1674_s0 + $0x68] sm:$0xff] }
   0xd   :  { %1074 = vmatpush3.bf16.msra.mxu0 %v1071_v9  ;;  %987 = vmatprep.mubr.msk.f32.mxu0 %vm67_vm0, %v51_v15  ;;  %v625_v40 = vld [vmem:[%s1675_s5] sm:$0xff]  ;;  %v626_v41 = vld [vmem:[%s1675_s5 + $0x8] sm:$0xff] }
   0xe   :  { %1076 = vmatprep.subr.bf16.mxu0 %v1075_v16  ;;  %999 = vmatprep.mubr.msk.f32.mxu1 %vm67_vm0, %v59_v17  ;;  %v1079_v42 = vpack.c.bf16 %v626_v41, %v625_v40  ;;  %v1390_v49 = vld [vmem:[%s1676_s4] ss:$0 sm:$0xff] }
  0x10   :  { %988 = vmatmul.mubr.msk.f32.gmra.mrb[2].mxu0 %vm67_vm0, %v52_v18  ;;  %1000 = vmatmul.mubr.msk.f32.gmra.mrb[2].mxu1 %vm67_vm0, %v60_v19 }
  0x11   :  { %990 = vmatprep.mubr.msk.f32.mxu0 %vm67_vm0, %v53_v20  ;;  %1078 = vmatpush3.bf16.msra.mxu0 %v1075_v16  ;;  %v627_v20 = vld [vmem:[%s1675_s5 + $0x10] sm:$0xff] }
  0x12   :  { %1002 = vmatprep.mubr.msk.f32.mxu1 %vm67_vm0, %v61_v21  ;;  %1080 = vmatprep.subr.bf16.mxu1 %v1079_v42  ;;  %v628_v21 = vld [vmem:[%s1675_s5 + $0x18] sm:$0xff]  ;;  %s1190_s5 = smov 96  }
  0x13   :  { %1082 = vmatpush3.bf16.msra.mxu1 %v1079_v42 }
  0x14   :  { %991 = vmatmul.mubr.msk.f32.gmra.mrb[4].mxu0 %vm67_vm0, %v54_v22  ;;  %1003 = vmatmul.mubr.msk.f32.gmra.mrb[4].mxu1 %vm67_vm0, %v62_v23 }
  0x15   :  { %993 = vmatprep.mubr.msk.f32.mxu0 %vm67_vm0, %v55_v24 }
  0x18   :  { %994 = vmatmul.mubr.msk.f32.gmra.mrb[6].mxu0 %vm67_vm0, %v56_v25  ;;  %v1083_v25 = vpack.c.bf16 %v628_v21, %v627_v20 }
  0x19   :  { %1013 = vmatprep.mubr.msk.f32.mxu0 %vm67_vm0, %v31_v26 }
  0x1a   :  { %1084 = vmatprep.subr.bf16.mxu1 %v1083_v25 }
  0x1b   :  { %1086 = vmatpush3.bf16.msra.mxu1 %v1083_v25 }
  0x1c   :  { %1014 = vmatmul.mubr.msk.f32.vlgmr.msra.gmra.mrb[0].mxu0 %vm67_vm0, %v32_v27 }
  0x1d   :  { %1016 = vmatprep.mubr.msk.f32.mxu0 %vm67_vm0, %v33_v28 }
  0x20   :  { %1017 = vmatmul.mubr.msk.f32.gmra.mrb[2].mxu0 %vm67_vm0, %v34_v29 }
  0x21   :  { %1019 = vmatprep.mubr.msk.f32.mxu0 %vm67_vm0, %v35_v30 }
  0x24   :  { %1020 = vmatmul.mubr.msk.f32.gmra.mrb[4].mxu0 %vm67_vm0, %v36_v31 }
  0x25   :  { %1022 = vmatprep.mubr.msk.f32.mxu0 %vm67_vm0, %v37_v32 }
  0x28   :  { %1023 = vmatmul.mubr.msk.f32.gmra.mrb[6].mxu0 %vm67_vm0, %v38_v33 }
  0x29   :  { %1025 = vmatprep.mubr.msk.f32.mxu0 %vm67_vm0, %v39_v34 }
  0x2c   :  { %1026 = vmatmul.mubr.msk.f32.gmra.mrb[8].mxu0 %vm67_vm0, %v40_v35 }
  0x2d   :  { %1028 = vmatprep.mubr.msk.f32.mxu0 %vm67_vm0, %v41_v36 }
  0x30   :  { %1029 = vmatmul.mubr.msk.f32.gmra.mrb[10].mxu0 %vm67_vm0, %v42_v37 }
  0x31   :  { %1031 = vmatprep.mubr.msk.f32.mxu0 %vm67_vm0, %v43_v38 }
  0x34   :  { %1032 = vmatmul.mubr.msk.f32.gmra.mrb[12].mxu0 %vm67_vm0, %v44_v39 }
  0xdf   :  { %v998_v43 = vpop.f32.mrb[0].mxu1 }
  0xe0   :  { %v216_v44 = vpop.f32.mrb[1].mxu1 }
  0xe3   :  { %v1001_v45 = vpop.f32.mrb[2].mxu1 }
  0xe4   :  { %v226_v46 = vpop.f32.mrb[3].mxu1 }
  0xe7   :  { %v1383_v47 = vpop.f32.mrb[4].mxu1 }
  0xe8   :  { %v1385_v48 = vpop.f32.mrb[5].mxu1 }
  0xef   :  { %v1015_v50 = vpop.f32.mrb[0].mxu0 }
  0xf0   :  { %v1393_v51 = vadd.f32 %v1015_v50, %v1390_v49  ;;  %v353_v52 = vpop.f32.mrb[1].mxu0 }
  0xf1   :  { %v1396_v53 = vadd.f32 %v1390_v49, %v353_v52 }
  0xf2   :  { %v894_v54 = vmul.f32 -1.442695, %v1393_v51 }
  0xf3   :  { %v893_v55 = vmul.f32 -1.442695, %v1396_v53  ;;  %v1018_v56 = vpop.f32.mrb[2].mxu0 }
  0xf4   :  { %1106 = vpow2.f32 %v894_v54  ;;  %v1401_v57 = vadd.f32 %v1018_v56, %v1390_v49  ;;  %v363_v58 = vpop.f32.mrb[3].mxu0 }
  0xf5   :  { %1108 = vpow2.f32 %v893_v55  ;;  %v1404_v59 = vadd.f32 %v1390_v49, %v363_v58 }
  0xf6   :  { %v896_v60 = vmul.f32 -1.442695, %v1401_v57 }
  0xf7   :  { %v895_v61 = vmul.f32 -1.442695, %v1404_v59  ;;  %v1021_v62 = vpop.f32.mrb[4].mxu0 }
  0xf8   :  { %1110 = vpow2.f32 %v896_v60  ;;  %v1409_v63 = vadd.f32 %v1021_v62, %v1390_v49  ;;  %v373_v0 = vpop.f32.mrb[5].mxu0 }
  0xf9   :  { %1112 = vpow2.f32 %v895_v61  ;;  %v1412_v1 = vadd.f32 %v1390_v49, %v373_v0 }
  0xfa   :  { %v898_v2 = vmul.f32 -1.442695, %v1409_v63 }
  0xfb   :  { %v897_v3 = vmul.f32 -1.442695, %v1412_v1  ;;  %v1024_v4 = vpop.f32.mrb[6].mxu0 }
  0xfc   :  { %1114 = vpow2.f32 %v898_v2  ;;  %v1417_v5 = vadd.f32 %v1024_v4, %v1390_v49  ;;  %v383_v6 = vpop.f32.mrb[7].mxu0 }
  0xfd   :  { %1116 = vpow2.f32 %v897_v3  ;;  %v1420_v7 = vadd.f32 %v1390_v49, %v383_v6 }
  0xfe   :  { %v1107_v8 = vpop.eup %1106  ;;  %v900_v9 = vmul.f32 -1.442695, %v1417_v5 }
  0xff   :  { %v1109_v10 = vpop.eup %1108  ;;  %v899_v11 = vmul.f32 -1.442695, %v1420_v7  ;;  %v1027_v12 = vpop.f32.mrb[8].mxu0  ;;  %v500_v16 = vadd.f32 1.0, %v1107_v8 }
 0x100   :  { %v499_v13 = vadd.f32 1.0, %v1109_v10  ;;  %v399_v14 = vadd.f32 %v1027_v12, %v998_v43  ;;  %v393_v15 = vpop.f32.mrb[9].mxu0  ;;  %1118 = vpow2.f32 %v900_v9 }
 0x101   :  { %v394_v17 = vadd.f32 %v393_v15, %v216_v44 }
 0x102   :  { %v1111_v18 = vpop.eup %1110  ;;  %1120 = vrcp.f32 %v499_v13  ;;  %v1425_v19 = vadd.f32 %v1390_v49, %v399_v14 }
 0x103   :  { %v1113_v22 = vpop.eup %1112  ;;  %1122 = vpow2.f32 %v899_v11  ;;  %v1434_v23 = vadd.f32 %v1390_v49, %v394_v17  ;;  %v1030_v24 = vpop.f32.mrb[10].mxu0  ;;  %v502_v30 = vadd.f32 1.0, %v1111_v18 }
 0x104   :  { %v501_v26 = vadd.f32 1.0, %v1113_v22  ;;  %v902_v27 = vmul.f32 -1.442695, %v1425_v19  ;;  %v409_v28 = vadd.f32 %v1030_v24, %v1001_v45  ;;  %v403_v29 = vpop.f32.mrb[11].mxu0  ;;  %1124 = vrcp.f32 %v500_v16 }
 0x105   :  { %v404_v31 = vadd.f32 %v403_v29, %v226_v46  ;;  %v901_v35 = vmul.f32 -1.442695, %v1434_v23 }
 0x106   :  { %v1115_v32 = vpop.eup %1114  ;;  %1126 = vrcp.f32 %v501_v26  ;;  %v1438_v33 = vadd.f32 %v1390_v49, %v409_v28 }
 0x107   :  { %v1117_v34 = vpop.eup %1116  ;;  %1128 = vpow2.f32 %v902_v27  ;;  %v1033_v36 = vpop.f32.mrb[12].mxu0  ;;  %v504_v40 = vadd.f32 1.0, %v1115_v32  ;;  %v1443_v41 = vadd.f32 %v1390_v49, %v404_v31 }
 0x108   :  { %v503_v37 = vadd.f32 1.0, %v1117_v34  ;;  %v419_v38 = vadd.f32 %v1033_v36, %v1383_v47  ;;  %v413_v39 = vpop.f32.mrb[13].mxu0  ;;  %1130 = vrcp.f32 %v502_v30  ;;  %v904_v43 = vmul.f32 -1.442695, %v1438_v33 }
 0x109   :  { %v414_v42 = vadd.f32 %v413_v39, %v1385_v48  ;;  %v903_v47 = vmul.f32 -1.442695, %v1443_v41 }
 0x10a   :  { %1132 = vrcp.f32 %v503_v37  ;;  %v1119_v44 = vpop.eup %1118  ;;  %v1448_v45 = vadd.f32 %v1390_v49, %v419_v38 }
 0x10b   :  { %1134 = vpow2.f32 %v901_v35  ;;  %v506_v52 = vadd.f32 1.0, %v1119_v44  ;;  %v1453_v48 = vadd.f32 %v1390_v49, %v414_v42 }
 0x10c   :  { %v1121_v46 = vpop.eup %1120  ;;  %1136 = vrcp.f32 %v504_v40  ;;  %v906_v56 = vmul.f32 -1.442695, %v1448_v45 }
 0x10d   :  { %v1123_v50 = vpop.eup %1122  ;;  %555 = vrot.lane.b32.xlu0 %v1121_v46, %s1190_s5  ;;  %1138 = vpow2.f32 %v904_v43  ;;  %v905_v62 = vmul.f32 -1.442695, %v1453_v48 }
 0x10e   :  { %v505_v54 = vadd.f32 1.0, %v1123_v50  ;;  %v1125_v55 = vpop.eup %1124 }
 0x110   :  { %v1127_v58 = vpop.eup %1126  ;;  %1140 = vrcp.f32 %v505_v54 }
 0x111   :  { %v1129_v60 = vpop.eup %1128  ;;  %1142 = vpow2.f32 %v903_v47  ;;  %557 = vrot.lane.b32.xlu0 %v1125_v55, %s1190_s5  ;;  %559 = vrot.lane.b32.xlu1 %v1127_v58, %s1190_s5 }
 0x112   :  { %1144 = vrcp.f32 %v506_v52  ;;  %v508_v61 = vadd.f32 1.0, %v1129_v60  ;;  %v1131_v0 = vpop.eup %1130 }
 0x113   :  { %1146 = vpow2.f32 %v906_v56 }
 0x114   :  { %v1133_v2 = vpop.eup %1132  ;;  %1148 = vrcp.f32 %v508_v61 }
 0x115   :  { %v1135_v49 = vpop.eup %1134  ;;  %561 = vrot.lane.b32.xlu1 %v1131_v0, %s1190_s5  ;;  %563 = vrot.lane.b32.xlu0 %v1133_v2, %s1190_s5  ;;  %1150 = vpow2.f32 %v905_v62  ;;  %v1557_v62 = vld [vmem:[%s1678_s6] ss:$0 sm:$0xff]  ;;  %v814_v2 = vld [vmem:[%s1679_s7 + $0x8] sm:$0xff] }
 0x116   :  { %v507_v3 = vadd.f32 1.0, %v1135_v49  ;;  %v1137_v4 = vpop.eup %1136 }
 0x117   :  { %v1139_v6 = vpop.eup %1138 }
 0x118   :  { %1152 = vrcp.f32 %v507_v3  ;;  %v510_v8 = vadd.f32 1.0, %v1139_v6 }
 0x119   :  { %565 = vrot.lane.b32.xlu1 %v1137_v4, %s1190_s5  ;;  %v813_v4 = vld [vmem:[%s1679_s7] sm:$0xff] }
 0x11a   :  { %v1141_v9 = vpop.eup %1140  ;;  %1154 = vrcp.f32 %v510_v8 }
 0x11b   :  { %v1143_v10 = vpop.eup %1142  ;;  %567 = vrot.lane.b32.xlu0 %v1141_v9, %s1190_s5 }
 0x11c   :  { %v1145_v11 = vpop.eup %1144  ;;  %v509_v12 = vadd.f32 1.0, %v1143_v10 }
 0x11d   :  { %v1147_v13 = vpop.eup %1146  ;;  %569 = vrot.lane.b32.xlu1 %v1145_v11, %s1190_s5  ;;  %v816_v11 = vld [vmem:[%s1679_s7 + $0x18] sm:$0xff] }
 0x11e   :  { %1156 = vrcp.f32 %v509_v12  ;;  %v512_v14 = vadd.f32 1.0, %v1147_v13  ;;  %v1149_v15 = vpop.eup %1148 }
 0x11f   :  { %v1151_v16 = vpop.eup %1150 }
 0x120   :  { %1158 = vrcp.f32 %v512_v14  ;;  %v511_v17 = vadd.f32 1.0, %v1151_v16  ;;  %v815_v14 = vld [vmem:[%s1679_s7 + $0x10] sm:$0xff] }
 0x121   :  { %573 = vrot.lane.b32.xlu1 %v1149_v15, %s1190_s5 }
 0x122   :  { %v1153_v18 = vpop.eup %1152  ;;  %1160 = vrcp.f32 %v511_v17 }
 0x123   :  { %571 = vrot.lane.b32.xlu0 %v1153_v18, %s1190_s5  ;;  %1162 = vtanh.f32 %v1396_v53 }
 0x124   :  { %v1155_v20 = vpop.eup %1154  ;;  %1164 = vtanh.f32 %v1393_v51 }
 0x125   :  { %577 = vrot.lane.b32.xlu1 %v1155_v20, %s1190_s5  ;;  %1166 = vtanh.f32 %v1404_v59  ;;  %v818_v20 = vld [vmem:[%s1679_s7 + $0x28] sm:$0xff] }
 0x126   :  { %1168 = vtanh.f32 %v1401_v57 }
 0x127   :  { %1170 = vtanh.f32 %v1412_v1 }
 0x128   :  { %v1157_v21 = vpop.eup %1156  ;;  %1172 = vtanh.f32 %v1409_v63 }
 0x129   :  { %575 = vrot.lane.b32.xlu0 %v1157_v21, %s1190_s5  ;;  %1174 = vtanh.f32 %v1420_v7 }
 0x12a   :  { %v1159_v22 = vpop.eup %1158  ;;  %1176 = vtanh.f32 %v1417_v5 }
 0x12b   :  { %581 = vrot.lane.b32.xlu1 %v1159_v22, %s1190_s5  ;;  %1178 = vtanh.f32 %v1425_v19 }
 0x12c   :  { %v1161_v24 = vpop.eup %1160  ;;  %1180 = vtanh.f32 %v1434_v23 }
 0x12d   :  { %579 = vrot.lane.b32.xlu0 %v1161_v24, %s1190_s5  ;;  %v1163_v25 = vpop.eup %1162  ;;  %1182 = vtanh.f32 %v1438_v33  ;;  %v817_v24 = vld [vmem:[%s1679_s7 + $0x20] sm:$0xff] }
 0x12e   :  { %v1165_v28 = vpop.eup %1164  ;;  %1184 = vtanh.f32 %v1443_v41 }
 0x12f   :  { %v1167_v51 = vpop.eup %1166  ;;  %1186 = vtanh.f32 %v1448_v45 }
 0x130   :  { %v1169_v29 = vpop.eup %1168  ;;  %1188 = vtanh.f32 %v1453_v48 }
 0x131   :  { %v1171_v63 = vpop.eup %1170 }
 0x132   :  { %v1173_v32 = vpop.eup %1172 }
 0x133   :  { %v1175_v19 = vpop.eup %1174 }
 0x134   :  { %v1177_v38 = vpop.eup %1176 }
 0x135   :  { %v1179_v33 = vpop.eup %1178 }
 0x136   :  { %v1181_v43 = vpop.eup %1180 }
 0x137   :  { %v1183_v41 = vpop.eup %1182 }
 0x138   :  { %v1185_v47 = vpop.eup %1184 }
 0x139   :  { %v1187_v48 = vpop.eup %1186 }
 0x13a   :  { %v1189_v58 = vpop.eup %1188 }
 0x17f   :  { %v556_v26 = vpop.permute.xlu0 %555 }
 0x180   :  { %v597_v27 = vmul.f32 %v1163_v25, %v556_v26 }
 0x182   :  { %611 = vst.msk [vmem:[%s1677_s8] sm:$0xff] %vm67_vm0, %v597_v27  ;;  %1042 = vmatprep.mubr.msk.f32.mxu1 %vm67_vm0, %v597_v27 }
 0x183   :  { %v558_v53 = vpop.permute.xlu0 %557  ;;  %v560_v57 = vpop.permute.xlu1 %559 }
 0x184   :  { %v598_v59 = vmul.f32 %v1165_v28, %v558_v53  ;;  %v599_v1 = vmul.f32 %v1167_v51, %v560_v57  ;;  %v820_v51 = vld [vmem:[%s1679_s7 + $0x38] sm:$0xff] }
 0x186   :  { %612 = vst.msk [vmem:[%s1677_s8 + $0x8] sm:$0xff] %vm67_vm0, %v598_v59  ;;  %613 = vst.msk [vmem:[%s1677_s8 + $0x10] sm:$0xff] %vm67_vm0, %v599_v1  ;;  %1043 = vmatmul.mubr.msk.f32.vlgmr.msra.gmra.mrb[6].mxu1 %vm67_vm0, %v598_v59  ;;  %v819_v59 = vld [vmem:[%s1679_s7 + $0x30] sm:$0xff] }
 0x187   :  { %v562_v7 = vpop.permute.xlu1 %561  ;;  %1045 = vmatprep.mubr.msk.f32.mxu1 %vm67_vm0, %v599_v1  ;;  %v564_v30 = vpop.permute.xlu0 %563 }
 0x188   :  { %v600_v31 = vmul.f32 %v1169_v29, %v562_v7  ;;  %v601_v5 = vmul.f32 %v1171_v63, %v564_v30  ;;  %v822_v30 = vld [vmem:[%s1679_s7 + $0x48] sm:$0xff] }
 0x18a   :  { %614 = vst.msk [vmem:[%s1677_s8 + $0x18] sm:$0xff] %vm67_vm0, %v600_v31  ;;  %615 = vst.msk [vmem:[%s1677_s8 + $0x20] sm:$0xff] %vm67_vm0, %v601_v5  ;;  %1046 = vmatmul.mubr.msk.f32.gmra.mrb[8].mxu1 %vm67_vm0, %v600_v31 }
 0x18b   :  { %v566_v34 = vpop.permute.xlu1 %565  ;;  %1048 = vmatprep.mubr.msk.f32.mxu1 %vm67_vm0, %v601_v5 }
 0x18c   :  { %v602_v35 = vmul.f32 %v1173_v32, %v566_v34  ;;  %v821_v32 = vld [vmem:[%s1679_s7 + $0x40] sm:$0xff] }
 0x18d   :  { %v568_v36 = vpop.permute.xlu0 %567 }
 0x18e   :  { %616 = vst.msk [vmem:[%s1677_s8 + $0x28] sm:$0xff] %vm67_vm0, %v602_v35  ;;  %v603_v37 = vmul.f32 %v1175_v19, %v568_v36  ;;  %1049 = vmatmul.mubr.msk.f32.gmra.mrb[10].mxu1 %vm67_vm0, %v602_v35 }
 0x18f   :  { %v570_v39 = vpop.permute.xlu1 %569 }
 0x190   :  { %617 = vst.msk [vmem:[%s1677_s8 + $0x30] sm:$0xff] %vm67_vm0, %v603_v37  ;;  %v604_v23 = vmul.f32 %v1177_v38, %v570_v39  ;;  %1051 = vmatprep.mubr.msk.f32.mxu1 %vm67_vm0, %v603_v37  ;;  %v824_v37 = vld [vmem:[%s1679_s7 + $0x58] sm:$0xff] }
 0x192   :  { %618 = vst.msk [vmem:[%s1677_s8 + $0x38] sm:$0xff] %vm67_vm0, %v604_v23  ;;  %1052 = vmatmul.mubr.msk.f32.gmra.mrb[12].mxu1 %vm67_vm0, %v604_v23  ;;  %v823_v23 = vld [vmem:[%s1679_s7 + $0x50] sm:$0xff] }
 0x193   :  { %v574_v40 = vpop.permute.xlu1 %573 }
 0x194   :  { %v606_v42 = vmul.f32 %v1179_v33, %v574_v40 }
 0x195   :  { %v572_v44 = vpop.permute.xlu0 %571 }
 0x196   :  { %v605_v46 = vmul.f32 %v1181_v43, %v572_v44  ;;  %620 = vst.msk [vmem:[%s1677_s8 + $0x48] sm:$0xff] %vm67_vm0, %v606_v42  ;;  %v826_v44 = vld [vmem:[%s1679_s7 + $0x68] sm:$0xff] }
 0x197   :  { %v578_v45 = vpop.permute.xlu1 %577 }
 0x198   :  { %619 = vst.msk [vmem:[%s1677_s8 + $0x40] sm:$0xff] %vm67_vm0, %v605_v46  ;;  %1054 = vmatprep.mubr.msk.f32.mxu1 %vm67_vm0, %v605_v46  ;;  %v608_v50 = vmul.f32 %v1183_v41, %v578_v45  ;;  %v825_v45 = vld [vmem:[%s1679_s7 + $0x60] sm:$0xff] }
 0x199   :  { %1055 = vmatmul.mubr.msk.f32.gmra.mrb[14].mxu1 %vm67_vm0, %v606_v42 }
 0x19a   :  { %622 = vst.msk [vmem:[%s1677_s8 + $0x58] sm:$0xff] %vm67_vm0, %v608_v50 }
 0x19b   :  { %v576_v52 = vpop.permute.xlu0 %575 }
 0x19c   :  { %v607_v54 = vmul.f32 %v1185_v47, %v576_v52 }
 0x19d   :  { %v582_v55 = vpop.permute.xlu1 %581 }
 0x19e   :  { %621 = vst.msk [vmem:[%s1677_s8 + $0x50] sm:$0xff] %vm67_vm0, %v607_v54  ;;  %1057 = vmatprep.mubr.msk.f32.mxu1 %vm67_vm0, %v607_v54  ;;  %v610_v56 = vmul.f32 %v1187_v48, %v582_v55 }
 0x19f   :  { %1058 = vmatmul.mubr.msk.f32.gmra.mrb[16].mxu1 %vm67_vm0, %v608_v50  ;;  %v580_v60 = vpop.permute.xlu0 %579 }
 0x1a0   :  { %624 = vst.msk [vmem:[%s1677_s8 + $0x68] sm:$0xff] %vm67_vm0, %v610_v56  ;;  %v609_v61 = vmul.f32 %v1189_v58, %v580_v60 }
 0x1a2   :  { %623 = vst.msk [vmem:[%s1677_s8 + $0x60] sm:$0xff] %vm67_vm0, %v609_v61  ;;  %1060 = vmatprep.mubr.msk.f32.mxu1 %vm67_vm0, %v609_v61 }
 0x1a3   :  { %1061 = vmatmul.mubr.msk.f32.gmra.mrb[18].mxu1 %vm67_vm0, %v610_v56 }
 0x259   :  { %v1044_v0 = vpop.f32.mrb[6].mxu1 }
 0x25a   :  { %v750_v49 = vadd.f32 %v1044_v0, %v1557_v62  ;;  %v744_v3 = vpop.f32.mrb[7].mxu1 }
 0x25b   :  { %v745_v6 = vadd.f32 %v1557_v62, %v744_v3 }
 0x25c   :  { %v828_v8 = vadd.f32 %v814_v2, %v750_v49 }
 0x25d   :  { %v827_v9 = vadd.f32 %v813_v4, %v745_v6  ;;  %v1047_v10 = vpop.f32.mrb[8].mxu1 }
 0x25e   :  { %843 = vst.msk [vmem:[%s1680_s9 + $0x8] sm:$0xff] %vm841_vm1, %v828_v8  ;;  %v760_v12 = vadd.f32 %v1047_v10, %v1557_v62  ;;  %v754_v13 = vpop.f32.mrb[9].mxu1 }
 0x25f   :  { %842 = vst.msk [vmem:[%s1680_s9] sm:$0xff] %vm841_vm1, %v827_v9  ;;  %v755_v15 = vadd.f32 %v1557_v62, %v754_v13 }
 0x260   :  { %v830_v16 = vadd.f32 %v816_v11, %v760_v12 }
 0x261   :  { %v829_v17 = vadd.f32 %v815_v14, %v755_v15  ;;  %v1050_v18 = vpop.f32.mrb[10].mxu1 }
 0x262   :  { %845 = vst.msk [vmem:[%s1680_s9 + $0x18] sm:$0xff] %vm841_vm1, %v830_v16  ;;  %v770_v21 = vadd.f32 %v1050_v18, %v1557_v62  ;;  %v764_v22 = vpop.f32.mrb[11].mxu1 }
 0x263   :  { %844 = vst.msk [vmem:[%s1680_s9 + $0x10] sm:$0xff] %vm841_vm1, %v829_v17  ;;  %v765_v25 = vadd.f32 %v1557_v62, %v764_v22 }
 0x264   :  { %v832_v26 = vadd.f32 %v818_v20, %v770_v21 }
 0x265   :  { %v831_v27 = vadd.f32 %v817_v24, %v765_v25  ;;  %v1053_v28 = vpop.f32.mrb[12].mxu1 }
 0x266   :  { %847 = vst.msk [vmem:[%s1680_s9 + $0x28] sm:$0xff] %vm841_vm1, %v832_v26  ;;  %v780_v53 = vadd.f32 %v1053_v28, %v1557_v62  ;;  %v774_v57 = vpop.f32.mrb[13].mxu1 }
 0x267   :  { %846 = vst.msk [vmem:[%s1680_s9 + $0x20] sm:$0xff] %vm841_vm1, %v831_v27  ;;  %v775_v1 = vadd.f32 %v1557_v62, %v774_v57 }
 0x268   :  { %v834_v29 = vadd.f32 %v820_v51, %v780_v53 }
 0x269   :  { %v833_v63 = vadd.f32 %v819_v59, %v775_v1 }
 0x26a   :  { %849 = vst.msk [vmem:[%s1680_s9 + $0x38] sm:$0xff] %vm841_vm1, %v834_v29 }
 0x26b   :  { %848 = vst.msk [vmem:[%s1680_s9 + $0x30] sm:$0xff] %vm841_vm1, %v833_v63 }
 0x26c   :  { %v1056_v7 = vpop.f32.mrb[14].mxu1 }
 0x26d   :  { %v790_v31 = vadd.f32 %v1056_v7, %v1557_v62  ;;  %v784_v5 = vpop.f32.mrb[15].mxu1 }
 0x26e   :  { %v785_v34 = vadd.f32 %v1557_v62, %v784_v5 }
 0x26f   :  { %v836_v35 = vadd.f32 %v822_v30, %v790_v31 }
 0x270   :  { %v835_v19 = vadd.f32 %v821_v32, %v785_v34 }
 0x271   :  { %851 = vst.msk [vmem:[%s1680_s9 + $0x48] sm:$0xff] %vm841_vm1, %v836_v35 }
 0x272   :  { %850 = vst.msk [vmem:[%s1680_s9 + $0x40] sm:$0xff] %vm841_vm1, %v835_v19  ;;  %v1059_v36 = vpop.f32.mrb[16].mxu1 }
 0x273   :  { %v800_v38 = vadd.f32 %v1059_v36, %v1557_v62  ;;  %v794_v39 = vpop.f32.mrb[17].mxu1 }
 0x274   :  { %v795_v33 = vadd.f32 %v1557_v62, %v794_v39 }
 0x275   :  { %v838_v40 = vadd.f32 %v824_v37, %v800_v38 }
 0x276   :  { %v837_v42 = vadd.f32 %v823_v23, %v795_v33  ;;  %v1062_v43 = vpop.f32.mrb[18].mxu1 }
 0x277   :  { %853 = vst.msk [vmem:[%s1680_s9 + $0x58] sm:$0xff] %vm841_vm1, %v838_v40  ;;  %v810_v46 = vadd.f32 %v1062_v43, %v1557_v62  ;;  %v804_v41 = vpop.f32.mrb[19].mxu1 }
 0x278   :  { %852 = vst.msk [vmem:[%s1680_s9 + $0x50] sm:$0xff] %vm841_vm1, %v837_v42  ;;  %v805_v50 = vadd.f32 %v1557_v62, %v804_v41 }
 0x279   :  { %v840_v47 = vadd.f32 %v826_v44, %v810_v46 }
 0x27a   :  { %v839_v52 = vadd.f32 %v825_v45, %v805_v50 }
 0x27b   :  { %855 = vst.msk [vmem:[%s1680_s9 + $0x68] sm:$0xff] %vm841_vm1, %v840_v47 }
 0x27c   :  { %854 = vst.msk [vmem:[%s1680_s9 + $0x60] sm:$0xff] %vm841_vm1, %v839_v52 }

// kernel: _lambda_.28
= control target key start
LH: loop header
LB: loop body
LE: loop exit
PB: predicated region body
PF: predicated region fallthrough
CT: control target
= control target key end

     0   :  { %vm63_vm0 = vcmask 261120   ;;  %vm757_vm1 = vcmask 523264   ;;  %s1474_s3 = inlined_call_operand.vmem [shape: f32[32,64], index: 3, kind: input, shape index: {}]   ;;  %s1475_s1 = inlined_call_operand.vmem [shape: f32[96,32], index: 1, kind: input, shape index: {}]   ;;  %s1476_s2 = inlined_call_operand.vmem [shape: f32[32,64], index: 2, kind: input, shape index: {}]   ;;  %s1477_s0 = inlined_call_operand.vmem [shape: f32[96,32], index: 0, kind: input, shape index: {}]   ;;  %s1478_s5 = inlined_call_operand.vmem [shape: f32[32,64], index: 5, kind: input, shape index: {}]   ;;  %s1479_s4 = inlined_call_operand.vmem [shape: f32[1,64], index: 4, kind: input, shape index: {}]   ;;  %s1480_s8 = inlined_call_operand.vmem [shape: f32[96,32], index: 8, kind: output, shape index: {0}]   ;;  %s1481_s6 = inlined_call_operand.vmem [shape: f32[1,64], index: 6, kind: input, shape index: {}]   ;;  %s1482_s7 = inlined_call_operand.vmem [shape: f32[96,64], index: 7, kind: input, shape index: {}]   ;;  %s1483_s9 = inlined_call_operand.vmem [shape: f32[96,64], index: 9, kind: output, shape index: {1}]  }
   0x1   :  { %v59_v0 = vld [vmem:[%s1474_s3] sm:$0xff]  ;;  %v60_v1 = vld [vmem:[%s1474_s3 + $0x8] sm:$0xff]  ;;  %v61_v2 = vld [vmem:[%s1474_s3 + $0x10] sm:$0xff] }
   0x2   :  { %v954_v3 = vpack.c.bf16 %v60_v1, %v59_v0  ;;  %v62_v4 = vld [vmem:[%s1474_s3 + $0x18] sm:$0xff]  ;;  %v47_v5 = vld [vmem:[%s1475_s1] sm:$0xff]  ;;  %v44_v8 = vld [vmem:[%s1476_s2 + $0x8] sm:$0xff] }
   0x3   :  { %v958_v6 = vpack.c.bf16 %v62_v4, %v61_v2  ;;  %884 = vmatprep.mubr.msk.f32.mxu0 %vm63_vm0, %v47_v5  ;;  %v43_v7 = vld [vmem:[%s1476_s2] sm:$0xff]  ;;  %v45_v10 = vld [vmem:[%s1476_s2 + $0x10] sm:$0xff]  ;;  %v46_v11 = vld [vmem:[%s1476_s2 + $0x18] sm:$0xff] }
   0x4   :  { %955 = vmatprep.subr.bf16.mxu0 %v954_v3  ;;  %978 = vmatprep.subr.bf16.mxu1 %v954_v3  ;;  %v962_v9 = vpack.c.bf16 %v44_v8, %v43_v7  ;;  %v53_v12 = vld [vmem:[%s1475_s1 + $0x30] sm:$0xff]  ;;  %v48_v13 = vld [vmem:[%s1475_s1 + $0x8] sm:$0xff]  ;;  %v54_v14 = vld [vmem:[%s1475_s1 + $0x38] sm:$0xff]  ;;  %v966_v16 = vpack.c.bf16 %v46_v11, %v45_v10 }
   0x5   :  { %957 = vmatpush3.bf16.msra.mxu0 %v954_v3  ;;  %980 = vmatpush3.bf16.msra.mxu1 %v954_v3  ;;  %v49_v15 = vld [vmem:[%s1475_s1 + $0x10] sm:$0xff]  ;;  %v55_v17 = vld [vmem:[%s1475_s1 + $0x40] sm:$0xff]  ;;  %v50_v18 = vld [vmem:[%s1475_s1 + $0x18] sm:$0xff] }
   0x6   :  { %959 = vmatprep.subr.bf16.mxu0 %v958_v6  ;;  %979 = vmatprep.subr.bf16.mxu1 %v958_v6  ;;  %v56_v19 = vld [vmem:[%s1475_s1 + $0x48] sm:$0xff]  ;;  %v51_v20 = vld [vmem:[%s1475_s1 + $0x20] sm:$0xff]  ;;  %v57_v21 = vld [vmem:[%s1475_s1 + $0x50] sm:$0xff] }
   0x7   :  { %893 = vmatprep.mubr.msk.f32.mxu1 %vm63_vm0, %v53_v12  ;;  %v52_v22 = vld [vmem:[%s1475_s1 + $0x28] sm:$0xff]  ;;  %v58_v23 = vld [vmem:[%s1475_s1 + $0x58] sm:$0xff]  ;;  %v31_v24 = vld [vmem:[%s1477_s0] sm:$0xff] }
   0x8   :  { %v32_v25 = vld [vmem:[%s1477_s0 + $0x8] sm:$0xff]  ;;  %v33_v26 = vld [vmem:[%s1477_s0 + $0x10] sm:$0xff]  ;;  %v34_v27 = vld [vmem:[%s1477_s0 + $0x18] sm:$0xff] }
   0x9   :  { %961 = vmatpush3.bf16.msra.mxu0 %v958_v6  ;;  %981 = vmatpush3.bf16.msra.mxu1 %v958_v6  ;;  %v35_v28 = vld [vmem:[%s1477_s0 + $0x20] sm:$0xff]  ;;  %v36_v29 = vld [vmem:[%s1477_s0 + $0x28] sm:$0xff]  ;;  %v37_v30 = vld [vmem:[%s1477_s0 + $0x30] sm:$0xff] }
   0xa   :  { %963 = vmatprep.subr.bf16.mxu0 %v962_v9  ;;  %v38_v31 = vld [vmem:[%s1477_s0 + $0x38] sm:$0xff]  ;;  %v39_v32 = vld [vmem:[%s1477_s0 + $0x40] sm:$0xff]  ;;  %v40_v33 = vld [vmem:[%s1477_s0 + $0x48] sm:$0xff] }
   0xb   :  { %v41_v34 = vld [vmem:[%s1477_s0 + $0x50] sm:$0xff]  ;;  %v42_v35 = vld [vmem:[%s1477_s0 + $0x58] sm:$0xff]  ;;  %v561_v36 = vld [vmem:[%s1478_s5] sm:$0xff] }
   0xc   :  { %885 = vmatmul.mubr.msk.f32.vlgmr.msra.gmra.mrb[0].mxu0 %vm63_vm0, %v48_v13  ;;  %894 = vmatmul.mubr.msk.f32.vlgmr.msra.gmra.mrb[0].mxu1 %vm63_vm0, %v54_v14  ;;  %v562_v37 = vld [vmem:[%s1478_s5 + $0x8] sm:$0xff]  ;;  %v1247_v45 = vld [vmem:[%s1479_s4] ss:$0 sm:$0xff] }
   0xd   :  { %965 = vmatpush3.bf16.msra.mxu0 %v962_v9  ;;  %887 = vmatprep.mubr.msk.f32.mxu0 %vm63_vm0, %v49_v15  ;;  %v970_v38 = vpack.c.bf16 %v562_v37, %v561_v36 }
   0xe   :  { %967 = vmatprep.subr.bf16.mxu0 %v966_v16  ;;  %896 = vmatprep.mubr.msk.f32.mxu1 %vm63_vm0, %v55_v17  ;;  %v564_v17 = vld [vmem:[%s1478_s5 + $0x18] sm:$0xff] }
   0xf   :  { %971 = vmatprep.subr.bf16.mxu1 %v970_v38 }
  0x10   :  { %888 = vmatmul.mubr.msk.f32.gmra.mrb[2].mxu0 %vm63_vm0, %v50_v18  ;;  %897 = vmatmul.mubr.msk.f32.gmra.mrb[2].mxu1 %vm63_vm0, %v56_v19 }
  0x11   :  { %890 = vmatprep.mubr.msk.f32.mxu0 %vm63_vm0, %v51_v20  ;;  %969 = vmatpush3.bf16.msra.mxu0 %v966_v16  ;;  %v563_v16 = vld [vmem:[%s1478_s5 + $0x10] sm:$0xff]  ;;  %s1067_s5 = smov 96  }
  0x12   :  { %899 = vmatprep.mubr.msk.f32.mxu1 %vm63_vm0, %v57_v21  ;;  %973 = vmatpush3.bf16.msra.mxu1 %v970_v38 }
  0x14   :  { %891 = vmatmul.mubr.msk.f32.gmra.mrb[4].mxu0 %vm63_vm0, %v52_v22  ;;  %900 = vmatmul.mubr.msk.f32.gmra.mrb[4].mxu1 %vm63_vm0, %v58_v23  ;;  %v974_v22 = vpack.c.bf16 %v564_v17, %v563_v16 }
  0x15   :  { %910 = vmatprep.mubr.msk.f32.mxu0 %vm63_vm0, %v31_v24 }
  0x16   :  { %975 = vmatprep.subr.bf16.mxu1 %v974_v22 }
  0x17   :  { %977 = vmatpush3.bf16.msra.mxu1 %v974_v22 }
  0x18   :  { %911 = vmatmul.mubr.msk.f32.vlgmr.msra.gmra.mrb[0].mxu0 %vm63_vm0, %v32_v25 }
  0x19   :  { %913 = vmatprep.mubr.msk.f32.mxu0 %vm63_vm0, %v33_v26 }
  0x1c   :  { %914 = vmatmul.mubr.msk.f32.gmra.mrb[2].mxu0 %vm63_vm0, %v34_v27 }
  0x1d   :  { %916 = vmatprep.mubr.msk.f32.mxu0 %vm63_vm0, %v35_v28 }
  0x20   :  { %917 = vmatmul.mubr.msk.f32.gmra.mrb[4].mxu0 %vm63_vm0, %v36_v29 }
  0x21   :  { %919 = vmatprep.mubr.msk.f32.mxu0 %vm63_vm0, %v37_v30 }
  0x24   :  { %920 = vmatmul.mubr.msk.f32.gmra.mrb[6].mxu0 %vm63_vm0, %v38_v31 }
  0x25   :  { %922 = vmatprep.mubr.msk.f32.mxu0 %vm63_vm0, %v39_v32 }
  0x28   :  { %923 = vmatmul.mubr.msk.f32.gmra.mrb[8].mxu0 %vm63_vm0, %v40_v33 }
  0x29   :  { %925 = vmatprep.mubr.msk.f32.mxu0 %vm63_vm0, %v41_v34 }
  0x2c   :  { %926 = vmatmul.mubr.msk.f32.gmra.mrb[10].mxu0 %vm63_vm0, %v42_v35 }
  0xdf   :  { %v895_v39 = vpop.f32.mrb[0].mxu1 }
  0xe0   :  { %v196_v40 = vpop.f32.mrb[1].mxu1 }
  0xe3   :  { %v898_v41 = vpop.f32.mrb[2].mxu1 }
  0xe4   :  { %v206_v42 = vpop.f32.mrb[3].mxu1 }
  0xe7   :  { %v901_v43 = vpop.f32.mrb[4].mxu1 }
  0xe8   :  { %v216_v44 = vpop.f32.mrb[5].mxu1 }
  0xeb   :  { %v912_v46 = vpop.f32.mrb[0].mxu0 }
  0xec   :  { %v1250_v47 = vadd.f32 %v912_v46, %v1247_v45  ;;  %v327_v48 = vpop.f32.mrb[1].mxu0 }
  0xed   :  { %v1253_v49 = vadd.f32 %v1247_v45, %v327_v48 }
  0xee   :  { %v804_v50 = vmul.f32 -1.442695, %v1250_v47 }
  0xef   :  { %v803_v51 = vmul.f32 -1.442695, %v1253_v49  ;;  %v915_v52 = vpop.f32.mrb[2].mxu0 }
  0xf0   :  { %995 = vpow2.f32 %v804_v50  ;;  %v1258_v53 = vadd.f32 %v915_v52, %v1247_v45  ;;  %v337_v54 = vpop.f32.mrb[3].mxu0 }
  0xf1   :  { %997 = vpow2.f32 %v803_v51  ;;  %v1261_v55 = vadd.f32 %v1247_v45, %v337_v54 }
  0xf2   :  { %v806_v56 = vmul.f32 -1.442695, %v1258_v53 }
  0xf3   :  { %v805_v57 = vmul.f32 -1.442695, %v1261_v55  ;;  %v918_v58 = vpop.f32.mrb[4].mxu0 }
  0xf4   :  { %999 = vpow2.f32 %v806_v56  ;;  %v1266_v59 = vadd.f32 %v918_v58, %v1247_v45  ;;  %v347_v60 = vpop.f32.mrb[5].mxu0 }
  0xf5   :  { %1001 = vpow2.f32 %v805_v57  ;;  %v1269_v61 = vadd.f32 %v1247_v45, %v347_v60 }
  0xf6   :  { %v808_v62 = vmul.f32 -1.442695, %v1266_v59 }
  0xf7   :  { %v807_v63 = vmul.f32 -1.442695, %v1269_v61  ;;  %v921_v0 = vpop.f32.mrb[6].mxu0 }
  0xf8   :  { %1003 = vpow2.f32 %v808_v62  ;;  %v363_v1 = vadd.f32 %v921_v0, %v895_v39  ;;  %v357_v2 = vpop.f32.mrb[7].mxu0 }
  0xf9   :  { %1005 = vpow2.f32 %v807_v63  ;;  %v358_v3 = vadd.f32 %v357_v2, %v196_v40 }
  0xfa   :  { %v996_v4 = vpop.eup %995  ;;  %v1274_v5 = vadd.f32 %v1247_v45, %v363_v1 }
  0xfb   :  { %v998_v6 = vpop.eup %997  ;;  %v1277_v7 = vadd.f32 %v1247_v45, %v358_v3  ;;  %v924_v8 = vpop.f32.mrb[8].mxu0  ;;  %v454_v13 = vadd.f32 1.0, %v996_v4 }
  0xfc   :  { %v453_v9 = vadd.f32 1.0, %v998_v6  ;;  %v810_v10 = vmul.f32 -1.442695, %v1274_v5  ;;  %v373_v11 = vadd.f32 %v924_v8, %v898_v41  ;;  %v367_v12 = vpop.f32.mrb[9].mxu0 }
  0xfd   :  { %v368_v14 = vadd.f32 %v367_v12, %v206_v42  ;;  %v809_v19 = vmul.f32 -1.442695, %v1277_v7 }
  0xfe   :  { %v1000_v15 = vpop.eup %999  ;;  %1007 = vrcp.f32 %v453_v9  ;;  %v1288_v20 = vadd.f32 %v1247_v45, %v373_v11 }
  0xff   :  { %v1002_v18 = vpop.eup %1001  ;;  %1009 = vpow2.f32 %v810_v10  ;;  %v927_v21 = vpop.f32.mrb[10].mxu0  ;;  %v456_v26 = vadd.f32 1.0, %v1000_v15  ;;  %v1291_v27 = vadd.f32 %v1247_v45, %v368_v14 }
 0x100   :  { %v455_v23 = vadd.f32 1.0, %v1002_v18  ;;  %v383_v24 = vadd.f32 %v927_v21, %v901_v43  ;;  %v377_v25 = vpop.f32.mrb[11].mxu0  ;;  %1011 = vrcp.f32 %v454_v13  ;;  %v812_v31 = vmul.f32 -1.442695, %v1288_v20 }
 0x101   :  { %v378_v28 = vadd.f32 %v377_v25, %v216_v44  ;;  %v811_v34 = vmul.f32 -1.442695, %v1291_v27 }
 0x102   :  { %v1004_v29 = vpop.eup %1003  ;;  %1013 = vrcp.f32 %v455_v23  ;;  %v1295_v32 = vadd.f32 %v1247_v45, %v383_v24 }
 0x103   :  { %v1006_v30 = vpop.eup %1005  ;;  %1015 = vpow2.f32 %v809_v19  ;;  %v458_v35 = vadd.f32 1.0, %v1004_v29  ;;  %v1299_v36 = vadd.f32 %v1247_v45, %v378_v28 }
 0x104   :  { %v457_v33 = vadd.f32 1.0, %v1006_v30  ;;  %1017 = vrcp.f32 %v456_v26  ;;  %v814_v37 = vmul.f32 -1.442695, %v1295_v32 }
 0x105   :  { %v813_v41 = vmul.f32 -1.442695, %v1299_v36 }
 0x106   :  { %1019 = vrcp.f32 %v457_v33 }
 0x107   :  { %1021 = vpow2.f32 %v812_v31 }
 0x108   :  { %v1008_v38 = vpop.eup %1007  ;;  %1023 = vpow2.f32 %v811_v34 }
 0x109   :  { %v1010_v39 = vpop.eup %1009  ;;  %501 = vrot.lane.b32.xlu0 %v1008_v38, %s1067_s5  ;;  %1025 = vrcp.f32 %v458_v35  ;;  %v815_v35 = vld [vmem:[%s1481_s6] ss:$0 sm:$0xff] }
 0x10a   :  { %v460_v40 = vadd.f32 1.0, %v1010_v39  ;;  %v1012_v42 = vpop.eup %1011  ;;  %1027 = vpow2.f32 %v814_v37  ;;  %v734_v37 = vld [vmem:[%s1482_s7 + $0x8] sm:$0xff] }
 0x10c   :  { %v1014_v43 = vpop.eup %1013  ;;  %1029 = vrcp.f32 %v460_v40  ;;  %v733_v40 = vld [vmem:[%s1482_s7] sm:$0xff] }
 0x10d   :  { %v1016_v44 = vpop.eup %1015  ;;  %503 = vrot.lane.b32.xlu0 %v1012_v42, %s1067_s5  ;;  %505 = vrot.lane.b32.xlu1 %v1014_v43, %s1067_s5  ;;  %1031 = vpow2.f32 %v813_v41 }
 0x10e   :  { %v459_v45 = vadd.f32 1.0, %v1016_v44  ;;  %v1018_v46 = vpop.eup %1017 }
 0x110   :  { %v1020_v48 = vpop.eup %1019  ;;  %1033 = vrcp.f32 %v459_v45  ;;  %v736_v45 = vld [vmem:[%s1482_s7 + $0x18] sm:$0xff] }
 0x111   :  { %v1022_v50 = vpop.eup %1021  ;;  %507 = vrot.lane.b32.xlu1 %v1018_v46, %s1067_s5  ;;  %509 = vrot.lane.b32.xlu0 %v1020_v48, %s1067_s5 }
 0x112   :  { %v462_v51 = vadd.f32 1.0, %v1022_v50  ;;  %v1024_v52 = vpop.eup %1023  ;;  %v735_v50 = vld [vmem:[%s1482_s7 + $0x10] sm:$0xff] }
 0x113   :  { %v1026_v54 = vpop.eup %1025  ;;  %v461_v56 = vadd.f32 1.0, %v1024_v52 }
 0x114   :  { %1035 = vrcp.f32 %v462_v51  ;;  %v1028_v57 = vpop.eup %1027 }
 0x115   :  { %511 = vrot.lane.b32.xlu1 %v1026_v54, %s1067_s5  ;;  %1037 = vrcp.f32 %v461_v56  ;;  %v464_v58 = vadd.f32 1.0, %v1028_v57  ;;  %v738_v57 = vld [vmem:[%s1482_s7 + $0x28] sm:$0xff] }
 0x116   :  { %v1030_v60 = vpop.eup %1029 }
 0x117   :  { %v1032_v62 = vpop.eup %1031  ;;  %1039 = vrcp.f32 %v464_v58 }
 0x118   :  { %v463_v63 = vadd.f32 1.0, %v1032_v62  ;;  %v737_v62 = vld [vmem:[%s1482_s7 + $0x20] sm:$0xff] }
 0x119   :  { %515 = vrot.lane.b32.xlu1 %v1030_v60, %s1067_s5 }
 0x11a   :  { %v1034_v0 = vpop.eup %1033  ;;  %1041 = vrcp.f32 %v463_v63 }
 0x11b   :  { %513 = vrot.lane.b32.xlu0 %v1034_v0, %s1067_s5  ;;  %1043 = vtanh.f32 %v1253_v49 }
 0x11c   :  { %1045 = vtanh.f32 %v1250_v47 }
 0x11d   :  { %1047 = vtanh.f32 %v1261_v55 }
 0x11e   :  { %v1036_v1 = vpop.eup %1035  ;;  %1049 = vtanh.f32 %v1258_v53 }
 0x11f   :  { %519 = vrot.lane.b32.xlu1 %v1036_v1, %s1067_s5  ;;  %v1038_v2 = vpop.eup %1037  ;;  %1051 = vtanh.f32 %v1269_v61 }
 0x120   :  { %517 = vrot.lane.b32.xlu0 %v1038_v2, %s1067_s5  ;;  %1053 = vtanh.f32 %v1266_v59 }
 0x121   :  { %v1040_v3 = vpop.eup %1039  ;;  %1055 = vtanh.f32 %v1274_v5 }
 0x122   :  { %1057 = vtanh.f32 %v1277_v7 }
 0x123   :  { %523 = vrot.lane.b32.xlu1 %v1040_v3, %s1067_s5  ;;  %1059 = vtanh.f32 %v1288_v20  ;;  %v740_v3 = vld [vmem:[%s1482_s7 + $0x38] sm:$0xff] }
 0x124   :  { %v1042_v4 = vpop.eup %1041  ;;  %1061 = vtanh.f32 %v1291_v27 }
 0x125   :  { %521 = vrot.lane.b32.xlu0 %v1042_v4, %s1067_s5  ;;  %v1044_v6 = vpop.eup %1043  ;;  %1063 = vtanh.f32 %v1295_v32 }
 0x126   :  { %v1046_v10 = vpop.eup %1045  ;;  %1065 = vtanh.f32 %v1299_v36 }
 0x127   :  { %v1048_v47 = vpop.eup %1047 }
 0x128   :  { %v1050_v61 = vpop.eup %1049 }
 0x129   :  { %v1052_v59 = vpop.eup %1051 }
 0x12a   :  { %v1054_v15 = vpop.eup %1053 }
 0x12b   :  { %v1056_v17 = vpop.eup %1055 }
 0x12c   :  { %v1058_v21 = vpop.eup %1057 }
 0x12d   :  { %v1060_v23 = vpop.eup %1059 }
 0x12e   :  { %v1062_v26 = vpop.eup %1061 }
 0x12f   :  { %v1064_v29 = vpop.eup %1063 }
 0x130   :  { %v1066_v32 = vpop.eup %1065 }
 0x17b   :  { %v502_v8 = vpop.permute.xlu0 %501 }
 0x17c   :  { %v537_v9 = vmul.f32 %v1044_v6, %v502_v8  ;;  %v739_v8 = vld [vmem:[%s1482_s7 + $0x30] sm:$0xff] }
 0x17e   :  { %549 = vst.msk [vmem:[%s1480_s8] sm:$0xff] %vm63_vm0, %v537_v9  ;;  %936 = vmatprep.mubr.msk.f32.mxu1 %vm63_vm0, %v537_v9 }
 0x17f   :  { %v504_v49 = vpop.permute.xlu0 %503  ;;  %v506_v55 = vpop.permute.xlu1 %505 }
 0x180   :  { %v538_v11 = vmul.f32 %v1046_v10, %v504_v49  ;;  %v539_v53 = vmul.f32 %v1048_v47, %v506_v55  ;;  %v742_v55 = vld [vmem:[%s1482_s7 + $0x48] sm:$0xff] }
 0x182   :  { %550 = vst.msk [vmem:[%s1480_s8 + $0x8] sm:$0xff] %vm63_vm0, %v538_v11  ;;  %551 = vst.msk [vmem:[%s1480_s8 + $0x10] sm:$0xff] %vm63_vm0, %v539_v53  ;;  %937 = vmatmul.mubr.msk.f32.vlgmr.msra.gmra.mrb[6].mxu1 %vm63_vm0, %v538_v11 }
 0x183   :  { %v508_v12 = vpop.permute.xlu1 %507  ;;  %939 = vmatprep.mubr.msk.f32.mxu1 %vm63_vm0, %v539_v53  ;;  %v510_v5 = vpop.permute.xlu0 %509 }
 0x184   :  { %v540_v13 = vmul.f32 %v1050_v61, %v508_v12  ;;  %v541_v14 = vmul.f32 %v1052_v59, %v510_v5  ;;  %v741_v61 = vld [vmem:[%s1482_s7 + $0x40] sm:$0xff] }
 0x186   :  { %552 = vst.msk [vmem:[%s1480_s8 + $0x18] sm:$0xff] %vm63_vm0, %v540_v13  ;;  %553 = vst.msk [vmem:[%s1480_s8 + $0x20] sm:$0xff] %vm63_vm0, %v541_v14  ;;  %940 = vmatmul.mubr.msk.f32.gmra.mrb[8].mxu1 %vm63_vm0, %v540_v13 }
 0x187   :  { %v512_v7 = vpop.permute.xlu1 %511  ;;  %942 = vmatprep.mubr.msk.f32.mxu1 %vm63_vm0, %v541_v14  ;;  %v744_v14 = vld [vmem:[%s1482_s7 + $0x58] sm:$0xff] }
 0x188   :  { %v542_v16 = vmul.f32 %v1054_v15, %v512_v7 }
 0x18a   :  { %554 = vst.msk [vmem:[%s1480_s8 + $0x28] sm:$0xff] %vm63_vm0, %v542_v16  ;;  %943 = vmatmul.mubr.msk.f32.gmra.mrb[10].mxu1 %vm63_vm0, %v542_v16  ;;  %v743_v16 = vld [vmem:[%s1482_s7 + $0x50] sm:$0xff] }
 0x18b   :  { %v516_v18 = vpop.permute.xlu1 %515 }
 0x18c   :  { %v544_v19 = vmul.f32 %v1056_v17, %v516_v18 }
 0x18d   :  { %v514_v20 = vpop.permute.xlu0 %513 }
 0x18e   :  { %v543_v22 = vmul.f32 %v1058_v21, %v514_v20  ;;  %556 = vst.msk [vmem:[%s1480_s8 + $0x38] sm:$0xff] %vm63_vm0, %v544_v19 }
 0x190   :  { %555 = vst.msk [vmem:[%s1480_s8 + $0x30] sm:$0xff] %vm63_vm0, %v543_v22  ;;  %945 = vmatprep.mubr.msk.f32.mxu1 %vm63_vm0, %v543_v22 }
 0x191   :  { %946 = vmatmul.mubr.msk.f32.gmra.mrb[12].mxu1 %vm63_vm0, %v544_v19  ;;  %v520_v24 = vpop.permute.xlu1 %519 }
 0x192   :  { %v546_v25 = vmul.f32 %v1060_v23, %v520_v24  ;;  %v518_v27 = vpop.permute.xlu0 %517 }
 0x193   :  { %v545_v28 = vmul.f32 %v1062_v26, %v518_v27 }
 0x194   :  { %558 = vst.msk [vmem:[%s1480_s8 + $0x48] sm:$0xff] %vm63_vm0, %v546_v25 }
 0x195   :  { %v524_v30 = vpop.permute.xlu1 %523  ;;  %557 = vst.msk [vmem:[%s1480_s8 + $0x40] sm:$0xff] %vm63_vm0, %v545_v28  ;;  %948 = vmatprep.mubr.msk.f32.mxu1 %vm63_vm0, %v545_v28 }
 0x196   :  { %v548_v31 = vmul.f32 %v1064_v29, %v524_v30  ;;  %949 = vmatmul.mubr.msk.f32.gmra.mrb[14].mxu1 %vm63_vm0, %v546_v25 }
 0x197   :  { %v522_v33 = vpop.permute.xlu0 %521 }
 0x198   :  { %560 = vst.msk [vmem:[%s1480_s8 + $0x58] sm:$0xff] %vm63_vm0, %v548_v31  ;;  %v547_v34 = vmul.f32 %v1066_v32, %v522_v33 }
 0x19a   :  { %559 = vst.msk [vmem:[%s1480_s8 + $0x50] sm:$0xff] %vm63_vm0, %v547_v34  ;;  %951 = vmatprep.mubr.msk.f32.mxu1 %vm63_vm0, %v547_v34 }
 0x19b   :  { %952 = vmatmul.mubr.msk.f32.gmra.mrb[16].mxu1 %vm63_vm0, %v548_v31 }
 0x255   :  { %v938_v36 = vpop.f32.mrb[6].mxu1 }
 0x256   :  { %v680_v38 = vadd.f32 %v938_v36, %v815_v35  ;;  %v674_v39 = vpop.f32.mrb[7].mxu1 }
 0x257   :  { %v675_v41 = vadd.f32 %v815_v35, %v674_v39 }
 0x258   :  { %v746_v42 = vadd.f32 %v734_v37, %v680_v38 }
 0x259   :  { %v745_v43 = vadd.f32 %v733_v40, %v675_v41  ;;  %v941_v44 = vpop.f32.mrb[8].mxu1 }
 0x25a   :  { %759 = vst.msk [vmem:[%s1483_s9 + $0x8] sm:$0xff] %vm757_vm1, %v746_v42  ;;  %v690_v46 = vadd.f32 %v941_v44, %v815_v35  ;;  %v684_v48 = vpop.f32.mrb[9].mxu1 }
 0x25b   :  { %758 = vst.msk [vmem:[%s1483_s9] sm:$0xff] %vm757_vm1, %v745_v43  ;;  %v685_v51 = vadd.f32 %v815_v35, %v684_v48 }
 0x25c   :  { %v748_v52 = vadd.f32 %v736_v45, %v690_v46 }
 0x25d   :  { %v747_v54 = vadd.f32 %v735_v50, %v685_v51  ;;  %v944_v56 = vpop.f32.mrb[10].mxu1 }
 0x25e   :  { %761 = vst.msk [vmem:[%s1483_s9 + $0x18] sm:$0xff] %vm757_vm1, %v748_v52  ;;  %v700_v58 = vadd.f32 %v944_v56, %v815_v35  ;;  %v694_v60 = vpop.f32.mrb[11].mxu1 }
 0x25f   :  { %760 = vst.msk [vmem:[%s1483_s9 + $0x10] sm:$0xff] %vm757_vm1, %v747_v54  ;;  %v695_v63 = vadd.f32 %v815_v35, %v694_v60 }
 0x260   :  { %v750_v0 = vadd.f32 %v738_v57, %v700_v58 }
 0x261   :  { %v749_v1 = vadd.f32 %v737_v62, %v695_v63 }
 0x262   :  { %763 = vst.msk [vmem:[%s1483_s9 + $0x28] sm:$0xff] %vm757_vm1, %v750_v0 }
 0x263   :  { %762 = vst.msk [vmem:[%s1483_s9 + $0x20] sm:$0xff] %vm757_vm1, %v749_v1 }
 0x264   :  { %v947_v2 = vpop.f32.mrb[12].mxu1 }
 0x265   :  { %v710_v4 = vadd.f32 %v947_v2, %v815_v35  ;;  %v704_v6 = vpop.f32.mrb[13].mxu1 }
 0x266   :  { %v705_v9 = vadd.f32 %v815_v35, %v704_v6 }
 0x267   :  { %v752_v10 = vadd.f32 %v740_v3, %v710_v4 }
 0x268   :  { %v751_v47 = vadd.f32 %v739_v8, %v705_v9 }
 0x269   :  { %765 = vst.msk [vmem:[%s1483_s9 + $0x38] sm:$0xff] %vm757_vm1, %v752_v10  ;;  %v950_v49 = vpop.f32.mrb[14].mxu1 }
 0x26a   :  { %764 = vst.msk [vmem:[%s1483_s9 + $0x30] sm:$0xff] %vm757_vm1, %v751_v47  ;;  %v720_v11 = vadd.f32 %v950_v49, %v815_v35  ;;  %v714_v53 = vpop.f32.mrb[15].mxu1 }
 0x26b   :  { %v715_v59 = vadd.f32 %v815_v35, %v714_v53 }
 0x26c   :  { %v754_v12 = vadd.f32 %v742_v55, %v720_v11 }
 0x26d   :  { %v753_v5 = vadd.f32 %v741_v61, %v715_v59 }
 0x26e   :  { %767 = vst.msk [vmem:[%s1483_s9 + $0x48] sm:$0xff] %vm757_vm1, %v754_v12  ;;  %v953_v13 = vpop.f32.mrb[16].mxu1 }
 0x26f   :  { %766 = vst.msk [vmem:[%s1483_s9 + $0x40] sm:$0xff] %vm757_vm1, %v753_v5  ;;  %v730_v15 = vadd.f32 %v953_v13, %v815_v35  ;;  %v724_v7 = vpop.f32.mrb[17].mxu1 }
 0x270   :  { %v725_v17 = vadd.f32 %v815_v35, %v724_v7 }
 0x271   :  { %v756_v18 = vadd.f32 %v744_v14, %v730_v15 }
 0x272   :  { %v755_v19 = vadd.f32 %v743_v16, %v725_v17 }
 0x273   :  { %769 = vst.msk [vmem:[%s1483_s9 + $0x58] sm:$0xff] %vm757_vm1, %v756_v18 }
 0x274   :  { %768 = vst.msk [vmem:[%s1483_s9 + $0x50] sm:$0xff] %vm757_vm1, %v755_v19 }

// kernel: _lambda_.29
= control target key start
LH: loop header
LB: loop body
LE: loop exit
PB: predicated region body
PF: predicated region fallthrough
CT: control target
= control target key end

     0   :  { %s986_s30 = smov 0   ;;  %s1070_s0 = inlined_call_operand.vmem [shape: f32[12,8,32], index: 0, kind: input, shape index: {}]   ;;  %s1071_s1 = inlined_call_operand.vmem [shape: f32[8,8], index: 1, kind: input, shape index: {}]   ;;  %s1072_s2 = inlined_call_operand.vmem [shape: f32[12,8,32], index: 2, kind: input, shape index: {}]   ;;  %s1073_s3 = inlined_call_operand.vmem [shape: f32[32,32], index: 3, kind: input, shape index: {}]   ;;  %s1074_s4 = inlined_call_operand.vmem [shape: f32[32,32], index: 4, kind: input, shape index: {}]   ;;  %s1075_s5 = inlined_call_operand.vmem [shape: f32[32,32], index: 5, kind: input, shape index: {}]   ;;  %s1076_s6 = inlined_call_operand.vmem [shape: f32[1,32], index: 6, kind: input, shape index: {}]   ;;  %s1077_s7 = inlined_call_operand.vmem [shape: f32[1,32], index: 7, kind: input, shape index: {}]   ;;  %s1078_s8 = inlined_call_operand.vmem [shape: f32[1,32], index: 8, kind: input, shape index: {}]   ;;  %s1079_s9 = inlined_call_operand.vmem [shape: f32[12,8,32], index: 9, kind: output, shape index: {}]  }
   0x1 LB: > { %s816_s10 = sadd.s32 4294967295, %s931_s30   ;;  %p820_p0 = scmp.ge.s32.totalorder %s931_s30, 1  ;;  %s931_s30 = sphi %s986_s30, %s19_s30  }
   0x2   : > { %p295_p1 = scmp.lt.s32.totalorder %s931_s30, 13 }
   0x4   : > { %p296_p2 = pnand %p820_p0, %p295_p1 }
   0x5   : > { %p333_p3 = scmp.lt.s32.totalorder (!%p296_p2), %s816_s10, 11  ;;  %v933_v0 = vmov (!%p296_p2), 0.0   ;;  %vm934_vm0 = vmmov (!%p296_p2), 0   ;;  %v495_v1 = vld [vmem:[%s1074_s4] sm:$0xff] (!%p296_p2)  ;;  %v496_v2 = vld [vmem:[%s1074_s4 + $0x8] sm:$0xff] (!%p296_p2)  ;;  %v497_v3 = vld [vmem:[%s1074_s4 + $0x10] sm:$0xff] (!%p296_p2) }
   0x6   : > { %299 = sbr.rel (%p296_p2) target bundleno = 666 (0x29a), region = 56  ;;  %853 = vmatprep.subr.mxu1 (!%p296_p2), %v933_v0  ;;  %855 = vmatprep.mubr.msk.f32.mxu1 (!%p296_p2), %vm934_vm0, %v933_v0  ;;  %v935_v4 = vmov (!%p296_p2), 0.0|0.0   ;;  %v897_v5 = vpack.c.bf16 (!%p296_p2), %v496_v2, %v495_v1  ;;  %v498_v6 = vld [vmem:[%s1074_s4 + $0x18] sm:$0xff] (!%p296_p2)  ;;  %v346_v8 = vld [vmem:[%s1071_s1] sm:$0xff] (!%p296_p2)  ;;  %vm347_vm1 = vcmask (!%p296_p2), 64512   ;;  %v492_v11 = vld [vmem:[%s1073_s3 + $0x8] sm:$0xff] (!%p296_p2) }
   0x7   : > { %896 = vmatprep.subr.bf16.mxu0 (!%p296_p2), %v935_v4  ;;  %871 = vmatprep.mubr.msk.f32.mxu0 (!%p296_p2), %vm934_vm0, %v933_v0  ;;  %v900_v7 = vpack.c.bf16 (!%p296_p2), %v498_v6, %v497_v3  ;;  %v491_v10 = vld [vmem:[%s1073_s3] sm:$0xff] (!%p296_p2)  ;;  %v647_v13 = vld [vmem:[%s1075_s5 + $0x8] sm:$0xff] (!%p296_p2)  ;;  %vm499_vm2 = vcmask (!%p296_p2), 261120   ;;  %v493_v16 = vld [vmem:[%s1073_s3 + $0x10] sm:$0xff] (!%p296_p2) }
   0x8   : > { %898 = vmatpush3.bf16.msra.mxu0 (!%p296_p2), %v897_v5  ;;  %v646_v12 = vld [vmem:[%s1075_s5] sm:$0xff] (!%p296_p2)  ;;  %v903_v14 = vpack.c.bf16 (!%p296_p2), %v492_v11, %v491_v10  ;;  %v494_v17 = vld [vmem:[%s1073_s3 + $0x18] sm:$0xff] (!%p296_p2)  ;;  %v648_v20 = vld [vmem:[%s1075_s5 + $0x10] sm:$0xff] (!%p296_p2) }
   0x9   : > { %899 = vmatprep.subr.bf16.mxu0 (!%p296_p2), %v935_v4  ;;  %v909_v18 = vpack.c.bf16 (!%p296_p2), %v647_v13, %v646_v12  ;;  %v649_v21 = vld [vmem:[%s1075_s5 + $0x18] sm:$0xff] (!%p296_p2)  ;;  %v906_v22 = vpack.c.bf16 (!%p296_p2), %v494_v17, %v493_v16  ;;  %v829_v32 = vld [vmem:[%s1076_s6] ss:$0 sm:$0xff] (!%p296_p2) }
   0xa   : > { %v912_v23 = vpack.c.bf16 (!%p296_p2), %v649_v21, %v648_v20  ;;  %v830_v37 = vld [vmem:[%s1077_s7] ss:$0 sm:$0xff] (!%p296_p2) }
   0xb   : > { %v831_v39 = vld [vmem:[%s1078_s8] ss:$0 sm:$0xff] (!%p296_p2) }
   0xc   : > { %901 = vmatpush3.bf16.msra.mxu0 (!%p296_p2), %v900_v7 }
   0xd   : > { %s1081_s10 = smov (!%p333_p3, %s816_s10), 11  ;;  %908 = vmatprep.subr.bf16.mxu0 %v935_v4 }
   0xe   : > { %s1008_s19 = sshll.u32 %s1081_s10, 3 }
   0xf   : > { %s336_s22 = scalar_lea.vmem %s1070_s0, %s1008_s19  ;;  %s340_s24 = scalar_lea.vmem %s1072_s2, %s1008_s19 }
  0x10   : > { %v345_v9 = vld [vmem:[%s336_s22] sm:$0xff]  ;;  %s344_s13 = scalar_lea.vmem %s1079_s9, %s1008_s19 }
  0x11   : > { %854 = vmatpush3.msra.mxu1 %v345_v9  ;;  %v732_v35 = vld [vmem:[%s340_s24] sm:$0xff] }
  0x12   : > { %856 = vmatmul.mubr.msk.f32.vlgmr.msra.gmra.mrb[0].mxu1 %vm347_vm1, %v346_v8  ;;  %858 = vmatprep.subr.mxu1 %v933_v0 }
  0x13   : > { %860 = vmatprep.mubr.msk.f32.mxu1 %vm934_vm0, %v933_v0 }
  0xe5   : > { %v417_v15 = vpop.f32.mrb[0].mxu1 }
  0xe6   : > { %v857_v19 = vpop.f32.mrb[1].mxu1  ;;  %859 = vmatpush3.msra.mxu1 %v417_v15  ;;  %872 = vmatmul.mubr.msk.f32.vlgmr.msra.gmra.mrb[0].mxu0 %vm499_vm2, %v417_v15 }
  0xe7   : > { %861 = vmatmul.mubr.msk.f32.vlgmr.msra.gmra.mrb[2].mxu1 %vm347_vm1, %v346_v8  ;;  %902 = vmatprep.subr.bf16.mxu1 %v935_v4 }
  0xe8   : > { %904 = vmatpush3.bf16.msra.mxu1 %v903_v14  ;;  %882 = vmatprep.mubr.msk.f32.mxu1 %vm934_vm0, %v933_v0 }
  0xe9   : > { %905 = vmatprep.subr.bf16.mxu1 %v935_v4  ;;  %910 = vmatpush3.bf16.msra.mxu0 %v909_v18 }
  0xea   : > { %911 = vmatprep.subr.bf16.mxu0 %v935_v4  ;;  %893 = vmatprep.mubr.msk.f32.mxu0 %vm934_vm0, %v933_v0 }
  0xec   : > { %907 = vmatpush3.bf16.msra.mxu1 %v906_v22 }
  0xed   : > { %913 = vmatpush3.bf16.msra.mxu0 %v912_v23 }
  0xef   : > { %883 = vmatmul.mubr.msk.f32.vlgmr.msra.gmra.mrb[4].mxu1 %vm499_vm2, %v345_v9 }
 0x1b9   : > { %v569_v24 = vpop.f32.mrb[0].mxu0 }
 0x1ba   : > { %v487_v25 = vpop.f32.mrb[2].mxu1  ;;  %v873_v26 = vpop.f32.mrb[1].mxu0 }
 0x1bb   : > { %894 = vmatmul.mubr.msk.f32.vlgmr.msra.gmra.mrb[2].mxu0 %vm499_vm2, %v487_v25  ;;  %v862_v27 = vpop.f32.mrb[3].mxu1 }
 0x1c2   : > { %v642_v28 = vpop.f32.mrb[4].mxu1 }
 0x1c3   : > { %v643_v29 = vadd.f32 %v642_v28, %v569_v24  ;;  %v884_v30 = vpop.f32.mrb[5].mxu1 }
 0x28e   : > { %v719_v31 = vpop.f32.mrb[2].mxu0 }
 0x28f   : > { %v723_v33 = vadd.f32 %v719_v31, %v643_v29  ;;  %v895_v34 = vpop.f32.mrb[3].mxu0 }
 0x291   : > { %v731_v36 = vadd.f32 %v829_v32, %v723_v33 }
 0x293   : > { %v733_v38 = vadd.f32 %v732_v35, %v731_v36 }
 0x295   : > { %v741_v40 = vmul.f32 %v830_v37, %v733_v38 }
 0x297   : > { %v749_v41 = vadd.f32 %v831_v39, %v741_v40 }
 0x299   : > { %750 = vst.msk [vmem:[%s344_s13] sm:$0xff] %vm499_vm2, %v749_v41 }
 0x29a PF: > { %s19_s30 = sadd.s32 1, %s931_s30  }
 0x29b   : > { %p16_p4 = scmp.ge.s32.totalorder %s19_s30, 14  }
 0x29d   :  { %18 = sbr.rel (!%p16_p4) target bundleno = 1 (0x1), region = 89 }

// kernel: _lambda_.31
= control target key start
LH: loop header
LB: loop body
LE: loop exit
PB: predicated region body
PF: predicated region fallthrough
CT: control target
= control target key end

     0   :  { %s986_s30 = smov 0   ;;  %s1070_s0 = inlined_call_operand.vmem [shape: f32[8,8,32], index: 0, kind: input, shape index: {}]   ;;  %s1071_s1 = inlined_call_operand.vmem [shape: f32[8,8], index: 1, kind: input, shape index: {}]   ;;  %s1072_s2 = inlined_call_operand.vmem [shape: f32[8,8,32], index: 2, kind: input, shape index: {}]   ;;  %s1073_s3 = inlined_call_operand.vmem [shape: f32[32,32], index: 3, kind: input, shape index: {}]   ;;  %s1074_s4 = inlined_call_operand.vmem [shape: f32[32,32], index: 4, kind: input, shape index: {}]   ;;  %s1075_s5 = inlined_call_operand.vmem [shape: f32[32,32], index: 5, kind: input, shape index: {}]   ;;  %s1076_s6 = inlined_call_operand.vmem [shape: f32[1,32], index: 6, kind: input, shape index: {}]   ;;  %s1077_s7 = inlined_call_operand.vmem [shape: f32[1,32], index: 7, kind: input, shape index: {}]   ;;  %s1078_s8 = inlined_call_operand.vmem [shape: f32[1,32], index: 8, kind: input, shape index: {}]   ;;  %s1079_s9 = inlined_call_operand.vmem [shape: f32[8,8,32], index: 9, kind: output, shape index: {}]  }
   0x1 LB: > { %s816_s10 = sadd.s32 4294967295, %s931_s30   ;;  %p820_p0 = scmp.ge.s32.totalorder %s931_s30, 1  ;;  %s931_s30 = sphi %s986_s30, %s19_s30  }
   0x2   : > { %p295_p1 = scmp.lt.s32.totalorder %s931_s30, 9 }
   0x4   : > { %p296_p2 = pnand %p820_p0, %p295_p1 }
   0x5   : > { %p333_p3 = scmp.lt.s32.totalorder (!%p296_p2), %s816_s10, 7  ;;  %v933_v0 = vmov (!%p296_p2), 0.0   ;;  %vm934_vm0 = vmmov (!%p296_p2), 0   ;;  %v495_v1 = vld [vmem:[%s1074_s4] sm:$0xff] (!%p296_p2)  ;;  %v496_v2 = vld [vmem:[%s1074_s4 + $0x8] sm:$0xff] (!%p296_p2)  ;;  %v497_v3 = vld [vmem:[%s1074_s4 + $0x10] sm:$0xff] (!%p296_p2) }
   0x6   : > { %299 = sbr.rel (%p296_p2) target bundleno = 666 (0x29a), region = 56  ;;  %853 = vmatprep.subr.mxu1 (!%p296_p2), %v933_v0  ;;  %855 = vmatprep.mubr.msk.f32.mxu1 (!%p296_p2), %vm934_vm0, %v933_v0  ;;  %v935_v4 = vmov (!%p296_p2), 0.0|0.0   ;;  %v897_v5 = vpack.c.bf16 (!%p296_p2), %v496_v2, %v495_v1  ;;  %v498_v6 = vld [vmem:[%s1074_s4 + $0x18] sm:$0xff] (!%p296_p2)  ;;  %v346_v8 = vld [vmem:[%s1071_s1] sm:$0xff] (!%p296_p2)  ;;  %vm347_vm1 = vcmask (!%p296_p2), 64512   ;;  %v492_v11 = vld [vmem:[%s1073_s3 + $0x8] sm:$0xff] (!%p296_p2) }
   0x7   : > { %896 = vmatprep.subr.bf16.mxu0 (!%p296_p2), %v935_v4  ;;  %871 = vmatprep.mubr.msk.f32.mxu0 (!%p296_p2), %vm934_vm0, %v933_v0  ;;  %v900_v7 = vpack.c.bf16 (!%p296_p2), %v498_v6, %v497_v3  ;;  %v491_v10 = vld [vmem:[%s1073_s3] sm:$0xff] (!%p296_p2)  ;;  %v647_v13 = vld [vmem:[%s1075_s5 + $0x8] sm:$0xff] (!%p296_p2)  ;;  %vm499_vm2 = vcmask (!%p296_p2), 261120   ;;  %v493_v16 = vld [vmem:[%s1073_s3 + $0x10] sm:$0xff] (!%p296_p2) }
   0x8   : > { %898 = vmatpush3.bf16.msra.mxu0 (!%p296_p2), %v897_v5  ;;  %v646_v12 = vld [vmem:[%s1075_s5] sm:$0xff] (!%p296_p2)  ;;  %v903_v14 = vpack.c.bf16 (!%p296_p2), %v492_v11, %v491_v10  ;;  %v494_v17 = vld [vmem:[%s1073_s3 + $0x18] sm:$0xff] (!%p296_p2)  ;;  %v648_v20 = vld [vmem:[%s1075_s5 + $0x10] sm:$0xff] (!%p296_p2) }
   0x9   : > { %899 = vmatprep.subr.bf16.mxu0 (!%p296_p2), %v935_v4  ;;  %v909_v18 = vpack.c.bf16 (!%p296_p2), %v647_v13, %v646_v12  ;;  %v649_v21 = vld [vmem:[%s1075_s5 + $0x18] sm:$0xff] (!%p296_p2)  ;;  %v906_v22 = vpack.c.bf16 (!%p296_p2), %v494_v17, %v493_v16  ;;  %v829_v32 = vld [vmem:[%s1076_s6] ss:$0 sm:$0xff] (!%p296_p2) }
   0xa   : > { %v912_v23 = vpack.c.bf16 (!%p296_p2), %v649_v21, %v648_v20  ;;  %v830_v37 = vld [vmem:[%s1077_s7] ss:$0 sm:$0xff] (!%p296_p2) }
   0xb   : > { %v831_v39 = vld [vmem:[%s1078_s8] ss:$0 sm:$0xff] (!%p296_p2) }
   0xc   : > { %901 = vmatpush3.bf16.msra.mxu0 (!%p296_p2), %v900_v7 }
   0xd   : > { %s1081_s10 = smov (!%p333_p3, %s816_s10), 7  ;;  %908 = vmatprep.subr.bf16.mxu0 %v935_v4 }
   0xe   : > { %s1008_s19 = sshll.u32 %s1081_s10, 3 }
   0xf   : > { %s336_s22 = scalar_lea.vmem %s1070_s0, %s1008_s19  ;;  %s340_s24 = scalar_lea.vmem %s1072_s2, %s1008_s19 }
  0x10   : > { %v345_v9 = vld [vmem:[%s336_s22] sm:$0xff]  ;;  %s344_s13 = scalar_lea.vmem %s1079_s9, %s1008_s19 }
  0x11   : > { %854 = vmatpush3.msra.mxu1 %v345_v9  ;;  %v732_v35 = vld [vmem:[%s340_s24] sm:$0xff] }
  0x12   : > { %856 = vmatmul.mubr.msk.f32.vlgmr.msra.gmra.mrb[0].mxu1 %vm347_vm1, %v346_v8  ;;  %858 = vmatprep.subr.mxu1 %v933_v0 }
  0x13   : > { %860 = vmatprep.mubr.msk.f32.mxu1 %vm934_vm0, %v933_v0 }
  0xe5   : > { %v417_v15 = vpop.f32.mrb[0].mxu1 }
  0xe6   : > { %v857_v19 = vpop.f32.mrb[1].mxu1  ;;  %859 = vmatpush3.msra.mxu1 %v417_v15  ;;  %872 = vmatmul.mubr.msk.f32.vlgmr.msra.gmra.mrb[0].mxu0 %vm499_vm2, %v417_v15 }
  0xe7   : > { %861 = vmatmul.mubr.msk.f32.vlgmr.msra.gmra.mrb[2].mxu1 %vm347_vm1, %v346_v8  ;;  %902 = vmatprep.subr.bf16.mxu1 %v935_v4 }
  0xe8   : > { %904 = vmatpush3.bf16.msra.mxu1 %v903_v14  ;;  %882 = vmatprep.mubr.msk.f32.mxu1 %vm934_vm0, %v933_v0 }
  0xe9   : > { %905 = vmatprep.subr.bf16.mxu1 %v935_v4  ;;  %910 = vmatpush3.bf16.msra.mxu0 %v909_v18 }
  0xea   : > { %911 = vmatprep.subr.bf16.mxu0 %v935_v4  ;;  %893 = vmatprep.mubr.msk.f32.mxu0 %vm934_vm0, %v933_v0 }
  0xec   : > { %907 = vmatpush3.bf16.msra.mxu1 %v906_v22 }
  0xed   : > { %913 = vmatpush3.bf16.msra.mxu0 %v912_v23 }
  0xef   : > { %883 = vmatmul.mubr.msk.f32.vlgmr.msra.gmra.mrb[4].mxu1 %vm499_vm2, %v345_v9 }
 0x1b9   : > { %v569_v24 = vpop.f32.mrb[0].mxu0 }
 0x1ba   : > { %v487_v25 = vpop.f32.mrb[2].mxu1  ;;  %v873_v26 = vpop.f32.mrb[1].mxu0 }
 0x1bb   : > { %894 = vmatmul.mubr.msk.f32.vlgmr.msra.gmra.mrb[2].mxu0 %vm499_vm2, %v487_v25  ;;  %v862_v27 = vpop.f32.mrb[3].mxu1 }
 0x1c2   : > { %v642_v28 = vpop.f32.mrb[4].mxu1 }
 0x1c3   : > { %v643_v29 = vadd.f32 %v642_v28, %v569_v24  ;;  %v884_v30 = vpop.f32.mrb[5].mxu1 }
 0x28e   : > { %v719_v31 = vpop.f32.mrb[2].mxu0 }
 0x28f   : > { %v723_v33 = vadd.f32 %v719_v31, %v643_v29  ;;  %v895_v34 = vpop.f32.mrb[3].mxu0 }
 0x291   : > { %v731_v36 = vadd.f32 %v829_v32, %v723_v33 }
 0x293   : > { %v733_v38 = vadd.f32 %v732_v35, %v731_v36 }
 0x295   : > { %v741_v40 = vmul.f32 %v830_v37, %v733_v38 }
 0x297   : > { %v749_v41 = vadd.f32 %v831_v39, %v741_v40 }
 0x299   : > { %750 = vst.msk [vmem:[%s344_s13] sm:$0xff] %vm499_vm2, %v749_v41 }
 0x29a PF: > { %s19_s30 = sadd.s32 1, %s931_s30  }
 0x29b   : > { %p16_p4 = scmp.ge.s32.totalorder %s19_s30, 10  }
 0x29d   :  { %18 = sbr.rel (!%p16_p4) target bundleno = 1 (0x1), region = 89 }

// kernel: _lambda_.30
= control target key start
LH: loop header
LB: loop body
LE: loop exit
PB: predicated region body
PF: predicated region fallthrough
CT: control target
= control target key end

     0   :  { %vm55_vm0 = vcmask 261120   ;;  %vm589_vm1 = vcmask 523264   ;;  %s1106_s3 = inlined_call_operand.vmem [shape: f32[32,64], index: 3, kind: input, shape index: {}]   ;;  %s1107_s1 = inlined_call_operand.vmem [shape: f32[64,32], index: 1, kind: input, shape index: {}]   ;;  %s1108_s2 = inlined_call_operand.vmem [shape: f32[32,64], index: 2, kind: input, shape index: {}]   ;;  %s1109_s0 = inlined_call_operand.vmem [shape: f32[64,32], index: 0, kind: input, shape index: {}]   ;;  %s1110_s5 = inlined_call_operand.vmem [shape: f32[32,64], index: 5, kind: input, shape index: {}]   ;;  %s1111_s4 = inlined_call_operand.vmem [shape: f32[1,64], index: 4, kind: input, shape index: {}]   ;;  %s1112_s8 = inlined_call_operand.vmem [shape: f32[64,32], index: 8, kind: output, shape index: {0}]   ;;  %s1113_s6 = inlined_call_operand.vmem [shape: f32[1,64], index: 6, kind: input, shape index: {}]   ;;  %s1114_s7 = inlined_call_operand.vmem [shape: f32[64,64], index: 7, kind: input, shape index: {}]   ;;  %s1115_s9 = inlined_call_operand.vmem [shape: f32[64,64], index: 9, kind: output, shape index: {1}]  }
   0x1   :  { %v51_v0 = vld [vmem:[%s1106_s3] sm:$0xff]  ;;  %v52_v1 = vld [vmem:[%s1106_s3 + $0x8] sm:$0xff]  ;;  %v53_v2 = vld [vmem:[%s1106_s3 + $0x10] sm:$0xff] }
   0x2   :  { %v736_v3 = vpack.c.bf16 %v52_v1, %v51_v0  ;;  %v54_v4 = vld [vmem:[%s1106_s3 + $0x18] sm:$0xff]  ;;  %v43_v5 = vld [vmem:[%s1107_s1] sm:$0xff]  ;;  %v40_v8 = vld [vmem:[%s1108_s2 + $0x8] sm:$0xff] }
   0x3   :  { %v740_v6 = vpack.c.bf16 %v54_v4, %v53_v2  ;;  %684 = vmatprep.mubr.msk.f32.mxu0 %vm55_vm0, %v43_v5  ;;  %v39_v7 = vld [vmem:[%s1108_s2] sm:$0xff]  ;;  %v41_v11 = vld [vmem:[%s1108_s2 + $0x10] sm:$0xff]  ;;  %v42_v12 = vld [vmem:[%s1108_s2 + $0x18] sm:$0xff] }
   0x4   :  { %737 = vmatprep.subr.bf16.mxu0 %v736_v3  ;;  %760 = vmatprep.subr.bf16.mxu1 %v736_v3  ;;  %v744_v9 = vpack.c.bf16 %v40_v8, %v39_v7  ;;  %v47_v10 = vld [vmem:[%s1107_s1 + $0x20] sm:$0xff]  ;;  %v44_v13 = vld [vmem:[%s1107_s1 + $0x8] sm:$0xff]  ;;  %v45_v15 = vld [vmem:[%s1107_s1 + $0x10] sm:$0xff]  ;;  %v748_v16 = vpack.c.bf16 %v42_v12, %v41_v11 }
   0x5   :  { %739 = vmatpush3.bf16.msra.mxu0 %v736_v3  ;;  %762 = vmatpush3.bf16.msra.mxu1 %v736_v3  ;;  %v48_v14 = vld [vmem:[%s1107_s1 + $0x28] sm:$0xff]  ;;  %v49_v17 = vld [vmem:[%s1107_s1 + $0x30] sm:$0xff]  ;;  %v46_v18 = vld [vmem:[%s1107_s1 + $0x18] sm:$0xff] }
   0x6   :  { %741 = vmatprep.subr.bf16.mxu0 %v740_v6  ;;  %761 = vmatprep.subr.bf16.mxu1 %v740_v6  ;;  %v50_v19 = vld [vmem:[%s1107_s1 + $0x38] sm:$0xff]  ;;  %v31_v20 = vld [vmem:[%s1109_s0] sm:$0xff]  ;;  %v32_v21 = vld [vmem:[%s1109_s0 + $0x8] sm:$0xff] }
   0x7   :  { %690 = vmatprep.mubr.msk.f32.mxu1 %vm55_vm0, %v47_v10  ;;  %v33_v22 = vld [vmem:[%s1109_s0 + $0x10] sm:$0xff]  ;;  %v34_v23 = vld [vmem:[%s1109_s0 + $0x18] sm:$0xff]  ;;  %v35_v24 = vld [vmem:[%s1109_s0 + $0x20] sm:$0xff] }
   0x8   :  { %v36_v25 = vld [vmem:[%s1109_s0 + $0x28] sm:$0xff]  ;;  %v37_v26 = vld [vmem:[%s1109_s0 + $0x30] sm:$0xff]  ;;  %v38_v27 = vld [vmem:[%s1109_s0 + $0x38] sm:$0xff] }
   0x9   :  { %743 = vmatpush3.bf16.msra.mxu0 %v740_v6  ;;  %763 = vmatpush3.bf16.msra.mxu1 %v740_v6  ;;  %v433_v28 = vld [vmem:[%s1110_s5] sm:$0xff]  ;;  %v434_v29 = vld [vmem:[%s1110_s5 + $0x8] sm:$0xff]  ;;  %v435_v4 = vld [vmem:[%s1110_s5 + $0x10] sm:$0xff] }
   0xa   :  { %745 = vmatprep.subr.bf16.mxu0 %v744_v9  ;;  %v752_v30 = vpack.c.bf16 %v434_v29, %v433_v28  ;;  %v622_v35 = vld [vmem:[%s1111_s4] ss:$0 sm:$0xff]  ;;  %v436_v5 = vld [vmem:[%s1110_s5 + $0x18] sm:$0xff]  ;;  %s821_s5 = smov 96  }
   0xb   :  { %v756_v8 = vpack.c.bf16 %v436_v5, %v435_v4  ;;  %v578_v5 = vld [vmem:[%s1114_s7 + $0x28] sm:$0xff] }
   0xc   :  { %685 = vmatmul.mubr.msk.f32.vlgmr.msra.gmra.mrb[0].mxu0 %vm55_vm0, %v44_v13  ;;  %691 = vmatmul.mubr.msk.f32.vlgmr.msra.gmra.mrb[0].mxu1 %vm55_vm0, %v48_v14 }
   0xd   :  { %747 = vmatpush3.bf16.msra.mxu0 %v744_v9  ;;  %687 = vmatprep.mubr.msk.f32.mxu0 %vm55_vm0, %v45_v15 }
   0xe   :  { %749 = vmatprep.subr.bf16.mxu0 %v748_v16  ;;  %693 = vmatprep.mubr.msk.f32.mxu1 %vm55_vm0, %v49_v17 }
   0xf   :  { %753 = vmatprep.subr.bf16.mxu1 %v752_v30 }
  0x10   :  { %688 = vmatmul.mubr.msk.f32.gmra.mrb[2].mxu0 %vm55_vm0, %v46_v18  ;;  %694 = vmatmul.mubr.msk.f32.gmra.mrb[2].mxu1 %vm55_vm0, %v50_v19 }
  0x11   :  { %751 = vmatpush3.bf16.msra.mxu0 %v748_v16  ;;  %704 = vmatprep.mubr.msk.f32.mxu0 %vm55_vm0, %v31_v20 }
  0x12   :  { %755 = vmatpush3.bf16.msra.mxu1 %v752_v30 }
  0x13   :  { %757 = vmatprep.subr.bf16.mxu1 %v756_v8 }
  0x14   :  { %705 = vmatmul.mubr.msk.f32.vlgmr.msra.gmra.mrb[0].mxu0 %vm55_vm0, %v32_v21 }
  0x15   :  { %707 = vmatprep.mubr.msk.f32.mxu0 %vm55_vm0, %v33_v22 }
  0x16   :  { %759 = vmatpush3.bf16.msra.mxu1 %v756_v8  ;;  %v577_v8 = vld [vmem:[%s1114_s7 + $0x20] sm:$0xff] }
  0x18   :  { %708 = vmatmul.mubr.msk.f32.gmra.mrb[2].mxu0 %vm55_vm0, %v34_v23 }
  0x19   :  { %710 = vmatprep.mubr.msk.f32.mxu0 %vm55_vm0, %v35_v24 }
  0x1c   :  { %711 = vmatmul.mubr.msk.f32.gmra.mrb[4].mxu0 %vm55_vm0, %v36_v25 }
  0x1d   :  { %713 = vmatprep.mubr.msk.f32.mxu0 %vm55_vm0, %v37_v26 }
  0x20   :  { %714 = vmatmul.mubr.msk.f32.gmra.mrb[6].mxu0 %vm55_vm0, %v38_v27 }
  0xdf   :  { %v692_v31 = vpop.f32.mrb[0].mxu1 }
  0xe0   :  { %v166_v32 = vpop.f32.mrb[1].mxu1 }
  0xe3   :  { %v695_v33 = vpop.f32.mrb[2].mxu1 }
  0xe4   :  { %v176_v34 = vpop.f32.mrb[3].mxu1 }
  0xe7   :  { %v706_v36 = vpop.f32.mrb[0].mxu0 }
  0xe8   :  { %v969_v37 = vadd.f32 %v706_v36, %v622_v35  ;;  %v275_v38 = vpop.f32.mrb[1].mxu0 }
  0xe9   :  { %v971_v39 = vadd.f32 %v622_v35, %v275_v38 }
  0xea   :  { %v624_v40 = vmul.f32 -1.442695, %v969_v37 }
  0xeb   :  { %v623_v41 = vmul.f32 -1.442695, %v971_v39  ;;  %v709_v42 = vpop.f32.mrb[2].mxu0 }
  0xec   :  { %773 = vpow2.f32 %v624_v40  ;;  %v975_v43 = vadd.f32 %v709_v42, %v622_v35  ;;  %v285_v44 = vpop.f32.mrb[3].mxu0 }
  0xed   :  { %775 = vpow2.f32 %v623_v41  ;;  %v977_v45 = vadd.f32 %v622_v35, %v285_v44 }
  0xee   :  { %v626_v46 = vmul.f32 -1.442695, %v975_v43 }
  0xef   :  { %v625_v47 = vmul.f32 -1.442695, %v977_v45  ;;  %v712_v48 = vpop.f32.mrb[4].mxu0 }
  0xf0   :  { %777 = vpow2.f32 %v626_v46  ;;  %v301_v49 = vadd.f32 %v712_v48, %v692_v31  ;;  %v295_v50 = vpop.f32.mrb[5].mxu0 }
  0xf1   :  { %779 = vpow2.f32 %v625_v47  ;;  %v296_v51 = vadd.f32 %v295_v50, %v166_v32 }
  0xf2   :  { %v981_v52 = vadd.f32 %v622_v35, %v301_v49 }
  0xf3   :  { %v983_v53 = vadd.f32 %v622_v35, %v296_v51  ;;  %v715_v54 = vpop.f32.mrb[6].mxu0  ;;  %v631_v51 = vld [vmem:[%s1113_s6] ss:$0 sm:$0xff] }
  0xf4   :  { %v628_v55 = vmul.f32 -1.442695, %v981_v52  ;;  %v311_v56 = vadd.f32 %v715_v54, %v695_v33  ;;  %v305_v57 = vpop.f32.mrb[7].mxu0 }
  0xf5   :  { %v627_v58 = vmul.f32 -1.442695, %v983_v53  ;;  %v306_v59 = vadd.f32 %v305_v57, %v176_v34 }
  0xf6   :  { %v774_v60 = vpop.eup %773  ;;  %781 = vpow2.f32 %v628_v55  ;;  %v987_v61 = vadd.f32 %v622_v35, %v311_v56  ;;  %v573_v56 = vld [vmem:[%s1114_s7] sm:$0xff] }
  0xf7   :  { %v776_v62 = vpop.eup %775  ;;  %783 = vpow2.f32 %v627_v58  ;;  %v989_v63 = vadd.f32 %v622_v35, %v306_v59  ;;  %v362_v2 = vadd.f32 1.0, %v774_v60 }
  0xf8   :  { %v361_v0 = vadd.f32 1.0, %v776_v62  ;;  %v630_v1 = vmul.f32 -1.442695, %v987_v61 }
  0xf9   :  { %v629_v7 = vmul.f32 -1.442695, %v989_v63 }
  0xfa   :  { %v778_v3 = vpop.eup %777  ;;  %785 = vrcp.f32 %v361_v0  ;;  %v575_v0 = vld [vmem:[%s1114_s7 + $0x10] sm:$0xff] }
  0xfb   :  { %v780_v6 = vpop.eup %779  ;;  %787 = vpow2.f32 %v630_v1  ;;  %v364_v10 = vadd.f32 1.0, %v778_v3 }
  0xfc   :  { %v363_v9 = vadd.f32 1.0, %v780_v6  ;;  %789 = vrcp.f32 %v362_v2 }
  0xfe   :  { %791 = vrcp.f32 %v363_v9 }
  0xff   :  { %793 = vpow2.f32 %v629_v7 }
 0x100   :  { %v782_v11 = vpop.eup %781  ;;  %795 = vrcp.f32 %v364_v10 }
 0x101   :  { %v784_v12 = vpop.eup %783  ;;  %v366_v13 = vadd.f32 1.0, %v782_v11 }
 0x102   :  { %v365_v14 = vadd.f32 1.0, %v784_v12 }
 0x104   :  { %v786_v15 = vpop.eup %785  ;;  %797 = vrcp.f32 %v365_v14 }
 0x105   :  { %v788_v16 = vpop.eup %787  ;;  %393 = vrot.lane.b32.xlu0 %v786_v15, %s821_s5  ;;  %799 = vrcp.f32 %v366_v13  ;;  %v580_v13 = vld [vmem:[%s1114_s7 + $0x38] sm:$0xff] }
 0x106   :  { %v368_v17 = vadd.f32 1.0, %v788_v16  ;;  %v790_v18 = vpop.eup %789  ;;  %v579_v16 = vld [vmem:[%s1114_s7 + $0x30] sm:$0xff] }
 0x108   :  { %v792_v19 = vpop.eup %791  ;;  %801 = vrcp.f32 %v368_v17 }
 0x109   :  { %v794_v20 = vpop.eup %793  ;;  %395 = vrot.lane.b32.xlu0 %v790_v18, %s821_s5  ;;  %397 = vrot.lane.b32.xlu1 %v792_v19, %s821_s5 }
 0x10a   :  { %v367_v21 = vadd.f32 1.0, %v794_v20  ;;  %v796_v22 = vpop.eup %795 }
 0x10c   :  { %803 = vrcp.f32 %v367_v21 }
 0x10d   :  { %399 = vrot.lane.b32.xlu1 %v796_v22, %s821_s5  ;;  %805 = vtanh.f32 %v971_v39 }
 0x10e   :  { %v798_v23 = vpop.eup %797  ;;  %807 = vtanh.f32 %v969_v37 }
 0x10f   :  { %401 = vrot.lane.b32.xlu0 %v798_v23, %s821_s5  ;;  %v800_v24 = vpop.eup %799  ;;  %809 = vtanh.f32 %v977_v45 }
 0x110   :  { %811 = vtanh.f32 %v975_v43 }
 0x111   :  { %403 = vrot.lane.b32.xlu1 %v800_v24, %s821_s5  ;;  %813 = vtanh.f32 %v983_v53  ;;  %v574_v53 = vld [vmem:[%s1114_s7 + $0x8] sm:$0xff] }
 0x112   :  { %v802_v25 = vpop.eup %801  ;;  %815 = vtanh.f32 %v981_v52 }
 0x113   :  { %817 = vtanh.f32 %v987_v61  ;;  %v576_v61 = vld [vmem:[%s1114_s7 + $0x18] sm:$0xff] }
 0x114   :  { %819 = vtanh.f32 %v989_v63 }
 0x115   :  { %407 = vrot.lane.b32.xlu1 %v802_v25, %s821_s5 }
 0x116   :  { %v804_v26 = vpop.eup %803 }
 0x117   :  { %405 = vrot.lane.b32.xlu0 %v804_v26, %s821_s5  ;;  %v806_v27 = vpop.eup %805 }
 0x118   :  { %v808_v30 = vpop.eup %807 }
 0x119   :  { %v810_v31 = vpop.eup %809 }
 0x11a   :  { %v812_v36 = vpop.eup %811 }
 0x11b   :  { %v814_v39 = vpop.eup %813 }
 0x11c   :  { %v816_v42 = vpop.eup %815 }
 0x11d   :  { %v818_v45 = vpop.eup %817 }
 0x11e   :  { %v820_v48 = vpop.eup %819 }
 0x177   :  { %v394_v28 = vpop.permute.xlu0 %393 }
 0x178   :  { %v417_v29 = vmul.f32 %v806_v27, %v394_v28 }
 0x17a   :  { %425 = vst.msk [vmem:[%s1112_s8] sm:$0xff] %vm55_vm0, %v417_v29  ;;  %724 = vmatprep.mubr.msk.f32.mxu1 %vm55_vm0, %v417_v29 }
 0x17b   :  { %v396_v32 = vpop.permute.xlu0 %395  ;;  %v398_v33 = vpop.permute.xlu1 %397 }
 0x17c   :  { %v418_v34 = vmul.f32 %v808_v30, %v396_v32  ;;  %v419_v35 = vmul.f32 %v810_v31, %v398_v33 }
 0x17e   :  { %426 = vst.msk [vmem:[%s1112_s8 + $0x8] sm:$0xff] %vm55_vm0, %v418_v34  ;;  %427 = vst.msk [vmem:[%s1112_s8 + $0x10] sm:$0xff] %vm55_vm0, %v419_v35  ;;  %725 = vmatmul.mubr.msk.f32.vlgmr.msra.gmra.mrb[4].mxu1 %vm55_vm0, %v418_v34 }
 0x17f   :  { %v400_v37 = vpop.permute.xlu1 %399  ;;  %727 = vmatprep.mubr.msk.f32.mxu1 %vm55_vm0, %v419_v35 }
 0x180   :  { %v420_v38 = vmul.f32 %v812_v36, %v400_v37 }
 0x181   :  { %v402_v40 = vpop.permute.xlu0 %401 }
 0x182   :  { %428 = vst.msk [vmem:[%s1112_s8 + $0x18] sm:$0xff] %vm55_vm0, %v420_v38  ;;  %v421_v41 = vmul.f32 %v814_v39, %v402_v40  ;;  %728 = vmatmul.mubr.msk.f32.gmra.mrb[6].mxu1 %vm55_vm0, %v420_v38 }
 0x183   :  { %v404_v43 = vpop.permute.xlu1 %403 }
 0x184   :  { %429 = vst.msk [vmem:[%s1112_s8 + $0x20] sm:$0xff] %vm55_vm0, %v421_v41  ;;  %v422_v44 = vmul.f32 %v816_v42, %v404_v43  ;;  %730 = vmatprep.mubr.msk.f32.mxu1 %vm55_vm0, %v421_v41 }
 0x186   :  { %430 = vst.msk [vmem:[%s1112_s8 + $0x28] sm:$0xff] %vm55_vm0, %v422_v44  ;;  %731 = vmatmul.mubr.msk.f32.gmra.mrb[8].mxu1 %vm55_vm0, %v422_v44 }
 0x187   :  { %v408_v46 = vpop.permute.xlu1 %407 }
 0x188   :  { %v424_v47 = vmul.f32 %v818_v45, %v408_v46 }
 0x189   :  { %v406_v49 = vpop.permute.xlu0 %405 }
 0x18a   :  { %v423_v50 = vmul.f32 %v820_v48, %v406_v49  ;;  %432 = vst.msk [vmem:[%s1112_s8 + $0x38] sm:$0xff] %vm55_vm0, %v424_v47 }
 0x18c   :  { %431 = vst.msk [vmem:[%s1112_s8 + $0x30] sm:$0xff] %vm55_vm0, %v423_v50  ;;  %733 = vmatprep.mubr.msk.f32.mxu1 %vm55_vm0, %v423_v50 }
 0x18d   :  { %734 = vmatmul.mubr.msk.f32.gmra.mrb[10].mxu1 %vm55_vm0, %v424_v47 }
 0x251   :  { %v726_v52 = vpop.f32.mrb[4].mxu1 }
 0x252   :  { %v540_v54 = vadd.f32 %v726_v52, %v631_v51  ;;  %v534_v55 = vpop.f32.mrb[5].mxu1 }
 0x253   :  { %v535_v57 = vadd.f32 %v631_v51, %v534_v55 }
 0x254   :  { %v582_v58 = vadd.f32 %v574_v53, %v540_v54 }
 0x255   :  { %v581_v59 = vadd.f32 %v573_v56, %v535_v57  ;;  %v729_v60 = vpop.f32.mrb[6].mxu1 }
 0x256   :  { %591 = vst.msk [vmem:[%s1115_s9 + $0x8] sm:$0xff] %vm589_vm1, %v582_v58  ;;  %v550_v62 = vadd.f32 %v729_v60, %v631_v51  ;;  %v544_v63 = vpop.f32.mrb[7].mxu1 }
 0x257   :  { %590 = vst.msk [vmem:[%s1115_s9] sm:$0xff] %vm589_vm1, %v581_v59  ;;  %v545_v1 = vadd.f32 %v631_v51, %v544_v63 }
 0x258   :  { %v584_v2 = vadd.f32 %v576_v61, %v550_v62 }
 0x259   :  { %v583_v3 = vadd.f32 %v575_v0, %v545_v1  ;;  %v732_v4 = vpop.f32.mrb[8].mxu1 }
 0x25a   :  { %593 = vst.msk [vmem:[%s1115_s9 + $0x18] sm:$0xff] %vm589_vm1, %v584_v2  ;;  %v560_v6 = vadd.f32 %v732_v4, %v631_v51  ;;  %v554_v7 = vpop.f32.mrb[9].mxu1 }
 0x25b   :  { %592 = vst.msk [vmem:[%s1115_s9 + $0x10] sm:$0xff] %vm589_vm1, %v583_v3  ;;  %v555_v9 = vadd.f32 %v631_v51, %v554_v7 }
 0x25c   :  { %v586_v10 = vadd.f32 %v578_v5, %v560_v6 }
 0x25d   :  { %v585_v11 = vadd.f32 %v577_v8, %v555_v9 }
 0x25e   :  { %595 = vst.msk [vmem:[%s1115_s9 + $0x28] sm:$0xff] %vm589_vm1, %v586_v10 }
 0x25f   :  { %594 = vst.msk [vmem:[%s1115_s9 + $0x20] sm:$0xff] %vm589_vm1, %v585_v11 }
 0x260   :  { %v735_v12 = vpop.f32.mrb[10].mxu1 }
 0x261   :  { %v570_v14 = vadd.f32 %v735_v12, %v631_v51  ;;  %v564_v15 = vpop.f32.mrb[11].mxu1 }
 0x262   :  { %v565_v17 = vadd.f32 %v631_v51, %v564_v15 }
 0x263   :  { %v588_v18 = vadd.f32 %v580_v13, %v570_v14 }
 0x264   :  { %v587_v19 = vadd.f32 %v579_v16, %v565_v17 }
 0x265   :  { %597 = vst.msk [vmem:[%s1115_s9 + $0x38] sm:$0xff] %vm589_vm1, %v588_v18 }
 0x266   :  { %596 = vst.msk [vmem:[%s1115_s9 + $0x30] sm:$0xff] %vm589_vm1, %v587_v19 }

// kernel: _lambda_.32
= control target key start
LH: loop header
LB: loop body
LE: loop exit
PB: predicated region body
PF: predicated region fallthrough
CT: control target
= control target key end

     0   :  { %vm51_vm0 = vcmask 261120   ;;  %vm505_vm1 = vcmask 523264   ;;  %s911_s3 = inlined_call_operand.vmem [shape: f32[32,64], index: 3, kind: input, shape index: {}]   ;;  %s912_s1 = inlined_call_operand.vmem [shape: f32[48,32], index: 1, kind: input, shape index: {}]   ;;  %s913_s2 = inlined_call_operand.vmem [shape: f32[32,64], index: 2, kind: input, shape index: {}]   ;;  %s914_s0 = inlined_call_operand.vmem [shape: f32[48,32], index: 0, kind: input, shape index: {}]   ;;  %s915_s5 = inlined_call_operand.vmem [shape: f32[32,64], index: 5, kind: input, shape index: {}]   ;;  %s916_s4 = inlined_call_operand.vmem [shape: f32[1,64], index: 4, kind: input, shape index: {}]   ;;  %s917_s8 = inlined_call_operand.vmem [shape: f32[48,32], index: 8, kind: output, shape index: {0}]   ;;  %s918_s6 = inlined_call_operand.vmem [shape: f32[1,64], index: 6, kind: input, shape index: {}]   ;;  %s919_s7 = inlined_call_operand.vmem [shape: f32[48,64], index: 7, kind: input, shape index: {}]   ;;  %s920_s9 = inlined_call_operand.vmem [shape: f32[48,64], index: 9, kind: output, shape index: {1}]  }
   0x1   :  { %v47_v0 = vld [vmem:[%s911_s3] sm:$0xff]  ;;  %v48_v1 = vld [vmem:[%s911_s3 + $0x8] sm:$0xff]  ;;  %v49_v2 = vld [vmem:[%s911_s3 + $0x10] sm:$0xff] }
   0x2   :  { %v627_v3 = vpack.c.bf16 %v48_v1, %v47_v0  ;;  %v50_v4 = vld [vmem:[%s911_s3 + $0x18] sm:$0xff]  ;;  %v41_v5 = vld [vmem:[%s912_s1] sm:$0xff]  ;;  %v38_v8 = vld [vmem:[%s913_s2 + $0x8] sm:$0xff] }
   0x3   :  { %v631_v6 = vpack.c.bf16 %v50_v4, %v49_v2  ;;  %584 = vmatprep.mubr.msk.f32.mxu0 %vm51_vm0, %v41_v5  ;;  %v37_v7 = vld [vmem:[%s913_s2] sm:$0xff]  ;;  %v39_v11 = vld [vmem:[%s913_s2 + $0x10] sm:$0xff]  ;;  %v40_v12 = vld [vmem:[%s913_s2 + $0x18] sm:$0xff] }
   0x4   :  { %628 = vmatprep.subr.bf16.mxu0 %v627_v3  ;;  %651 = vmatprep.subr.bf16.mxu1 %v627_v3  ;;  %v635_v9 = vpack.c.bf16 %v38_v8, %v37_v7  ;;  %v45_v10 = vld [vmem:[%s912_s1 + $0x20] sm:$0xff]  ;;  %v42_v13 = vld [vmem:[%s912_s1 + $0x8] sm:$0xff]  ;;  %v43_v15 = vld [vmem:[%s912_s1 + $0x10] sm:$0xff]  ;;  %v639_v16 = vpack.c.bf16 %v40_v12, %v39_v11 }
   0x5   :  { %630 = vmatpush3.bf16.msra.mxu0 %v627_v3  ;;  %653 = vmatpush3.bf16.msra.mxu1 %v627_v3  ;;  %v46_v14 = vld [vmem:[%s912_s1 + $0x28] sm:$0xff]  ;;  %v44_v17 = vld [vmem:[%s912_s1 + $0x18] sm:$0xff]  ;;  %v31_v18 = vld [vmem:[%s914_s0] sm:$0xff] }
   0x6   :  { %632 = vmatprep.subr.bf16.mxu0 %v631_v6  ;;  %652 = vmatprep.subr.bf16.mxu1 %v631_v6  ;;  %v32_v19 = vld [vmem:[%s914_s0 + $0x8] sm:$0xff]  ;;  %v33_v20 = vld [vmem:[%s914_s0 + $0x10] sm:$0xff]  ;;  %v34_v21 = vld [vmem:[%s914_s0 + $0x18] sm:$0xff] }
   0x7   :  { %590 = vmatprep.mubr.msk.f32.mxu1 %vm51_vm0, %v45_v10  ;;  %v35_v22 = vld [vmem:[%s914_s0 + $0x20] sm:$0xff]  ;;  %v36_v23 = vld [vmem:[%s914_s0 + $0x28] sm:$0xff]  ;;  %v371_v52 = vld [vmem:[%s915_s5 + $0x10] sm:$0xff] }
   0x8   :  { %v369_v24 = vld [vmem:[%s915_s5] sm:$0xff]  ;;  %v370_v25 = vld [vmem:[%s915_s5 + $0x8] sm:$0xff]  ;;  %v372_v53 = vld [vmem:[%s915_s5 + $0x18] sm:$0xff]  ;;  %s698_s5 = smov 96  }
   0x9   :  { %634 = vmatpush3.bf16.msra.mxu0 %v631_v6  ;;  %654 = vmatpush3.bf16.msra.mxu1 %v631_v6  ;;  %v643_v26 = vpack.c.bf16 %v370_v25, %v369_v24  ;;  %v532_v29 = vld [vmem:[%s916_s4] ss:$0 sm:$0xff]  ;;  %v647_v55 = vpack.c.bf16 %v372_v53, %v371_v52 }
   0xa   :  { %636 = vmatprep.subr.bf16.mxu0 %v635_v9  ;;  %v539_v25 = vld [vmem:[%s918_s6] ss:$0 sm:$0xff] }
   0xb   :  { %644 = vmatprep.subr.bf16.mxu1 %v643_v26 }
   0xc   :  { %585 = vmatmul.mubr.msk.f32.vlgmr.msra.gmra.mrb[0].mxu0 %vm51_vm0, %v42_v13  ;;  %591 = vmatmul.mubr.msk.f32.vlgmr.msra.gmra.mrb[0].mxu1 %vm51_vm0, %v46_v14 }
   0xd   :  { %638 = vmatpush3.bf16.msra.mxu0 %v635_v9  ;;  %587 = vmatprep.mubr.msk.f32.mxu0 %vm51_vm0, %v43_v15 }
   0xe   :  { %640 = vmatprep.subr.bf16.mxu0 %v639_v16  ;;  %646 = vmatpush3.bf16.msra.mxu1 %v643_v26 }
   0xf   :  { %648 = vmatprep.subr.bf16.mxu1 %v647_v55 }
  0x10   :  { %588 = vmatmul.mubr.msk.f32.gmra.mrb[2].mxu0 %vm51_vm0, %v44_v17 }
  0x11   :  { %642 = vmatpush3.bf16.msra.mxu0 %v639_v16  ;;  %601 = vmatprep.mubr.msk.f32.mxu0 %vm51_vm0, %v31_v18 }
  0x12   :  { %650 = vmatpush3.bf16.msra.mxu1 %v647_v55 }
  0x14   :  { %602 = vmatmul.mubr.msk.f32.vlgmr.msra.gmra.mrb[0].mxu0 %vm51_vm0, %v32_v19 }
  0x15   :  { %604 = vmatprep.mubr.msk.f32.mxu0 %vm51_vm0, %v33_v20 }
  0x18   :  { %605 = vmatmul.mubr.msk.f32.gmra.mrb[2].mxu0 %vm51_vm0, %v34_v21 }
  0x19   :  { %607 = vmatprep.mubr.msk.f32.mxu0 %vm51_vm0, %v35_v22 }
  0x1c   :  { %608 = vmatmul.mubr.msk.f32.gmra.mrb[4].mxu0 %vm51_vm0, %v36_v23 }
  0xdf   :  { %v592_v27 = vpop.f32.mrb[0].mxu1 }
  0xe0   :  { %v156_v28 = vpop.f32.mrb[1].mxu1 }
  0xe7   :  { %v603_v30 = vpop.f32.mrb[0].mxu0 }
  0xe8   :  { %v286_v31 = vadd.f32 %v603_v30, %v532_v29  ;;  %v249_v32 = vpop.f32.mrb[1].mxu0  ;;  %v493_v30 = vld [vmem:[%s919_s7] sm:$0xff] }
  0xe9   :  { %v285_v33 = vadd.f32 %v532_v29, %v249_v32 }
  0xea   :  { %v534_v34 = vmul.f32 -1.442695, %v286_v31 }
  0xeb   :  { %v533_v35 = vmul.f32 -1.442695, %v285_v33  ;;  %v606_v36 = vpop.f32.mrb[2].mxu0 }
  0xec   :  { %662 = vpow2.f32 %v534_v34  ;;  %v288_v37 = vadd.f32 %v606_v36, %v532_v29  ;;  %v259_v38 = vpop.f32.mrb[3].mxu0 }
  0xed   :  { %664 = vpow2.f32 %v533_v35  ;;  %v287_v39 = vadd.f32 %v532_v29, %v259_v38  ;;  %v496_v35 = vld [vmem:[%s919_s7 + $0x18] sm:$0xff]  ;;  %v495_v38 = vld [vmem:[%s919_s7 + $0x10] sm:$0xff] }
  0xee   :  { %v536_v40 = vmul.f32 -1.442695, %v288_v37 }
  0xef   :  { %v535_v41 = vmul.f32 -1.442695, %v287_v39  ;;  %v609_v42 = vpop.f32.mrb[4].mxu0 }
  0xf0   :  { %666 = vpow2.f32 %v536_v40  ;;  %v275_v43 = vadd.f32 %v609_v42, %v592_v27  ;;  %v269_v44 = vpop.f32.mrb[5].mxu0  ;;  %v494_v27 = vld [vmem:[%s919_s7 + $0x8] sm:$0xff] }
  0xf1   :  { %668 = vpow2.f32 %v535_v41  ;;  %v270_v45 = vadd.f32 %v269_v44, %v156_v28 }
  0xf2   :  { %v290_v46 = vadd.f32 %v532_v29, %v275_v43  ;;  %v498_v43 = vld [vmem:[%s919_s7 + $0x28] sm:$0xff] }
  0xf3   :  { %v289_v47 = vadd.f32 %v532_v29, %v270_v45 }
  0xf4   :  { %v538_v48 = vmul.f32 -1.442695, %v290_v46 }
  0xf5   :  { %v537_v49 = vmul.f32 -1.442695, %v289_v47 }
  0xf6   :  { %v663_v50 = vpop.eup %662  ;;  %670 = vpow2.f32 %v538_v48 }
  0xf7   :  { %v665_v51 = vpop.eup %664  ;;  %672 = vpow2.f32 %v537_v49  ;;  %v316_v56 = vadd.f32 1.0, %v663_v50 }
  0xf8   :  { %v315_v54 = vadd.f32 1.0, %v665_v51 }
  0xfa   :  { %v667_v57 = vpop.eup %666  ;;  %674 = vrcp.f32 %v315_v54 }
  0xfb   :  { %v669_v58 = vpop.eup %668  ;;  %676 = vrcp.f32 %v316_v56  ;;  %v318_v60 = vadd.f32 1.0, %v667_v57 }
  0xfc   :  { %v317_v59 = vadd.f32 1.0, %v669_v58 }
  0xfe   :  { %678 = vrcp.f32 %v317_v59 }
  0xff   :  { %680 = vrcp.f32 %v318_v60 }
 0x100   :  { %v671_v61 = vpop.eup %670 }
 0x101   :  { %v673_v62 = vpop.eup %672  ;;  %v320_v63 = vadd.f32 1.0, %v671_v61 }
 0x102   :  { %v319_v0 = vadd.f32 1.0, %v673_v62 }
 0x104   :  { %v675_v1 = vpop.eup %674  ;;  %682 = vrcp.f32 %v319_v0 }
 0x105   :  { %339 = vrot.lane.b32.xlu0 %v675_v1, %s698_s5  ;;  %684 = vrcp.f32 %v320_v63  ;;  %v677_v2 = vpop.eup %676 }
 0x106   :  { %686 = vtanh.f32 %v285_v33 }
 0x107   :  { %688 = vtanh.f32 %v286_v31 }
 0x108   :  { %v679_v3 = vpop.eup %678  ;;  %690 = vtanh.f32 %v287_v39 }
 0x109   :  { %341 = vrot.lane.b32.xlu0 %v677_v2, %s698_s5  ;;  %343 = vrot.lane.b32.xlu1 %v679_v3, %s698_s5  ;;  %v681_v4 = vpop.eup %680  ;;  %692 = vtanh.f32 %v288_v37 }
 0x10a   :  { %694 = vtanh.f32 %v289_v47 }
 0x10b   :  { %696 = vtanh.f32 %v290_v46  ;;  %v497_v46 = vld [vmem:[%s919_s7 + $0x20] sm:$0xff] }
 0x10d   :  { %345 = vrot.lane.b32.xlu1 %v681_v4, %s698_s5 }
 0x10e   :  { %v683_v5 = vpop.eup %682 }
 0x10f   :  { %347 = vrot.lane.b32.xlu0 %v683_v5, %s698_s5  ;;  %v685_v6 = vpop.eup %684 }
 0x110   :  { %v687_v7 = vpop.eup %686 }
 0x111   :  { %349 = vrot.lane.b32.xlu1 %v685_v6, %s698_s5  ;;  %v689_v10 = vpop.eup %688 }
 0x112   :  { %v691_v11 = vpop.eup %690 }
 0x113   :  { %v693_v16 = vpop.eup %692 }
 0x114   :  { %v695_v19 = vpop.eup %694 }
 0x115   :  { %v697_v22 = vpop.eup %696 }
 0x177   :  { %v340_v8 = vpop.permute.xlu0 %339 }
 0x178   :  { %v357_v9 = vmul.f32 %v687_v7, %v340_v8 }
 0x17a   :  { %363 = vst.msk [vmem:[%s917_s8] sm:$0xff] %vm51_vm0, %v357_v9  ;;  %618 = vmatprep.mubr.msk.f32.mxu1 %vm51_vm0, %v357_v9 }
 0x17b   :  { %v342_v12 = vpop.permute.xlu0 %341  ;;  %v344_v13 = vpop.permute.xlu1 %343 }
 0x17c   :  { %v358_v14 = vmul.f32 %v689_v10, %v342_v12  ;;  %v359_v15 = vmul.f32 %v691_v11, %v344_v13 }
 0x17e   :  { %364 = vst.msk [vmem:[%s917_s8 + $0x8] sm:$0xff] %vm51_vm0, %v358_v14  ;;  %365 = vst.msk [vmem:[%s917_s8 + $0x10] sm:$0xff] %vm51_vm0, %v359_v15  ;;  %619 = vmatmul.mubr.msk.f32.vlgmr.msra.gmra.mrb[2].mxu1 %vm51_vm0, %v358_v14 }
 0x17f   :  { %v346_v17 = vpop.permute.xlu1 %345  ;;  %621 = vmatprep.mubr.msk.f32.mxu1 %vm51_vm0, %v359_v15 }
 0x180   :  { %v360_v18 = vmul.f32 %v693_v16, %v346_v17 }
 0x181   :  { %v348_v20 = vpop.permute.xlu0 %347 }
 0x182   :  { %366 = vst.msk [vmem:[%s917_s8 + $0x18] sm:$0xff] %vm51_vm0, %v360_v18  ;;  %v361_v21 = vmul.f32 %v695_v19, %v348_v20  ;;  %622 = vmatmul.mubr.msk.f32.gmra.mrb[4].mxu1 %vm51_vm0, %v360_v18 }
 0x183   :  { %v350_v23 = vpop.permute.xlu1 %349 }
 0x184   :  { %367 = vst.msk [vmem:[%s917_s8 + $0x20] sm:$0xff] %vm51_vm0, %v361_v21  ;;  %v362_v24 = vmul.f32 %v697_v22, %v350_v23  ;;  %624 = vmatprep.mubr.msk.f32.mxu1 %vm51_vm0, %v361_v21 }
 0x186   :  { %368 = vst.msk [vmem:[%s917_s8 + $0x28] sm:$0xff] %vm51_vm0, %v362_v24  ;;  %625 = vmatmul.mubr.msk.f32.gmra.mrb[6].mxu1 %vm51_vm0, %v362_v24 }
 0x251   :  { %v620_v26 = vpop.f32.mrb[2].mxu1 }
 0x252   :  { %v470_v28 = vadd.f32 %v620_v26, %v539_v25  ;;  %v464_v29 = vpop.f32.mrb[3].mxu1 }
 0x253   :  { %v465_v31 = vadd.f32 %v539_v25, %v464_v29 }
 0x254   :  { %v500_v32 = vadd.f32 %v494_v27, %v470_v28 }
 0x255   :  { %v499_v33 = vadd.f32 %v493_v30, %v465_v31  ;;  %v623_v34 = vpop.f32.mrb[4].mxu1 }
 0x256   :  { %507 = vst.msk [vmem:[%s920_s9 + $0x8] sm:$0xff] %vm505_vm1, %v500_v32  ;;  %v480_v36 = vadd.f32 %v623_v34, %v539_v25  ;;  %v474_v37 = vpop.f32.mrb[5].mxu1 }
 0x257   :  { %506 = vst.msk [vmem:[%s920_s9] sm:$0xff] %vm505_vm1, %v499_v33  ;;  %v475_v39 = vadd.f32 %v539_v25, %v474_v37 }
 0x258   :  { %v502_v40 = vadd.f32 %v496_v35, %v480_v36 }
 0x259   :  { %v501_v41 = vadd.f32 %v495_v38, %v475_v39  ;;  %v626_v42 = vpop.f32.mrb[6].mxu1 }
 0x25a   :  { %509 = vst.msk [vmem:[%s920_s9 + $0x18] sm:$0xff] %vm505_vm1, %v502_v40  ;;  %v490_v44 = vadd.f32 %v626_v42, %v539_v25  ;;  %v484_v45 = vpop.f32.mrb[7].mxu1 }
 0x25b   :  { %508 = vst.msk [vmem:[%s920_s9 + $0x10] sm:$0xff] %vm505_vm1, %v501_v41  ;;  %v485_v47 = vadd.f32 %v539_v25, %v484_v45 }
 0x25c   :  { %v504_v48 = vadd.f32 %v498_v43, %v490_v44 }
 0x25d   :  { %v503_v49 = vadd.f32 %v497_v46, %v485_v47 }
 0x25e   :  { %511 = vst.msk [vmem:[%s920_s9 + $0x28] sm:$0xff] %vm505_vm1, %v504_v48 }
 0x25f   :  { %510 = vst.msk [vmem:[%s920_s9 + $0x20] sm:$0xff] %vm505_vm1, %v503_v49 }

// kernel: _lambda_.33
= control target key start
LH: loop header
LB: loop body
LE: loop exit
PB: predicated region body
PF: predicated region fallthrough
CT: control target
= control target key end

     0   :  { %s986_s30 = smov 0   ;;  %s1070_s0 = inlined_call_operand.vmem [shape: f32[6,8,32], index: 0, kind: input, shape index: {}]   ;;  %s1071_s1 = inlined_call_operand.vmem [shape: f32[8,8], index: 1, kind: input, shape index: {}]   ;;  %s1072_s2 = inlined_call_operand.vmem [shape: f32[6,8,32], index: 2, kind: input, shape index: {}]   ;;  %s1073_s3 = inlined_call_operand.vmem [shape: f32[32,32], index: 3, kind: input, shape index: {}]   ;;  %s1074_s4 = inlined_call_operand.vmem [shape: f32[32,32], index: 4, kind: input, shape index: {}]   ;;  %s1075_s5 = inlined_call_operand.vmem [shape: f32[32,32], index: 5, kind: input, shape index: {}]   ;;  %s1076_s6 = inlined_call_operand.vmem [shape: f32[1,32], index: 6, kind: input, shape index: {}]   ;;  %s1077_s7 = inlined_call_operand.vmem [shape: f32[1,32], index: 7, kind: input, shape index: {}]   ;;  %s1078_s8 = inlined_call_operand.vmem [shape: f32[1,32], index: 8, kind: input, shape index: {}]   ;;  %s1079_s9 = inlined_call_operand.vmem [shape: f32[6,8,32], index: 9, kind: output, shape index: {}]  }
   0x1 LB: > { %s816_s10 = sadd.s32 4294967295, %s931_s30   ;;  %p820_p0 = scmp.ge.s32.totalorder %s931_s30, 1  ;;  %s931_s30 = sphi %s986_s30, %s19_s30  }
   0x2   : > { %p295_p1 = scmp.lt.s32.totalorder %s931_s30, 7 }
   0x4   : > { %p296_p2 = pnand %p820_p0, %p295_p1 }
   0x5   : > { %p333_p3 = scmp.lt.s32.totalorder (!%p296_p2), %s816_s10, 5  ;;  %v933_v0 = vmov (!%p296_p2), 0.0   ;;  %vm934_vm0 = vmmov (!%p296_p2), 0   ;;  %v495_v1 = vld [vmem:[%s1074_s4] sm:$0xff] (!%p296_p2)  ;;  %v496_v2 = vld [vmem:[%s1074_s4 + $0x8] sm:$0xff] (!%p296_p2)  ;;  %v497_v3 = vld [vmem:[%s1074_s4 + $0x10] sm:$0xff] (!%p296_p2) }
   0x6   : > { %299 = sbr.rel (%p296_p2) target bundleno = 666 (0x29a), region = 56  ;;  %853 = vmatprep.subr.mxu1 (!%p296_p2), %v933_v0  ;;  %855 = vmatprep.mubr.msk.f32.mxu1 (!%p296_p2), %vm934_vm0, %v933_v0  ;;  %v935_v4 = vmov (!%p296_p2), 0.0|0.0   ;;  %v897_v5 = vpack.c.bf16 (!%p296_p2), %v496_v2, %v495_v1  ;;  %v498_v6 = vld [vmem:[%s1074_s4 + $0x18] sm:$0xff] (!%p296_p2)  ;;  %v346_v8 = vld [vmem:[%s1071_s1] sm:$0xff] (!%p296_p2)  ;;  %vm347_vm1 = vcmask (!%p296_p2), 64512   ;;  %v492_v11 = vld [vmem:[%s1073_s3 + $0x8] sm:$0xff] (!%p296_p2) }
   0x7   : > { %896 = vmatprep.subr.bf16.mxu0 (!%p296_p2), %v935_v4  ;;  %871 = vmatprep.mubr.msk.f32.mxu0 (!%p296_p2), %vm934_vm0, %v933_v0  ;;  %v900_v7 = vpack.c.bf16 (!%p296_p2), %v498_v6, %v497_v3  ;;  %v491_v10 = vld [vmem:[%s1073_s3] sm:$0xff] (!%p296_p2)  ;;  %v647_v13 = vld [vmem:[%s1075_s5 + $0x8] sm:$0xff] (!%p296_p2)  ;;  %vm499_vm2 = vcmask (!%p296_p2), 261120   ;;  %v493_v16 = vld [vmem:[%s1073_s3 + $0x10] sm:$0xff] (!%p296_p2) }
   0x8   : > { %898 = vmatpush3.bf16.msra.mxu0 (!%p296_p2), %v897_v5  ;;  %v646_v12 = vld [vmem:[%s1075_s5] sm:$0xff] (!%p296_p2)  ;;  %v903_v14 = vpack.c.bf16 (!%p296_p2), %v492_v11, %v491_v10  ;;  %v494_v17 = vld [vmem:[%s1073_s3 + $0x18] sm:$0xff] (!%p296_p2)  ;;  %v648_v20 = vld [vmem:[%s1075_s5 + $0x10] sm:$0xff] (!%p296_p2) }
   0x9   : > { %899 = vmatprep.subr.bf16.mxu0 (!%p296_p2), %v935_v4  ;;  %v909_v18 = vpack.c.bf16 (!%p296_p2), %v647_v13, %v646_v12  ;;  %v649_v21 = vld [vmem:[%s1075_s5 + $0x18] sm:$0xff] (!%p296_p2)  ;;  %v906_v22 = vpack.c.bf16 (!%p296_p2), %v494_v17, %v493_v16  ;;  %v829_v32 = vld [vmem:[%s1076_s6] ss:$0 sm:$0xff] (!%p296_p2) }
   0xa   : > { %v912_v23 = vpack.c.bf16 (!%p296_p2), %v649_v21, %v648_v20  ;;  %v830_v37 = vld [vmem:[%s1077_s7] ss:$0 sm:$0xff] (!%p296_p2) }
   0xb   : > { %v831_v39 = vld [vmem:[%s1078_s8] ss:$0 sm:$0xff] (!%p296_p2) }
   0xc   : > { %901 = vmatpush3.bf16.msra.mxu0 (!%p296_p2), %v900_v7 }
   0xd   : > { %s1081_s10 = smov (!%p333_p3, %s816_s10), 5  ;;  %908 = vmatprep.subr.bf16.mxu0 %v935_v4 }
   0xe   : > { %s1008_s19 = sshll.u32 %s1081_s10, 3 }
   0xf   : > { %s336_s22 = scalar_lea.vmem %s1070_s0, %s1008_s19  ;;  %s340_s24 = scalar_lea.vmem %s1072_s2, %s1008_s19 }
  0x10   : > { %v345_v9 = vld [vmem:[%s336_s22] sm:$0xff]  ;;  %s344_s13 = scalar_lea.vmem %s1079_s9, %s1008_s19 }
  0x11   : > { %854 = vmatpush3.msra.mxu1 %v345_v9  ;;  %v732_v35 = vld [vmem:[%s340_s24] sm:$0xff] }
  0x12   : > { %856 = vmatmul.mubr.msk.f32.vlgmr.msra.gmra.mrb[0].mxu1 %vm347_vm1, %v346_v8  ;;  %858 = vmatprep.subr.mxu1 %v933_v0 }
  0x13   : > { %860 = vmatprep.mubr.msk.f32.mxu1 %vm934_vm0, %v933_v0 }
  0xe5   : > { %v417_v15 = vpop.f32.mrb[0].mxu1 }
  0xe6   : > { %v857_v19 = vpop.f32.mrb[1].mxu1  ;;  %859 = vmatpush3.msra.mxu1 %v417_v15  ;;  %872 = vmatmul.mubr.msk.f32.vlgmr.msra.gmra.mrb[0].mxu0 %vm499_vm2, %v417_v15 }
  0xe7   : > { %861 = vmatmul.mubr.msk.f32.vlgmr.msra.gmra.mrb[2].mxu1 %vm347_vm1, %v346_v8  ;;  %902 = vmatprep.subr.bf16.mxu1 %v935_v4 }
  0xe8   : > { %904 = vmatpush3.bf16.msra.mxu1 %v903_v14  ;;  %882 = vmatprep.mubr.msk.f32.mxu1 %vm934_vm0, %v933_v0 }
  0xe9   : > { %905 = vmatprep.subr.bf16.mxu1 %v935_v4  ;;  %910 = vmatpush3.bf16.msra.mxu0 %v909_v18 }
  0xea   : > { %911 = vmatprep.subr.bf16.mxu0 %v935_v4  ;;  %893 = vmatprep.mubr.msk.f32.mxu0 %vm934_vm0, %v933_v0 }
  0xec   : > { %907 = vmatpush3.bf16.msra.mxu1 %v906_v22 }
  0xed   : > { %913 = vmatpush3.bf16.msra.mxu0 %v912_v23 }
  0xef   : > { %883 = vmatmul.mubr.msk.f32.vlgmr.msra.gmra.mrb[4].mxu1 %vm499_vm2, %v345_v9 }
 0x1b9   : > { %v569_v24 = vpop.f32.mrb[0].mxu0 }
 0x1ba   : > { %v487_v25 = vpop.f32.mrb[2].mxu1  ;;  %v873_v26 = vpop.f32.mrb[1].mxu0 }
 0x1bb   : > { %894 = vmatmul.mubr.msk.f32.vlgmr.msra.gmra.mrb[2].mxu0 %vm499_vm2, %v487_v25  ;;  %v862_v27 = vpop.f32.mrb[3].mxu1 }
 0x1c2   : > { %v642_v28 = vpop.f32.mrb[4].mxu1 }
 0x1c3   : > { %v643_v29 = vadd.f32 %v642_v28, %v569_v24  ;;  %v884_v30 = vpop.f32.mrb[5].mxu1 }
 0x28e   : > { %v719_v31 = vpop.f32.mrb[2].mxu0 }
 0x28f   : > { %v723_v33 = vadd.f32 %v719_v31, %v643_v29  ;;  %v895_v34 = vpop.f32.mrb[3].mxu0 }
 0x291   : > { %v731_v36 = vadd.f32 %v829_v32, %v723_v33 }
 0x293   : > { %v733_v38 = vadd.f32 %v732_v35, %v731_v36 }
 0x295   : > { %v741_v40 = vmul.f32 %v830_v37, %v733_v38 }
 0x297   : > { %v749_v41 = vadd.f32 %v831_v39, %v741_v40 }
 0x299   : > { %750 = vst.msk [vmem:[%s344_s13] sm:$0xff] %vm499_vm2, %v749_v41 }
 0x29a PF: > { %s19_s30 = sadd.s32 1, %s931_s30  }
 0x29b   : > { %p16_p4 = scmp.ge.s32.totalorder %s19_s30, 8  }
 0x29d   :  { %18 = sbr.rel (!%p16_p4) target bundleno = 1 (0x1), region = 89 }

// kernel: _lambda_.34
= control target key start
LH: loop header
LB: loop body
LE: loop exit
PB: predicated region body
PF: predicated region fallthrough
CT: control target
= control target key end

     0   :  { %vm44_vm0 = vcmask 261120   ;;  %s628_s0 = inlined_call_operand.vmem [shape: f32[16,32], index: 0, kind: input, shape index: {}]   ;;  %s629_s1 = inlined_call_operand.vmem [shape: f32[16,32], index: 1, kind: input, shape index: {}]   ;;  %s630_s2 = inlined_call_operand.vmem [shape: f32[32,64], index: 2, kind: input, shape index: {}]   ;;  %s631_s3 = inlined_call_operand.vmem [shape: f32[32,64], index: 3, kind: input, shape index: {}]   ;;  %s632_s4 = inlined_call_operand.vmem [shape: f32[1,64], index: 4, kind: input, shape index: {}]   ;;  %s633_s5 = inlined_call_operand.vmem [shape: f32[32,64], index: 5, kind: input, shape index: {}]   ;;  %s634_s6 = inlined_call_operand.vmem [shape: f32[1,64], index: 6, kind: input, shape index: {}]   ;;  %s635_s7 = inlined_call_operand.vmem [shape: f32[16,64], index: 7, kind: input, shape index: {}]   ;;  %s636_s8 = inlined_call_operand.hbm [shape: f32[16,32], index: 8, kind: output, shape index: {0}]   ;;  %s637_s9 = inlined_call_operand.vmem [shape: f32[16,64], index: 9, kind: output, shape index: {1}]  }
   0x1   :  { %v40_v0 = vld [vmem:[%s631_s3] sm:$0xff]  ;;  %v41_v1 = vld [vmem:[%s631_s3 + $0x8] sm:$0xff]  ;;  %v42_v2 = vld [vmem:[%s631_s3 + $0x10] sm:$0xff] }
   0x2   :  { %v422_v3 = vpack.c.bf16 %v41_v1, %v40_v0  ;;  %v43_v4 = vld [vmem:[%s631_s3 + $0x18] sm:$0xff]  ;;  %v38_v5 = vld [vmem:[%s629_s1] sm:$0xff]  ;;  %v35_v8 = vld [vmem:[%s630_s2 + $0x8] sm:$0xff] }
   0x3   :  { %v426_v6 = vpack.c.bf16 %v43_v4, %v42_v2  ;;  %397 = vmatprep.mubr.msk.f32.mxu0 %vm44_vm0, %v38_v5  ;;  %v34_v7 = vld [vmem:[%s630_s2] sm:$0xff] }
   0x4   :  { %423 = vmatprep.subr.bf16.mxu0 %v422_v3 }
   0x5   :  { %425 = vmatpush3.bf16.msra.mxu0 %v422_v3 }
   0x6   :  { %15 = vsyncpa [#allocation3], 0  ;;  %427 = vmatprep.subr.bf16.mxu0 %v426_v6  ;;  %v430_v9 = vpack.c.bf16 %v35_v8, %v34_v7  ;;  %v36_v10 = vld [vmem:[%s630_s2 + $0x10] sm:$0xff]  ;;  %v37_v11 = vld [vmem:[%s630_s2 + $0x18] sm:$0xff] }
   0x7   :  { %v39_v12 = vld [vmem:[%s629_s1 + $0x8] sm:$0xff]  ;;  %v434_v13 = vpack.c.bf16 %v37_v11, %v36_v10  ;;  %v32_v14 = vld [vmem:[%s628_s0] sm:$0xff]  ;;  %v244_v28 = vld [vmem:[%s633_s5 + $0x10] sm:$0xff] }
   0x8   :  { %v33_v15 = vld [vmem:[%s628_s0 + $0x8] sm:$0xff]  ;;  %v242_v16 = vld [vmem:[%s633_s5] sm:$0xff]  ;;  %v245_v29 = vld [vmem:[%s633_s5 + $0x18] sm:$0xff] }
   0x9   :  { %429 = vmatpush3.bf16.msra.mxu0 %v426_v6  ;;  %v243_v17 = vld [vmem:[%s633_s5 + $0x8] sm:$0xff]  ;;  %v365_v19 = vld [vmem:[%s632_s4] ss:$0 sm:$0xff]  ;;  %v442_v31 = vpack.c.bf16 %v245_v29, %v244_v28  ;;  %s488_s4 = smov 96   ;;  %s489_s5 = smov [#allocation2]  }
   0xa   :  { %431 = vmatprep.subr.bf16.mxu0 %v430_v9  ;;  %v438_v18 = vpack.c.bf16 %v243_v17, %v242_v16  ;;  %s346_s18 = sshll.u32 %s489_s5, 4  ;;  %s347_s18 = int_to_ptr.vmem [resolvable:$true] %s346_s18 }
   0xb   :  { %s464_s19 = scalar_lea.vmem %s347_s18, 256  ;;  %p469_p1 = scmp.lt.s32.totalorder %s347_s18, %s347_s18 }
   0xc   :  { %398 = vmatmul.mubr.msk.f32.vlgmr.msra.gmra.mrb[0].mxu0 %vm44_vm0, %v39_v12  ;;  %439 = vmatprep.subr.bf16.mxu1 %v438_v18  ;;  %p465_p0 = scmp.ne.s32.totalorder %s347_s18, %s464_s19  ;;  %p470_p2 = scmp.lt.s32.totalorder %s464_s19, %s464_s19 }
   0xd   :  { %433 = vmatpush3.bf16.msra.mxu0 %v430_v9  ;;  %408 = vmatprep.mubr.msk.f32.mxu0 %vm44_vm0, %v32_v14 }
   0xe   :  { %435 = vmatprep.subr.bf16.mxu0 %v434_v13  ;;  %441 = vmatpush3.bf16.msra.mxu1 %v438_v18  ;;  %p471_p3 = por %p470_p2, %p469_p1 }
   0xf   :  { %443 = vmatprep.subr.bf16.mxu1 %v442_v31 }
  0x10   :  { %p472_p4 = pnand %p471_p3, %p465_p0 }
  0x11   :  { %437 = vmatpush3.bf16.msra.mxu0 %v434_v13 }
  0x12   :  { %445 = vmatpush3.bf16.msra.mxu1 %v442_v31 }
  0x14   :  { %409 = vmatmul.mubr.msk.f32.vlgmr.msra.gmra.mrb[0].mxu0 %vm44_vm0, %v33_v15 }
  0xe7   :  { %v410_v20 = vpop.f32.mrb[0].mxu0 }
  0xe8   :  { %v215_v21 = vadd.f32 %v410_v20, %v365_v19  ;;  %v198_v22 = vpop.f32.mrb[1].mxu0 }
  0xe9   :  { %v214_v23 = vadd.f32 %v365_v19, %v198_v22 }
  0xea   :  { %v367_v24 = vmul.f32 -1.442695, %v215_v21 }
  0xeb   :  { %v366_v25 = vmul.f32 -1.442695, %v214_v23 }
  0xec   :  { %452 = vpow2.f32 %v367_v24 }
  0xed   :  { %454 = vpow2.f32 %v366_v25 }
  0xf6   :  { %v453_v26 = vpop.eup %452 }
  0xf7   :  { %v455_v27 = vpop.eup %454  ;;  %v225_v32 = vadd.f32 1.0, %v453_v26 }
  0xf8   :  { %v224_v30 = vadd.f32 1.0, %v455_v27 }
  0xfa   :  { %456 = vrcp.f32 %v224_v30 }
  0xfb   :  { %458 = vrcp.f32 %v225_v32 }
  0xfc   :  { %460 = vtanh.f32 %v214_v23 }
  0xfd   :  { %462 = vtanh.f32 %v215_v21 }
 0x104   :  { %v457_v33 = vpop.eup %456 }
 0x105   :  { %232 = vrot.lane.b32.xlu0 %v457_v33, %s488_s4  ;;  %v459_v34 = vpop.eup %458 }
 0x106   :  { %v461_v35 = vpop.eup %460 }
 0x107   :  { %v463_v38 = vpop.eup %462 }
 0x109   :  { %234 = vrot.lane.b32.xlu0 %v459_v34, %s488_s4 }
 0x177   :  { %v233_v36 = vpop.permute.xlu0 %232 }
 0x178   :  { %v238_v37 = vmul.f32 %v461_v35, %v233_v36 }
 0x17a   :  { %240 = vst.msk [vmem:[#allocation2] sm:$0xff] %vm44_vm0, %v238_v37  ;;  %419 = vmatprep.mubr.msk.f32.mxu1 %vm44_vm0, %v238_v37 }
 0x17b   :  { %v235_v39 = vpop.permute.xlu0 %234 }
 0x17c   :  { %v239_v40 = vmul.f32 %v463_v38, %v235_v39 }
 0x17e   :  { %241 = vst.msk [vmem:[#allocation2 + $0x8] sm:$0xff] %vm44_vm0, %v239_v40  ;;  %420 = vmatmul.mubr.msk.f32.vlgmr.msra.gmra.mrb[0].mxu1 %vm44_vm0, %v239_v40 }
 0x17f   :  { %475 = shalt.err (!%p472_p4)
}
 0x180   :  { %s476_s22 = scalar_lea.hbm %s636_s8, 256 }
 0x181   :  { %p477_p5 = scmp.ne.s32.totalorder %s636_s8, %s476_s22  ;;  %p480_p6 = scmp.lt.u32.totalorder %s476_s22, %s636_s8 }
 0x183   :  { %p482_p7 = pnand %p480_p6, %p477_p5 }
 0x185   :  { %485 = shalt.err (!%p482_p7)
}
 0x186   :  { %s490_s26 = smov 128   ;;  %s491_s27 = smov 8   ;;  %v368_v41 = vld [vmem:[%s634_s6] ss:$0 sm:$0xff]  ;;  %v335_v43 = vld [vmem:[%s635_s7 + $0x8] sm:$0xff]  ;;  %vm338_vm1 = vcmask 523264  }
 0x187   :  { %352 = dma.vmem_to_hbm [thread:$0]  %s347_s18, 256, %s636_s8, [#allocation3], %s490_s26, %s490_s26, %s491_s27  }
 0x188   :  { %v334_v46 = vld [vmem:[%s635_s7] sm:$0xff] }
 0x251   :  { %v421_v42 = vpop.f32.mrb[0].mxu1 }
 0x252   :  { %v331_v44 = vadd.f32 %v421_v42, %v368_v41  ;;  %v325_v45 = vpop.f32.mrb[1].mxu1 }
 0x253   :  { %v326_v47 = vadd.f32 %v368_v41, %v325_v45 }
 0x254   :  { %v337_v48 = vadd.f32 %v335_v43, %v331_v44 }
 0x255   :  { %v336_v49 = vadd.f32 %v334_v46, %v326_v47 }
 0x256   :  { %340 = vst.msk [vmem:[%s637_s9 + $0x8] sm:$0xff] %vm338_vm1, %v337_v48 }
 0x257   :  { %339 = vst.msk [vmem:[%s637_s9] sm:$0xff] %vm338_vm1, %v336_v49 }
 0x258   :  { %486 = dma.done.wait [#allocation3], 256  }
 0x259   :  { %487 = vsyncadd [#allocation3], 4294967040 }
 0x25a   :  { %360 = vsyncpa [#allocation3], 1 }

// kernel: _lambda_.35
= control target key start
LH: loop header
LB: loop body
LE: loop exit
PB: predicated region body
PF: predicated region fallthrough
CT: control target
= control target key end

     0   :  { %vm40_vm0 = vcmask 523264   ;;  %s533_s0 = inlined_call_operand.vmem [shape: f32[16,64], index: 0, kind: input, shape index: {}]   ;;  %s534_s1 = inlined_call_operand.vmem [shape: f32[64,128], index: 1, kind: input, shape index: {}]   ;;  %s535_s2 = inlined_call_operand.vmem [shape: f32[1,128], index: 2, kind: input, shape index: {}]   ;;  %s536_s3 = inlined_call_operand.vmem [shape: f32[128,12], index: 3, kind: input, shape index: {}]   ;;  %s537_s4 = inlined_call_operand.vmem [shape: f32[1,12], index: 4, kind: input, shape index: {}]   ;;  %s538_s5 = inlined_call_operand.hbm [shape: f32[16,12], index: 5, kind: output, shape index: {}]  }
   0x1   :  { %v25_v0 = vld [vmem:[%s534_s1] sm:$0xff]  ;;  %v26_v1 = vld [vmem:[%s534_s1 + $0x8] sm:$0xff]  ;;  %v27_v2 = vld [vmem:[%s534_s1 + $0x10] sm:$0xff] }
   0x2   :  { %v327_v3 = vpack.c.bf16 %v26_v1, %v25_v0  ;;  %v28_v4 = vld [vmem:[%s534_s1 + $0x18] sm:$0xff]  ;;  %v29_v6 = vld [vmem:[%s534_s1 + $0x20] sm:$0xff]  ;;  %v30_v7 = vld [vmem:[%s534_s1 + $0x28] sm:$0xff] }
   0x3   :  { %v331_v5 = vpack.c.bf16 %v28_v4, %v27_v2  ;;  %v21_v8 = vld [vmem:[%s533_s0] sm:$0xff]  ;;  %v125_v11 = vld [vmem:[%s536_s3 + $0x8] sm:$0xff]  ;;  %v126_v13 = vld [vmem:[%s536_s3 + $0x10] sm:$0xff]  ;;  %v335_v15 = vpack.c.bf16 %v30_v7, %v29_v6 }
   0x4   :  { %328 = vmatprep.subr.bf16.mxu0 %v327_v3  ;;  %v23_v9 = vmax.f32 %v21_v8, 0.0  ;;  %v124_v10 = vld [vmem:[%s536_s3] sm:$0xff]  ;;  %v127_v14 = vld [vmem:[%s536_s3 + $0x18] sm:$0xff]  ;;  %v129_v18 = vld [vmem:[%s536_s3 + $0x28] sm:$0xff] }
   0x5   :  { %330 = vmatpush3.bf16.msra.mxu0 %v327_v3  ;;  %v343_v12 = vpack.c.bf16 %v125_v11, %v124_v10  ;;  %v347_v16 = vpack.c.bf16 %v127_v14, %v126_v13  ;;  %v128_v17 = vld [vmem:[%s536_s3 + $0x20] sm:$0xff]  ;;  %v31_v19 = vld [vmem:[%s534_s1 + $0x30] sm:$0xff]  ;;  %v32_v20 = vld [vmem:[%s534_s1 + $0x38] sm:$0xff] }
   0x6   :  { %332 = vmatprep.subr.bf16.mxu0 %v331_v5  ;;  %289 = vmatprep.mubr.msk.f32.mxu0 %vm40_vm0, %v23_v9  ;;  %v351_v21 = vpack.c.bf16 %v129_v18, %v128_v17 }
   0x7   :  { %344 = vmatprep.subr.bf16.mxu1 %v343_v12 }
   0x8   :  { %346 = vmatpush3.bf16.msra.mxu1 %v343_v12 }
   0x9   :  { %334 = vmatpush3.bf16.msra.mxu0 %v331_v5  ;;  %348 = vmatprep.subr.bf16.mxu1 %v347_v16 }
   0xa   :  { %10 = vsyncpa [#allocation3], 0  ;;  %336 = vmatprep.subr.bf16.mxu0 %v335_v15  ;;  %v339_v22 = vpack.c.bf16 %v32_v20, %v31_v19  ;;  %v130_v23 = vld [vmem:[%s536_s3 + $0x30] sm:$0xff]  ;;  %v131_v24 = vld [vmem:[%s536_s3 + $0x38] sm:$0xff]  ;;  %vm222_vm1 = vcmask 97280  }
   0xb   :  { %v22_v25 = vld [vmem:[%s533_s0 + $0x8] sm:$0xff]  ;;  %v355_v26 = vpack.c.bf16 %v131_v24, %v130_v23  ;;  %v132_v27 = vld [vmem:[%s536_s3 + $0x40] sm:$0xff]  ;;  %v134_v31 = vld [vmem:[%s536_s3 + $0x50] sm:$0xff] }
   0xc   :  { %350 = vmatpush3.bf16.msra.mxu1 %v347_v16  ;;  %v133_v28 = vld [vmem:[%s536_s3 + $0x48] sm:$0xff]  ;;  %v24_v29 = vmax.f32 %v22_v25, 0.0  ;;  %v135_v32 = vld [vmem:[%s536_s3 + $0x58] sm:$0xff]  ;;  %v136_v34 = vld [vmem:[%s536_s3 + $0x60] sm:$0xff] }
   0xd   :  { %338 = vmatpush3.bf16.msra.mxu0 %v335_v15  ;;  %352 = vmatprep.subr.bf16.mxu1 %v351_v21  ;;  %v359_v30 = vpack.c.bf16 %v133_v28, %v132_v27  ;;  %v363_v33 = vpack.c.bf16 %v135_v32, %v134_v31  ;;  %v137_v35 = vld [vmem:[%s536_s3 + $0x68] sm:$0xff]  ;;  %v138_v37 = vld [vmem:[%s536_s3 + $0x70] sm:$0xff]  ;;  %v139_v38 = vld [vmem:[%s536_s3 + $0x78] sm:$0xff]  ;;  %s402_s3 = smov [#allocation2]  }
   0xe   :  { %340 = vmatprep.subr.bf16.mxu0 %v339_v22  ;;  %v367_v36 = vpack.c.bf16 %v137_v35, %v136_v34  ;;  %v371_v39 = vpack.c.bf16 %v139_v38, %v138_v37  ;;  %v241_v40 = vld [vmem:[%s535_s2] ss:$0 sm:$0xff]  ;;  %s230_s22 = sshll.u32 %s402_s3, 4  ;;  %s231_s22 = int_to_ptr.vmem [resolvable:$true] %s230_s22 }
   0xf   :  { %v244_v47 = vld [vmem:[%s537_s4] ss:$0 sm:$0xff]  ;;  %s378_s2 = scalar_lea.vmem %s231_s22, 256  ;;  %p383_p1 = scmp.lt.s32.totalorder %s231_s22, %s231_s22 }
  0x10   :  { %354 = vmatpush3.bf16.msra.mxu1 %v351_v21  ;;  %p379_p0 = scmp.ne.s32.totalorder %s231_s22, %s378_s2  ;;  %p384_p2 = scmp.lt.s32.totalorder %s378_s2, %s378_s2 }
  0x11   :  { %342 = vmatpush3.bf16.msra.mxu0 %v339_v22  ;;  %356 = vmatprep.subr.bf16.mxu1 %v355_v26 }
  0x12   :  { %p385_p3 = por %p384_p2, %p383_p1 }
  0x14   :  { %290 = vmatmul.mubr.msk.f32.vlgmr.msra.gmra.mrb[0].mxu0 %vm40_vm0, %v24_v29  ;;  %358 = vmatpush3.bf16.msra.mxu1 %v355_v26  ;;  %p386_p4 = pnand %p385_p3, %p379_p0 }
  0x15   :  { %360 = vmatprep.subr.bf16.mxu1 %v359_v30 }
  0x18   :  { %362 = vmatpush3.bf16.msra.mxu1 %v359_v30 }
  0x19   :  { %364 = vmatprep.subr.bf16.mxu1 %v363_v33 }
  0x1c   :  { %366 = vmatpush3.bf16.msra.mxu1 %v363_v33 }
  0x1d   :  { %368 = vmatprep.subr.bf16.mxu1 %v367_v36 }
  0x20   :  { %370 = vmatpush3.bf16.msra.mxu1 %v367_v36 }
  0x21   :  { %372 = vmatprep.subr.bf16.mxu1 %v371_v39 }
  0x24   :  { %374 = vmatpush3.bf16.msra.mxu1 %v371_v39 }
  0xe7   :  { %v291_v41 = vpop.f32.mrb[0].mxu0 }
  0xe8   :  { %v119_v42 = vadd.f32 %v291_v41, %v241_v40  ;;  %v113_v43 = vpop.f32.mrb[1].mxu0 }
  0xe9   :  { %v114_v44 = vadd.f32 %v241_v40, %v113_v43 }
  0xea   :  { %v123_v46 = vmax.f32 %v119_v42, 0.0 }
  0xeb   :  { %v122_v45 = vmax.f32 %v114_v44, 0.0 }
  0xed   :  { %324 = vmatprep.mubr.f32.mxu1 %v122_v45 }
  0xee   :  { %325 = vmatmul.mubr.f32.vlgmr.msra.gmra.mrb[0].mxu1 %v123_v46 }
 0x1c1   :  { %v326_v48 = vpop.f32.mrb[0].mxu1 }
 0x1c2   :  { %v219_v49 = vadd.f32 %v326_v48, %v244_v47  ;;  %v213_v50 = vpop.f32.mrb[1].mxu1 }
 0x1c3   :  { %v214_v51 = vadd.f32 %v244_v47, %v213_v50 }
 0x1c4   :  { %224 = vst.msk [vmem:[#allocation2 + $0x8] sm:$0xff] %vm222_vm1, %v219_v49 }
 0x1c5   :  { %223 = vst.msk [vmem:[#allocation2] sm:$0xff] %vm222_vm1, %v214_v51 }
 0x1c6   :  { %389 = shalt.err (!%p386_p4)
}
 0x1c7   :  { %s390_s4 = scalar_lea.hbm %s538_s5, 256 }
 0x1c8   :  { %p391_p5 = scmp.ne.s32.totalorder %s538_s5, %s390_s4  ;;  %p394_p6 = scmp.lt.u32.totalorder %s390_s4, %s538_s5 }
 0x1ca   :  { %p396_p7 = pnand %p394_p6, %p391_p5 }
 0x1cc   :  { %399 = shalt.err (!%p396_p7)
}
 0x1cd   :  { %s403_s28 = smov 128   ;;  %s404_s29 = smov 8  }
 0x1ce   :  { %236 = dma.vmem_to_hbm [thread:$0]  %s231_s22, 256, %s538_s5, [#allocation3], %s403_s28, %s403_s28, %s404_s29  }
 0x1cf   :  { %400 = dma.done.wait [#allocation3], 256  }
 0x1d0   :  { %401 = vsyncadd [#allocation3], 4294967040 }
 0x1d1   :  { %240 = vsyncpa [#allocation3], 1 }

</bundles_post_ra>
